<compile_context>
chip_gen: v6e
topology: v6e:2x2x1
jax: 0.10.0
libtpu: 0.0.40
codegen_flags: <defaults>
</compile_context>

<pallas_src>
import math
import jax
import jax.numpy as jnp
from jax.experimental import pallas as pl
from jax.experimental.pallas import tpu as pltpu


# ----------------------------- Pallas kernel --------------------------------
def _intent_edge_kernel(x_ref, iq_ref, sq_ref, et_ref,
                        wka_ref, wkb_ref, bk_ref,
                        w1f_ref, w1d_ref, b1_ref, w2_ref, b2_ref,
                        m_item_ref, m_user_ref):
    D = m_item_ref.shape[-1]
    x = x_ref[...]                              # [TE, (2+Lu)*D]  bf16
    src_bf = x[:, :D]                           # [TE, D]   (user h per edge)
    dst_bf = x[:, D:2 * D]                      # [TE, D]   (item h per edge)
    uq_bf = x[:, 2 * D:]                        # [TE, Lu*D]

    # ---- linear_K over [src_h | userquery_flat]  (K = D and K = Lu*D, MXU bf16).
    #      The attention scale 1/sqrt(D) is pre-folded into wka/wkb/bk.
    key = (jnp.dot(src_bf, wka_ref[...], preferred_element_type=jnp.float32)
           + jnp.dot(uq_bf, wkb_ref[...], preferred_element_type=jnp.float32)
           + bk_ref[...])                        # [TE, D] f32 (already scaled)

    # ---- item_query_attn: scaled dot-product attention (f32 VPU/XLU + EUP recip) ----
    iq = iq_ref[...].astype(jnp.float32)                      # [TE, Li, D]
    scores = jnp.sum(iq * key[:, None, :], axis=-1)           # [TE, Li]
    scores = scores - jnp.max(scores, axis=-1, keepdims=True)
    p = jnp.exp(scores)
    inv = pl.reciprocal(jnp.sum(p, axis=-1, keepdims=True), approx=True)
    iq_emb = jnp.sum(p[:, :, None] * iq, axis=1) * inv        # [TE, D] f32

    # ---- demand_mlp: fused front matmul (K=(2+Lu)*D) + iq term (K=D), ReLU, out ----
    h1 = (jnp.dot(x, w1f_ref[...], preferred_element_type=jnp.float32)
          + jnp.dot(iq_emb.astype(jnp.bfloat16), w1d_ref[...],
                    preferred_element_type=jnp.float32)
          + b1_ref[...])                                       # [TE, H]
    h1 = jnp.maximum(h1, 0.0)
    rec_q = (jnp.dot(h1.astype(jnp.bfloat16), w2_ref[...],
                     preferred_element_type=jnp.float32) + b2_ref[...])   # [TE, D]

    # ---- q_e: type==0 -> recommend, type==1 -> search, else 0 (exact semantics) ----
    et = et_ref[...]                                           # [TE, 1] int32
    sq = sq_ref[...]                                           # [TE, D] f32
    q_e = jnp.where(et == 0, rec_q, jnp.where(et == 1, sq, jnp.zeros_like(sq)))

    # ---- per-edge messages (segment-mean aggregation done outside the kernel) ----
    m_item_ref[...] = src_bf.astype(jnp.float32) + q_e         # uqi: u_add_e
    m_user_ref[...] = dst_bf.astype(jnp.float32) - q_e         # iqu: u_sub_e


# ------------------------------ wrapper --------------------------------------
def intent_graph_forward(user_emb, item_emb, query_table,
                         u_idx, i_idx, edge_type,
                         query_ids, userquery_ids, itemquery_ids,
                         params, *, tile_e=128):
    E = u_idx.shape[0]
    NU, D = user_emb.shape
    NI, _ = item_emb.shape
    Lu = userquery_ids.shape[1]
    Li = itemquery_ids.shape[1]
    H = params['w1a'].shape[1]

    # ---- glue: embedding gathers (per-edge rows), kept outside the kernel ----
    # TODO(synk): move these gathers in-kernel via scalar-prefetched indices + DMA
    # gather to avoid the HBM round-trip of the gathered copies at production sizes.
    src_h = user_emb[u_idx]                                    # [E, D]
    dst_h = item_emb[i_idx]                                    # [E, D]
    uq_flat = query_table[userquery_ids].reshape(E, Lu * D)    # [E, Lu*D]
    iq = query_table[itemquery_ids]                            # [E, Li, D]
    sq_sum = jnp.sum(query_table[query_ids], axis=-2)          # [E, D]

    x = jnp.concatenate([src_h, dst_h, uq_flat], axis=1).astype(jnp.bfloat16)
    iq_bf = iq.astype(jnp.bfloat16)
    sq = sq_sum.astype(jnp.float32)
    et = edge_type.astype(jnp.int32)[:, None]                  # [E, 1]

    # ---- packed / fused weights (bf16 MXU operands; f32 biases) ----
    # fold the attention scale 1/sqrt(D) into linear_K (key only feeds attention)
    attn_scale = 1.0 / math.sqrt(float(D))
    wk_a = (params['wk_a'] * attn_scale).astype(jnp.bfloat16)  # [D, D]
    wk_b = (params['wk_b'] * attn_scale).astype(jnp.bfloat16)  # [Lu*D, D]
    bk = (params['bk'] * attn_scale).astype(jnp.float32)       # [1, D]
    w1f = jnp.concatenate(
        [params['w1a'], params['w1b'],
         jnp.concatenate([params['w1c']] * Lu, axis=0)],
        axis=0).astype(jnp.bfloat16)                           # [(2+Lu)*D, H]
    w1d = params['w1d'].astype(jnp.bfloat16)                   # [D, H]
    w2 = params['w2'].astype(jnp.bfloat16)                     # [H, D]
    b1, b2 = params['b1'], params['b2']                        # f32 [1, *]

    # ---- pad edge count to a multiple of the edge tile ----
    TE = tile_e
    E_pad = ((E + TE - 1) // TE) * TE
    pad = E_pad - E
    if pad:
        x = jnp.pad(x, ((0, pad), (0, 0)))
        iq_bf = jnp.pad(iq_bf, ((0, pad), (0, 0), (0, 0)))
        sq = jnp.pad(sq, ((0, pad), (0, 0)))
        et = jnp.pad(et, ((0, pad), (0, 0)), constant_values=-1)

    def edge_spec(shape):
        nd = len(shape)
        return pl.BlockSpec(shape, lambda e, _nd=nd: (e,) + (0,) * (_nd - 1))

    def full_spec(shape):
        nd = len(shape)
        return pl.BlockSpec(shape, lambda e, _nd=nd: (0,) * _nd)

    m_item, m_user = pl.pallas_call(
        _intent_edge_kernel,
        out_shape=(jax.ShapeDtypeStruct((E_pad, D), jnp.float32),
                   jax.ShapeDtypeStruct((E_pad, D), jnp.float32)),
        grid=(E_pad // TE,),
        in_specs=[
            edge_spec((TE, (2 + Lu) * D)),        # x
            edge_spec((TE, Li, D)),               # item-query embeddings
            edge_spec((TE, D)),                   # search query sum
            edge_spec((TE, 1)),                   # edge type
            full_spec((D, D)), full_spec((Lu * D, D)), full_spec((1, D)),
            full_spec(((2 + Lu) * D, H)), full_spec((D, H)), full_spec((1, H)),
            full_spec((H, D)), full_spec((1, D)),
        ],
        out_specs=(edge_spec((TE, D)), edge_spec((TE, D))),
        compiler_params=pltpu.CompilerParams(
            dimension_semantics=("parallel",),
            vmem_limit_bytes=64 * 1024 * 1024),
    )(x, iq_bf, sq, et, wk_a, wk_b, bk, w1f, w1d, b1, w2, b2)

    m_item = m_item[:E]
    m_user = m_user[:E]

    # ---- segment-mean aggregation (scatter-add glue; replaces one-hot adj matmuls) ----
    deg_i = jnp.zeros((NI,), jnp.float32).at[i_idx].add(1.0)
    deg_u = jnp.zeros((NU,), jnp.float32).at[u_idx].add(1.0)
    item_new = (jnp.zeros((NI, D), jnp.float32).at[i_idx].add(m_item)
                / jnp.maximum(deg_i, 1.0)[:, None])
    user_new = (jnp.zeros((NU, D), jnp.float32).at[u_idx].add(m_user)
                / jnp.maximum(deg_u, 1.0)[:, None])
    return user_new, item_new


# ------------------------------ pure-JAX f32 reference ------------------------
def _reference(user_emb, item_emb, query_table, u_idx, i_idx, edge_type,
               query_ids, userquery_ids, itemquery_ids, p):
    E = u_idx.shape[0]
    D = user_emb.shape[1]
    src_h = user_emb[u_idx]
    dst_h = item_emb[i_idx]
    q_embs = query_table[query_ids]
    uq_embs = query_table[userquery_ids]
    iq_embs = query_table[itemquery_ids]
    sq_sum = jnp.sum(q_embs, axis=-2)
    uq_sum = jnp.sum(uq_embs, axis=1)
    key = src_h @ p['wk_a'] + uq_embs.reshape(E, -1) @ p['wk_b'] + p['bk']
    scores = jnp.einsum('eld,ed->el', iq_embs, key) / math.sqrt(D)
    attn = jax.nn.softmax(scores, axis=-1)
    iq_emb = jnp.einsum('el,eld->ed', attn, iq_embs)
    h1 = jax.nn.relu(src_h @ p['w1a'] + dst_h @ p['w1b'] + uq_sum @ p['w1c']
                     + iq_emb @ p['w1d'] + p['b1'])
    rec_q = h1 @ p['w2'] + p['b2']
    rec_mask = (edge_type == 0).astype(jnp.float32)[:, None]
    sea_mask = (edge_type == 1).astype(jnp.float32)[:, None]
    q_e = rec_mask * rec_q + sea_mask * sq_sum
    NI, NU = item_emb.shape[0], user_emb.shape[0]
    deg_i = jnp.zeros((NI,)).at[i_idx].add(1.0)
    deg_u = jnp.zeros((NU,)).at[u_idx].add(1.0)
    item_new = jnp.zeros((NI, D)).at[i_idx].add(src_h + q_e) / jnp.maximum(deg_i, 1.0)[:, None]
    user_new = jnp.zeros((NU, D)).at[u_idx].add(dst_h - q_e) / jnp.maximum(deg_u, 1.0)[:, None]
    return user_new, item_new


# ---------------------------------- main -------------------------------------
if __name__ == "__main__":
    D = 128          # node / query embedding dim (lane-dense)
    H = 128          # demand_mlp hidden dim
    NU, NI = 8, 12   # users, items
    E = 50           # uqi edges (iqu edges are their reverses, share q_e)
    Lq, Lu, Li = 4, 3, 3
    V = 64           # query vocab

    key = jax.random.PRNGKey(0)
    ks = jax.random.split(key, 20)

    user_emb = jax.random.normal(ks[0], (NU, D), jnp.float32)
    item_emb = jax.random.normal(ks[1], (NI, D), jnp.float32)
    query_table = jax.random.normal(ks[2], (V, D), jnp.float32) * 0.5

    u_idx = jax.random.randint(ks[3], (E,), 0, NU)
    i_idx = jax.random.randint(ks[4], (E,), 0, NI)
    edge_type = jax.random.randint(ks[5], (E,), 0, 2)       # 0=recommend, 1=search
    query_ids = jax.random.randint(ks[6], (E, Lq), 0, V)
    userquery_ids = jax.random.randint(ks[7], (E, Lu), 0, V)
    itemquery_ids = jax.random.randint(ks[8], (E, Li), 0, V)

    def init(k, shape, fan_in):
        return jax.random.normal(k, shape, jnp.float32) / math.sqrt(fan_in)

    params = {
        # linear_K: [D + Lu*D] -> D, stored as two row blocks
        'wk_a': init(ks[9], (D, D), D + Lu * D),
        'wk_b': init(ks[10], (Lu * D, D), D + Lu * D),
        'bk': 0.1 * jax.random.normal(ks[16], (1, D), jnp.float32),
        # demand_mlp layer 1: [4D] -> H, stored as four row blocks
        'w1a': init(ks[11], (D, H), 4 * D),
        'w1b': init(ks[12], (D, H), 4 * D),
        'w1c': init(ks[13], (D, H), 4 * D),
        'w1d': init(ks[14], (D, H), 4 * D),
        'b1': 0.1 * jax.random.normal(ks[17], (1, H), jnp.float32),
        # demand_mlp layer 2: H -> D
        'w2': init(ks[15], (H, D), H),
        'b2': 0.1 * jax.random.normal(ks[18], (1, D), jnp.float32),
    }

    user_new, item_new = intent_graph_forward(
        user_emb, item_emb, query_table, u_idx, i_idx, edge_type,
        query_ids, userquery_ids, itemquery_ids, params, tile_e=128)
    jax.block_until_ready((user_new, item_new))

    ref_u, ref_i = _reference(user_emb, item_emb, query_table, u_idx, i_idx,
                              edge_type, query_ids, userquery_ids, itemquery_ids, params)

    # bf16 MXU operands + approx reciprocal -> compare against f32 reference with
    # a bf16-appropriate tolerance.
    assert jnp.allclose(user_new, ref_u, atol=5e-2, rtol=5e-2), "user mismatch"
    assert jnp.allclose(item_new, ref_i, atol=5e-2, rtol=5e-2), "item mismatch"

    print("KERNEL_OK")
</pallas_src>

<mosaic_0001>
module attributes {stable_mosaic.version = 11 : i64} {
  func.func @_intent_edge_kernel(%arg0: i32, %arg1: memref<128x640xbf16, #tpu.memory_space<vmem>>, %arg2: memref<128x3x128xbf16, #tpu.memory_space<vmem>>, %arg3: memref<128x128xf32, #tpu.memory_space<vmem>>, %arg4: memref<128x1xi32, #tpu.memory_space<vmem>>, %arg5: memref<128x128xbf16, #tpu.memory_space<vmem>>, %arg6: memref<384x128xbf16, #tpu.memory_space<vmem>>, %arg7: memref<1x128xf32, #tpu.memory_space<vmem>>, %arg8: memref<640x128xbf16, #tpu.memory_space<vmem>>, %arg9: memref<128x128xbf16, #tpu.memory_space<vmem>>, %arg10: memref<1x128xf32, #tpu.memory_space<vmem>>, %arg11: memref<128x128xbf16, #tpu.memory_space<vmem>>, %arg12: memref<1x128xf32, #tpu.memory_space<vmem>>, %arg13: memref<128x128xf32, #tpu.memory_space<vmem>>, %arg14: memref<128x128xf32, #tpu.memory_space<vmem>>) attributes {dimension_semantics = [#tpu.dimension_semantics<parallel>], iteration_bounds = array<i64: 1>, scalar_prefetch = 0 : i64, scratch_operands = 0 : i64, tpu.core_type = #tpu.core_type<tc>, window_params = [{transform_indices = @transform_0, window_bounds = array<i64: 128, 640>}, {transform_indices = @transform_1, window_bounds = array<i64: 128, 3, 128>}, {transform_indices = @transform_2, window_bounds = array<i64: 128, 128>}, {transform_indices = @transform_3, window_bounds = array<i64: 128, 1>}, {pipeline_mode = #tpu.pipeline_mode<synchronous>, transform_indices = @transform_4, window_bounds = array<i64: 128, 128>}, {pipeline_mode = #tpu.pipeline_mode<synchronous>, transform_indices = @transform_5, window_bounds = array<i64: 384, 128>}, {pipeline_mode = #tpu.pipeline_mode<synchronous>, transform_indices = @transform_6, window_bounds = array<i64: 1, 128>}, {pipeline_mode = #tpu.pipeline_mode<synchronous>, transform_indices = @transform_7, window_bounds = array<i64: 640, 128>}, {pipeline_mode = #tpu.pipeline_mode<synchronous>, transform_indices = @transform_8, window_bounds = array<i64: 128, 128>}, {pipeline_mode = #tpu.pipeline_mode<synchronous>, transform_indices = @transform_9, window_bounds = array<i64: 1, 128>}, {pipeline_mode = #tpu.pipeline_mode<synchronous>, transform_indices = @transform_10, window_bounds = array<i64: 128, 128>}, {pipeline_mode = #tpu.pipeline_mode<synchronous>, transform_indices = @transform_11, window_bounds = array<i64: 1, 128>}, {transform_indices = @transform_12, window_bounds = array<i64: 128, 128>}, {transform_indices = @transform_13, window_bounds = array<i64: 128, 128>}]} {
    %c0 = arith.constant 0 : index
    %c0_0 = arith.constant 0 : index
    %0 = vector.load %arg1[%c0, %c0_0] : memref<128x640xbf16, #tpu.memory_space<vmem>>, vector<128x640xbf16>
    %1 = vector.extract_strided_slice %0 {offsets = [0, 0], sizes = [128, 128], strides = [1, 1]} : vector<128x640xbf16> to vector<128x128xbf16>
    %2 = vector.extract_strided_slice %0 {offsets = [0, 128], sizes = [128, 128], strides = [1, 1]} : vector<128x640xbf16> to vector<128x128xbf16>
    %3 = vector.extract_strided_slice %0 {offsets = [0, 256], sizes = [128, 384], strides = [1, 1]} : vector<128x640xbf16> to vector<128x384xbf16>
    %c0_1 = arith.constant 0 : index
    %c0_2 = arith.constant 0 : index
    %4 = vector.load %arg5[%c0_1, %c0_2] : memref<128x128xbf16, #tpu.memory_space<vmem>>, vector<128x128xbf16>
    %cst = arith.constant dense<0.000000e+00> : vector<128x128xf32>
    %5 = tpu.matmul %1, %4, %cst {dimension_numbers = #tpu.dot_dimension_numbers<[1], [0], [0], [1], [0, 0, 1, 1], [], []>} : vector<128x128xbf16>, vector<128x128xbf16>, vector<128x128xf32> -> vector<128x128xf32>
    %c0_3 = arith.constant 0 : index
    %c0_4 = arith.constant 0 : index
    %6 = vector.load %arg6[%c0_3, %c0_4] : memref<384x128xbf16, #tpu.memory_space<vmem>>, vector<384x128xbf16>
    %cst_5 = arith.constant dense<0.000000e+00> : vector<128x128xf32>
    %7 = tpu.matmul %3, %6, %cst_5 {dimension_numbers = #tpu.dot_dimension_numbers<[1], [0], [0], [1], [0, 0, 1, 1], [], []>} : vector<128x384xbf16>, vector<384x128xbf16>, vector<128x128xf32> -> vector<128x128xf32>
    %8 = arith.addf %5, %7 : vector<128x128xf32>
    %c0_6 = arith.constant 0 : index
    %c0_7 = arith.constant 0 : index
    %9 = vector.load %arg7[%c0_6, %c0_7] : memref<1x128xf32, #tpu.memory_space<vmem>>, vector<1x128xf32>
    %10 = vector.broadcast %9 : vector<1x128xf32> to vector<128x128xf32>
    %11 = arith.addf %8, %10 : vector<128x128xf32>
    %c0_8 = arith.constant 0 : index
    %c0_9 = arith.constant 0 : index
    %c0_10 = arith.constant 0 : index
    %12 = vector.load %arg2[%c0_8, %c0_9, %c0_10] : memref<128x3x128xbf16, #tpu.memory_space<vmem>>, vector<128x3x128xbf16>
    %13 = arith.extf %12 : vector<128x3x128xbf16> to vector<128x3x128xf32>
    %14 = vector.shape_cast %11 : vector<128x128xf32> to vector<128x1x128xf32>
    %15 = vector.broadcast %14 : vector<128x1x128xf32> to vector<128x3x128xf32>
    %16 = arith.mulf %13, %15 : vector<128x3x128xf32>
    %cst_11 = arith.constant dense<0.000000e+00> : vector<128x3xf32>
    %17 = vector.multi_reduction <add>, %16, %cst_11 [2] : vector<128x3x128xf32> to vector<128x3xf32>
    %cst_12 = arith.constant dense<0xFF800000> : vector<128xf32>
    %18 = vector.multi_reduction <maximumf>, %17, %cst_12 [1] : vector<128x3xf32> to vector<128xf32>
    %19 = vector.shape_cast %18 : vector<128xf32> to vector<128x1xf32>
    %20 = vector.broadcast %19 : vector<128x1xf32> to vector<128x3xf32>
    %21 = arith.subf %17, %20 : vector<128x3xf32>
    %22 = math.exp %21 : vector<128x3xf32>
    %cst_13 = arith.constant dense<0.000000e+00> : vector<128xf32>
    %23 = vector.multi_reduction <add>, %22, %cst_13 [1] : vector<128x3xf32> to vector<128xf32>
    %24 = vector.shape_cast %23 : vector<128xf32> to vector<128x1xf32>
    %25 = tpu.reciprocal %24 {approx = true} : vector<128x1xf32> -> vector<128x1xf32>
    %26 = vector.shape_cast %22 : vector<128x3xf32> to vector<128x3x1xf32>
    %27 = vector.broadcast %26 : vector<128x3x1xf32> to vector<128x3x128xf32>
    %28 = arith.mulf %27, %13 : vector<128x3x128xf32>
    %cst_14 = arith.constant dense<0.000000e+00> : vector<128x128xf32>
    %29 = vector.multi_reduction <add>, %28, %cst_14 [1] : vector<128x3x128xf32> to vector<128x128xf32>
    %30 = vector.broadcast %25 : vector<128x1xf32> to vector<128x128xf32>
    %31 = arith.mulf %29, %30 : vector<128x128xf32>
    %c0_15 = arith.constant 0 : index
    %c0_16 = arith.constant 0 : index
    %32 = vector.load %arg8[%c0_15, %c0_16] : memref<640x128xbf16, #tpu.memory_space<vmem>>, vector<640x128xbf16>
    %cst_17 = arith.constant dense<0.000000e+00> : vector<128x128xf32>
    %33 = tpu.matmul %0, %32, %cst_17 {dimension_numbers = #tpu.dot_dimension_numbers<[1], [0], [0], [1], [0, 0, 1, 1], [], []>} : vector<128x640xbf16>, vector<640x128xbf16>, vector<128x128xf32> -> vector<128x128xf32>
    %34 = arith.truncf %31 : vector<128x128xf32> to vector<128x128xbf16>
    %c0_18 = arith.constant 0 : index
    %c0_19 = arith.constant 0 : index
    %35 = vector.load %arg9[%c0_18, %c0_19] : memref<128x128xbf16, #tpu.memory_space<vmem>>, vector<128x128xbf16>
    %cst_20 = arith.constant dense<0.000000e+00> : vector<128x128xf32>
    %36 = tpu.matmul %34, %35, %cst_20 {dimension_numbers = #tpu.dot_dimension_numbers<[1], [0], [0], [1], [0, 0, 1, 1], [], []>} : vector<128x128xbf16>, vector<128x128xbf16>, vector<128x128xf32> -> vector<128x128xf32>
    %37 = arith.addf %33, %36 : vector<128x128xf32>
    %c0_21 = arith.constant 0 : index
    %c0_22 = arith.constant 0 : index
    %38 = vector.load %arg10[%c0_21, %c0_22] : memref<1x128xf32, #tpu.memory_space<vmem>>, vector<1x128xf32>
    %39 = vector.broadcast %38 : vector<1x128xf32> to vector<128x128xf32>
    %40 = arith.addf %37, %39 : vector<128x128xf32>
    %cst_23 = arith.constant 0.000000e+00 : f32
    %41 = vector.broadcast %cst_23 : f32 to vector<128x128xf32>
    %42 = arith.maximumf %40, %41 : vector<128x128xf32>
    %43 = arith.truncf %42 : vector<128x128xf32> to vector<128x128xbf16>
    %c0_24 = arith.constant 0 : index
    %c0_25 = arith.constant 0 : index
    %44 = vector.load %arg11[%c0_24, %c0_25] : memref<128x128xbf16, #tpu.memory_space<vmem>>, vector<128x128xbf16>
    %cst_26 = arith.constant dense<0.000000e+00> : vector<128x128xf32>
    %45 = tpu.matmul %43, %44, %cst_26 {dimension_numbers = #tpu.dot_dimension_numbers<[1], [0], [0], [1], [0, 0, 1, 1], [], []>} : vector<128x128xbf16>, vector<128x128xbf16>, vector<128x128xf32> -> vector<128x128xf32>
    %c0_27 = arith.constant 0 : index
    %c0_28 = arith.constant 0 : index
    %46 = vector.load %arg12[%c0_27, %c0_28] : memref<1x128xf32, #tpu.memory_space<vmem>>, vector<1x128xf32>
    %47 = vector.broadcast %46 : vector<1x128xf32> to vector<128x128xf32>
    %48 = arith.addf %45, %47 : vector<128x128xf32>
    %c0_29 = arith.constant 0 : index
    %c0_30 = arith.constant 0 : index
    %49 = vector.load %arg4[%c0_29, %c0_30] : memref<128x1xi32, #tpu.memory_space<vmem>>, vector<128x1xi32>
    %c0_31 = arith.constant 0 : index
    %c0_32 = arith.constant 0 : index
    %50 = vector.load %arg3[%c0_31, %c0_32] : memref<128x128xf32, #tpu.memory_space<vmem>>, vector<128x128xf32>
    %c0_i32 = arith.constant 0 : i32
    %51 = vector.broadcast %c0_i32 : i32 to vector<128x1xi32>
    %52 = arith.cmpi eq, %49, %51 : vector<128x1xi32>
    %c1_i32 = arith.constant 1 : i32
    %53 = vector.broadcast %c1_i32 : i32 to vector<128x1xi32>
    %54 = arith.cmpi eq, %49, %53 : vector<128x1xi32>
    %cst_33 = arith.constant 0.000000e+00 : f32
    %55 = vector.broadcast %cst_33 : f32 to vector<128x128xf32>
    %56 = vector.shape_cast %54 : vector<128x1xi1> to vector<128x1xi1>
    %57 = vector.broadcast %56 : vector<128x1xi1> to vector<128x128xi1>
    %58 = arith.select %57, %50, %55 : vector<128x128xi1>, vector<128x128xf32>
    %59 = vector.shape_cast %52 : vector<128x1xi1> to vector<128x1xi1>
    %60 = vector.broadcast %59 : vector<128x1xi1> to vector<128x128xi1>
    %61 = arith.select %60, %48, %58 : vector<128x128xi1>, vector<128x128xf32>
    %62 = arith.extf %1 : vector<128x128xbf16> to vector<128x128xf32>
    %63 = arith.addf %62, %61 : vector<128x128xf32>
    %c0_34 = arith.constant 0 : index
    %c0_35 = arith.constant 0 : index
    %64 = vector.load %arg13[%c0_34, %c0_35] : memref<128x128xf32, #tpu.memory_space<vmem>>, vector<128x128xf32>
    tpu.vector_store %arg13[%c0_34, %c0_35], %63 {strides = array<i32>} : memref<128x128xf32, #tpu.memory_space<vmem>>, vector<128x128xf32>,
    %65 = arith.extf %2 : vector<128x128xbf16> to vector<128x128xf32>
    %66 = arith.subf %65, %61 : vector<128x128xf32>
    %c0_36 = arith.constant 0 : index
    %c0_37 = arith.constant 0 : index
    %67 = vector.load %arg14[%c0_36, %c0_37] : memref<128x128xf32, #tpu.memory_space<vmem>>, vector<128x128xf32>
    tpu.vector_store %arg14[%c0_36, %c0_37], %66 {strides = array<i32>} : memref<128x128xf32, #tpu.memory_space<vmem>>, vector<128x128xf32>,
    return
  }
  func.func @transform_0(%arg0: i32) -> (i32, i32) {
    %c0_i32 = arith.constant 0 : i32
    %c0_i32_0 = arith.constant 0 : i32
    return %arg0, %c0_i32 : i32, i32
  }
  func.func @transform_1(%arg0: i32) -> (i32, i32, i32) {
    %c0_i32 = arith.constant 0 : i32
    %c0_i32_0 = arith.constant 0 : i32
    %c0_i32_1 = arith.constant 0 : i32
    return %arg0, %c0_i32, %c0_i32_0 : i32, i32, i32
  }
  func.func @transform_2(%arg0: i32) -> (i32, i32) {
    %c0_i32 = arith.constant 0 : i32
    %c0_i32_0 = arith.constant 0 : i32
    return %arg0, %c0_i32 : i32, i32
  }
  func.func @transform_3(%arg0: i32) -> (i32, i32) {
    %c0_i32 = arith.constant 0 : i32
    %c0_i32_0 = arith.constant 0 : i32
    return %arg0, %c0_i32 : i32, i32
  }
  func.func @transform_4(%arg0: i32) -> (i32, i32) {
    %c0_i32 = arith.constant 0 : i32
    %c0_i32_0 = arith.constant 0 : i32
    %c0_i32_1 = arith.constant 0 : i32
    return %c0_i32, %c0_i32_0 : i32, i32
  }
  func.func @transform_5(%arg0: i32) -> (i32, i32) {
    %c0_i32 = arith.constant 0 : i32
    %c0_i32_0 = arith.constant 0 : i32
    %c0_i32_1 = arith.constant 0 : i32
    return %c0_i32, %c0_i32_0 : i32, i32
  }
  func.func @transform_6(%arg0: i32) -> (i32, i32) {
    %c0_i32 = arith.constant 0 : i32
    %c0_i32_0 = arith.constant 0 : i32
    %c0_i32_1 = arith.constant 0 : i32
    return %c0_i32, %c0_i32_0 : i32, i32
  }
  func.func @transform_7(%arg0: i32) -> (i32, i32) {
    %c0_i32 = arith.constant 0 : i32
    %c0_i32_0 = arith.constant 0 : i32
    %c0_i32_1 = arith.constant 0 : i32
    return %c0_i32, %c0_i32_0 : i32, i32
  }
  func.func @transform_8(%arg0: i32) -> (i32, i32) {
    %c0_i32 = arith.constant 0 : i32
    %c0_i32_0 = arith.constant 0 : i32
    %c0_i32_1 = arith.constant 0 : i32
    return %c0_i32, %c0_i32_0 : i32, i32
  }
  func.func @transform_9(%arg0: i32) -> (i32, i32) {
    %c0_i32 = arith.constant 0 : i32
    %c0_i32_0 = arith.constant 0 : i32
    %c0_i32_1 = arith.constant 0 : i32
    return %c0_i32, %c0_i32_0 : i32, i32
  }
  func.func @transform_10(%arg0: i32) -> (i32, i32) {
    %c0_i32 = arith.constant 0 : i32
    %c0_i32_0 = arith.constant 0 : i32
    %c0_i32_1 = arith.constant 0 : i32
    return %c0_i32, %c0_i32_0 : i32, i32
  }
  func.func @transform_11(%arg0: i32) -> (i32, i32) {
    %c0_i32 = arith.constant 0 : i32
    %c0_i32_0 = arith.constant 0 : i32
    %c0_i32_1 = arith.constant 0 : i32
    return %c0_i32, %c0_i32_0 : i32, i32
  }
  func.func @transform_12(%arg0: i32) -> (i32, i32) {
    %c0_i32 = arith.constant 0 : i32
    %c0_i32_0 = arith.constant 0 : i32
    return %arg0, %c0_i32 : i32, i32
  }
  func.func @transform_13(%arg0: i32) -> (i32, i32) {
    %c0_i32 = arith.constant 0 : i32
    %c0_i32_0 = arith.constant 0 : i32
    return %arg0, %c0_i32 : i32, i32
  }
}

</mosaic_0001>

<bundles_post_ra>
// kernel: tpu_custom_call.1
= control target key start
LH: loop header
LB: loop body
LE: loop exit
PB: predicated region body
PF: predicated region fallthrough
CT: control target
= control target key end

     0   :  { %19 = vsyncpa [#allocation3], 0  ;;  %s17192_s0 = inlined_call_operand.vmem [shape: bf16[128,640], index: 0, kind: input, shape index: {}]   ;;  %s17193_s1 = inlined_call_operand.vmem [shape: bf16[128,3,128], index: 1, kind: input, shape index: {}]   ;;  %s17194_s2 = inlined_call_operand.hbm [shape: f32[128,128], index: 2, kind: input, shape index: {}]   ;;  %s17195_s3 = inlined_call_operand.vmem [shape: s32[128,1], index: 3, kind: input, shape index: {}]   ;;  %s17196_s4 = inlined_call_operand.vmem [shape: bf16[128,128], index: 4, kind: input, shape index: {}]   ;;  %s17197_s5 = inlined_call_operand.vmem [shape: bf16[384,128], index: 5, kind: input, shape index: {}]   ;;  %s17198_s6 = inlined_call_operand.vmem [shape: f32[1,128], index: 6, kind: input, shape index: {}]   ;;  %s17199_s7 = inlined_call_operand.hbm [shape: bf16[640,128], index: 7, kind: input, shape index: {}]   ;;  %s17200_s8 = inlined_call_operand.hbm [shape: bf16[128,128], index: 8, kind: input, shape index: {}]   ;;  %s17201_s9 = inlined_call_operand.vmem [shape: f32[1,128], index: 9, kind: input, shape index: {}]   ;;  %s17202_s10 = inlined_call_operand.hbm [shape: bf16[128,128], index: 10, kind: input, shape index: {}]   ;;  %s17203_s11 = inlined_call_operand.vmem [shape: f32[1,128], index: 11, kind: input, shape index: {}]   ;;  %s17204_s12 = inlined_call_operand.hbm [shape: f32[128,128], index: 12, kind: output, shape index: {0}]   ;;  %s17205_s13 = inlined_call_operand.hbm [shape: f32[128,128], index: 13, kind: output, shape index: {1}]  }
   0x1   :  { %20 = vsyncpa [#allocation6], 0 }
   0x2   :  { %21 = vsyncpa [#allocation9], 0 }
   0x3   :  { %22 = vsyncpa [#allocation4], 0 }
   0x4   :  { %23 = vsyncpa [#allocation12], 0  ;;  %s10987_s25 = smov [#allocation5]  }
   0x5   :  { %s53_s26 = sshll.u32 %s10987_s25, 4  ;;  %s54_s26 = int_to_ptr.vmem [resolvable:$true] %s53_s26 }
   0x6   :  { %s10865_s27 = scalar_lea.vmem %s54_s26, 5120  ;;  %p10870_p1 = scmp.lt.s32.totalorder %s54_s26, %s54_s26 }
   0x7   :  { %p10866_p0 = scmp.ne.s32.totalorder %s54_s26, %s10865_s27  ;;  %p10871_p2 = scmp.lt.s32.totalorder %s10865_s27, %s10865_s27 }
   0x9   :  { %p10872_p3 = por %p10871_p2, %p10870_p1 }
   0xb   :  { %p10873_p4 = pnand %p10872_p3, %p10866_p0 }
   0xd   :  { %10876 = shalt.err (!%p10873_p4)
}
   0xe   :  { %s10988_s28 = smov 64   ;;  %s10989_s29 = smov 4  }
   0xf   :  { %59 = dma.hbm_to_vmem [thread:$0]  %s17199_s7, 5120, %s54_s26, [#allocation6], %s10988_s28, %s10988_s28, %s10989_s29  }
  0x10   :  { %s10990_s15 = smov [#allocation2]  }
  0x11   :  { %s33_s16 = sshll.u32 %s10990_s15, 4  ;;  %s34_s16 = int_to_ptr.vmem [resolvable:$true] %s33_s16 }
  0x12   :  { %s10885_s17 = scalar_lea.vmem %s34_s16, 2048  ;;  %p10890_p6 = scmp.lt.s32.totalorder %s34_s16, %s34_s16 }
  0x13   :  { %p10886_p5 = scmp.ne.s32.totalorder %s34_s16, %s10885_s17  ;;  %p10891_p7 = scmp.lt.s32.totalorder %s10885_s17, %s10885_s17 }
  0x15   :  { %p10892_p8 = por %p10891_p7, %p10890_p6 }
  0x17   :  { %p10893_p9 = pnand %p10892_p8, %p10886_p5 }
  0x19   :  { %10896 = shalt.err (!%p10893_p9)
}
  0x1a   :  { %s10991_s18 = smov 128   ;;  %s10992_s19 = smov 8  }
  0x1b   :  { %39 = dma.hbm_to_vmem [thread:$0]  %s17194_s2, 2048, %s34_s16, [#allocation3], %s10991_s18, %s10991_s18, %s10992_s19  }
  0x1c   :  { %s10993_s7 = smov [#allocation7]   ;;  %s10994_s23 = smov [#allocation8]  }
  0x1d   :  { %s65_s22 = sshll.u32 %s10993_s7, 4  ;;  %s79_s24 = sshll.u32 %s10994_s23, 4  ;;  %s66_s22 = int_to_ptr.vmem [resolvable:$true] %s65_s22  ;;  %s80_s24 = int_to_ptr.vmem [resolvable:$true] %s79_s24 }
  0x1e   :  { %s10905_s25 = scalar_lea.vmem %s66_s22, 1024  ;;  %p10910_p11 = scmp.lt.s32.totalorder %s66_s22, %s66_s22 }
  0x1f   :  { %p10906_p10 = scmp.ne.s32.totalorder %s66_s22, %s10905_s25  ;;  %p10911_p12 = scmp.lt.s32.totalorder %s10905_s25, %s10905_s25 }
  0x21   :  { %p10912_p13 = por %p10911_p12, %p10910_p11 }
  0x23   :  { %p10913_p0 = pnand %p10912_p13, %p10906_p10 }
  0x25   :  { %10916 = shalt.err (!%p10913_p0)
}
  0x26   :  { %71 = dma.hbm_to_vmem [thread:$0]  %s17200_s8, 1024, %s66_s22, [#allocation6], %s10988_s28, %s10988_s28, %s10989_s29  }
  0x27   :  { %s10925_s2 = scalar_lea.vmem %s80_s24, 1024  ;;  %p10930_p2 = scmp.lt.s32.totalorder %s80_s24, %s80_s24 }
  0x28   :  { %p10926_p1 = scmp.ne.s32.totalorder %s80_s24, %s10925_s2  ;;  %p10931_p3 = scmp.lt.s32.totalorder %s10925_s2, %s10925_s2 }
  0x2a   :  { %p10932_p4 = por %p10931_p3, %p10930_p2 }
  0x2c   :  { %p10933_p5 = pnand %p10932_p4, %p10926_p1 }
  0x2e   :  { %10936 = shalt.err (!%p10933_p5)
}
  0x2f   :  { %85 = dma.hbm_to_vmem [thread:$0]  %s17202_s10, 1024, %s80_s24, [#allocation9], %s10988_s28, %s10988_s28, %s10989_s29  }
  0x30   :  { %10977 = dma.done.wait [#allocation3], 2048  }
  0x31   :  { %10978 = vsyncadd [#allocation3], 4294965248 }
  0x32   :  { %10979 = dma.done.wait [#allocation6], 6144  }
  0x33   :  { %10980 = vsyncadd [#allocation6], 4294961152 }
  0x34   :  { %10981 = dma.done.wait [#allocation9], 1024  }
  0x35   :  { %10982 = vsyncadd [#allocation9], 4294966272  ;;  %v10377_v0 = vld [vmem:[%s17197_s5 + $0x78] sm:$0xff]   ;;  %v10380_v3 = vld [vmem:[%s17197_s5 + $0x70] sm:$0xff]   ;;  %vm2719_vm0 = vcmask 1042432   ;;  %vm3746_vm1 = vcmask 1041409  }
  0x36   :  { %v10378_v1 = vld [vmem:[%s17197_s5 + $0xb8] sm:$0xff]   ;;  %9915 = vmatprep.subr.bf16.mxu0 %v10377_v0  ;;  %v10381_v4 = vld [vmem:[%s17197_s5 + $0xb0] sm:$0xff]   ;;  %v10383_v6 = vld [vmem:[%s17197_s5 + $0x68] sm:$0xff]   ;;  %vm3748_vm2 = vcmask 1042434   ;;  %vm3750_vm3 = vcmask 1043459   ;;  %vm3752_vm4 = vcmask 1044484  }
  0x37   :  { %v10379_v2 = vld [vmem:[%s17197_s5 + $0x38] sm:$0xff]   ;;  %10187 = vmatprep.subr.bf16.mxu1 %v10378_v1  ;;  %v10382_v5 = vld [vmem:[%s17197_s5 + $0x30] sm:$0xff]   ;;  %v10384_v7 = vld [vmem:[%s17197_s5 + $0xa8] sm:$0xff]   ;;  %vm3754_vm5 = vcmask 1045509   ;;  %vm17493_vm6 = vcmask 1046534   ;;  %vm17492_vm7 = vcmask 1047559  }
  0x38   :  { %9916 = vmatpush3.bf16.msra.mxu0 %v10379_v2  ;;  %10188 = vmatpush3.bf16.msra.mxu1 %v10378_v1  ;;  %v10385_v8 = vld [vmem:[%s17197_s5 + $0x28] sm:$0xff]   ;;  %v10386_v9 = vld [vmem:[%s17197_s5 + $0x60] sm:$0xff]   ;;  %v10389_v12 = vld [vmem:[%s17197_s5 + $0x58] sm:$0xff]   ;;  %vm3881_vm8 = vcmask 23552   ;;  %s10998_s8 = smov [#allocation11]  }
  0x39   :  { %9917 = vmatprep.subr.bf16.mxu0 %v10380_v3  ;;  %10189 = vmatprep.subr.bf16.mxu1 %v10381_v4  ;;  %v10387_v10 = vld [vmem:[%s17197_s5 + $0xa0] sm:$0xff]   ;;  %v10390_v13 = vld [vmem:[%s17197_s5 + $0x98] sm:$0xff]   ;;  %v10392_v15 = vld [vmem:[%s17197_s5 + $0x50] sm:$0xff]   ;;  %s9766_s15 = sshll.u32 %s10998_s8, 4  ;;  %s9767_s15 = int_to_ptr.vmem [resolvable:$true] %s9766_s15 }
  0x3a   :  { %v10388_v11 = vld [vmem:[%s17197_s5 + $0x20] sm:$0xff]   ;;  %v10391_v14 = vld [vmem:[%s17197_s5 + $0x18] sm:$0xff]   ;;  %v10393_v16 = vld [vmem:[%s17197_s5 + $0x90] sm:$0xff]  }
  0x3b   :  { %v10394_v17 = vld [vmem:[%s17197_s5 + $0x10] sm:$0xff]   ;;  %v10395_v18 = vld [vmem:[%s17197_s5 + $0x48] sm:$0xff]   ;;  %v10398_v21 = vld [vmem:[%s17197_s5 + $0x40] sm:$0xff]  }
  0x3c   :  { %9918 = vmatpush3.bf16.msra.mxu0 %v10382_v5  ;;  %10190 = vmatpush3.bf16.msra.mxu1 %v10381_v4  ;;  %v10396_v19 = vld [vmem:[%s17197_s5 + $0x88] sm:$0xff]   ;;  %v10399_v22 = vld [vmem:[%s17197_s5 + $0x80] sm:$0xff]   ;;  %v10406_v26 = vld [vmem:[%s17196_s4 + $0x38] sm:$0xff]  }
  0x3d   :  { %9919 = vmatprep.subr.bf16.mxu0 %v10383_v6  ;;  %10191 = vmatprep.subr.bf16.mxu1 %v10384_v7  ;;  %v10397_v20 = vld [vmem:[%s17197_s5 + $0x8] sm:$0xff]   ;;  %v10404_v24 = vld [vmem:[%s17192_s0 + $0x10] ss:$20 sps:$4 sm:$0xff]   ;;  %v10410_v31 = vld [vmem:[%s17192_s0 + $0x60] ss:$20 sps:$4 sm:$0xff]  }
  0x3e   :  { %v10403_v23 = vld [vmem:[%s17192_s0 + $0xc] ss:$20 sps:$4 sm:$0xff]   ;;  %v10401_v27 = vld [vmem:[%s17192_s0 + $0x8] ss:$20 sps:$4 sm:$0xff]   ;;  %10203 = vmatprep.mubr.bf16.mxu1 %v10404_v24  ;;  %v10407_v29 = vld [vmem:[%s17196_s4 + $0x30] sm:$0xff]  }
  0x3f   :  { %517 = vmatprep.mubr.bf16.mxu0 %v10403_v23  ;;  %v10400_v25 = vld [vmem:[%s17197_s5] sm:$0xff]   ;;  %v10405_v28 = vld [vmem:[%s17192_s0 + $0x38] ss:$20 sps:$4 sm:$0xff]   ;;  %v10408_v30 = vld [vmem:[%s17192_s0 + $0x34] ss:$20 sps:$4 sm:$0xff]  }
  0x40   :  { %9920 = vmatpush3.bf16.msra.mxu0 %v10385_v8  ;;  %10192 = vmatpush3.bf16.msra.mxu1 %v10384_v7  ;;  %v10411_v32 = vld [vmem:[%s17192_s0 + $0x30] ss:$20 sps:$4 sm:$0xff]   ;;  %v10413_v33 = vld [vmem:[%s17196_s4 + $0x28] sm:$0xff]   ;;  %v10420_v38 = vld [vmem:[%s17196_s4 + $0x18] sm:$0xff]  }
  0x41   :  { %9921 = vmatprep.subr.bf16.mxu0 %v10386_v9  ;;  %10193 = vmatprep.subr.bf16.mxu1 %v10387_v10  ;;  %v10412_v34 = vld [vmem:[%s17192_s0 + $0x88] ss:$20 sps:$4 sm:$0xff]   ;;  %v10414_v35 = vld [vmem:[%s17196_s4 + $0x20] sm:$0xff]   ;;  %v10418_v39 = vld [vmem:[%s17192_s0 + $0x58] ss:$20 sps:$4 sm:$0xff]  }
  0x42   :  { %v10415_v36 = vld [vmem:[%s17192_s0 + $0x5c] ss:$20 sps:$4 sm:$0xff]   ;;  %v10419_v40 = vld [vmem:[%s17192_s0 + $0xd8] ss:$20 sps:$4 sm:$0xff]   ;;  %v10424_v43 = vld [vmem:[%s17192_s0 + $0x100] ss:$20 sps:$4 sm:$0xff]  }
  0x43   :  { %v10417_v37 = vld [vmem:[%s17192_s0 + $0xb0] ss:$20 sps:$4 sm:$0xff]   ;;  %v10427_v44 = vld [vmem:[%s17196_s4 + $0x8] sm:$0xff]   ;;  %v10425_v45 = vld [vmem:[%s17192_s0 + $0x80] ss:$20 sps:$4 sm:$0xff]  }
  0x44   :  { %9922 = vmatpush3.bf16.msra.mxu0 %v10388_v11  ;;  %10194 = vmatpush3.bf16.msra.mxu1 %v10387_v10  ;;  %v10422_v41 = vld [vmem:[%s17192_s0 + $0x84] ss:$20 sps:$4 sm:$0xff]   ;;  %v10421_v42 = vld [vmem:[%s17196_s4 + $0x10] sm:$0xff]   ;;  %v10426_v48 = vld [vmem:[%s17192_s0 + $0x128] ss:$20 sps:$4 sm:$0xff]  }
  0x45   :  { %9923 = vmatprep.subr.bf16.mxu0 %v10389_v12  ;;  %10195 = vmatprep.subr.bf16.mxu1 %v10390_v13  ;;  %v101_v46 = vld [vmem:[%s17192_s0] sm:$0xff]  ;;  %v104_v47 = vld [vmem:[%s17192_s0 + $0x14] sm:$0xff]  ;;  %v107_v52 = vld [vmem:[%s17192_s0 + $0x28] sm:$0xff] }
  0x46   :  { %v10428_v49 = vld [vmem:[%s17196_s4] sm:$0xff]   ;;  %v11246_v51 = vcombine.low %v101_v46, %v104_v47  ;;  %v113_v54 = vld [vmem:[%s17192_s0 + $0x50] sm:$0xff]  ;;  %v10432_v56 = vld [vmem:[%s17192_s0 + $0xa8] ss:$20 sps:$4 sm:$0xff]  }
  0x47   :  { %v10429_v50 = vld [vmem:[%s17192_s0 + $0xac] ss:$20 sps:$4 sm:$0xff]   ;;  %v116_v55 = vld [vmem:[%s17192_s0 + $0x64] sm:$0xff]  ;;  %v119_v60 = vld [vmem:[%s17192_s0 + $0x78] sm:$0xff] }
  0x48   :  { %9924 = vmatpush3.bf16.msra.mxu0 %v10391_v14  ;;  %10196 = vmatpush3.bf16.msra.mxu1 %v10390_v13  ;;  %17517 = vst [vmem:[#allocation18_spill] sm:$0xff] %v11246_v51  ;;  %v110_v53 = vld [vmem:[%s17192_s0 + $0x3c] sm:$0xff]  ;;  %v10434_v57 = vld [vmem:[%s17192_s0 + $0xd4] ss:$20 sps:$4 sm:$0xff]   ;;  %v11269_v59 = vcombine.low %v113_v54, %v116_v55  ;;  %v122_v61 = vld [vmem:[%s17192_s0 + $0x8c] sm:$0xff] }
  0x49   :  { %9925 = vmatprep.subr.bf16.mxu0 %v10392_v15  ;;  %10197 = vmatprep.subr.bf16.mxu1 %v10393_v16  ;;  %v11267_v58 = vcombine.low %v107_v52, %v110_v53  ;;  %v125_v62 = vld [vmem:[%s17192_s0 + $0xa0] sm:$0xff]  ;;  %v128_v63 = vld [vmem:[%s17192_s0 + $0xb4] sm:$0xff]  ;;  %v10439_v1 = vld [vmem:[%s17192_s0 + $0xfc] ss:$20 sps:$4 sm:$0xff]   ;;  %v11291_v2 = vcombine.low %v119_v60, %v122_v61 }
  0x4a   :  { %17519 = vst [vmem:[#allocation20_spill] sm:$0xff] %v11269_v59  ;;  %v10437_v0 = vld [vmem:[%s17192_s0 + $0xd0] ss:$20 sps:$4 sm:$0xff]   ;;  %v11293_v3 = vcombine.low %v125_v62, %v128_v63  ;;  %v131_v4 = vld [vmem:[%s17192_s0 + $0xc8] sm:$0xff]  ;;  %v134_v5 = vld [vmem:[%s17192_s0 + $0xdc] sm:$0xff] }
  0x4b   :  { %17518 = vst [vmem:[#allocation19_spill] sm:$0xff] %v11267_v58  ;;  %17520 = vst [vmem:[#allocation21_spill] sm:$0xff] %v11291_v2  ;;  %v137_v6 = vld [vmem:[%s17192_s0 + $0xf0] sm:$0xff]  ;;  %v140_v7 = vld [vmem:[%s17192_s0 + $0x104] sm:$0xff]  ;;  %v11315_v10 = vcombine.low %v131_v4, %v134_v5 }
  0x4c   :  { %9926 = vmatpush3.bf16.msra.mxu0 %v10394_v17  ;;  %10198 = vmatpush3.bf16.msra.mxu1 %v10393_v16  ;;  %17521 = vst [vmem:[#allocation22_spill] sm:$0xff] %v11293_v3  ;;  %v10442_v8 = vld [vmem:[%s17192_s0 + $0xf8] ss:$20 sps:$4 sm:$0xff]   ;;  %v11317_v11 = vcombine.low %v137_v6, %v140_v7  ;;  %v10447_v14 = vld [vmem:[%s17192_s0 + $0x120] ss:$20 sps:$4 sm:$0xff]  }
  0x4d   :  { %9927 = vmatprep.subr.bf16.mxu0 %v10395_v18  ;;  %10199 = vmatprep.subr.bf16.mxu1 %v10396_v19  ;;  %v10444_v9 = vld [vmem:[%s17192_s0 + $0x124] ss:$20 sps:$4 sm:$0xff]   ;;  %17522 = vst [vmem:[#allocation23_spill] sm:$0xff] %v11315_v10  ;;  %v146_v13 = vld [vmem:[%s17192_s0 + $0x12c] sm:$0xff]  ;;  %v11371_v61 = vld [vmem:[%s17198_s6] ss:$0 sm:$0xff] }
  0x4e   :  { %17523 = vst [vmem:[#allocation24_spill] sm:$0xff] %v11317_v11  ;;  %v143_v12 = vld [vmem:[%s17192_s0 + $0x118] sm:$0xff] }
  0x4f   :  { %v11330_v15 = vcombine.low %v143_v12, %v146_v13 }
  0x50   :  { %9928 = vmatpush3.bf16.msra.mxu0 %v10397_v20  ;;  %10200 = vmatpush3.bf16.msra.mxu1 %v10396_v19 }
  0x51   :  { %9929 = vmatprep.subr.bf16.mxu0 %v10398_v21  ;;  %10201 = vmatprep.subr.bf16.mxu1 %v10399_v22  ;;  %17524 = vst [vmem:[#allocation25_spill] sm:$0xff] %v11330_v15 }
  0x54   :  { %9930 = vmatpush3.bf16.msra.mxu0 %v10400_v25  ;;  %10202 = vmatpush3.bf16.msra.mxu1 %v10399_v22 }
  0x55   :  { %10219 = vmatprep.subr.bf16.mxu1 %v10406_v26 }
  0x57   :  { %518 = vmatmul.mubr.bf16.vlgmr.msra.gmra.mxu0 %v10401_v27  ;;  %10204 = vmatmul.mubr.bf16.vlgmr.msra.gmra.mxu1 %v10405_v28 }
  0x58   :  { %10220 = vmatpush3.bf16.msra.mxu1 %v10406_v26  ;;  %525 = vmatprep.mubr.bf16.mxu0 %v10408_v30 }
  0x59   :  { %10221 = vmatprep.subr.bf16.mxu1 %v10407_v29  ;;  %10207 = vmatprep.mubr.bf16.mxu1 %v10410_v31 }
  0x5c   :  { %10222 = vmatpush3.bf16.msra.mxu1 %v10407_v29 }
  0x5d   :  { %10223 = vmatprep.subr.bf16.mxu1 %v10413_v33 }
  0x5f   :  { %526 = vmatmul.mubr.bf16.gmra.mxu0 %v10411_v32  ;;  %10208 = vmatmul.mubr.bf16.gmra.mxu1 %v10412_v34 }
  0x60   :  { %10224 = vmatpush3.bf16.msra.mxu1 %v10413_v33  ;;  %533 = vmatprep.mubr.bf16.mxu0 %v10415_v36 }
  0x61   :  { %10225 = vmatprep.subr.bf16.mxu1 %v10414_v35  ;;  %10211 = vmatprep.mubr.bf16.mxu1 %v10417_v37 }
  0x64   :  { %10226 = vmatpush3.bf16.msra.mxu1 %v10414_v35 }
  0x65   :  { %10227 = vmatprep.subr.bf16.mxu1 %v10420_v38 }
  0x67   :  { %534 = vmatmul.mubr.bf16.gmra.mxu0 %v10418_v39  ;;  %10212 = vmatmul.mubr.bf16.gmra.mxu1 %v10419_v40 }
  0x68   :  { %10228 = vmatpush3.bf16.msra.mxu1 %v10420_v38  ;;  %541 = vmatprep.mubr.bf16.mxu0 %v10422_v41 }
  0x69   :  { %10229 = vmatprep.subr.bf16.mxu1 %v10421_v42  ;;  %10215 = vmatprep.mubr.bf16.mxu1 %v10424_v43 }
  0x6c   :  { %10230 = vmatpush3.bf16.msra.mxu1 %v10421_v42  ;;  %v10995_v42 = vmov 1966171168  }
  0x6d   :  { %10231 = vmatprep.subr.bf16.mxu1 %v10427_v44  ;;  %v1169_v43 = vunpack.c.l.s4 %v10995_v42 }
  0x6f   :  { %542 = vmatmul.mubr.bf16.gmra.mxu0 %v10425_v45  ;;  %10216 = vmatmul.mubr.bf16.gmra.mxu1 %v10426_v48 }
  0x70   :  { %10232 = vmatpush3.bf16.msra.mxu1 %v10427_v44  ;;  %549 = vmatprep.mubr.bf16.mxu0 %v10429_v50  ;;  %v17208_v44 = vlaneseq  ;;  %v1170_v50 = vunpack.c.0.s8 %v1169_v43 }
  0x71   :  { %10233 = vmatprep.subr.bf16.mxu1 %v10428_v49  ;;  %10235 = vmatprep.mubr.bf16.mxu1 %v11246_v51 }
  0x72   :  { %v11364_v52 = vshrl.u32 %v17208_v44, 7 }
  0x74   :  { %10234 = vmatpush3.bf16.msra.mxu1 %v10428_v49  ;;  %17525 = vst [vmem:[#allocation26_spill] sm:$0xff] %v11364_v52  ;;  %v11374_v63 = vsub.s32 %v1170_v50, %v11364_v52 }
  0x77   :  { %550 = vmatmul.mubr.bf16.gmra.mxu0 %v10432_v56  ;;  %10236 = vmatmul.mubr.bf16.vlgmr.msra.gmra.mxu1 %v11267_v58 }
  0x78   :  { %557 = vmatprep.mubr.bf16.mxu0 %v10434_v57  ;;  %10239 = vmatprep.mubr.bf16.mxu1 %v11269_v59 }
  0x7f   :  { %558 = vmatmul.mubr.bf16.gmra.mxu0 %v10437_v0  ;;  %10240 = vmatmul.mubr.bf16.gmra.mxu1 %v11291_v2 }
  0x80   :  { %565 = vmatprep.mubr.bf16.mxu0 %v10439_v1  ;;  %10243 = vmatprep.mubr.bf16.mxu1 %v11293_v3 }
  0x87   :  { %566 = vmatmul.mubr.bf16.gmra.mxu0 %v10442_v8  ;;  %10244 = vmatmul.mubr.bf16.gmra.mxu1 %v11315_v10 }
  0x88   :  { %573 = vmatprep.mubr.bf16.mxu0 %v10444_v9  ;;  %10247 = vmatprep.mubr.bf16.mxu1 %v11317_v11 }
  0x8f   :  { %574 = vmatmul.mubr.bf16.gmra.mxu0 %v10447_v14  ;;  %10248 = vmatmul.mubr.bf16.gmra.mxu1 %v11330_v15 }
 0x117   :  { %v9931_v16 = vpop.f32.mrf.mxu0  ;;  %v10205_v17 = vpop.f32.mrf.mxu1 }
 0x119   :  { %v9932_v18 = vpop.f32.mrf.mxu0  ;;  %v616_v19 = vpop.f32.mrf.mxu1 }
 0x11a   :  { %v9933_v56 = vadd.f32 %v9932_v18, %v9931_v16  ;;  %v11393_v18 = vsub.s32 0, %v11364_v52 }
 0x11b   :  { %v11333_v20 = vpop.f32.mrf.mxu0  ;;  %v11335_v21 = vpop.f32.mrf.mxu1 }
 0x11c   :  { %v617_v6 = vadd.f32 %v9933_v56, %v616_v19 }
 0x11d   :  { %v11337_v22 = vpop.f32.mrf.mxu0  ;;  %v11339_v23 = vpop.f32.mrf.mxu1 }
 0x11f   :  { %v9937_v24 = vpop.f32.mrf.mxu0  ;;  %v10209_v25 = vpop.f32.mrf.mxu1 }
 0x121   :  { %v9938_v26 = vpop.f32.mrf.mxu0  ;;  %v632_v27 = vpop.f32.mrf.mxu1 }
 0x122   :  { %v9939_v47 = vadd.f32 %v9938_v26, %v9937_v24 }
 0x123   :  { %v11341_v28 = vpop.f32.mrf.mxu0  ;;  %v11343_v29 = vpop.f32.mrf.mxu1 }
 0x124   :  { %v625_v55 = vadd.f32 %v10205_v17, %v9939_v47  ;;  %v11390_v17 = vld [vmem:[%s17193_s1 + $0x20] sm:$0x3] }
 0x125   :  { %v11345_v30 = vpop.f32.mrf.mxu0  ;;  %v11347_v31 = vpop.f32.mrf.mxu1  ;;  %17526 = vst [vmem:[#allocation27_spill] sm:$0xff] %v11390_v17  ;;  %v17207_v47 = vunpack.c.l.bf16 %v11390_v17 }
 0x127   :  { %v9943_v32 = vpop.f32.mrf.mxu0  ;;  %v11349_v33 = vpop.f32.mrf.mxu1 }
 0x129   :  { %v9944_v34 = vpop.f32.mrf.mxu0  ;;  %v11351_v35 = vpop.f32.mrf.mxu1 }
 0x12a   :  { %v9945_v9 = vadd.f32 %v9944_v34, %v9943_v32  ;;  %v11398_v32 = vld [vmem:[%s17193_s1 + $0x22] sm:$0x3] }
 0x12b   :  { %v9946_v36 = vpop.f32.mrf.mxu0  ;;  %v11353_v37 = vpop.f32.mrf.mxu1  ;;  %17527 = vst [vmem:[#allocation28_spill] sm:$0xff] %v11398_v32 }
 0x12d   :  { %v9947_v38 = vpop.f32.mrf.mxu0  ;;  %v11355_v39 = vpop.f32.mrf.mxu1 }
 0x12f   :  { %v9949_v40 = vpop.f32.mrf.mxu0  ;;  %v11357_v41 = vpop.f32.mrf.mxu1 }
 0x131   :  { %v9950_v45 = vpop.f32.mrf.mxu0  ;;  %v11359_v46 = vpop.f32.mrf.mxu1 }
 0x132   :  { %v9951_v4 = vadd.f32 %v9950_v45, %v9949_v40  ;;  %v633_v45 = vadd.f32 %v9945_v9, %v632_v27 }
 0x133   :  { %v9952_v48 = vpop.f32.mrf.mxu0  ;;  %v11361_v49 = vpop.f32.mrf.mxu1 }
 0x134   :  { %v641_v26 = vadd.f32 %v10209_v25, %v9951_v4 }
 0x135   :  { %v9953_v53 = vpop.f32.mrf.mxu0  ;;  %v11366_v54 = vpop.f32.mrf.mxu1 }
 0x136   :  { %v9954_v19 = vadd.f32 %v9953_v53, %v9952_v48  ;;  %v9948_v48 = vadd.f32 %v9947_v38, %v9946_v36 }
 0x137   :  { %v9955_v57 = vpop.f32.mrf.mxu0  ;;  %v10237_v60 = vpop.f32.mrf.mxu1 }
 0x138   :  { %v818_v62 = vadd.f32 %v10237_v60, %v625_v55  ;;  %v17206_v60 = vunpack.c.l.bf16 %v11398_v32 }
 0x139   :  { %v9956_v0 = vpop.f32.mrf.mxu0  ;;  %v809_v1 = vpop.f32.mrf.mxu1 }
 0x13a   :  { %v11377_v5 = vadd.f32 %v11371_v61, %v818_v62  ;;  %v810_v13 = vadd.f32 %v809_v1, %v617_v6  ;;  %v644_v1 = vadd.f32 %v11343_v29, %v9954_v19  ;;  %v9957_v6 = vadd.f32 %v9956_v0, %v9955_v57 }
 0x13b   :  { %v11379_v7 = vpop.f32.mrf.mxu0  ;;  %v11381_v8 = vpop.f32.mrf.mxu1  ;;  %v636_v19 = vadd.f32 %v9948_v48, %v11347_v31  ;;  %v11441_v48 = vld [vmem:[%s17193_s1] sm:$0x3] }
 0x13c   :  { %v1272_v12 = vrot.slane %v11377_v5, %v11374_v63  ;;  %v11408_v25 = vadd.f32 %v11371_v61, %v810_v13  ;;  %v649_v31 = vadd.f32 %v9957_v6, %v11351_v35  ;;  %17528 = vst [vmem:[#allocation29_spill] sm:$0xff] %v11441_v48  ;;  %v11452_v35 = vld [vmem:[%s17193_s1 + $0x4] sm:$0x3] }
 0x13d   :  { %v9959_v14 = vpop.f32.mrf.mxu0  ;;  %v11385_v16 = vpop.f32.mrf.mxu1  ;;  %17529 = vst [vmem:[#allocation30_spill] sm:$0xff] %v11452_v35 }
 0x13e   :  { %v1280_v24 = vcombine.high %v1272_v12, %v1272_v12  ;;  %v11401_v42 = vrot.slane %v1272_v12, %v11374_v63  ;;  %v9960_v6 = vadd.f32 %v9959_v14, %v11379_v7  ;;  %v9942_v7 = vadd.f32 %v11345_v30, %v11341_v28 }
 0x13f   :  { %v9961_v34 = vpop.f32.mrf.mxu0  ;;  %v10241_v40 = vpop.f32.mrf.mxu1  ;;  %v1265_v14 = vcombine.high %v11377_v5, %v11377_v5 }
 0x140   :  { %v834_v43 = vadd.f32 %v10241_v40, %v641_v26  ;;  %v11405_v50 = vrot.slane %v1280_v24, %v11374_v63  ;;  %v2018_v56 = vrot.slane %v11401_v42, %v11393_v18  ;;  %v11424_v24 = vrot.slane %v11408_v25, %v11374_v63 }
 0x141   :  { %v9962_v53 = vpop.f32.mrf.mxu0  ;;  %v825_v55 = vpop.f32.mrf.mxu1 }
 0x142   :  { %v11414_v62 = vadd.f32 %v11371_v61, %v834_v43  ;;  %v826_v27 = vadd.f32 %v825_v55, %v633_v45  ;;  %v2022_v4 = vrot.slane %v11405_v50, %v11393_v18  ;;  %v9963_v9 = vadd.f32 %v9962_v53, %v9961_v34 }
 0x143   :  { %v9964_v36 = vpop.f32.mrf.mxu0  ;;  %v10242_v38 = vpop.f32.mrf.mxu1  ;;  %v2607_v29 = vmul.f32 %v2018_v56, %v17207_v47 }
 0x144   :  { %v11420_v12 = vadd.f32 %v11371_v61, %v826_v27  ;;  %v837_v13 = vadd.f32 %v10242_v38, %v644_v1  ;;  %v2608_v43 = vmul.f32 %v2022_v4, %v17206_v60  ;;  %v657_v56 = vadd.f32 %v11349_v33, %v9963_v9 }
 0x145   :  { %v9965_v26 = vpop.f32.mrf.mxu0  ;;  %v828_v40 = vpop.f32.mrf.mxu1  ;;  %v2768_v34 = vsel %vm2719_vm0, %v2607_v29, 0.0  ;;  %v1190_v38 = vrot.slane %v11424_v24, %v11374_v63  ;;  %v17209_v9 = vunpack.c.l.bf16 %v11441_v48  ;;  %v652_v60 = vadd.f32 %v9960_v6, %v11355_v39 }
 0x146   :  { %v11432_v57 = vadd.f32 %v11371_v61, %v837_v13  ;;  %v9966_v0 = vadd.f32 %v9965_v26, %v9964_v36  ;;  %v829_v45 = vadd.f32 %v828_v40, %v636_v19  ;;  %2769 = vadd.xlane.f32.xlu0 %v2768_v34  ;;  %v2771_v27 = vsel %vm2719_vm0, %v2608_v43, 0.0  ;;  %v11459_v40 = vld [vmem:[%s17193_s1 + $0x24] sm:$0x3] }
 0x147   :  { %v9967_v53 = vpop.f32.mrf.mxu0  ;;  %v10245_v55 = vpop.f32.mrf.mxu1  ;;  %2772 = vadd.xlane.f32.xlu1 %v2771_v27  ;;  %17530 = vst [vmem:[#allocation31_spill] sm:$0xff] %v11459_v40 }
 0x148   :  { %v11444_v1 = vadd.f32 %v11371_v61, %v829_v45  ;;  %v850_v13 = vadd.f32 %v10245_v55, %v657_v56  ;;  %v660_v33 = vadd.f32 %v11353_v37, %v9966_v0  ;;  %v1954_v0 = vrot.slane %v1190_v38, %v11393_v18 }
 0x149   :  { %v9968_v4 = vpop.f32.mrf.mxu0  ;;  %v841_v36 = vpop.f32.mrf.mxu1  ;;  %v17212_v45 = vunpack.c.l.bf16 %v11452_v35  ;;  %v1212_v55 = vcombine.high %v1190_v38, %v1190_v38 }
 0x14a   :  { %v842_v26 = vadd.f32 %v841_v36, %v649_v31  ;;  %v11462_v43 = vadd.f32 %v11371_v61, %v850_v13  ;;  %v11476_v31 = vld [vmem:[%s17193_s1 + $0x26] sm:$0x3]  ;;  %v11481_v36 = vld [vmem:[%s17193_s1 + $0x28] sm:$0x3]  ;;  %v9969_v30 = vadd.f32 %v9968_v4, %v9967_v53  ;;  %v2591_v5 = vmul.f32 %v1954_v0, %v17209_v9 }
 0x14b   :  { %v9970_v29 = vpop.f32.mrf.mxu0  ;;  %v10246_v19 = vpop.f32.mrf.mxu1  ;;  %17531 = vst [vmem:[#allocation32_spill] sm:$0xff] %v11476_v31  ;;  %17532 = vst [vmem:[#allocation33_spill] sm:$0xff] %v11481_v36  ;;  %v1962_v13 = vrot.slane %v1212_v55, %v11393_v18  ;;  %v17219_v47 = vunpack.c.l.bf16 %v11476_v31  ;;  %v17217_v44 = vunpack.c.l.bf16 %v11481_v36  ;;  %v1279_v53 = vrot.slane %v1265_v14, %v11374_v63 }
 0x14c   :  { %v11465_v37 = vadd.f32 %v11371_v61, %v842_v26  ;;  %v853_v34 = vadd.f32 %v10246_v19, %v660_v33  ;;  %v9936_v19 = vadd.f32 %v11337_v22, %v11333_v20  ;;  %v628_v4 = vadd.f32 %v11335_v21, %v9942_v7 }
 0x14d   :  { %v9971_v27 = vpop.f32.mrf.mxu0  ;;  %v844_v56 = vpop.f32.mrf.mxu1  ;;  %v2720_v0 = vsel %vm2719_vm0, %v2591_v5, 0.0  ;;  %v1310_v20 = vcombine.high %v11401_v42, %v11401_v42  ;;  %v1312_v22 = vcombine.high %v11405_v50, %v11405_v50  ;;  %v665_v14 = vadd.f32 %v9969_v30, %v11359_v46 }
 0x14e   :  { %v11487_v38 = vadd.f32 %v11371_v61, %v853_v34  ;;  %v2593_v34 = vmul.f32 %v1962_v13, %v17212_v45  ;;  %2721 = vadd.xlane.f32.xlu0 %v2720_v0  ;;  %v845_v28 = vadd.f32 %v844_v56, %v652_v60  ;;  %v821_v6 = vadd.f32 %v11381_v8, %v628_v4  ;;  %v11510_v60 = vld [vmem:[%s17193_s1 + $0x2a] sm:$0x3]  ;;  %v11639_v45 = vld [vmem:[%s17193_s1 + $0x32] sm:$0x3] }
 0x14f   :  { %v9973_v26 = vpop.f32.mrf.mxu0  ;;  %v10249_v33 = vpop.f32.mrf.mxu1  ;;  %v9972_v7 = vadd.f32 %v9971_v27, %v9970_v29  ;;  %17533 = vst [vmem:[#allocation34_spill] sm:$0xff] %v11510_v60  ;;  %v2026_v50 = vrot.slane %v1310_v20, %v11393_v18  ;;  %v2030_v8 = vrot.slane %v1312_v22, %v11393_v18  ;;  %v1167_v46 = vcombine.high %v11408_v25, %v11408_v25 }
 0x150   :  { %v2726_v21 = vsel %vm2719_vm0, %v2593_v34, 0.0  ;;  %v11513_v42 = vadd.f32 %v11371_v61, %v845_v28  ;;  %v11521_v27 = vrot.slane %v1279_v53, %v11374_v63  ;;  %v1281_v30 = vcombine.high %v1279_v53, %v1279_v53  ;;  %17542 = vst [vmem:[#allocation42_spill] sm:$0xff] %v11639_v45 }
 0x151   :  { %v9974_v55 = vpop.f32.mrf.mxu0  ;;  %v857_v9 = vpop.f32.mrf.mxu1  ;;  %2727 = vadd.xlane.f32.xlu1 %v2726_v21  ;;  %v17534_v4 = vunpack.c.l.bf16 %v11459_v40  ;;  %v2610_v0 = vmul.f32 %v2030_v8, %v17219_v47  ;;  %v17216_v34 = vunpack.c.l.bf16 %v11510_v60  ;;  %v1181_v21 = vrot.slane %v1167_v46, %v11374_v63 }
 0x152   :  { %v9975_v39 = vadd.f32 %v9974_v55, %v9973_v26  ;;  %v858_v29 = vadd.f32 %v857_v9, %v665_v14  ;;  %v620_v26 = vadd.f32 %v9936_v19, %v11339_v23  ;;  %v2034_v25 = vrot.slane %v11521_v27, %v11393_v18 }
 0x153   :  { %v9976_v5 = vpop.f32.mrf.mxu0  ;;  %v10250_v13 = vpop.f32.mrf.mxu1  ;;  %v2609_v28 = vmul.f32 %v2026_v50, %v17534_v4  ;;  %v11535_v9 = vrot.slane %v1281_v30, %v11374_v63  ;;  %v11538_v19 = vadd.f32 %v11371_v61, %v821_v6  ;;  %v2777_v22 = vsel %vm2719_vm0, %v2610_v0, 0.0 }
 0x154   :  { %v673_v56 = vadd.f32 %v11357_v41, %v9975_v39  ;;  %v11530_v41 = vadd.f32 %v11371_v61, %v858_v29  ;;  %v11546_v39 = vld [vmem:[%s17193_s1 + $0x2] sm:$0x3]  ;;  %v1182_v14 = vcombine.high %v11424_v24, %v11424_v24  ;;  %v2611_v50 = vmul.f32 %v2034_v25, %v17217_v44  ;;  %v11563_v24 = vld [vmem:[%s17193_s1 + $0x6] sm:$0x3]  ;;  %v11568_v29 = vld [vmem:[%s17193_s1 + $0x8] sm:$0x3] }
 0x155   :  { %v9977_v53 = vpop.f32.mrf.mxu0  ;;  %v860_v23 = vpop.f32.mrf.mxu1  ;;  %v2774_v20 = vsel %vm2719_vm0, %v2609_v28, 0.0  ;;  %17535 = vst [vmem:[#allocation35_spill] sm:$0xff] %v11546_v39  ;;  %2778 = vadd.xlane.f32.xlu1 %v2777_v22  ;;  %v17214_v46 = vunpack.c.l.bf16 %v11546_v39  ;;  %17536 = vst [vmem:[#allocation36_spill] sm:$0xff] %v11563_v24  ;;  %v1197_v0 = vrot.slane %v1181_v21, %v11374_v63  ;;  %v1183_v25 = vcombine.high %v1181_v21, %v1181_v21 }
 0x156   :  { %v866_v55 = vadd.f32 %v10249_v33, %v673_v56  ;;  %v668_v33 = vadd.f32 %v9972_v7, %v11366_v54  ;;  %2775 = vadd.xlane.f32.xlu0 %v2774_v20  ;;  %v2038_v54 = vrot.slane %v11535_v9, %v11393_v18  ;;  %v9978_v7 = vadd.f32 %v9977_v53, %v9976_v5 }
 0x157   :  { %v813_v56 = vadd.f32 %v11385_v16, %v620_v26  ;;  %17537 = vst [vmem:[#allocation37_spill] sm:$0xff] %v11568_v29  ;;  %v2780_v30 = vsel %vm2719_vm0, %v2611_v50, 0.0  ;;  %v1321_v26 = vrot.slane %v11538_v19, %v11374_v63  ;;  %v1204_v28 = vrot.slane %v1182_v14, %v11374_v63 }
 0x158   :  { %v11552_v6 = vadd.f32 %v11371_v61, %v866_v55  ;;  %v861_v8 = vadd.f32 %v860_v23, %v668_v33  ;;  %v2612_v5 = vmul.f32 %v2038_v54, %v17216_v34  ;;  %v676_v4 = vadd.f32 %v11361_v49, %v9978_v7  ;;  %v11584_v55 = vld [vmem:[%s17193_s1 + $0xa] sm:$0x3]  ;;  %v11602_v7 = vld [vmem:[%s17193_s1 + $0x2c] sm:$0x3]  ;;  %v11663_v34 = vld [vmem:[%s17193_s1 + $0xe] sm:$0x3] }
 0x159   :  { %17538 = vst [vmem:[#allocation38_spill] sm:$0xff] %v11584_v55  ;;  %v17211_v23 = vunpack.c.l.bf16 %v11563_v24  ;;  %v17210_v20 = vunpack.c.l.bf16 %v11568_v29  ;;  %v1958_v22 = vrot.slane %v1204_v28, %v11393_v18  ;;  %v1214_v33 = vcombine.high %v1204_v28, %v1204_v28  ;;  %17539 = vst [vmem:[#allocation39_spill] sm:$0xff] %v11602_v7  ;;  %v12617_v24 = vld [vmem:[%s17193_s1 + $0x9c] sm:$0x3] }
 0x15a   :  { %v11575_v16 = vadd.f32 %v11371_v61, %v861_v8  ;;  %2781 = vadd.xlane.f32.xlu0 %v2780_v30  ;;  %v2783_v53 = vsel %vm2719_vm0, %v2612_v5, 0.0  ;;  %v869_v49 = vadd.f32 %v10250_v13, %v676_v4  ;;  %v1970_v14 = vrot.slane %v1197_v0, %v11393_v18  ;;  %17544 = vst [vmem:[#allocation44_spill] sm:$0xff] %v11663_v34 }
 0x15b   :  { %2784 = vadd.xlane.f32.xlu1 %v2783_v53  ;;  %v1211_v50 = vrot.slane %v1183_v25, %v11374_v63  ;;  %v11593_v54 = vadd.f32 %v11371_v61, %v813_v56  ;;  %v17213_v13 = vunpack.c.l.bf16 %v11584_v55  ;;  %v1329_v8 = vcombine.high %v1321_v26, %v1321_v26  ;;  %17702 = vst [vmem:[#allocation130_spill] sm:$0xff] %v12617_v24 }
 0x15c   :  { %v11596_v21 = vadd.f32 %v11371_v61, %v869_v49  ;;  %v2592_v30 = vmul.f32 %v1958_v22, %v17214_v46  ;;  %v1966_v5 = vrot.slane %v1214_v33, %v11393_v18  ;;  %v1311_v56 = vcombine.high %v11521_v27, %v11521_v27  ;;  %v11613_v61 = vld [vmem:[%s17193_s1 + $0x2e] sm:$0x3]  ;;  %v11624_v22 = vld [vmem:[%s17193_s1 + $0x30] sm:$0x3] }
 0x15d   :  { %v1974_v4 = vrot.slane %v1211_v50, %v11393_v18  ;;  %17540 = vst [vmem:[#allocation40_spill] sm:$0xff] %v11613_v61  ;;  %v2595_v53 = vmul.f32 %v1970_v14, %v17210_v20  ;;  %v17215_v49 = vunpack.c.l.bf16 %v11602_v7  ;;  %17541 = vst [vmem:[#allocation41_spill] sm:$0xff] %v11624_v22  ;;  %v1223_v27 = vrot.slane %v11593_v54, %v11374_v63 }
 0x15e   :  { %v2723_v28 = vsel %vm2719_vm0, %v2592_v30, 0.0  ;;  %v2594_v25 = vmul.f32 %v1966_v5, %v17211_v23  ;;  %v2042_v33 = vrot.slane %v1311_v56, %v11393_v18  ;;  %v1313_v30 = vcombine.high %v11535_v9, %v11535_v9 }
 0x15f   :  { %2724 = vadd.xlane.f32.xlu0 %v2723_v28  ;;  %v1337_v5 = vrot.slane %v1321_v26, %v11374_v63  ;;  %v2596_v20 = vmul.f32 %v1974_v4, %v17213_v13  ;;  %v17218_v23 = vunpack.c.l.bf16 %v11613_v61  ;;  %v1351_v28 = vrot.slane %v1329_v8, %v11374_v63  ;;  %v11651_v13 = vld [vmem:[%s17193_s1 + $0xc] sm:$0x3] }
 0x160   :  { %v2729_v14 = vsel %vm2719_vm0, %v2594_v25, 0.0  ;;  %v2046_v56 = vrot.slane %v1313_v30, %v11393_v18  ;;  %v17220_v9 = vunpack.c.l.bf16 %v11624_v22  ;;  %v2732_v26 = vsel %vm2719_vm0, %v2595_v53, 0.0  ;;  %17543 = vst [vmem:[#allocation43_spill] sm:$0xff] %v11651_v13 }
 0x161   :  { %2730 = vadd.xlane.f32.xlu1 %v2729_v14  ;;  %v2613_v25 = vmul.f32 %v2042_v33, %v17215_v49  ;;  %v2050_v4 = vrot.slane %v1337_v5, %v11393_v18  ;;  %v1213_v46 = vcombine.high %v1197_v0, %v1197_v0  ;;  %v1314_v8 = vcombine.high %v11538_v19, %v11538_v19 }
 0x162   :  { %v1231_v14 = vcombine.high %v1223_v27, %v1223_v27  ;;  %v17221_v30 = vunpack.c.l.bf16 %v11639_v45  ;;  %v2735_v53 = vsel %vm2719_vm0, %v2596_v20, 0.0  ;;  %v2614_v33 = vmul.f32 %v2046_v56, %v17218_v23  ;;  %v11673_v56 = vld [vmem:[%s17193_s1 + $0x10] sm:$0x3] }
 0x163   :  { %2733 = vadd.xlane.f32.xlu0 %v2732_v26  ;;  %v2054_v49 = vrot.slane %v1351_v28, %v11393_v18  ;;  %v1215_v0 = vcombine.high %v1211_v50, %v1211_v50  ;;  %v17222_v19 = vunpack.c.l.bf16 %v11651_v13  ;;  %v2786_v26 = vsel %vm2719_vm0, %v2613_v25, 0.0  ;;  %17545 = vst [vmem:[#allocation45_spill] sm:$0xff] %v11673_v56  ;;  %v12500_v13 = vld [vmem:[%s17193_s1 + $0xb8] sm:$0x3] }
 0x164   :  { %v2615_v44 = vmul.f32 %v2050_v4, %v17220_v9  ;;  %v1978_v20 = vrot.slane %v1213_v46, %v11393_v18  ;;  %v1239_v23 = vrot.slane %v1223_v27, %v11374_v63  ;;  %v17224_v50 = vunpack.c.l.bf16 %v11663_v34  ;;  %v11688_v9 = vld [vmem:[%s17193_s1 + $0x12] sm:$0x3]  ;;  %17681 = vst [vmem:[#allocation117_spill] sm:$0xff] %v12500_v13 }
 0x165   :  { %2736 = vadd.xlane.f32.xlu1 %v2735_v53  ;;  %v11678_v53 = vrot.slane %v1231_v14, %v11374_v63  ;;  %v1328_v25 = vrot.slane %v1314_v8, %v11374_v63  ;;  %v2789_v47 = vsel %vm2719_vm0, %v2614_v33, 0.0  ;;  %v2616_v46 = vmul.f32 %v2054_v49, %v17221_v30  ;;  %17546 = vst [vmem:[#allocation46_spill] sm:$0xff] %v11688_v9  ;;  %v11698_v49 = vld [vmem:[%s17193_s1 + $0x34] sm:$0x3] }
 0x166   :  { %v1982_v4 = vrot.slane %v1215_v0, %v11393_v18  ;;  %v2792_v14 = vsel %vm2719_vm0, %v2615_v44, 0.0  ;;  %v2597_v8 = vmul.f32 %v1978_v20, %v17222_v19  ;;  %v1986_v33 = vrot.slane %v1239_v23, %v11393_v18  ;;  %17547 = vst [vmem:[#allocation47_spill] sm:$0xff] %v11698_v49  ;;  %v11711_v19 = vld [vmem:[%s17193_s1 + $0x36] sm:$0x3] }
 0x167   :  { %2787 = vadd.xlane.f32.xlu0 %v2786_v26  ;;  %v1359_v0 = vcombine.high %v1337_v5, %v1337_v5  ;;  %v1216_v26 = vcombine.high %v11593_v54, %v11593_v54  ;;  %v1990_v44 = vrot.slane %v11678_v53, %v11393_v18  ;;  %v2795_v30 = vsel %vm2719_vm0, %v2616_v46, 0.0  ;;  %17548 = vst [vmem:[#allocation48_spill] sm:$0xff] %v11711_v19 }
 0x168   :  { %v2598_v20 = vmul.f32 %v1982_v4, %v17224_v50  ;;  %v1361_v5 = vcombine.high %v1351_v28, %v1351_v28  ;;  %v1330_v27 = vcombine.high %v1328_v25, %v1328_v25  ;;  %v11721_v4 = vld [vmem:[%s17193_s1 + $0x38] sm:$0x3]  ;;  %v1344_v50 = vrot.slane %v1328_v25, %v11374_v63 }
 0x169   :  { %2790 = vadd.xlane.f32.xlu1 %v2789_v47  ;;  %v17549_v47 = vunpack.c.l.bf16 %v11673_v56  ;;  %v2058_v46 = vrot.slane %v1359_v0, %v11393_v18  ;;  %17550 = vst [vmem:[#allocation49_spill] sm:$0xff] %v11721_v4  ;;  %v17551_v28 = vunpack.c.l.bf16 %v11688_v9  ;;  %v11733_v0 = vld [vmem:[%s17193_s1 + $0x3a] sm:$0x3]  ;;  %v11846_v56 = vld [vmem:[%s17193_s1 + $0x1e] sm:$0x3] }
 0x16a   :  { %v2741_v11 = vsel %vm2719_vm0, %v2598_v20, 0.0  ;;  %17552 = vst [vmem:[#allocation50_spill] sm:$0xff] %v11733_v0  ;;  %v11744_v20 = vld [vmem:[%s17193_s1 + $0x14] sm:$0x3]  ;;  %17572 = vst [vmem:[#allocation60_spill] sm:$0xff] %v11846_v56 }
 0x16b   :  { %2793 = vadd.xlane.f32.xlu0 %v2792_v14  ;;  %v2738_v14 = vsel %vm2719_vm0, %v2597_v8, 0.0  ;;  %v2599_v15 = vmul.f32 %v1986_v33, %v17549_v47  ;;  %v1230_v8 = vrot.slane %v1216_v26, %v11374_v63  ;;  %v2062_v33 = vrot.slane %v1361_v5, %v11393_v18  ;;  %17554 = vst [vmem:[#allocation51_spill] sm:$0xff] %v11744_v20 }
 0x16c   :  { %v1358_v47 = vrot.slane %v1330_v27, %v11374_v63  ;;  %v2066_v26 = vrot.slane %v1344_v50, %v11393_v18  ;;  %v1261_v5 = vcombine.high %v1239_v23, %v1239_v23  ;;  %v17555_v27 = vunpack.c.l.bf16 %v11711_v19 }
 0x16d   :  { %2796 = vadd.xlane.f32.xlu1 %v2795_v30  ;;  %v2600_v30 = vmul.f32 %v1990_v44, %v17551_v28  ;;  %v2744_v44 = vsel %vm2719_vm0, %v2599_v15, 0.0  ;;  %v1232_v10 = vcombine.high %v1230_v8, %v1230_v8  ;;  %v1246_v3 = vrot.slane %v1230_v8, %v11374_v63 }
 0x16e   :  { %v2618_v25 = vmul.f32 %v2062_v33, %v17555_v27  ;;  %v2070_v15 = vrot.slane %v1358_v47, %v11393_v18  ;;  %v1994_v33 = vrot.slane %v1261_v5, %v11393_v18  ;;  %v11766_v27 = vld [vmem:[%s17193_s1 + $0x18] sm:$0x3]  ;;  %v17559_v23 = vunpack.c.l.bf16 %v11733_v0 }
 0x16f   :  { %2739 = vadd.xlane.f32.xlu0 %v2738_v14  ;;  %v17553_v14 = vunpack.c.l.bf16 %v11698_v49  ;;  %v2747_v54 = vsel %vm2719_vm0, %v2600_v30, 0.0  ;;  %17558 = vst [vmem:[#allocation53_spill] sm:$0xff] %v11766_v27  ;;  %v1260_v8 = vrot.slane %v1232_v10, %v11374_v63  ;;  %v2002_v59 = vrot.slane %v1246_v3, %v11393_v18 }
 0x170   :  { %v17565_v10 = vunpack.c.l.bf16 %v11766_v27 }
 0x171   :  { %2742 = vadd.xlane.f32.xlu1 %v2741_v11  ;;  %v2617_v28 = vmul.f32 %v2058_v46, %v17553_v14  ;;  %v11754_v46 = vld [vmem:[%s17193_s1 + $0x16] sm:$0x3]  ;;  %v1263_v14 = vcombine.high %v11678_v53, %v11678_v53  ;;  %v1468_v53 = vrot.slane %v11414_v62, %v11374_v63  ;;  %v2006_v58 = vrot.slane %v1260_v8, %v11393_v18 }
 0x172   :  { %17556 = vst [vmem:[#allocation52_spill] sm:$0xff] %v11754_v46  ;;  %v17563_v2 = vunpack.c.l.bf16 %v11754_v46  ;;  %v2603_v51 = vmul.f32 %v2002_v59, %v17565_v10  ;;  %v11823_v10 = vld [vmem:[%s17193_s1 + $0x62] sm:$0x3] }
 0x173   :  { %2745 = vadd.xlane.f32.xlu0 %v2744_v44  ;;  %v2798_v30 = vsel %vm2719_vm0, %v2617_v28, 0.0  ;;  %v17557_v44 = vunpack.c.l.bf16 %v11721_v4  ;;  %v2801_v28 = vsel %vm2719_vm0, %v2618_v25, 0.0  ;;  %v1998_v5 = vrot.slane %v1263_v14, %v11393_v18  ;;  %17568 = vst [vmem:[#allocation58_spill] sm:$0xff] %v11823_v10 }
 0x174   :  { %v1360_v14 = vcombine.high %v1344_v50, %v1344_v50 }
 0x175   :  { %2748 = vadd.xlane.f32.xlu1 %v2747_v54  ;;  %v2619_v11 = vmul.f32 %v2066_v26, %v17557_v44  ;;  %v2620_v26 = vmul.f32 %v2070_v15, %v17559_v23  ;;  %v11779_v44 = vld [vmem:[%s17193_s1 + $0x1a] sm:$0x3]  ;;  %v17561_v54 = vunpack.c.l.bf16 %v11744_v20  ;;  %v11790_v15 = vld [vmem:[%s17193_s1 + $0x3c] sm:$0x3]  ;;  %v1476_v23 = vcombine.high %v1468_v53, %v1468_v53 }
 0x176   :  { %17560 = vst [vmem:[#allocation54_spill] sm:$0xff] %v11779_v44  ;;  %17562 = vst [vmem:[#allocation55_spill] sm:$0xff] %v11790_v15  ;;  %v17567_v50 = vunpack.c.l.bf16 %v11779_v44 }
 0x177   :  { %2799 = vadd.xlane.f32.xlu0 %v2798_v30  ;;  %v2804_v30 = vsel %vm2719_vm0, %v2619_v11, 0.0  ;;  %v2601_v25 = vmul.f32 %v1994_v33, %v17561_v54  ;;  %v2602_v11 = vmul.f32 %v1998_v5, %v17563_v2  ;;  %v11800_v33 = vld [vmem:[%s17193_s1 + $0x3e] sm:$0x3]  ;;  %v1362_v54 = vcombine.high %v1358_v47, %v1358_v47  ;;  %v11810_v2 = vld [vmem:[%s17193_s1 + $0x60] sm:$0x3] }
 0x178   :  { %17564 = vst [vmem:[#allocation56_spill] sm:$0xff] %v11800_v33  ;;  %17566 = vst [vmem:[#allocation57_spill] sm:$0xff] %v11810_v2  ;;  %v1484_v5 = vrot.slane %v1468_v53, %v11374_v63  ;;  %v1370_v47 = vrot.slane %v11420_v12, %v11374_v63  ;;  %v2604_v59 = vmul.f32 %v2006_v58, %v17567_v50  ;;  %v11834_v58 = vld [vmem:[%s17193_s1 + $0x1c] sm:$0x3] }
 0x179   :  { %2802 = vadd.xlane.f32.xlu1 %v2801_v28  ;;  %v2807_v28 = vsel %vm2719_vm0, %v2620_v26, 0.0  ;;  %v2074_v26 = vrot.slane %v1360_v14, %v11393_v18  ;;  %v2078_v14 = vrot.slane %v1362_v54, %v11393_v18  ;;  %v1498_v53 = vrot.slane %v1476_v23, %v11374_v63  ;;  %17570 = vst [vmem:[#allocation59_spill] sm:$0xff] %v11834_v58 }
 0x17a   :  { %v2146_v20 = vrot.slane %v1484_v5, %v11393_v18  ;;  %v1262_v54 = vcombine.high %v1246_v3, %v1246_v3  ;;  %v1461_v50 = vcombine.high %v11414_v62, %v11414_v62  ;;  %v1378_v27 = vcombine.high %v1370_v47, %v1370_v47 }
 0x17b   :  { %2805 = vadd.xlane.f32.xlu0 %v2804_v30  ;;  %v2750_v30 = vsel %vm2719_vm0, %v2601_v25, 0.0  ;;  %v2753_v25 = vsel %vm2719_vm0, %v2602_v11, 0.0  ;;  %v2150_v9 = vrot.slane %v1498_v53, %v11393_v18  ;;  %v1363_v23 = vcombine.high %v11420_v12, %v11420_v12 }
 0x17c   :  { %v1475_v3 = vrot.slane %v1461_v50, %v11374_v63  ;;  %v1508_v19 = vcombine.high %v1498_v53, %v1498_v53 }
 0x17d   :  { %2808 = vadd.xlane.f32.xlu1 %v2807_v28  ;;  %v17569_v28 = vunpack.c.l.bf16 %v11790_v15  ;;  %v1377_v53 = vrot.slane %v1363_v23, %v11374_v63 }
 0x17f   :  { %2751 = vadd.xlane.f32.xlu0 %v2750_v30  ;;  %v2756_v30 = vsel %vm2719_vm0, %v2603_v51, 0.0  ;;  %v2621_v11 = vmul.f32 %v2074_v26, %v17569_v28  ;;  %v2759_v51 = vsel %vm2719_vm0, %v2604_v59, 0.0  ;;  %v17571_v26 = vunpack.c.l.bf16 %v11800_v33  ;;  %v12603_v33 = vld [vmem:[%s17193_s1 + $0xbe] sm:$0x3] }
 0x180   :  { %v2010_v59 = vrot.slane %v1262_v54, %v11393_v18  ;;  %v11868_v54 = vld [vmem:[%s17193_s1 + $0x42] sm:$0x3]  ;;  %17699 = vst [vmem:[#allocation128_spill] sm:$0xff] %v12603_v33 }
 0x181   :  { %2754 = vadd.xlane.f32.xlu1 %v2753_v25  ;;  %v1264_v25 = vcombine.high %v1260_v8, %v1260_v8  ;;  %v2622_v28 = vmul.f32 %v2078_v14, %v17571_v26  ;;  %v2810_v62 = vsel %vm2719_vm0, %v2621_v11, 0.0  ;;  %v17573_v8 = vunpack.c.l.bf16 %v11810_v2  ;;  %v11856_v14 = vld [vmem:[%s17193_s1 + $0x40] sm:$0x3]  ;;  %17576 = vst [vmem:[#allocation62_spill] sm:$0xff] %v11868_v54 }
 0x182   :  { %17574 = vst [vmem:[#allocation61_spill] sm:$0xff] %v11856_v14  ;;  %v1386_v26 = vrot.slane %v1370_v47, %v11374_v63  ;;  %v1400_v2 = vrot.slane %v1378_v27, %v11374_v63  ;;  %v17579_v27 = vunpack.c.l.bf16 %v11846_v56 }
 0x183   :  { %2757 = vadd.xlane.f32.xlu0 %v2756_v30  ;;  %v2639_v30 = vmul.f32 %v2146_v20, %v17573_v8  ;;  %v2813_v11 = vsel %vm2719_vm0, %v2622_v28, 0.0  ;;  %v17575_v20 = vunpack.c.l.bf16 %v11823_v10  ;;  %v1491_v10 = vrot.slane %v1475_v3, %v11374_v63 }
 0x184   :  { %v2082_v28 = vrot.slane %v1386_v26, %v11393_v18 }
 0x185   :  { %2760 = vadd.xlane.f32.xlu1 %v2759_v51  ;;  %v2014_v51 = vrot.slane %v1264_v25, %v11393_v18  ;;  %v2640_v8 = vmul.f32 %v2150_v9, %v17575_v20  ;;  %v17577_v25 = vunpack.c.l.bf16 %v11834_v58  ;;  %v11879_v9 = vld [vmem:[%s17193_s1 + $0x64] sm:$0x3]  ;;  %v1506_v20 = vcombine.high %v1484_v5, %v1484_v5 }
 0x186   :  { %17578 = vst [vmem:[#allocation63_spill] sm:$0xff] %v11879_v9  ;;  %v1477_v5 = vcombine.high %v1475_v3, %v1475_v3 }
 0x187   :  { %2811 = vadd.xlane.f32.xlu0 %v2810_v62  ;;  %v2864_v62 = vsel %vm2719_vm0, %v2639_v30, 0.0  ;;  %v2605_v50 = vmul.f32 %v2010_v59, %v17577_v25  ;;  %v2867_v47 = vsel %vm2719_vm0, %v2640_v8, 0.0  ;;  %v2086_v59 = vrot.slane %v1400_v2, %v11393_v18  ;;  %v11891_v25 = vld [vmem:[%s17193_s1 + $0x66] sm:$0x3]  ;;  %v11901_v8 = vld [vmem:[%s17193_s1 + $0x68] sm:$0x3] }
 0x188   :  { %17580 = vst [vmem:[#allocation64_spill] sm:$0xff] %v11891_v25  ;;  %v2154_v30 = vrot.slane %v1506_v20, %v11393_v18  ;;  %17582 = vst [vmem:[#allocation65_spill] sm:$0xff] %v11901_v8  ;;  %v11913_v20 = vld [vmem:[%s17193_s1 + $0x6a] sm:$0x3]  ;;  %v17587_v23 = vunpack.c.l.bf16 %v11891_v25  ;;  %v1517_v25 = vrot.slane %v11432_v57, %v11374_v63 }
 0x189   :  { %2814 = vadd.xlane.f32.xlu1 %v2813_v11  ;;  %v2606_v11 = vmul.f32 %v2014_v51, %v17579_v27  ;;  %v17581_v51 = vunpack.c.l.bf16 %v11856_v14  ;;  %17584 = vst [vmem:[#allocation66_spill] sm:$0xff] %v11913_v20 }
 0x18b   :  { %2865 = vadd.xlane.f32.xlu0 %v2864_v62  ;;  %v2762_v62 = vsel %vm2719_vm0, %v2605_v50, 0.0  ;;  %v2623_v27 = vmul.f32 %v2082_v28, %v17581_v51  ;;  %v2765_v12 = vsel %vm2719_vm0, %v2606_v11, 0.0  ;;  %v17583_v50 = vunpack.c.l.bf16 %v11868_v54 }
 0x18c   :  { %v2158_v28 = vrot.slane %v1508_v19, %v11393_v18  ;;  %v1505_v51 = vrot.slane %v1477_v5, %v11374_v63  ;;  %v11924_v19 = vld [vmem:[%s17193_s1 + $0x44] sm:$0x3]  ;;  %v1410_v5 = vcombine.high %v1400_v2, %v1400_v2  ;;  %v17589_v2 = vunpack.c.l.bf16 %v11901_v8 }
 0x18d   :  { %2868 = vadd.xlane.f32.xlu1 %v2867_v47  ;;  %v2624_v14 = vmul.f32 %v2086_v59, %v17583_v50  ;;  %v2816_v3 = vsel %vm2719_vm0, %v2623_v27, 0.0  ;;  %v2162_v47 = vrot.slane %v1491_v10, %v11393_v18  ;;  %17586 = vst [vmem:[#allocation67_spill] sm:$0xff] %v11924_v19  ;;  %v1408_v59 = vcombine.high %v1386_v26, %v1386_v26 }
 0x18e   :  { %v2642_v27 = vmul.f32 %v2158_v28, %v17587_v23  ;;  %v11944_v28 = vld [vmem:[%s17193_s1 + $0x48] sm:$0x3]  ;;  %v1393_v23 = vrot.slane %v1377_v53, %v11374_v63  ;;  %v17591_v26 = vunpack.c.l.bf16 %v11913_v20 }
 0x18f   :  { %2763 = vadd.xlane.f32.xlu0 %v2762_v62  ;;  %v17585_v62 = vunpack.c.l.bf16 %v11879_v9  ;;  %v2166_v9 = vrot.slane %v1505_v51, %v11393_v18  ;;  %v2643_v50 = vmul.f32 %v2162_v47, %v17589_v2  ;;  %17590 = vst [vmem:[#allocation69_spill] sm:$0xff] %v11944_v28  ;;  %v11957_v2 = vld [vmem:[%s17193_s1 + $0x4a] sm:$0x3] }
 0x190   :  { %17592 = vst [vmem:[#allocation70_spill] sm:$0xff] %v11957_v2  ;;  %v2098_v20 = vrot.slane %v1393_v23, %v11393_v18 }
 0x191   :  { %2766 = vadd.xlane.f32.xlu1 %v2765_v12  ;;  %v2641_v11 = vmul.f32 %v2154_v30, %v17585_v62  ;;  %v2819_v12 = vsel %vm2719_vm0, %v2624_v14, 0.0  ;;  %v11934_v30 = vld [vmem:[%s17193_s1 + $0x46] sm:$0x3]  ;;  %v1379_v62 = vcombine.high %v1377_v53, %v1377_v53  ;;  %v2090_v14 = vrot.slane %v1408_v59, %v11393_v18 }
 0x192   :  { %17588 = vst [vmem:[#allocation68_spill] sm:$0xff] %v11934_v30  ;;  %v2644_v47 = vmul.f32 %v2166_v9, %v17591_v26  ;;  %v2094_v59 = vrot.slane %v1410_v5, %v11393_v18  ;;  %v11968_v9 = vld [vmem:[%s17193_s1 + $0x6c] sm:$0x3]  ;;  %v1507_v5 = vcombine.high %v1491_v10, %v1491_v10  ;;  %v1525_v26 = vcombine.high %v1517_v25, %v1517_v25 }
 0x193   :  { %2817 = vadd.xlane.f32.xlu0 %v2816_v3  ;;  %v2870_v3 = vsel %vm2719_vm0, %v2641_v11, 0.0  ;;  %v2873_v11 = vsel %vm2719_vm0, %v2642_v27, 0.0  ;;  %v1407_v53 = vrot.slane %v1379_v62, %v11374_v63  ;;  %17594 = vst [vmem:[#allocation71_spill] sm:$0xff] %v11968_v9  ;;  %v17595_v8 = vunpack.c.l.bf16 %v11934_v30  ;;  %v12027_v30 = vld [vmem:[%s17193_s1 + $0x4e] sm:$0x3] }
 0x194   :  { %v17597_v62 = vunpack.c.l.bf16 %v11944_v28  ;;  %17604 = vst [vmem:[#allocation76_spill] sm:$0xff] %v12027_v30 }
 0x195   :  { %2820 = vadd.xlane.f32.xlu1 %v2819_v12  ;;  %v17593_v12 = vunpack.c.l.bf16 %v11924_v19  ;;  %v2102_v19 = vrot.slane %v1407_v53, %v11393_v18 }
 0x196   :  { %v2627_v54 = vmul.f32 %v2098_v20, %v17597_v62 }
 0x197   :  { %2871 = vadd.xlane.f32.xlu0 %v2870_v3  ;;  %v2876_v3 = vsel %vm2719_vm0, %v2643_v50, 0.0  ;;  %v2625_v27 = vmul.f32 %v2090_v14, %v17593_v12  ;;  %v2626_v50 = vmul.f32 %v2094_v59, %v17595_v8  ;;  %v11978_v14 = vld [vmem:[%s17193_s1 + $0x6e] sm:$0x3]  ;;  %v1509_v12 = vcombine.high %v1505_v51, %v1505_v51  ;;  %v11988_v8 = vld [vmem:[%s17193_s1 + $0x70] sm:$0x3] }
 0x198   :  { %17596 = vst [vmem:[#allocation72_spill] sm:$0xff] %v11978_v14  ;;  %17598 = vst [vmem:[#allocation73_spill] sm:$0xff] %v11988_v8  ;;  %v1533_v59 = vrot.slane %v1517_v25, %v11374_v63  ;;  %v12004_v25 = vld [vmem:[%s17193_s1 + $0x72] sm:$0x3]  ;;  %v17601_v51 = vunpack.c.l.bf16 %v11968_v9 }
 0x199   :  { %2874 = vadd.xlane.f32.xlu1 %v2873_v11  ;;  %v2879_v11 = vsel %vm2719_vm0, %v2644_v47, 0.0  ;;  %v2170_v47 = vrot.slane %v1507_v5, %v11393_v18  ;;  %v2825_v20 = vsel %vm2719_vm0, %v2626_v50, 0.0  ;;  %v17599_v5 = vunpack.c.l.bf16 %v11957_v2  ;;  %17600 = vst [vmem:[#allocation74_spill] sm:$0xff] %v12004_v25 }
 0x19a   :  { %v2174_v10 = vrot.slane %v1509_v12, %v11393_v18  ;;  %v2178_v50 = vrot.slane %v1533_v59, %v11393_v18  ;;  %v1409_v12 = vcombine.high %v1393_v23, %v1393_v23  ;;  %v1411_v23 = vcombine.high %v1407_v53, %v1407_v53 }
 0x19b   :  { %2877 = vadd.xlane.f32.xlu0 %v2876_v3  ;;  %v2822_v3 = vsel %vm2719_vm0, %v2625_v27, 0.0  ;;  %v1419_v27 = vrot.slane %v11444_v1, %v11374_v63  ;;  %v2628_v62 = vmul.f32 %v2102_v19, %v17599_v5  ;;  %v2645_v28 = vmul.f32 %v2170_v47, %v17601_v51  ;;  %v12014_v19 = vld [vmem:[%s17193_s1 + $0x4c] sm:$0x3] }
 0x19c   :  { %17602 = vst [vmem:[#allocation75_spill] sm:$0xff] %v12014_v19  ;;  %v1510_v5 = vcombine.high %v11432_v57, %v11432_v57  ;;  %v17603_v51 = vunpack.c.l.bf16 %v11978_v14  ;;  %v2106_v45 = vrot.slane %v1409_v12, %v11393_v18  ;;  %v17607_v53 = vunpack.c.l.bf16 %v12004_v25  ;;  %v12049_v12 = vld [vmem:[%s17193_s1 + $0x52] sm:$0x3] }
 0x19d   :  { %2880 = vadd.xlane.f32.xlu1 %v2879_v11  ;;  %v11993_v11 = vrot.slane %v1525_v26, %v11374_v63  ;;  %v2828_v26 = vsel %vm2719_vm0, %v2627_v54, 0.0  ;;  %v2831_v47 = vsel %vm2719_vm0, %v2628_v62, 0.0  ;;  %v1435_v62 = vrot.slane %v1419_v27, %v11374_v63  ;;  %17608 = vst [vmem:[#allocation78_spill] sm:$0xff] %v12049_v12 }
 0x19e   :  { %v2646_v2 = vmul.f32 %v2174_v10, %v17603_v51  ;;  %v12037_v10 = vld [vmem:[%s17193_s1 + $0x50] sm:$0x3]  ;;  %v1412_v51 = vcombine.high %v11444_v1, %v11444_v1  ;;  %v1664_v14 = vrot.slane %v11462_v43, %v11374_v63 }
 0x19f   :  { %2823 = vadd.xlane.f32.xlu0 %v2822_v3  ;;  %v2182_v54 = vrot.slane %v11993_v11, %v11393_v18  ;;  %v1427_v3 = vcombine.high %v1419_v27, %v1419_v27  ;;  %17606 = vst [vmem:[#allocation77_spill] sm:$0xff] %v12037_v10 }
 0x1a0   :  { %v2885_v57 = vsel %vm2719_vm0, %v2646_v2, 0.0  ;;  %v12060_v2 = vld [vmem:[%s17193_s1 + $0x74] sm:$0x3] }
 0x1a1   :  { %2826 = vadd.xlane.f32.xlu1 %v2825_v20  ;;  %v17605_v20 = vunpack.c.l.bf16 %v11988_v8  ;;  %17610 = vst [vmem:[#allocation79_spill] sm:$0xff] %v12060_v2 }
 0x1a3   :  { %2829 = vadd.xlane.f32.xlu0 %v2828_v26  ;;  %v2882_v26 = vsel %vm2719_vm0, %v2645_v28, 0.0  ;;  %v2647_v9 = vmul.f32 %v2178_v50, %v17605_v20  ;;  %v1524_v28 = vrot.slane %v1510_v5, %v11374_v63  ;;  %v2110_v50 = vrot.slane %v1411_v23, %v11393_v18 }
 0x1a4   :  { %v1449_v20 = vrot.slane %v1427_v3, %v11374_v63  ;;  %v2114_v5 = vrot.slane %v1435_v62, %v11393_v18  ;;  %v1555_v23 = vcombine.high %v1533_v59, %v1533_v59  ;;  %v1557_v59 = vcombine.high %v11993_v11, %v11993_v11 }
 0x1a5   :  { %2832 = vadd.xlane.f32.xlu1 %v2831_v47  ;;  %v2648_v47 = vmul.f32 %v2182_v54, %v17607_v53  ;;  %v2888_v54 = vsel %vm2719_vm0, %v2647_v9, 0.0  ;;  %v17611_v9 = vunpack.c.l.bf16 %v12027_v30  ;;  %v1526_v8 = vcombine.high %v1524_v28, %v1524_v28 }
 0x1a6   :  { %v1540_v30 = vrot.slane %v1524_v28, %v11374_v63  ;;  %v1426_v11 = vrot.slane %v1412_v51, %v11374_v63 }
 0x1a7   :  { %2883 = vadd.xlane.f32.xlu0 %v2882_v26  ;;  %v17609_v26 = vunpack.c.l.bf16 %v12014_v19  ;;  %v2891_v3 = vsel %vm2719_vm0, %v2648_v47, 0.0  ;;  %v2630_v27 = vmul.f32 %v2110_v50, %v17611_v9  ;;  %v2186_v50 = vrot.slane %v1555_v23, %v11393_v18  ;;  %v12084_v9 = vld [vmem:[%s17193_s1 + $0x78] sm:$0x3]  ;;  %v12096_v23 = vld [vmem:[%s17193_s1 + $0x7a] sm:$0x3] }
 0x1a8   :  { %17614 = vst [vmem:[#allocation81_spill] sm:$0xff] %v12084_v9  ;;  %17616 = vst [vmem:[#allocation82_spill] sm:$0xff] %v12096_v23 }
 0x1a9   :  { %2886 = vadd.xlane.f32.xlu1 %v2885_v57  ;;  %v2629_v53 = vmul.f32 %v2106_v45, %v17609_v26  ;;  %v2118_v45 = vrot.slane %v1449_v20, %v11393_v18  ;;  %v12072_v26 = vld [vmem:[%s17193_s1 + $0x76] sm:$0x3]  ;;  %v2837_v1 = vsel %vm2719_vm0, %v2630_v27, 0.0 }
 0x1aa   :  { %17612 = vst [vmem:[#allocation80_spill] sm:$0xff] %v12072_v26  ;;  %v17619_v51 = vunpack.c.l.bf16 %v12072_v26 }
 0x1ab   :  { %2889 = vadd.xlane.f32.xlu0 %v2888_v54  ;;  %v2834_v47 = vsel %vm2719_vm0, %v2629_v53, 0.0  ;;  %v17613_v54 = vunpack.c.l.bf16 %v12037_v10  ;;  %v17615_v53 = vunpack.c.l.bf16 %v12049_v12 }
 0x1ad   :  { %2892 = vadd.xlane.f32.xlu1 %v2891_v3  ;;  %v2631_v57 = vmul.f32 %v2114_v5, %v17613_v54  ;;  %v2632_v10 = vmul.f32 %v2118_v45, %v17615_v53  ;;  %v2190_v5 = vrot.slane %v1557_v59, %v11393_v18  ;;  %v1554_v54 = vrot.slane %v1526_v8, %v11374_v63  ;;  %v12107_v45 = vld [vmem:[%s17193_s1 + $0x54] sm:$0x3] }
 0x1ae   :  { %v2194_v3 = vrot.slane %v1540_v30, %v11393_v18  ;;  %17618 = vst [vmem:[#allocation83_spill] sm:$0xff] %v12107_v45  ;;  %v1457_v59 = vcombine.high %v1435_v62, %v1435_v62  ;;  %v1459_v8 = vcombine.high %v1449_v20, %v1449_v20  ;;  %v17621_v20 = vunpack.c.l.bf16 %v12084_v9 }
 0x1af   :  { %2835 = vadd.xlane.f32.xlu0 %v2834_v47  ;;  %v2840_v28 = vsel %vm2719_vm0, %v2631_v57, 0.0  ;;  %v17617_v47 = vunpack.c.l.bf16 %v12060_v2  ;;  %v2650_v57 = vmul.f32 %v2190_v5, %v17619_v51  ;;  %v2198_v19 = vrot.slane %v1554_v54, %v11393_v18  ;;  %v12127_v5 = vld [vmem:[%s17193_s1 + $0x58] sm:$0x3]  ;;  %v12379_v2 = vld [vmem:[%s17193_s1 + $0xb0] sm:$0x3] }
 0x1b0   :  { %v2651_v53 = vmul.f32 %v2194_v3, %v17621_v20  ;;  %17622 = vst [vmem:[#allocation85_spill] sm:$0xff] %v12127_v5  ;;  %v1442_v51 = vrot.slane %v1426_v11, %v11374_v63  ;;  %v17623_v62 = vunpack.c.l.bf16 %v12096_v23  ;;  %v12140_v20 = vld [vmem:[%s17193_s1 + $0x5a] sm:$0x3]  ;;  %17664 = vst [vmem:[#allocation108_spill] sm:$0xff] %v12379_v2 }
 0x1b1   :  { %2838 = vadd.xlane.f32.xlu1 %v2837_v1  ;;  %v2649_v27 = vmul.f32 %v2186_v50, %v17617_v47  ;;  %v2843_v1 = vsel %vm2719_vm0, %v2632_v10, 0.0  ;;  %v12117_v50 = vld [vmem:[%s17193_s1 + $0x56] sm:$0x3]  ;;  %v1428_v47 = vcombine.high %v1426_v11, %v1426_v11  ;;  %v2122_v10 = vrot.slane %v1457_v59, %v11393_v18  ;;  %17624 = vst [vmem:[#allocation86_spill] sm:$0xff] %v12140_v20 }
 0x1b2   :  { %17620 = vst [vmem:[#allocation84_spill] sm:$0xff] %v12117_v50  ;;  %v2652_v3 = vmul.f32 %v2198_v19, %v17623_v62  ;;  %v2126_v59 = vrot.slane %v1459_v8, %v11393_v18  ;;  %v2130_v23 = vrot.slane %v1442_v51, %v11393_v18  ;;  %v12151_v19 = vld [vmem:[%s17193_s1 + $0x7c] sm:$0x3]  ;;  %v1556_v8 = vcombine.high %v1540_v30, %v1540_v30 }
 0x1b3   :  { %2841 = vadd.xlane.f32.xlu0 %v2840_v28  ;;  %v2894_v28 = vsel %vm2719_vm0, %v2649_v27, 0.0  ;;  %v2897_v27 = vsel %vm2719_vm0, %v2650_v57, 0.0  ;;  %v1456_v11 = vrot.slane %v1428_v47, %v11374_v63  ;;  %17626 = vst [vmem:[#allocation87_spill] sm:$0xff] %v12151_v19  ;;  %v1672_v62 = vcombine.high %v1664_v14, %v1664_v14 }
 0x1b4   :  { %v17627_v12 = vunpack.c.l.bf16 %v12117_v50  ;;  %v17629_v47 = vunpack.c.l.bf16 %v12127_v5  ;;  %v17631_v30 = vunpack.c.l.bf16 %v12140_v20 }
 0x1b5   :  { %2844 = vadd.xlane.f32.xlu1 %v2843_v1  ;;  %v17625_v1 = vunpack.c.l.bf16 %v12107_v45  ;;  %v2134_v45 = vrot.slane %v1456_v11, %v11393_v18 }
 0x1b6   :  { %v2635_v9 = vmul.f32 %v2130_v23, %v17629_v47  ;;  %v12184_v47 = vld [vmem:[%s17193_s1 + $0xa2] sm:$0x3] }
 0x1b7   :  { %2895 = vadd.xlane.f32.xlu0 %v2894_v28  ;;  %v2900_v28 = vsel %vm2719_vm0, %v2651_v53, 0.0  ;;  %v2633_v57 = vmul.f32 %v2122_v10, %v17625_v1  ;;  %v2634_v53 = vmul.f32 %v2126_v59, %v17627_v12  ;;  %v12161_v10 = vld [vmem:[%s17193_s1 + $0x7e] sm:$0x3]  ;;  %v1558_v1 = vcombine.high %v1554_v54, %v1554_v54  ;;  %v12171_v12 = vld [vmem:[%s17193_s1 + $0xa0] sm:$0x3]  ;;  %17632 = vst [vmem:[#allocation90_spill] sm:$0xff] %v12184_v47 }
 0x1b8   :  { %17628 = vst [vmem:[#allocation88_spill] sm:$0xff] %v12161_v10  ;;  %17630 = vst [vmem:[#allocation89_spill] sm:$0xff] %v12171_v12  ;;  %v1680_v59 = vrot.slane %v1664_v14, %v11374_v63  ;;  %v1566_v54 = vrot.slane %v11465_v37, %v11374_v63  ;;  %v2636_v23 = vmul.f32 %v2134_v45, %v17631_v30  ;;  %v12195_v45 = vld [vmem:[%s17193_s1 + $0x5c] sm:$0x3] }
 0x1b9   :  { %2898 = vadd.xlane.f32.xlu1 %v2897_v27  ;;  %v2903_v27 = vsel %vm2719_vm0, %v2652_v3, 0.0  ;;  %v2202_v3 = vrot.slane %v1556_v8, %v11393_v18  ;;  %v2206_v8 = vrot.slane %v1558_v1, %v11393_v18  ;;  %v1694_v14 = vrot.slane %v1672_v62, %v11374_v63  ;;  %17634 = vst [vmem:[#allocation91_spill] sm:$0xff] %v12195_v45 }
 0x1ba   :  { %v2274_v20 = vrot.slane %v1680_v59, %v11393_v18  ;;  %v1458_v1 = vcombine.high %v1442_v51, %v1442_v51  ;;  %v1657_v30 = vcombine.high %v11462_v43, %v11462_v43  ;;  %v1574_v5 = vcombine.high %v1566_v54, %v1566_v54 }
 0x1bb   :  { %2901 = vadd.xlane.f32.xlu0 %v2900_v28  ;;  %v2846_v28 = vsel %vm2719_vm0, %v2633_v57, 0.0  ;;  %v2849_v57 = vsel %vm2719_vm0, %v2634_v53, 0.0  ;;  %v2278_v50 = vrot.slane %v1694_v14, %v11393_v18 }
 0x1bc   :  { %v1671_v43 = vrot.slane %v1657_v30, %v11374_v63  ;;  %v17641_v30 = vunpack.c.l.bf16 %v12195_v45 }
 0x1bd   :  { %2904 = vadd.xlane.f32.xlu1 %v2903_v27  ;;  %v17633_v27 = vunpack.c.l.bf16 %v12151_v19  ;;  %v12207_v19 = vld [vmem:[%s17193_s1 + $0x5e] sm:$0x3] }
 0x1be   :  { %17636 = vst [vmem:[#allocation92_spill] sm:$0xff] %v12207_v19  ;;  %v17266_v62 = vunpack.c.l.bf16 %v12207_v19  ;;  %v12268_v19 = vrot.slane %v1671_v43, %v11374_v63 }
 0x1bf   :  { %2847 = vadd.xlane.f32.xlu0 %v2846_v28  ;;  %v2852_v28 = vsel %vm2719_vm0, %v2635_v9, 0.0  ;;  %v2653_v53 = vmul.f32 %v2202_v3, %v17633_v27  ;;  %v2855_v9 = vsel %vm2719_vm0, %v2636_v23, 0.0  ;;  %v17635_v3 = vunpack.c.l.bf16 %v12161_v10 }
 0x1c0   :  { %v2138_v23 = vrot.slane %v1458_v1, %v11393_v18  ;;  %v12229_v1 = vld [vmem:[%s17193_s1 + $0x82] sm:$0x3] }
 0x1c1   :  { %2850 = vadd.xlane.f32.xlu1 %v2849_v57  ;;  %v1460_v57 = vcombine.high %v1456_v11, %v1456_v11  ;;  %v2654_v27 = vmul.f32 %v2206_v8, %v17635_v3  ;;  %v2906_v51 = vsel %vm2719_vm0, %v2653_v53, 0.0  ;;  %v17637_v11 = vunpack.c.l.bf16 %v12171_v12  ;;  %v12217_v8 = vld [vmem:[%s17193_s1 + $0x80] sm:$0x3]  ;;  %17640 = vst [vmem:[#allocation94_spill] sm:$0xff] %v12229_v1 }
 0x1c2   :  { %17638 = vst [vmem:[#allocation93_spill] sm:$0xff] %v12217_v8  ;;  %v1582_v3 = vrot.slane %v1566_v54, %v11374_v63  ;;  %v12232_v12 = vrot.slane %v1574_v5, %v11374_v63  ;;  %v1559_v5 = vcombine.high %v11465_v37, %v11465_v37  ;;  %v17646_v37 = vunpack.c.l.bf16 %v12229_v1  ;;  %v12310_v1 = vld [vmem:[%s17193_s1 + $0x86] sm:$0x3] }
 0x1c3   :  { %2853 = vadd.xlane.f32.xlu0 %v2852_v28  ;;  %v2671_v28 = vmul.f32 %v2274_v20, %v17637_v11  ;;  %v2909_v53 = vsel %vm2719_vm0, %v2654_v27, 0.0  ;;  %v17639_v20 = vunpack.c.l.bf16 %v12184_v47  ;;  %v1673_v47 = vcombine.high %v1671_v43, %v1671_v43  ;;  %17653 = vst [vmem:[#allocation102_spill] sm:$0xff] %v12310_v1 }
 0x1c4   :  { %v2210_v27 = vrot.slane %v1582_v3, %v11393_v18  ;;  %v17661_v10 = vunpack.c.l.bf16 %v12310_v1 }
 0x1c5   :  { %2856 = vadd.xlane.f32.xlu1 %v2855_v9  ;;  %v2142_v9 = vrot.slane %v1460_v57, %v11393_v18  ;;  %v2672_v11 = vmul.f32 %v2278_v50, %v17639_v20  ;;  %v2960_v57 = vsel %vm2719_vm0, %v2671_v28, 0.0  ;;  %v12242_v50 = vld [vmem:[%s17193_s1 + $0xa4] sm:$0x3]  ;;  %v1702_v20 = vcombine.high %v1680_v59, %v1680_v59  ;;  %v12265_v28 = vld [vmem:[%s17193_s1 + $0xa8] sm:$0x3] }
 0x1c6   :  { %17642 = vst [vmem:[#allocation95_spill] sm:$0xff] %v12242_v50  ;;  %v1704_v59 = vcombine.high %v1694_v14, %v1694_v14  ;;  %17645 = vst [vmem:[#allocation97_spill] sm:$0xff] %v12265_v28  ;;  %v1573_v14 = vrot.slane %v1559_v5, %v11374_v63  ;;  %v12282_v43 = vrot.slane %v1673_v47, %v11374_v63  ;;  %v12297_v47 = vld [vmem:[%s17193_s1 + $0x84] sm:$0x3] }
 0x1c7   :  { %2907 = vadd.xlane.f32.xlu0 %v2906_v51  ;;  %v2637_v51 = vmul.f32 %v2138_v23, %v17641_v30  ;;  %v2963_v54 = vsel %vm2719_vm0, %v2672_v11, 0.0  ;;  %v2214_v23 = vrot.slane %v12232_v12, %v11393_v18  ;;  %v12255_v30 = vld [vmem:[%s17193_s1 + $0xa6] sm:$0x3]  ;;  %v2282_v11 = vrot.slane %v1702_v20, %v11393_v18  ;;  %17651 = vst [vmem:[#allocation101_spill] sm:$0xff] %v12297_v47 }
 0x1c8   :  { %17643 = vst [vmem:[#allocation96_spill] sm:$0xff] %v12255_v30  ;;  %v2286_v20 = vrot.slane %v1704_v59, %v11393_v18  ;;  %v2290_v59 = vrot.slane %v12268_v19, %v11393_v18  ;;  %v1705_v26 = vcombine.high %v12282_v43, %v12282_v43 }
 0x1c9   :  { %2910 = vadd.xlane.f32.xlu1 %v2909_v53  ;;  %v2638_v53 = vmul.f32 %v2142_v9, %v17266_v62  ;;  %v17644_v9 = vunpack.c.l.bf16 %v12217_v8 }
 0x1cb   :  { %2961 = vadd.xlane.f32.xlu0 %v2960_v57  ;;  %v2858_v57 = vsel %vm2719_vm0, %v2637_v51, 0.0  ;;  %v2655_v62 = vmul.f32 %v2210_v27, %v17644_v9  ;;  %v2861_v51 = vsel %vm2719_vm0, %v2638_v53, 0.0  ;;  %v2656_v27 = vmul.f32 %v2214_v23, %v17646_v37  ;;  %v12279_v9 = vld [vmem:[%s17193_s1 + $0xaa] sm:$0x3] }
 0x1cc   :  { %17647 = vst [vmem:[#allocation98_spill] sm:$0xff] %v12279_v9 }
 0x1cd   :  { %2964 = vadd.xlane.f32.xlu1 %v2963_v54  ;;  %v2912_v53 = vsel %vm2719_vm0, %v2655_v62, 0.0  ;;  %v17649_v54 = vunpack.c.l.bf16 %v12242_v50  ;;  %v1606_v62 = vcombine.high %v12232_v12, %v12232_v12  ;;  %v2294_v50 = vrot.slane %v12282_v43, %v11393_v18 }
 0x1ce   :  { %v17654_v12 = vunpack.c.l.bf16 %v12265_v28 }
 0x1cf   :  { %2859 = vadd.xlane.f32.xlu0 %v2858_v57  ;;  %v12284_v5 = vpop.xlane.xlu0 %2769  ;;  %v2673_v23 = vmul.f32 %v2282_v11, %v17649_v54  ;;  %v2915_v57 = vsel %vm2719_vm0, %v2656_v27, 0.0  ;;  %v17652_v11 = vunpack.c.l.bf16 %v12255_v30  ;;  %v2222_v45 = vrot.slane %v1606_v62, %v11393_v18  ;;  %v12351_v62 = vld [vmem:[%s17193_s1 + $0xac] sm:$0x3] }
 0x1d0   :  { %17648 = vst [vmem:[#allocation99_spill] sm:$0xff] %v12284_v5  ;;  %v12290_v37 = vpop.xlane.xlu1 %2772  ;;  %v2675_v27 = vmul.f32 %v2290_v59, %v17654_v12  ;;  %17660 = vst [vmem:[#allocation106_spill] sm:$0xff] %v12351_v62 }
 0x1d1   :  { %2862 = vadd.xlane.f32.xlu1 %v2861_v51  ;;  %17650 = vst [vmem:[#allocation100_spill] sm:$0xff] %v12290_v37  ;;  %v1604_v51 = vcombine.high %v1582_v3, %v1582_v3  ;;  %v2674_v54 = vmul.f32 %v2286_v20, %v17652_v11  ;;  %v1575_v3 = vcombine.high %v1573_v14, %v1573_v14  ;;  %v2966_v8 = vsel %vm2719_vm0, %v2673_v23, 0.0  ;;  %v12320_v20 = vld [vmem:[%s17193_s1 + $0x88] sm:$0x3] }
 0x1d2   :  { %17655 = vst [vmem:[#allocation103_spill] sm:$0xff] %v12320_v20  ;;  %v12323_v11 = vrot.slane %v1573_v14, %v11374_v63  ;;  %v12339_v14 = vld [vmem:[%s17193_s1 + $0x8a] sm:$0x3]  ;;  %v2972_v23 = vsel %vm2719_vm0, %v2675_v27, 0.0 }
 0x1d3   :  { %2913 = vadd.xlane.f32.xlu0 %v2912_v53  ;;  %v2218_v30 = vrot.slane %v1604_v51, %v11393_v18  ;;  %v2969_v59 = vsel %vm2719_vm0, %v2674_v54, 0.0  ;;  %v17656_v51 = vunpack.c.l.bf16 %v12279_v9  ;;  %17658 = vst [vmem:[#allocation105_spill] sm:$0xff] %v12339_v14  ;;  %v17659_v54 = vunpack.c.l.bf16 %v12297_v47  ;;  %v12363_v47 = vld [vmem:[%s17193_s1 + $0xae] sm:$0x3] }
 0x1d4   :  { %17662 = vst [vmem:[#allocation107_spill] sm:$0xff] %v12363_v47 }
 0x1d5   :  { %2916 = vadd.xlane.f32.xlu1 %v2915_v57  ;;  %v1713_v57 = vrot.slane %v11487_v38, %v11374_v63  ;;  %v2676_v12 = vmul.f32 %v2294_v50, %v17656_v51  ;;  %v2657_v9 = vmul.f32 %v2218_v30, %v17659_v54  ;;  %v2226_v50 = vrot.slane %v12323_v11, %v11393_v18 }
 0x1d6   :  { %v1703_v51 = vcombine.high %v12268_v19, %v12268_v19  ;;  %v2658_v30 = vmul.f32 %v2222_v45, %v17661_v10  ;;  %v17663_v10 = vunpack.c.l.bf16 %v12320_v20  ;;  %v12394_v20 = vld [vmem:[%s17193_s1 + $0xb2] sm:$0x3] }
 0x1d7   :  { %2967 = vadd.xlane.f32.xlu0 %v2966_v8  ;;  %v12327_v53 = vpop.xlane.xlu0 %2721  ;;  %v1603_v8 = vrot.slane %v1575_v3, %v11374_v63  ;;  %v1721_v3 = vcombine.high %v1713_v57, %v1713_v57  ;;  %v2975_v27 = vsel %vm2719_vm0, %v2676_v12, 0.0  ;;  %v2918_v12 = vsel %vm2719_vm0, %v2657_v9, 0.0  ;;  %17666 = vst [vmem:[#allocation109_spill] sm:$0xff] %v12394_v20 }
 0x1d8   :  { %v2659_v45 = vmul.f32 %v2226_v50, %v17663_v10  ;;  %v2298_v1 = vrot.slane %v1703_v51, %v11393_v18  ;;  %v12382_v43 = vrot.slane %v1713_v57, %v11374_v63  ;;  %v17665_v50 = vunpack.c.l.bf16 %v12339_v14 }
 0x1d9   :  { %2970 = vadd.xlane.f32.xlu1 %v2969_v59  ;;  %v2230_v54 = vrot.slane %v1603_v8, %v11393_v18  ;;  %v2302_v51 = vrot.slane %v1705_v26, %v11393_v18  ;;  %v12397_v57 = vrot.slane %v1721_v3, %v11374_v63  ;;  %v1605_v3 = vcombine.high %v12323_v11, %v12323_v11  ;;  %v12427_v11 = vld [vmem:[%s17193_s1 + $0x8e] sm:$0x3] }
 0x1da   :  { %v12333_v28 = vpop.xlane.xlu1 %2727  ;;  %v2924_v9 = vsel %vm2719_vm0, %v2659_v45, 0.0  ;;  %v2306_v26 = vrot.slane %v12382_v43, %v11393_v18  ;;  %17670 = vst [vmem:[#allocation111_spill] sm:$0xff] %v12427_v11 }
 0x1db   :  { %17657 = vst [vmem:[#allocation104_spill] sm:$0xff] %v12333_v28  ;;  %2973 = vadd.xlane.f32.xlu0 %v2972_v23  ;;  %v2921_v23 = vsel %vm2719_vm0, %v2658_v30, 0.0  ;;  %v2660_v10 = vmul.f32 %v2230_v54, %v17665_v50  ;;  %v17667_v30 = vunpack.c.l.bf16 %v12351_v62  ;;  %v12410_v50 = vld [vmem:[%s17193_s1 + $0x8c] sm:$0x3]  ;;  %v17669_v62 = vunpack.c.l.bf16 %v12363_v47 }
 0x1dc   :  { %17668 = vst [vmem:[#allocation110_spill] sm:$0xff] %v12410_v50  ;;  %v2310_v34 = vrot.slane %v12397_v57, %v11393_v18  ;;  %v2234_v45 = vrot.slane %v1605_v3, %v11393_v18  ;;  %v17674_v3 = vunpack.c.l.bf16 %v12394_v20 }
 0x1dd   :  { %2976 = vadd.xlane.f32.xlu1 %v2975_v27  ;;  %v1615_v27 = vrot.slane %v11513_v42, %v11374_v63  ;;  %v2677_v54 = vmul.f32 %v2298_v1, %v17667_v30  ;;  %v2927_v1 = vsel %vm2719_vm0, %v2660_v10, 0.0  ;;  %v2678_v56 = vmul.f32 %v2302_v51, %v17669_v62  ;;  %v12437_v62 = vld [vmem:[%s17193_s1 + $0x90] sm:$0x3] }
 0x1de   :  { %v12371_v59 = vpop.xlane.xlu1 %2778  ;;  %17672 = vst [vmem:[#allocation112_spill] sm:$0xff] %v12437_v62 }
 0x1df   :  { %v12367_v19 = vpop.xlane.xlu0 %2775  ;;  %2919 = vadd.xlane.f32.xlu0 %v2918_v12  ;;  %v1607_v12 = vcombine.high %v1603_v8, %v1603_v8  ;;  %v1623_v14 = vcombine.high %v1615_v27, %v1615_v27  ;;  %v2978_v8 = vsel %vm2719_vm0, %v2677_v54, 0.0  ;;  %v12440_v51 = vrot.slane %v1615_v27, %v11374_v63 }
 0x1e1   :  { %2922 = vadd.xlane.f32.xlu1 %v2921_v23  ;;  %v1706_v23 = vcombine.high %v11487_v38, %v11487_v38  ;;  %v2238_v38 = vrot.slane %v1607_v12, %v11393_v18  ;;  %v12456_v27 = vrot.slane %v1623_v14, %v11374_v63  ;;  %v1751_v14 = vcombine.high %v12382_v43, %v12382_v43  ;;  %v12486_v43 = vld [vmem:[%s17193_s1 + $0xb6] sm:$0x3] }
 0x1e2   :  { %17679 = vst [vmem:[#allocation116_spill] sm:$0xff] %v12486_v43 }
 0x1e3   :  { %v12401_v25 = vpop.xlane.xlu0 %2781  ;;  %2925 = vadd.xlane.f32.xlu0 %v2924_v9  ;;  %v17671_v9 = vunpack.c.l.bf16 %v12379_v2  ;;  %v1720_v54 = vrot.slane %v1706_v23, %v11374_v63  ;;  %v12453_v2 = vld [vmem:[%s17193_s1 + $0x92] sm:$0x3]  ;;  %v2246_v20 = vrot.slane %v12456_v27, %v11393_v18  ;;  %v2314_v58 = vrot.slane %v1751_v14, %v11393_v18 }
 0x1e4   :  { %v12418_v30 = vpop.xlane.xlu1 %2784  ;;  %17675 = vst [vmem:[#allocation114_spill] sm:$0xff] %v12453_v2 }
 0x1e5   :  { %2928 = vadd.xlane.f32.xlu1 %v2927_v1  ;;  %v2679_v10 = vmul.f32 %v2306_v26, %v17671_v9  ;;  %v2981_v26 = vsel %vm2719_vm0, %v2678_v56, 0.0  ;;  %v2680_v9 = vmul.f32 %v2310_v34, %v17674_v3  ;;  %v17676_v56 = vunpack.c.l.bf16 %v12410_v50  ;;  %v12469_v3 = vld [vmem:[%s17193_s1 + $0xb4] sm:$0x3] }
 0x1e6   :  { %v2242_v34 = vrot.slane %v12440_v51, %v11393_v18  ;;  %17677 = vst [vmem:[#allocation115_spill] sm:$0xff] %v12469_v3 }
 0x1e7   :  { %2979 = vadd.xlane.f32.xlu0 %v2978_v8  ;;  %v2984_v23 = vsel %vm2719_vm0, %v2679_v10, 0.0  ;;  %v2661_v1 = vmul.f32 %v2234_v45, %v17676_v56  ;;  %v17678_v10 = vunpack.c.l.bf16 %v12427_v11  ;;  %v2987_v50 = vsel %vm2719_vm0, %v2680_v9, 0.0 }
 0x1e8   :  { %v12445_v47 = vpop.xlane.xlu0 %2724  ;;  %v17680_v9 = vunpack.c.l.bf16 %v12437_v62  ;;  %v12516_v62 = vld [vmem:[%s17193_s1 + $0xba] sm:$0x3] }
 0x1e9   :  { %17673 = vst [vmem:[#allocation113_spill] sm:$0xff] %v12445_v47  ;;  %2982 = vadd.xlane.f32.xlu1 %v2981_v26  ;;  %v1608_v26 = vcombine.high %v11513_v42, %v11513_v42  ;;  %v2662_v12 = vmul.f32 %v2238_v38, %v17678_v10  ;;  %v1753_v42 = vcombine.high %v12397_v57, %v12397_v57  ;;  %v2930_v45 = vsel %vm2719_vm0, %v2661_v1, 0.0 }
 0x1ea   :  { %v12459_v8 = vpop.xlane.xlu1 %2730  ;;  %v2663_v11 = vmul.f32 %v2242_v34, %v17680_v9  ;;  %v12503_v57 = vrot.slane %v1720_v54, %v11374_v63  ;;  %v17682_v34 = vunpack.c.l.bf16 %v12453_v2  ;;  %17683 = vst [vmem:[#allocation118_spill] sm:$0xff] %v12516_v62  ;;  %v17684_v38 = vunpack.c.l.bf16 %v12469_v3 }
 0x1eb   :  { %2985 = vadd.xlane.f32.xlu0 %v2984_v23  ;;  %v1722_v23 = vcombine.high %v1720_v54, %v1720_v54  ;;  %v2933_v1 = vsel %vm2719_vm0, %v2662_v12, 0.0  ;;  %v2318_v9 = vrot.slane %v1753_v42, %v11393_v18 }
 0x1ec   :  { %v12478_v56 = vpop.xlane.xlu0 %2733  ;;  %v2664_v14 = vmul.f32 %v2246_v20, %v17682_v34  ;;  %v2936_v12 = vsel %vm2719_vm0, %v2663_v11, 0.0  ;;  %v2681_v20 = vmul.f32 %v2314_v58, %v17684_v38  ;;  %v2322_v42 = vrot.slane %v12503_v57, %v11393_v18  ;;  %v12532_v34 = vld [vmem:[%s17193_s1 + $0x94] sm:$0x3] }
 0x1ed   :  { %2988 = vadd.xlane.f32.xlu1 %v2987_v50  ;;  %v1622_v50 = vrot.slane %v1608_v26, %v11374_v63  ;;  %v12519_v54 = vrot.slane %v1722_v23, %v11374_v63  ;;  %17685 = vst [vmem:[#allocation119_spill] sm:$0xff] %v12532_v34  ;;  %v1653_v23 = vcombine.high %v12440_v51, %v12440_v51  ;;  %v17686_v38 = vunpack.c.l.bf16 %v12486_v43  ;;  %v12549_v51 = vld [vmem:[%s17193_s1 + $0x96] sm:$0x3] }
 0x1ee   :  { %v12491_v10 = vpop.xlane.xlu1 %2736  ;;  %v1655_v11 = vcombine.high %v12456_v27, %v12456_v27  ;;  %v2939_v58 = vsel %vm2719_vm0, %v2664_v14, 0.0  ;;  %17687 = vst [vmem:[#allocation120_spill] sm:$0xff] %v12549_v51  ;;  %v2990_v55 = vsel %vm2719_vm0, %v2681_v20, 0.0  ;;  %v17689_v14 = vunpack.c.l.bf16 %v12500_v13 }
 0x1ef   :  { %2931 = vadd.xlane.f32.xlu0 %v2930_v45  ;;  %v2682_v2 = vmul.f32 %v2318_v9, %v17686_v38  ;;  %v2326_v3 = vrot.slane %v12519_v54, %v11393_v18  ;;  %v2250_v9 = vrot.slane %v1653_v23, %v11393_v18  ;;  %v12561_v38 = vld [vmem:[%s17193_s1 + $0x98] sm:$0x3]  ;;  %v1638_v46 = vrot.slane %v1622_v50, %v11374_v63  ;;  %v12574_v23 = vld [vmem:[%s17193_s1 + $0x9a] sm:$0x3] }
 0x1f0   :  { %v12507_v44 = vpop.xlane.xlu0 %2787  ;;  %v2683_v43 = vmul.f32 %v2322_v42, %v17689_v14  ;;  %17690 = vst [vmem:[#allocation122_spill] sm:$0xff] %v12561_v38  ;;  %v17692_v20 = vunpack.c.l.bf16 %v12516_v62  ;;  %v2254_v42 = vrot.slane %v1655_v11, %v11393_v18  ;;  %17693 = vst [vmem:[#allocation124_spill] sm:$0xff] %v12574_v23  ;;  %v12587_v11 = vld [vmem:[%s17193_s1 + $0xbc] sm:$0x3] }
 0x1f1   :  { %2934 = vadd.xlane.f32.xlu1 %v2933_v1  ;;  %v2993_v29 = vsel %vm2719_vm0, %v2682_v2, 0.0  ;;  %v17695_v2 = vunpack.c.l.bf16 %v12532_v34  ;;  %17696 = vst [vmem:[#allocation126_spill] sm:$0xff] %v12587_v11  ;;  %v1654_v15 = vcombine.high %v1638_v46, %v1638_v46 }
 0x1f2   :  { %v12522_v45 = vpop.xlane.xlu1 %2790  ;;  %v2684_v13 = vmul.f32 %v2326_v3, %v17692_v20  ;;  %v2258_v3 = vrot.slane %v1638_v46, %v11393_v18  ;;  %v12631_v46 = vld [vmem:[%s17193_s1 + $0x9e] sm:$0x3] }
 0x1f3   :  { %2937 = vadd.xlane.f32.xlu0 %v2936_v12  ;;  %v1624_v12 = vcombine.high %v1622_v50, %v1622_v50  ;;  %v2665_v62 = vmul.f32 %v2250_v9, %v17695_v2  ;;  %v17698_v2 = vunpack.c.l.bf16 %v12549_v51  ;;  %v17701_v51 = vunpack.c.l.bf16 %v12561_v38  ;;  %17704 = vst [vmem:[#allocation131_spill] sm:$0xff] %v12631_v46 }
 0x1f4   :  { %v12539_v26 = vpop.xlane.xlu0 %2793  ;;  %v2999_v9 = vsel %vm2719_vm0, %v2684_v13, 0.0 }
 0x1f5   :  { %2940 = vadd.xlane.f32.xlu1 %v2939_v58  ;;  %v1652_v14 = vrot.slane %v1624_v12, %v11374_v63  ;;  %v2996_v58 = vsel %vm2719_vm0, %v2683_v43, 0.0  ;;  %v1752_v12 = vcombine.high %v12503_v57, %v12503_v57  ;;  %v1754_v57 = vcombine.high %v12519_v54, %v12519_v54 }
 0x1f6   :  { %v12552_v27 = vpop.xlane.xlu1 %2796  ;;  %v2942_v13 = vsel %vm2719_vm0, %v2665_v62, 0.0  ;;  %v1811_v54 = vrot.slane %v11575_v16, %v11374_v63 }
 0x1f7   :  { %17688 = vst [vmem:[#allocation121_spill] sm:$0xff] %v12552_v27  ;;  %2991 = vadd.xlane.f32.xlu0 %v2990_v55  ;;  %v2666_v55 = vmul.f32 %v2254_v42, %v17698_v2  ;;  %v2262_v34 = vrot.slane %v1652_v14, %v11393_v18  ;;  %v2667_v42 = vmul.f32 %v2258_v3, %v17701_v51  ;;  %v17703_v51 = vunpack.c.l.bf16 %v12574_v23  ;;  %v12645_v23 = vld [vmem:[%s17193_s1 + $0xc0] sm:$0x3] }
 0x1f8   :  { %v12565_v1 = vpop.xlane.xlu0 %2739  ;;  %v2330_v2 = vrot.slane %v1752_v12, %v11393_v18  ;;  %v2334_v12 = vrot.slane %v1754_v57, %v11393_v18  ;;  %v1656_v38 = vcombine.high %v1652_v14, %v1652_v14  ;;  %v2266_v57 = vrot.slane %v1654_v15, %v11393_v18  ;;  %17707 = vst [vmem:[#allocation133_spill] sm:$0xff] %v12645_v23 }
 0x1f9   :  { %17691 = vst [vmem:[#allocation123_spill] sm:$0xff] %v12565_v1  ;;  %2994 = vadd.xlane.f32.xlu1 %v2993_v29  ;;  %v1762_v29 = vrot.slane %v11530_v41, %v11374_v63  ;;  %v2945_v62 = vsel %vm2719_vm0, %v2666_v55, 0.0  ;;  %v2668_v3 = vmul.f32 %v2262_v34, %v17703_v51  ;;  %v2948_v55 = vsel %vm2719_vm0, %v2667_v42, 0.0 }
 0x1fa   :  { %v12578_v50 = vpop.xlane.xlu1 %2742  ;;  %v17706_v34 = vunpack.c.l.bf16 %v12587_v11  ;;  %v17708_v15 = vunpack.c.l.bf16 %v12603_v33  ;;  %v2270_v11 = vrot.slane %v1656_v38, %v11393_v18  ;;  %v17710_v33 = vunpack.c.l.bf16 %v12617_v24 }
 0x1fb   :  { %17694 = vst [vmem:[#allocation125_spill] sm:$0xff] %v12578_v50  ;;  %2997 = vadd.xlane.f32.xlu0 %v2996_v58  ;;  %v1770_v35 = vcombine.high %v1762_v29, %v1762_v29  ;;  %v1778_v14 = vrot.slane %v1762_v29, %v11374_v63  ;;  %v12661_v29 = vld [vmem:[%s17193_s1 + $0xc2] sm:$0x3]  ;;  %v17713_v24 = vunpack.c.l.bf16 %v12631_v46 }
 0x1fc   :  { %v12594_v43 = vpop.xlane.xlu0 %2745  ;;  %v2685_v51 = vmul.f32 %v2330_v2, %v17706_v34  ;;  %v2951_v2 = vsel %vm2719_vm0, %v2668_v3, 0.0  ;;  %v2686_v34 = vmul.f32 %v2334_v12, %v17708_v15  ;;  %17709 = vst [vmem:[#allocation134_spill] sm:$0xff] %v12661_v29  ;;  %v2669_v12 = vmul.f32 %v2266_v57, %v17710_v33  ;;  %v12676_v15 = vld [vmem:[%s17193_s1 + $0xc4] sm:$0x3] }
 0x1fd   :  { %17697 = vst [vmem:[#allocation127_spill] sm:$0xff] %v12594_v43  ;;  %3000 = vadd.xlane.f32.xlu1 %v2999_v9  ;;  %v1819_v9 = vcombine.high %v1811_v54, %v1811_v54  ;;  %v2338_v38 = vrot.slane %v1778_v14, %v11393_v18  ;;  %17711 = vst [vmem:[#allocation135_spill] sm:$0xff] %v12676_v15  ;;  %v1800_v39 = vcombine.high %v1778_v14, %v1778_v14  ;;  %v12694_v14 = vld [vmem:[%s17193_s1 + $0xd2] sm:$0x3] }
 0x1fe   :  { %v12608_v20 = vpop.xlane.xlu1 %2748  ;;  %v3002_v3 = vsel %vm2719_vm0, %v2685_v51, 0.0  ;;  %v3005_v57 = vsel %vm2719_vm0, %v2686_v34, 0.0  ;;  %v2670_v4 = vmul.f32 %v2270_v11, %v17713_v24  ;;  %17714 = vst [vmem:[#allocation137_spill] sm:$0xff] %v12694_v14  ;;  %v2954_v61 = vsel %vm2719_vm0, %v2669_v12, 0.0  ;;  %v12718_v12 = vld [vmem:[%s17193_s1 + $0xc8] sm:$0x3] }
 0x1ff   :  { %17700 = vst [vmem:[#allocation129_spill] sm:$0xff] %v12608_v20  ;;  %2943 = vadd.xlane.f32.xlu0 %v2942_v13  ;;  %v1755_v13 = vcombine.high %v11530_v41, %v11530_v41  ;;  %v17715_v34 = vunpack.c.l.bf16 %v12645_v23  ;;  %v2346_v24 = vrot.slane %v1800_v39, %v11393_v18  ;;  %17717 = vst [vmem:[#allocation138_spill] sm:$0xff] %v12718_v12  ;;  %v17721_v23 = vunpack.c.l.bf16 %v12676_v15 }
 0x200   :  { %v12622_v58 = vpop.xlane.xlu0 %2799  ;;  %v2957_v39 = vsel %vm2719_vm0, %v2670_v4, 0.0 }
 0x201   :  { %2946 = vadd.xlane.f32.xlu1 %v2945_v62  ;;  %v12650_v62 = vrot.slane %v1770_v35, %v11374_v63  ;;  %v12684_v35 = vrot.slane %v1811_v54, %v11374_v63  ;;  %v2687_v7 = vmul.f32 %v2338_v38, %v17715_v34  ;;  %v2689_v4 = vmul.f32 %v2346_v24, %v17721_v23 }
 0x202   :  { %v12636_v0 = vpop.xlane.xlu1 %2802  ;;  %v17724_v23 = vunpack.c.l.bf16 %v12694_v14 }
 0x203   :  { %17705 = vst [vmem:[#allocation132_spill] sm:$0xff] %v12636_v0  ;;  %2949 = vadd.xlane.f32.xlu0 %v2948_v55  ;;  %v12664_v55 = vrot.slane %v1755_v13, %v11374_v63  ;;  %v1860_v13 = vrot.slane %v11552_v6, %v11374_v63  ;;  %v2342_v51 = vrot.slane %v12650_v62, %v11393_v18  ;;  %v3008_v46 = vsel %vm2719_vm0, %v2687_v7, 0.0 }
 0x204   :  { %v12652_v42 = vpop.xlane.xlu0 %2805 }
 0x205   :  { %2952 = vadd.xlane.f32.xlu1 %v2951_v2  ;;  %v12708_v11 = vrot.slane %v12664_v55, %v11374_v63 }
 0x206   :  { %v12667_v41 = vpop.xlane.xlu1 %2808 }
 0x207   :  { %3003 = vadd.xlane.f32.xlu0 %v3002_v3  ;;  %v12697_v3 = vrot.slane %v1819_v9, %v11374_v63  ;;  %v1804_v9 = vcombine.high %v11575_v16, %v11575_v16  ;;  %v12728_v16 = vld [vmem:[%s17193_s1 + $0xd4] sm:$0x3]  ;;  %v2354_v49 = vrot.slane %v12708_v11, %v11393_v18  ;;  %v1801_v17 = vcombine.high %v12708_v11, %v12708_v11 }
 0x208   :  { %v12686_v33 = vpop.xlane.xlu0 %2751  ;;  %17719 = vst [vmem:[#allocation140_spill] sm:$0xff] %v12728_v16 }
 0x209   :  { %17712 = vst [vmem:[#allocation136_spill] sm:$0xff] %v12686_v33  ;;  %3006 = vadd.xlane.f32.xlu1 %v3005_v57  ;;  %v17716_v57 = vunpack.c.l.bf16 %v12661_v29  ;;  %v2374_v34 = vrot.slane %v12697_v3, %v11393_v18  ;;  %v1818_v60 = vrot.slane %v1804_v9, %v11374_v63  ;;  %v12762_v9 = vrot.slane %v1860_v13, %v11374_v63 }
 0x20a   :  { %v12700_v54 = vpop.xlane.xlu1 %2754 }
 0x20b   :  { %2955 = vadd.xlane.f32.xlu0 %v2954_v61  ;;  %v2688_v2 = vmul.f32 %v2342_v51, %v17716_v57  ;;  %v1849_v61 = vcombine.high %v12684_v35, %v12684_v35  ;;  %v1868_v51 = vcombine.high %v1860_v13, %v1860_v13  ;;  %v2696_v24 = vmul.f32 %v2374_v34, %v17724_v23 }
 0x20c   :  { %v12720_v38 = vpop.xlane.xlu0 %2757  ;;  %v17727_v34 = vunpack.c.l.bf16 %v12718_v12  ;;  %v1771_v13 = vcombine.high %v12664_v55, %v12664_v55  ;;  %v1820_v14 = vcombine.high %v1818_v60, %v1818_v60  ;;  %v12791_v55 = vld [vmem:[%s17193_s1 + $0xd8] sm:$0x3] }
 0x20d   :  { %17718 = vst [vmem:[#allocation139_spill] sm:$0xff] %v12720_v38  ;;  %2958 = vadd.xlane.f32.xlu1 %v2957_v39  ;;  %v12745_v39 = vld [vmem:[%s17193_s1 + $0xd0] sm:$0x3]  ;;  %v3011_v7 = vsel %vm2719_vm0, %v2688_v2, 0.0  ;;  %v2378_v29 = vrot.slane %v1849_v61, %v11393_v18  ;;  %v12754_v15 = vrot.slane %v1868_v51, %v11374_v63  ;;  %v3014_v2 = vsel %vm2719_vm0, %v2689_v4, 0.0  ;;  %17731 = vst [vmem:[#allocation148_spill] sm:$0xff] %v12791_v55 }
 0x20e   :  { %v12732_v57 = vpop.xlane.xlu1 %2760  ;;  %17722 = vst [vmem:[#allocation142_spill] sm:$0xff] %v12745_v39  ;;  %v2691_v23 = vmul.f32 %v2354_v49, %v17727_v34  ;;  %v2370_v51 = vrot.slane %v12684_v35, %v11393_v18  ;;  %v1834_v4 = vrot.slane %v1818_v60, %v11374_v63  ;;  %v3035_v49 = vsel %vm2719_vm0, %v2696_v24, 0.0  ;;  %v13024_v38 = vld [vmem:[%s17193_s1 + $0xf6] sm:$0x3] }
 0x20f   :  { %17720 = vst [vmem:[#allocation141_spill] sm:$0xff] %v12732_v57  ;;  %3009 = vadd.xlane.f32.xlu0 %v3008_v46  ;;  %v12759_v46 = vld [vmem:[%s17193_s1 + $0xe2] sm:$0x3]  ;;  %v17730_v34 = vunpack.c.l.bf16 %v12728_v16  ;;  %v2406_v12 = vrot.slane %v12754_v15, %v11393_v18  ;;  %v2402_v24 = vrot.slane %v12762_v9, %v11393_v18  ;;  %v17733_v32 = vunpack.c.l.bf16 %v12745_v39  ;;  %17772 = vst [vmem:[#allocation174_spill] sm:$0xff] %v13024_v38 }
 0x210   :  { %v12747_v48 = vpop.xlane.xlu0 %2811  ;;  %17725 = vst [vmem:[#allocation144_spill] sm:$0xff] %v12759_v46  ;;  %v3020_v16 = vsel %vm2719_vm0, %v2691_v23, 0.0  ;;  %v2386_v60 = vrot.slane %v1834_v4, %v11393_v18  ;;  %v12823_v23 = vrot.slane %v1771_v13, %v11374_v63  ;;  %v17737_v39 = vunpack.c.l.bf16 %v12759_v46 }
 0x211   :  { %17723 = vst [vmem:[#allocation143_spill] sm:$0xff] %v12747_v48  ;;  %3012 = vadd.xlane.f32.xlu1 %v3011_v7  ;;  %v12775_v7 = vld [vmem:[%s17193_s1 + $0xe0] sm:$0x3]  ;;  %v2697_v61 = vmul.f32 %v2378_v29, %v17730_v34  ;;  %v1802_v29 = vcombine.high %v12650_v62, %v12650_v62  ;;  %v1853_v34 = vcombine.high %v11552_v6, %v11552_v6  ;;  %v12838_v6 = vld [vmem:[%s17193_s1 + $0xda] sm:$0x3] }
 0x212   :  { %v12764_v22 = vpop.xlane.xlu1 %2814  ;;  %17728 = vst [vmem:[#allocation146_spill] sm:$0xff] %v12775_v7  ;;  %v2695_v31 = vmul.f32 %v2370_v51, %v17733_v32  ;;  %v12820_v32 = vld [vmem:[%s17193_s1 + $0xd6] sm:$0x3]  ;;  %v2704_v62 = vmul.f32 %v2406_v12, %v17737_v39  ;;  %17739 = vst [vmem:[#allocation153_spill] sm:$0xff] %v12838_v6  ;;  %v12841_v13 = vrot.slane %v1820_v14, %v11374_v63  ;;  %v17740_v12 = vunpack.c.l.bf16 %v12775_v7 }
 0x213   :  { %17726 = vst [vmem:[#allocation145_spill] sm:$0xff] %v12764_v22  ;;  %3015 = vadd.xlane.f32.xlu0 %v3014_v2  ;;  %v17732_v2 = vlaneseq  ;;  %17735 = vst [vmem:[#allocation150_spill] sm:$0xff] %v12820_v32  ;;  %v2350_v50 = vrot.slane %v1802_v29, %v11393_v18  ;;  %v1850_v57 = vcombine.high %v1834_v4, %v1834_v4  ;;  %v2358_v46 = vrot.slane %v12823_v23, %v11393_v18 }
 0x214   :  { %v12780_v36 = vpop.xlane.xlu0 %2865  ;;  %v2703_v39 = vmul.f32 %v2402_v24, %v17740_v12  ;;  %v3032_v11 = vsel %vm2719_vm0, %v2695_v31, 0.0  ;;  %v17743_v24 = vunpack.c.l.bf16 %v12791_v55  ;;  %v12870_v31 = vld [vmem:[%s17193_s1 + $0xdc] sm:$0x3]  ;;  %v3059_v4 = vsel %vm2719_vm0, %v2704_v62, 0.0 }
 0x215   :  { %17729 = vst [vmem:[#allocation147_spill] sm:$0xff] %v12780_v36  ;;  %v3233_v40 = vand.u32 127, %v17732_v2  ;;  %3036 = vadd.xlane.f32.xlu1 %v3035_v49  ;;  %v12809_v49 = vld [vmem:[%s17193_s1 + $0xc6] sm:$0x3]  ;;  %v1851_v2 = vcombine.high %v12697_v3, %v12697_v3  ;;  %v3038_v3 = vsel %vm2719_vm0, %v2697_v61, 0.0  ;;  %v1909_v61 = vrot.slane %v11596_v21, %v11374_v63  ;;  %17744 = vst [vmem:[#allocation156_spill] sm:$0xff] %v12870_v31 }
 0x216   :  { %v12801_v35 = vpop.xlane.xlu1 %2868  ;;  %17734 = vst [vmem:[#allocation149_spill] sm:$0xff] %v12809_v49  ;;  %v2699_v12 = vmul.f32 %v2386_v60, %v17743_v24  ;;  %v3056_v24 = vsel %vm2719_vm0, %v2703_v39, 0.0  ;;  %v17746_v7 = vunpack.c.l.bf16 %v12809_v49  ;;  %v17748_v62 = vunpack.c.l.bf16 %v12820_v32 }
 0x217   :  { %3021 = vadd.xlane.f32.xlu0 %v3020_v16  ;;  %v12833_v16 = vld [vmem:[%s17193_s1 + $0xca] sm:$0x3]  ;;  %v1917_v55 = vcombine.high %v1909_v61, %v1909_v61  ;;  %v2394_v60 = vrot.slane %v1850_v57, %v11393_v18 }
 0x218   :  { %v12825_v51 = vpop.xlane.xlu0 %2763  ;;  %17738 = vst [vmem:[#allocation152_spill] sm:$0xff] %v12833_v16  ;;  %v2690_v29 = vmul.f32 %v2350_v50, %v17746_v7  ;;  %v17749_v39 = vunpack.c.l.bf16 %v12833_v16  ;;  %v1898_v7 = vcombine.high %v12762_v9, %v12762_v9 }
 0x219   :  { %17736 = vst [vmem:[#allocation151_spill] sm:$0xff] %v12825_v51  ;;  %3039 = vadd.xlane.f32.xlu1 %v3038_v3  ;;  %v12854_v51 = vld [vmem:[%s17193_s1 + $0xcc] sm:$0x3]  ;;  %v2382_v3 = vrot.slane %v1851_v2, %v11393_v18  ;;  %v2390_v2 = vrot.slane %v12841_v13, %v11393_v18 }
 0x21a   :  { %17741 = vst [vmem:[#allocation154_spill] sm:$0xff] %v12854_v51  ;;  %v12856_v14 = vpop.xlane.xlu1 %2766  ;;  %v2692_v50 = vmul.f32 %v2358_v46, %v17749_v39  ;;  %v12911_v46 = vld [vmem:[%s17193_s1 + $0xe4] sm:$0x3]  ;;  %v3017_v9 = vsel %vm2719_vm0, %v2690_v29, 0.0  ;;  %v1803_v29 = vcombine.high %v12823_v23, %v12823_v23  ;;  %v17761_v23 = vcombine.high %v11596_v21, %v11596_v21 }
 0x21b   :  { %17742 = vst [vmem:[#allocation155_spill] sm:$0xff] %v12856_v14  ;;  %3033 = vadd.xlane.f32.xlu0 %v3032_v11  ;;  %v2362_v11 = vrot.slane %v1801_v17, %v11393_v18  ;;  %v12883_v14 = vrot.slane %v1853_v34, %v11374_v63  ;;  %v2698_v1 = vmul.f32 %v2382_v3, %v17748_v62  ;;  %v3044_v3 = vsel %vm2719_vm0, %v2699_v12, 0.0 }
 0x21c   :  { %v12872_v22 = vpop.xlane.xlu0 %2817  ;;  %v12892_v17 = vrot.slane %v1909_v61, %v11374_v63  ;;  %v12899_v34 = vsub.s32 %v3233_v40, %v11364_v52  ;;  %v17752_v62 = vunpack.c.l.bf16 %v12838_v6  ;;  %v17753_v61 = vunpack.c.l.bf16 %v12854_v51  ;;  %17754 = vst [vmem:[#allocation161_spill] sm:$0xff] %v12911_v46  ;;  %v12916_v40 = vld [vmem:[%s17193_s1 + $0xf2] sm:$0x3]  ;;  %v12948_v51 = vld [vmem:[%s17193_s1 + $0xce] sm:$0x3] }
 0x21d   :  { %17745 = vst [vmem:[#allocation157_spill] sm:$0xff] %v12872_v22  ;;  %3060 = vadd.xlane.f32.xlu1 %v3059_v4  ;;  %17755 = vst [vmem:[#allocation162_spill] sm:$0xff] %v12916_v40  ;;  %v12920_v12 = vrot.slane %v1917_v55, %v11374_v63  ;;  %v3041_v39 = vsel %vm2719_vm0, %v2698_v1, 0.0  ;;  %v1916_v16 = vrot.slane %v17761_v23, %v11374_v63  ;;  %v3023_v49 = vsel %vm2719_vm0, %v2692_v50, 0.0 }
 0x21e   :  { %v12885_v22 = vpop.xlane.xlu1 %2820  ;;  %17750 = vst [vmem:[#allocation159_spill] sm:$0xff] %v12899_v34  ;;  %v2700_v57 = vmul.f32 %v2390_v2, %v17752_v62  ;;  %v2693_v48 = vmul.f32 %v2362_v11, %v17753_v61  ;;  %v12925_v2 = vld [vmem:[%s17193_s1 + $0xe8] sm:$0x3]  ;;  %v12929_v11 = vrot.slane %v12883_v14, %v11374_v63  ;;  %v1947_v61 = vcombine.high %v12892_v17, %v12892_v17 }
 0x21f   :  { %17747 = vst [vmem:[#allocation158_spill] sm:$0xff] %v12885_v22  ;;  %3057 = vadd.xlane.f32.xlu0 %v3056_v24  ;;  %17756 = vst [vmem:[#allocation163_spill] sm:$0xff] %v12925_v2  ;;  %v12934_v24 = vld [vmem:[%s17193_s1 + $0xf4] sm:$0x3]  ;;  %v17358_v1 = vunpack.c.l.bf16 %v12911_v46  ;;  %v2438_v50 = vrot.slane %v12920_v12, %v11393_v18  ;;  %v2366_v23 = vrot.slane %v1803_v29, %v11393_v18 }
 0x220   :  { %v12901_v4 = vpop.xlane.xlu0 %2871  ;;  %17757 = vst [vmem:[#allocation164_spill] sm:$0xff] %v12934_v24  ;;  %17760 = vst [vmem:[#allocation166_spill] sm:$0xff] %v12948_v51  ;;  %v3047_v6 = vsel %vm2719_vm0, %v2700_v57, 0.0  ;;  %v3026_v32 = vsel %vm2719_vm0, %v2693_v48, 0.0  ;;  %v12973_v57 = vld [vmem:[%s17193_s1 + $0xf8] sm:$0x3]  ;;  %v12980_v52 = vrot.slane %v1916_v16, %v11374_v63  ;;  %v1869_v29 = vcombine.high %v12883_v14, %v12883_v14 }
 0x221   :  { %17751 = vst [vmem:[#allocation160_spill] sm:$0xff] %v12901_v4  ;;  %3045 = vadd.xlane.f32.xlu1 %v3044_v3  ;;  %v17759_v3 = vunpack.c.l.bf16 %v12870_v31  ;;  %17763 = vst [vmem:[#allocation168_spill] sm:$0xff] %v12973_v57  ;;  %v17770_v14 = vunpack.c.l.bf16 %v12925_v2 }
 0x222   :  { %v12938_v55 = vpop.xlane.xlu1 %2874 }
 0x223   :  { %17758 = vst [vmem:[#allocation165_spill] sm:$0xff] %v12938_v55  ;;  %v2701_v62 = vmul.f32 %v2394_v60, %v17759_v3  ;;  %3018 = vadd.xlane.f32.xlu0 %v3017_v9  ;;  %v2410_v60 = vrot.slane %v1898_v7, %v11393_v18  ;;  %v2418_v9 = vrot.slane %v12929_v11, %v11393_v18  ;;  %v12985_v7 = vld [vmem:[%s17193_s1 + $0xf0] sm:$0x3]  ;;  %v13060_v55 = vld [vmem:[%s17193_s1 + $0xfa] sm:$0x3] }
 0x224   :  { %v12958_v31 = vpop.xlane.xlu0 %2877  ;;  %17765 = vst [vmem:[#allocation170_spill] sm:$0xff] %v12985_v7  ;;  %v3301_v3 = vrot.slane %v12284_v5, %v12899_v34  ;;  %v17771_v5 = vunpack.c.l.bf16 %v12948_v51  ;;  %17777 = vst [vmem:[#allocation178_spill] sm:$0xff] %v13060_v55 }
 0x225   :  { %17762 = vst [vmem:[#allocation167_spill] sm:$0xff] %v12958_v31  ;;  %3042 = vadd.xlane.f32.xlu1 %v3041_v39  ;;  %v3050_v21 = vsel %vm2719_vm0, %v2701_v62, 0.0  ;;  %v2442_v39 = vrot.slane %v1947_v61, %v11393_v18  ;;  %v2705_v62 = vmul.f32 %v2410_v60, %v17358_v1  ;;  %v1852_v61 = vcombine.high %v12841_v13, %v12841_v13  ;;  %v13010_v60 = vld [vmem:[%s17193_s1 + $0xe6] sm:$0x3] }
 0x226   :  { %v12975_v48 = vpop.xlane.xlu1 %2880  ;;  %v3305_v31 = vrot.slane %v12290_v37, %v12899_v34  ;;  %17768 = vst [vmem:[#allocation173_spill] sm:$0xff] %v13010_v60  ;;  %v1918_v13 = vcombine.high %v1916_v16, %v1916_v16  ;;  %v17769_v1 = vunpack.c.l.bf16 %v12916_v40  ;;  %v2707_v37 = vmul.f32 %v2418_v9, %v17770_v14 }
 0x227   :  { %17764 = vst [vmem:[#allocation169_spill] sm:$0xff] %v12975_v48  ;;  %3024 = vadd.xlane.f32.xlu0 %v3023_v49  ;;  %v1900_v48 = vcombine.high %v12754_v15, %v12754_v15  ;;  %v13005_v49 = vld [vmem:[%s17193_s1 + $0xde] sm:$0x3]  ;;  %v1949_v15 = vcombine.high %v12920_v12, %v12920_v12  ;;  %v2450_v12 = vrot.slane %v12980_v52, %v11393_v18 }
 0x228   :  { %v12999_v22 = vpop.xlane.xlu0 %2823  ;;  %17767 = vst [vmem:[#allocation172_spill] sm:$0xff] %v13005_v49  ;;  %v2712_v46 = vmul.f32 %v2438_v50, %v17769_v1  ;;  %v2434_v1 = vrot.slane %v12892_v17, %v11393_v18  ;;  %v2398_v9 = vrot.slane %v1852_v61, %v11393_v18  ;;  %v3062_v17 = vsel %vm2719_vm0, %v2705_v62, 0.0 }
 0x229   :  { %17766 = vst [vmem:[#allocation171_spill] sm:$0xff] %v12999_v22  ;;  %3048 = vadd.xlane.f32.xlu1 %v3047_v6  ;;  %v2694_v22 = vmul.f32 %v2366_v23, %v17771_v5  ;;  %v17774_v6 = vunpack.c.l.bf16 %v12934_v24  ;;  %v13035_v5 = vrot.slane %v1869_v29, %v11374_v63  ;;  %v2414_v14 = vrot.slane %v1900_v48, %v11393_v18 }
 0x22a   :  { %v13026_v36 = vpop.xlane.xlu1 %2826  ;;  %v2446_v29 = vrot.slane %v1949_v15, %v11393_v18  ;;  %v13052_v61 = vrot.slane %v1918_v13, %v11374_v63  ;;  %v3767_v23 = vsel %vm3746_vm1, %v3305_v31, %v3301_v3  ;;  %v3083_v48 = vsel %vm2719_vm0, %v2712_v46, 0.0 }
 0x22b   :  { %17773 = vst [vmem:[#allocation175_spill] sm:$0xff] %v13026_v36  ;;  %v2713_v16 = vmul.f32 %v2442_v39, %v17774_v6  ;;  %3027 = vadd.xlane.f32.xlu0 %v3026_v32  ;;  %v13044_v39 = vld [vmem:[%s17193_s1 + $0xea] sm:$0x3]  ;;  %v3068_v50 = vsel %vm2719_vm0, %v2707_v37, 0.0  ;;  %v1899_v62 = vcombine.high %v12929_v11, %v12929_v11  ;;  %v17778_v63 = vunpack.c.l.bf16 %v12973_v57  ;;  %v13115_v57 = vld [vmem:[%s17193_s1 + $0xee] sm:$0x3] }
 0x22c   :  { %17775 = vst [vmem:[#allocation176_spill] sm:$0xff] %v13044_v39  ;;  %v13046_v6 = vpop.xlane.xlu0 %2829  ;;  %v17779_v31 = vunpack.c.l.bf16 %v12985_v7  ;;  %v2422_v37 = vrot.slane %v13035_v5, %v11393_v18  ;;  %v3029_v13 = vsel %vm2719_vm0, %v2694_v22, 0.0  ;;  %v17783_v7 = vunpack.c.l.bf16 %v13024_v38  ;;  %17786 = vst [vmem:[#allocation181_spill] sm:$0xff] %v13115_v57 }
 0x22d   :  { %17776 = vst [vmem:[#allocation177_spill] sm:$0xff] %v13046_v6  ;;  %3051 = vadd.xlane.f32.xlu1 %v3050_v21  ;;  %v2715_v15 = vmul.f32 %v2450_v12, %v17778_v63  ;;  %v13076_v21 = vld [vmem:[%s17193_s1 + $0xec] sm:$0x3]  ;;  %v3086_v11 = vsel %vm2719_vm0, %v2713_v16, 0.0  ;;  %v17781_v12 = vunpack.c.l.bf16 %v13005_v49  ;;  %v1948_v16 = vcombine.high %v12980_v52, %v12980_v52 }
 0x22e   :  { %v13064_v32 = vpop.xlane.xlu1 %2832  ;;  %v2711_v3 = vmul.f32 %v2434_v1, %v17779_v31  ;;  %17780 = vst [vmem:[#allocation179_spill] sm:$0xff] %v13076_v21  ;;  %v17782_v1 = vunpack.c.l.bf16 %v13010_v60  ;;  %v2714_v2 = vmul.f32 %v2446_v29, %v17783_v7  ;;  %v3241_v22 = vrot.slane %v12445_v47, %v12899_v34  ;;  %v13100_v7 = vld [vmem:[%s17193_s1 + $0xfc] sm:$0x3] }
 0x22f   :  { %3063 = vadd.xlane.f32.xlu0 %v3062_v17  ;;  %v2702_v63 = vmul.f32 %v2398_v9, %v17781_v12  ;;  %v2454_v17 = vrot.slane %v13052_v61, %v11393_v18  ;;  %17784 = vst [vmem:[#allocation180_spill] sm:$0xff] %v13100_v7  ;;  %v1901_v29 = vcombine.high %v13035_v5, %v13035_v5  ;;  %v17378_v24 = vunpack.c.l.bf16 %v13100_v7 }
 0x230   :  { %v2706_v31 = vmul.f32 %v2414_v14, %v17782_v1  ;;  %v13084_v46 = vpop.xlane.xlu0 %2883  ;;  %v2426_v14 = vrot.slane %v1899_v62, %v11393_v18  ;;  %v3237_v12 = vrot.slane %v12327_v53, %v12899_v34  ;;  %v3080_v1 = vsel %vm2719_vm0, %v2711_v3, 0.0  ;;  %v13126_v3 = vld [vmem:[%s17193_s1 + $0xfe] sm:$0x3] }
 0x231   :  { %3084 = vadd.xlane.f32.xlu1 %v3083_v48  ;;  %v3092_v48 = vsel %vm2719_vm0, %v2715_v15, 0.0  ;;  %v17785_v62 = vunpack.c.l.bf16 %v13044_v39  ;;  %v3245_v5 = vrot.slane %v12333_v28, %v12899_v34  ;;  %v3309_v60 = vrot.slane %v12367_v19, %v12899_v34  ;;  %17787 = vst [vmem:[#allocation182_spill] sm:$0xff] %v13126_v3 }
 0x232   :  { %v13106_v52 = vpop.xlane.xlu1 %2886  ;;  %v3053_v38 = vsel %vm2719_vm0, %v2702_v63, 0.0  ;;  %v3065_v15 = vsel %vm2719_vm0, %v2706_v31, 0.0  ;;  %v17789_v39 = vunpack.c.l.bf16 %v13060_v55  ;;  %v3747_v63 = vsel %vm3746_vm1, %v3241_v22, %v3237_v12 }
 0x233   :  { %v2708_v9 = vmul.f32 %v2422_v37, %v17785_v62  ;;  %3069 = vadd.xlane.f32.xlu0 %v3068_v50  ;;  %v13131_v62 = vsel %vm2719_vm0, %v2714_v2, 0.0  ;;  %v2458_v50 = vrot.slane %v1948_v16, %v11393_v18  ;;  %v17790_v31 = vunpack.c.l.bf16 %v13076_v21 }
 0x234   :  { %v13128_v37 = vpop.xlane.xlu0 %2889  ;;  %v2716_v51 = vmul.f32 %v2454_v17, %v17789_v39  ;;  %v17379_v49 = vunpack.c.l.bf16 %v13115_v57  ;;  %v2430_v28 = vrot.slane %v1901_v29, %v11393_v18  ;;  %v3313_v2 = vrot.slane %v12371_v59, %v12899_v34 }
 0x235   :  { %17788 = vst [vmem:[#allocation183_spill] sm:$0xff] %v13128_v37  ;;  %3087 = vadd.xlane.f32.xlu1 %v3086_v11  ;;  %v2709_v40 = vmul.f32 %v2426_v14, %v17790_v31  ;;  %v13147_v39 = vsel %vm2719_vm0, %v2708_v9, 0.0  ;;  %v1950_v11 = vcombine.high %v13052_v61, %v13052_v61  ;;  %v3768_v16 = vsel %vm3748_vm2, %v3309_v60, %v3767_v23 }
 0x236   :  { %v13144_v47 = vpop.xlane.xlu1 %2892  ;;  %v3249_v22 = vrot.slane %v12459_v8, %v12899_v34  ;;  %v3337_v14 = vrot.slane %v12552_v27, %v12899_v34  ;;  %v3749_v29 = vsel %vm3748_vm2, %v3245_v5, %v3747_v63  ;;  %v3341_v9 = vrot.slane %v12622_v58, %v12899_v34  ;;  %v17807_v27 = vld [vmem:[#allocation151_spill] sm:$0xff] }
 0x237   :  { %17791 = vst [vmem:[#allocation184_spill] sm:$0xff] %v13144_v47  ;;  %3030 = vadd.xlane.f32.xlu0 %v3029_v13  ;;  %v13163_v31 = vsel %vm2719_vm0, %v2716_v51, 0.0  ;;  %v2717_v60 = vmul.f32 %v2458_v50, %v17378_v24  ;;  %v3317_v23 = vrot.slane %v12401_v25, %v12899_v34  ;;  %v3333_v61 = vrot.slane %v12539_v26, %v12899_v34 }
 0x238   :  { %v13160_v12 = vpop.xlane.xlu0 %2835  ;;  %v13172_v13 = vsel %vm2719_vm0, %v2709_v40, 0.0  ;;  %v2710_v5 = vmul.f32 %v2430_v28, %v17379_v49  ;;  %v3769_v63 = vsel %vm3750_vm3, %v3313_v2, %v3768_v16  ;;  %v3253_v51 = vrot.slane %v12478_v56, %v12899_v34 }
 0x239   :  { %3093 = vadd.xlane.f32.xlu1 %v3092_v48  ;;  %v2462_v50 = vrot.slane %v1950_v11, %v11393_v18  ;;  %v3751_v24 = vsel %vm3750_vm3, %v3249_v22, %v3749_v29  ;;  %v3774_v48 = vsel %vm3746_vm1, %v3337_v14, %v3333_v61  ;;  %v3273_v40 = vrot.slane %v12608_v20, %v12899_v34 }
 0x23a   :  { %v13179_v17 = vpop.xlane.xlu1 %2838  ;;  %v3345_v28 = vrot.slane %v12636_v0, %v12899_v34  ;;  %v3321_v2 = vrot.slane %v12418_v30, %v12899_v34  ;;  %v3775_v16 = vsel %vm3748_vm2, %v3341_v9, %v3774_v48  ;;  %v3277_v11 = vrot.slane %v12686_v33, %v12899_v34 }
 0x23b   :  { %3081 = vadd.xlane.f32.xlu0 %v3080_v1  ;;  %v13196_v22 = vsel %vm2719_vm0, %v2717_v60, 0.0  ;;  %v3770_v14 = vsel %vm3752_vm4, %v3317_v23, %v3769_v63  ;;  %v3325_v29 = vrot.slane %v12507_v44, %v12899_v34  ;;  %v3269_v1 = vrot.slane %v12594_v43, %v12899_v34 }
 0x23c   :  { %v13193_v49 = vpop.xlane.xlu0 %2841  ;;  %v3753_v9 = vsel %vm3752_vm4, %v3253_v51, %v3751_v24  ;;  %v3257_v61 = vrot.slane %v12491_v10, %v12899_v34  ;;  %v3349_v48 = vrot.slane %v12652_v42, %v12899_v34  ;;  %v17793_v23 = vunpack.c.l.bf16 %v13126_v3 }
 0x23d   :  { %3054 = vadd.xlane.f32.xlu1 %v3053_v38  ;;  %v3760_v57 = vsel %vm3746_vm1, %v3273_v40, %v3269_v1  ;;  %v3776_v21 = vsel %vm3750_vm3, %v3345_v28, %v3775_v16  ;;  %v3281_v38 = vrot.slane %v12700_v54, %v12899_v34  ;;  %v3433_v24 = vrot.slane %v12801_v35, %v12899_v34  ;;  %v17795_v16 = vld [vmem:[#allocation147_spill] sm:$0xff] }
 0x23e   :  { %v13208_v60 = vpop.xlane.xlu1 %2844  ;;  %v2718_v63 = vmul.f32 %v2462_v50, %v17793_v23  ;;  %v3329_v51 = vrot.slane %v12522_v45, %v12899_v34  ;;  %v3761_v7 = vsel %vm3748_vm2, %v3277_v11, %v3760_v57  ;;  %v3437_v50 = vrot.slane %v12901_v4, %v12899_v34  ;;  %v17796_v11 = vld [vmem:[#allocation139_spill] sm:$0xff] }
 0x23f   :  { %17792 = vst [vmem:[#allocation185_spill] sm:$0xff] %v13208_v60  ;;  %3066 = vadd.xlane.f32.xlu0 %v3065_v15  ;;  %v3771_v40 = vsel %vm3754_vm5, %v3321_v2, %v3770_v14  ;;  %v3353_v28 = vrot.slane %v12667_v41, %v12899_v34  ;;  %v3429_v1 = vrot.slane %v17795_v16, %v12899_v34  ;;  %v3077_v15 = vsel %vm2719_vm0, %v2710_v5, 0.0  ;;  %v17797_v16 = vld [vmem:[#allocation143_spill] sm:$0xff] }
 0x240   :  { %v13223_v23 = vpop.xlane.xlu0 %2895  ;;  %v3772_v3 = vsel %vm17493_vm6, %v3325_v29, %v3771_v40  ;;  %v3777_v57 = vsel %vm3752_vm4, %v3349_v48, %v3776_v21  ;;  %v3285_v55 = vrot.slane %v17796_v11, %v12899_v34  ;;  %v3101_v2 = vsel %vm2719_vm0, %v2718_v63, 0.0  ;;  %v17798_v29 = vld [vmem:[#allocation165_spill] sm:$0xff]  ;;  %v17799_v21 = vld [vmem:[#allocation158_spill] sm:$0xff]  ;;  %v17800_v63 = vld [vmem:[#allocation123_spill] sm:$0xff] }
 0x241   :  { %17794 = vst [vmem:[#allocation186_spill] sm:$0xff] %v13223_v23  ;;  %3090 = vadd.xlane.f32.xlu1 %v13131_v62  ;;  %v3755_v14 = vsel %vm3754_vm5, %v3257_v61, %v3753_v9  ;;  %v3762_v33 = vsel %vm3750_vm3, %v3281_v38, %v3761_v7  ;;  %v3357_v62 = vrot.slane %v17797_v16, %v12899_v34 }
 0x242   :  { %v13236_v4 = vpop.xlane.xlu1 %2898  ;;  %v3795_v5 = vsel %vm3746_vm1, %v3433_v24, %v3429_v1  ;;  %v3441_v40 = vrot.slane %v17798_v29, %v12899_v34  ;;  %v3369_v48 = vrot.slane %v17799_v21, %v12899_v34  ;;  %v3465_v9 = vrot.slane %v13144_v47, %v12899_v34  ;;  %v17801_v24 = vld [vmem:[#allocation171_spill] sm:$0xff]  ;;  %v17802_v29 = vld [vmem:[#allocation157_spill] sm:$0xff] }
 0x243   :  { %3072 = vadd.xlane.f32.xlu0 %v13147_v39  ;;  %v3796_v11 = vsel %vm3748_vm2, %v3437_v50, %v3795_v5  ;;  %v3773_v7 = vsel %vm17492_vm7, %v3329_v51, %v3772_v3  ;;  %v3261_v38 = vrot.slane %v17800_v63, %v12899_v34  ;;  %v3373_v1 = vrot.slane %v17801_v24, %v12899_v34  ;;  %v17803_v3 = vld [vmem:[#allocation167_spill] sm:$0xff]  ;;  %v17804_v24 = vld [vmem:[#allocation141_spill] sm:$0xff] }
 0x244   :  { %v13252_v61 = vpop.xlane.xlu0 %2901  ;;  %v3469_v39 = vrot.slane %v13223_v23, %v12899_v34  ;;  %v3778_v50 = vsel %vm3754_vm5, %v3353_v28, %v3777_v57  ;;  %v3763_v5 = vsel %vm3752_vm4, %v3285_v55, %v3762_v33  ;;  %v3365_v20 = vrot.slane %v17802_v29, %v12899_v34 }
 0x245   :  { %3096 = vadd.xlane.f32.xlu1 %v13163_v31  ;;  %v3445_v51 = vrot.slane %v17803_v3, %v12899_v34  ;;  %v3461_v47 = vrot.slane %v13128_v37, %v12899_v34  ;;  %v3289_v23 = vrot.slane %v17804_v24, %v12899_v34  ;;  %v17805_v31 = vld [vmem:[#allocation145_spill] sm:$0xff]  ;;  %v3797_v28 = vsel %vm3750_vm3, %v3441_v40, %v3796_v11 }
 0x246   :  { %v13270_v43 = vpop.xlane.xlu1 %2904  ;;  %v3361_v0 = vrot.slane %v17805_v31, %v12899_v34  ;;  %v3779_v33 = vsel %vm17493_vm6, %v3357_v62, %v3778_v50  ;;  %v3781_v55 = vsel %vm3746_vm1, %v3369_v48, %v3365_v20  ;;  %v3377_v57 = vrot.slane %v13026_v36, %v12899_v34  ;;  %v17808_v11 = vld [vmem:[#allocation169_spill] sm:$0xff] }
 0x247   :  { %3075 = vadd.xlane.f32.xlu0 %v13172_v13  ;;  %v3802_v29 = vsel %vm3746_vm1, %v3465_v9, %v3461_v47  ;;  %v3473_v37 = vrot.slane %v13236_v4, %v12899_v34  ;;  %v3293_v21 = vrot.slane %v17807_v27, %v12899_v34  ;;  %v3449_v13 = vrot.slane %v17808_v11, %v12899_v34  ;;  %v17809_v40 = vld [vmem:[#allocation125_spill] sm:$0xff] }
 0x248   :  { %v13285_v3 = vpop.xlane.xlu0 %2847  ;;  %v3782_v62 = vsel %vm3748_vm2, %v3373_v1, %v3781_v55  ;;  %v3803_v20 = vsel %vm3748_vm2, %v3469_v39, %v3802_v29  ;;  %v3265_v47 = vrot.slane %v17809_v40, %v12899_v34  ;;  %v3798_v48 = vsel %vm3752_vm4, %v3445_v51, %v3797_v28  ;;  %v17810_v28 = vld [vmem:[#allocation155_spill] sm:$0xff] }
 0x249   :  { %17806 = vst [vmem:[#allocation143_spill] sm:$0xff] %v13285_v3  ;;  %3099 = vadd.xlane.f32.xlu1 %v13196_v22  ;;  %v3888_v50 = vsel %vm3881_vm8, %v3773_v7, -inf  ;;  %v3757_v36 = vsel %vm17493_vm6, %v3261_v38, %v3755_v14  ;;  %v3381_v11 = vrot.slane %v13046_v6, %v12899_v34  ;;  %v3453_v1 = vrot.slane %v13084_v46, %v12899_v34 }
 0x24a   :  { %v13297_v9 = vpop.xlane.xlu1 %2850  ;;  %v3477_v22 = vrot.slane %v13252_v61, %v12899_v34  ;;  %v3764_v29 = vsel %vm3754_vm5, %v3289_v23, %v3763_v5  ;;  %v3783_v39 = vsel %vm3750_vm3, %v3377_v57, %v3782_v62  ;;  %v3401_v51 = vrot.slane %v13208_v60, %v12899_v34 }
 0x24b   :  { %3078 = vadd.xlane.f32.xlu0 %v3077_v15  ;;  %v3804_v7 = vsel %vm3750_vm3, %v3473_v37, %v3803_v20  ;;  %v3780_v38 = vsel %vm17492_vm7, %v3361_v0, %v3779_v33  ;;  %v3297_v55 = vrot.slane %v17810_v28, %v12899_v34  ;;  %v3405_v6 = vrot.slane %v13285_v3, %v12899_v34 }
 0x24c   :  { %v13312_v14 = vpop.xlane.xlu0 %2853  ;;  %v3765_v23 = vsel %vm17493_vm6, %v3293_v21, %v3764_v29  ;;  %v3799_v15 = vsel %vm3754_vm5, %v3449_v13, %v3798_v48  ;;  %v3385_v5 = vrot.slane %v13064_v32, %v12899_v34  ;;  %v3457_v37 = vrot.slane %v13106_v52, %v12899_v34 }
 0x24d   :  { %3102 = vadd.xlane.f32.xlu1 %v3101_v2  ;;  %v3397_v0 = vrot.slane %v13193_v49, %v12899_v34  ;;  %v3481_v33 = vrot.slane %v13270_v43, %v12899_v34  ;;  %v3784_v2 = vsel %vm3752_vm4, %v3381_v11, %v3783_v39  ;;  %v3805_v21 = vsel %vm3752_vm4, %v3477_v22, %v3804_v7 }
 0x24e   :  { %v13329_v57 = vpop.xlane.xlu1 %2856  ;;  %v3759_v13 = vsel %vm17492_vm7, %v3265_v47, %v3757_v36  ;;  %v3800_v62 = vsel %vm17493_vm6, %v3453_v1, %v3799_v15  ;;  %v3389_v20 = vrot.slane %v13160_v12, %v12899_v34  ;;  %v3409_v29 = vrot.slane %v13297_v9, %v12899_v34 }
 0x24f   :  { %17811 = vst [vmem:[#allocation123_spill] sm:$0xff] %v13329_v57  ;;  %3889 = vmax.xlane.f32.xlu0 %v3888_v50  ;;  %v3788_v48 = vsel %vm3746_vm1, %v3401_v51, %v3397_v0  ;;  %v3891_v60 = vsel %vm3881_vm8, %v3780_v38, -inf  ;;  %v3766_v36 = vsel %vm17492_vm7, %v3297_v55, %v3765_v23  ;;  %v3882_v1 = vsel %vm3881_vm8, %v3759_v13, -inf }
 0x250   :  { %v13340_v3 = vpop.xlane.xlu0 %2907  ;;  %v3789_v11 = vsel %vm3748_vm2, %v3405_v6, %v3788_v48  ;;  %v3801_v22 = vsel %vm17492_vm7, %v3457_v37, %v3800_v62  ;;  %v3806_v39 = vsel %vm3754_vm5, %v3481_v33, %v3805_v21  ;;  %v3785_v51 = vsel %vm3754_vm5, %v3385_v5, %v3784_v2 }
 0x251   :  { %v3485_v50 = vrot.slane %v13340_v3, %v12899_v34  ;;  %3892 = vmax.xlane.f32.xlu1 %v3891_v60  ;;  %v3393_v7 = vrot.slane %v13179_v17, %v12899_v34  ;;  %v3413_v6 = vrot.slane %v13312_v14, %v12899_v34  ;;  %v3790_v55 = vsel %vm3750_vm3, %v3409_v29, %v3789_v11 }
 0x252   :  { %v13347_v47 = vpop.xlane.xlu1 %2910  ;;  %v3885_v15 = vsel %vm3881_vm8, %v3766_v36, -inf  ;;  %v3786_v5 = vsel %vm17493_vm6, %v3389_v20, %v3785_v51  ;;  %v3417_v0 = vrot.slane %v13329_v57, %v12899_v34  ;;  %v3900_v2 = vsel %vm3881_vm8, %v3801_v22, -inf }
 0x253   :  { %v3489_v60 = vrot.slane %v13347_v47, %v12899_v34  ;;  %3883 = vmax.xlane.f32.xlu0 %v3882_v1  ;;  %v3807_v38 = vsel %vm17493_vm6, %v3485_v50, %v3806_v39  ;;  %v3791_v21 = vsel %vm3752_vm4, %v3413_v6, %v3790_v55  ;;  %v3787_v13 = vsel %vm17492_vm7, %v3393_v7, %v3786_v5 }
 0x254   :  { %v13361_v23 = vpop.xlane.xlu0 %2961  ;;  %v3894_v11 = vsel %vm3881_vm8, %v3787_v13, -inf  ;;  %v3792_v50 = vsel %vm3754_vm5, %v3417_v0, %v3791_v21 }
 0x255   :  { %17812 = vst [vmem:[#allocation141_spill] sm:$0xff] %v13361_v23  ;;  %3886 = vmax.xlane.f32.xlu1 %v3885_v15  ;;  %v3808_v37 = vsel %vm17492_vm7, %v3489_v60, %v3807_v38  ;;  %v3557_v5 = vrot.slane %v13361_v23, %v12899_v34 }
 0x256   :  { %v13368_v33 = vpop.xlane.xlu1 %2964  ;;  %v3903_v48 = vsel %vm3881_vm8, %v3808_v37, -inf }
 0x257   :  { %17813 = vst [vmem:[#allocation145_spill] sm:$0xff] %v13368_v33  ;;  %3901 = vmax.xlane.f32.xlu0 %v3900_v2  ;;  %v3561_v38 = vrot.slane %v13368_v33, %v12899_v34 }
 0x258   :  { %v13373_v62 = vpop.xlane.xlu0 %2859 }
 0x259   :  { %17814 = vst [vmem:[#allocation151_spill] sm:$0xff] %v13373_v62  ;;  %v3421_v20 = vrot.slane %v13373_v62, %v12899_v34  ;;  %3904 = vmax.xlane.f32.xlu1 %v3903_v48  ;;  %v3823_v0 = vsel %vm3746_vm1, %v3561_v38, %v3557_v5 }
 0x25a   :  { %v13378_v29 = vpop.xlane.xlu1 %2862 }
 0x25b   :  { %17815 = vst [vmem:[#allocation125_spill] sm:$0xff] %v13378_v29  ;;  %v3425_v36 = vrot.slane %v13378_v29, %v12899_v34  ;;  %3895 = vmax.xlane.f32.xlu0 %v3894_v11  ;;  %v3793_v1 = vsel %vm17493_vm6, %v3421_v20, %v3792_v50 }
 0x25c   :  { %v13385_v22 = vpop.xlane.xlu0 %2913 }
 0x25d   :  { %17816 = vst [vmem:[#allocation155_spill] sm:$0xff] %v13385_v22  ;;  %v3794_v39 = vsel %vm17492_vm7, %v3425_v36, %v3793_v1 }
 0x25e   :  { %v13388_v51 = vpop.xlane.xlu1 %2916  ;;  %v3897_v7 = vsel %vm3881_vm8, %v3794_v39, -inf  ;;  %v3493_v39 = vrot.slane %v13385_v22, %v12899_v34 }
 0x25f   :  { %17817 = vst [vmem:[#allocation187_spill] sm:$0xff] %v13388_v51  ;;  %3898 = vmax.xlane.f32.xlu1 %v3897_v7  ;;  %v3497_v11 = vrot.slane %v13388_v51, %v12899_v34 }
 0x260   :  { %v13391_v6 = vpop.xlane.xlu0 %2967 }
 0x261   :  { %17818 = vst [vmem:[#allocation188_spill] sm:$0xff] %v13391_v6  ;;  %v3565_v15 = vrot.slane %v13391_v6, %v12899_v34  ;;  %v3809_v5 = vsel %vm3746_vm1, %v3497_v11, %v3493_v39 }
 0x262   :  { %v13393_v60 = vpop.xlane.xlu1 %2970 }
 0x263   :  { %17819 = vst [vmem:[#allocation189_spill] sm:$0xff] %v13393_v60  ;;  %v3569_v2 = vrot.slane %v13393_v60, %v12899_v34  ;;  %v3824_v13 = vsel %vm3748_vm2, %v3565_v15, %v3823_v0 }
 0x264   :  { %v13397_v55 = vpop.xlane.xlu0 %2973 }
 0x265   :  { %17820 = vst [vmem:[#allocation190_spill] sm:$0xff] %v13397_v55  ;;  %v3573_v20 = vrot.slane %v13397_v55, %v12899_v34  ;;  %v3825_v50 = vsel %vm3750_vm3, %v3569_v2, %v3824_v13 }
 0x266   :  { %v13403_v37 = vpop.xlane.xlu1 %2976 }
 0x267   :  { %17821 = vst [vmem:[#allocation191_spill] sm:$0xff] %v13403_v37  ;;  %v3577_v7 = vrot.slane %v13403_v37, %v12899_v34  ;;  %v3826_v15 = vsel %vm3752_vm4, %v3573_v20, %v3825_v50 }
 0x268   :  { %v13408_v21 = vpop.xlane.xlu0 %2919 }
 0x269   :  { %17822 = vst [vmem:[#allocation192_spill] sm:$0xff] %v13408_v21  ;;  %v3501_v1 = vrot.slane %v13408_v21, %v12899_v34  ;;  %v3827_v22 = vsel %vm3754_vm5, %v3577_v7, %v3826_v15 }
 0x26a   :  { %v13411_v48 = vpop.xlane.xlu1 %2922 }
 0x26b   :  { %17823 = vst [vmem:[#allocation193_spill] sm:$0xff] %v13411_v48  ;;  %v3505_v0 = vrot.slane %v13411_v48, %v12899_v34  ;;  %v3810_v13 = vsel %vm3748_vm2, %v3501_v1, %v3809_v5 }
 0x26c   :  { %v13418_v36 = vpop.xlane.xlu0 %2925 }
 0x26d   :  { %17824 = vst [vmem:[#allocation194_spill] sm:$0xff] %v13418_v36  ;;  %v3509_v37 = vrot.slane %v13418_v36, %v12899_v34  ;;  %v3811_v50 = vsel %vm3750_vm3, %v3505_v0, %v3810_v13 }
 0x26e   :  { %v13426_v38 = vpop.xlane.xlu1 %2928 }
 0x26f   :  { %17825 = vst [vmem:[#allocation195_spill] sm:$0xff] %v13426_v38  ;;  %v3513_v5 = vrot.slane %v13426_v38, %v12899_v34  ;;  %v3812_v15 = vsel %vm3752_vm4, %v3509_v37, %v3811_v50 }
 0x270   :  { %v13432_v2 = vpop.xlane.xlu0 %2979 }
 0x271   :  { %17826 = vst [vmem:[#allocation196_spill] sm:$0xff] %v13432_v2  ;;  %v3581_v21 = vrot.slane %v13432_v2, %v12899_v34  ;;  %v3813_v0 = vsel %vm3754_vm5, %v3513_v5, %v3812_v15 }
 0x272   :  { %v13437_v51 = vpop.xlane.xlu1 %2982 }
 0x273   :  { %17827 = vst [vmem:[#allocation197_spill] sm:$0xff] %v13437_v51  ;;  %v3585_v20 = vrot.slane %v13437_v51, %v12899_v34  ;;  %v3828_v11 = vsel %vm17493_vm6, %v3581_v21, %v3827_v22 }
 0x274   :  { %v13446_v39 = vpop.xlane.xlu0 %2985 }
 0x275   :  { %17828 = vst [vmem:[#allocation198_spill] sm:$0xff] %v13446_v39  ;;  %v3829_v1 = vsel %vm17492_vm7, %v3585_v20, %v3828_v11 }
 0x276   :  { %v13451_v48 = vpop.xlane.xlu1 %2988  ;;  %v3912_v7 = vsel %vm3881_vm8, %v3829_v1, -inf }
 0x277   :  { %17829 = vst [vmem:[#allocation199_spill] sm:$0xff] %v13451_v48  ;;  %3913 = vmax.xlane.f32.xlu0 %v3912_v7  ;;  %v3593_v5 = vrot.slane %v13451_v48, %v12899_v34 }
 0x278   :  { %v13455_v36 = vpop.xlane.xlu0 %2931 }
 0x279   :  { %17830 = vst [vmem:[#allocation200_spill] sm:$0xff] %v13455_v36  ;;  %v3517_v22 = vrot.slane %v13455_v36, %v12899_v34 }
 0x27a   :  { %v13459_v21 = vpop.xlane.xlu1 %2934 }
 0x27b   :  { %17831 = vst [vmem:[#allocation201_spill] sm:$0xff] %v13459_v21  ;;  %v3521_v13 = vrot.slane %v13459_v21, %v12899_v34  ;;  %v3814_v20 = vsel %vm17493_vm6, %v3517_v22, %v3813_v0  ;;  %v3589_v0 = vrot.slane %v13446_v39, %v12899_v34 }
 0x27c   :  { %v13465_v11 = vpop.xlane.xlu0 %2937 }
 0x27d   :  { %17832 = vst [vmem:[#allocation202_spill] sm:$0xff] %v13465_v11  ;;  %v3815_v1 = vsel %vm17492_vm7, %v3521_v13, %v3814_v20  ;;  %v3830_v20 = vsel %vm3746_vm1, %v3593_v5, %v3589_v0  ;;  %v3525_v39 = vrot.slane %v13465_v11, %v12899_v34 }
 0x27e   :  { %v13468_v37 = vpop.xlane.xlu1 %2940  ;;  %v3906_v50 = vsel %vm3881_vm8, %v3815_v1, -inf }
 0x27f   :  { %17833 = vst [vmem:[#allocation203_spill] sm:$0xff] %v13468_v37  ;;  %3907 = vmax.xlane.f32.xlu0 %v3906_v50  ;;  %v3529_v1 = vrot.slane %v13468_v37, %v12899_v34 }
 0x280   :  { %v13471_v7 = vpop.xlane.xlu0 %2991 }
 0x281   :  { %17834 = vst [vmem:[#allocation204_spill] sm:$0xff] %v13471_v7  ;;  %v3597_v22 = vrot.slane %v13471_v7, %v12899_v34  ;;  %v3816_v0 = vsel %vm3746_vm1, %v3529_v1, %v3525_v39 }
 0x282   :  { %v13473_v36 = vpop.xlane.xlu1 %2994 }
 0x283   :  { %17835 = vst [vmem:[#allocation205_spill] sm:$0xff] %v13473_v36  ;;  %v3601_v50 = vrot.slane %v13473_v36, %v12899_v34  ;;  %v3831_v48 = vsel %vm3748_vm2, %v3597_v22, %v3830_v20 }
 0x284   :  { %v13477_v15 = vpop.xlane.xlu0 %2997 }
 0x285   :  { %17836 = vst [vmem:[#allocation206_spill] sm:$0xff] %v13477_v15  ;;  %v3605_v5 = vrot.slane %v13477_v15, %v12899_v34  ;;  %v3832_v37 = vsel %vm3750_vm3, %v3601_v50, %v3831_v48 }
 0x286   :  { %v13483_v13 = vpop.xlane.xlu1 %3000 }
 0x287   :  { %17837 = vst [vmem:[#allocation207_spill] sm:$0xff] %v13483_v13  ;;  %v3609_v20 = vrot.slane %v13483_v13, %v12899_v34  ;;  %v3833_v11 = vsel %vm3752_vm4, %v3605_v5, %v3832_v37 }
 0x288   :  { %v13490_v21 = vpop.xlane.xlu0 %2943 }
 0x289   :  { %17838 = vst [vmem:[#allocation208_spill] sm:$0xff] %v13490_v21  ;;  %v3533_v7 = vrot.slane %v13490_v21, %v12899_v34 }
 0x28a   :  { %v13497_v38 = vpop.xlane.xlu1 %2946 }
 0x28b   :  { %17839 = vst [vmem:[#allocation209_spill] sm:$0xff] %v13497_v38  ;;  %v3537_v36 = vrot.slane %v13497_v38, %v12899_v34  ;;  %v3817_v22 = vsel %vm3748_vm2, %v3533_v7, %v3816_v0  ;;  %v3834_v0 = vsel %vm3754_vm5, %v3609_v20, %v3833_v11 }
 0x28c   :  { %v13505_v51 = vpop.xlane.xlu0 %2949 }
 0x28d   :  { %17840 = vst [vmem:[#allocation210_spill] sm:$0xff] %v13505_v51  ;;  %v3541_v15 = vrot.slane %v13505_v51, %v12899_v34  ;;  %v3818_v39 = vsel %vm3750_vm3, %v3537_v36, %v3817_v22 }
 0x28e   :  { %v13510_v21 = vpop.xlane.xlu1 %2952 }
 0x28f   :  { %17841 = vst [vmem:[#allocation211_spill] sm:$0xff] %v13510_v21  ;;  %v3545_v7 = vrot.slane %v13510_v21, %v12899_v34  ;;  %v3819_v38 = vsel %vm3752_vm4, %v3541_v15, %v3818_v39 }
 0x290   :  { %v13516_v48 = vpop.xlane.xlu0 %3003 }
 0x291   :  { %17842 = vst [vmem:[#allocation212_spill] sm:$0xff] %v13516_v48  ;;  %v3613_v1 = vrot.slane %v13516_v48, %v12899_v34  ;;  %v3820_v11 = vsel %vm3754_vm5, %v3545_v7, %v3819_v38  ;;  %v17422_v38 = vmov 0  }
 0x292   :  { %v13522_v50 = vpop.xlane.xlu1 %3006  ;;  %10376 = vset.pattern.permute.xlu1 %v17422_v38  ;;  %10375 = vset.pattern.permute.xlu0 %v17422_v38 }
 0x293   :  { %17843 = vst [vmem:[#allocation213_spill] sm:$0xff] %v13522_v50  ;;  %v3617_v37 = vrot.slane %v13522_v50, %v12899_v34  ;;  %v3835_v5 = vsel %vm17493_vm6, %v3613_v1, %v3834_v0 }
 0x294   :  { %v13529_v36 = vpop.xlane.xlu0 %2955 }
 0x295   :  { %17844 = vst [vmem:[#allocation214_spill] sm:$0xff] %v13529_v36  ;;  %v3549_v22 = vrot.slane %v13529_v36, %v12899_v34  ;;  %v3836_v51 = vsel %vm17492_vm7, %v3617_v37, %v3835_v5 }
 0x296   :  { %v13534_v48 = vpop.xlane.xlu1 %2958  ;;  %v3915_v21 = vsel %vm3881_vm8, %v3836_v51, -inf }
 0x297   :  { %17845 = vst [vmem:[#allocation215_spill] sm:$0xff] %v13534_v48  ;;  %v3553_v15 = vrot.slane %v13534_v48, %v12899_v34  ;;  %3916 = vmax.xlane.f32.xlu1 %v3915_v21  ;;  %v3821_v20 = vsel %vm17493_vm6, %v3549_v22, %v3820_v11 }
 0x298   :  { %v13541_v39 = vpop.xlane.xlu0 %3009 }
 0x299   :  { %17846 = vst [vmem:[#allocation216_spill] sm:$0xff] %v13541_v39  ;;  %v3822_v1 = vsel %vm17492_vm7, %v3553_v15, %v3821_v20  ;;  %v3621_v2 = vrot.slane %v13541_v39, %v12899_v34 }
 0x29a   :  { %v13544_v0 = vpop.xlane.xlu1 %3012  ;;  %v3909_v37 = vsel %vm3881_vm8, %v3822_v1, -inf }
 0x29b   :  { %17847 = vst [vmem:[#allocation217_spill] sm:$0xff] %v13544_v0  ;;  %3910 = vmax.xlane.f32.xlu1 %v3909_v37  ;;  %v3625_v50 = vrot.slane %v13544_v0, %v12899_v34 }
 0x29c   :  { %v13547_v5 = vpop.xlane.xlu0 %3015 }
 0x29d   :  { %17848 = vst [vmem:[#allocation218_spill] sm:$0xff] %v13547_v5  ;;  %v3629_v55 = vrot.slane %v13547_v5, %v12899_v34  ;;  %v3837_v6 = vsel %vm3746_vm1, %v3625_v50, %v3621_v2 }
 0x29e   :  { %v13549_v51 = vpop.xlane.xlu1 %3036 }
 0x29f   :  { %17849 = vst [vmem:[#allocation219_spill] sm:$0xff] %v13549_v51  ;;  %v3838_v29 = vsel %vm3748_vm2, %v3629_v55, %v3837_v6  ;;  %v3657_v39 = vrot.slane %v13549_v51, %v12899_v34 }
 0x2a0   :  { %v13553_v21 = vpop.xlane.xlu0 %3021 }
 0x2a1   :  { %17850 = vst [vmem:[#allocation220_spill] sm:$0xff] %v13553_v21  ;;  %v3637_v50 = vrot.slane %v13553_v21, %v12899_v34 }
 0x2a2   :  { %v13555_v7 = vpop.xlane.xlu1 %3039 }
 0x2a3   :  { %17851 = vst [vmem:[#allocation221_spill] sm:$0xff] %v13555_v7  ;;  %v3661_v51 = vrot.slane %v13555_v7, %v12899_v34 }
 0x2a4   :  { %v13557_v22 = vpop.xlane.xlu0 %3033 }
 0x2a5   :  { %17852 = vst [vmem:[#allocation222_spill] sm:$0xff] %v13557_v22  ;;  %v3653_v0 = vrot.slane %v13557_v22, %v12899_v34 }
 0x2a6   :  { %v13559_v11 = vpop.xlane.xlu1 %3060 }
 0x2a7   :  { %17853 = vst [vmem:[#allocation223_spill] sm:$0xff] %v13559_v11  ;;  %v3844_v6 = vsel %vm3746_vm1, %v3657_v39, %v3653_v0 }
 0x2a8   :  { %v13561_v15 = vpop.xlane.xlu0 %3057 }
 0x2a9   :  { %17854 = vst [vmem:[#allocation224_spill] sm:$0xff] %v13561_v15 }
 0x2aa   :  { %v13563_v20 = vpop.xlane.xlu1 %3045 }
 0x2ac   :  { %v13565_v1 = vpop.xlane.xlu0 %3018 }
 0x2ad   :  { %17855 = vst [vmem:[#allocation225_spill] sm:$0xff] %v13565_v1  ;;  %v3633_v33 = vrot.slane %v13565_v1, %v12899_v34 }
 0x2ae   :  { %v13567_v37 = vpop.xlane.xlu1 %3042 }
 0x2af   :  { %17856 = vst [vmem:[#allocation226_spill] sm:$0xff] %v13567_v37  ;;  %v3839_v5 = vsel %vm3750_vm3, %v3633_v33, %v3838_v29  ;;  %v3665_v55 = vrot.slane %v13567_v37, %v12899_v34 }
 0x2b0   :  { %v13569_v48 = vpop.xlane.xlu0 %3024  ;;  %v3840_v29 = vsel %vm3752_vm4, %v3637_v50, %v3839_v5  ;;  %v3669_v5 = vrot.slane %v13563_v20, %v12899_v34 }
 0x2b1   :  { %17857 = vst [vmem:[#allocation227_spill] sm:$0xff] %v13569_v48  ;;  %v3641_v2 = vrot.slane %v13569_v48, %v12899_v34 }
 0x2b2   :  { %v13571_v36 = vpop.xlane.xlu1 %3048 }
 0x2b3   :  { %v3841_v48 = vsel %vm3754_vm5, %v3641_v2, %v3840_v29  ;;  %v3673_v37 = vrot.slane %v13571_v36, %v12899_v34 }
 0x2b4   :  { %v13573_v38 = vpop.xlane.xlu0 %3027 }
 0x2b5   :  { %17858 = vst [vmem:[#allocation228_spill] sm:$0xff] %v13573_v38  ;;  %v3645_v1 = vrot.slane %v13573_v38, %v12899_v34  ;;  %v3845_v38 = vsel %vm3748_vm2, %v3661_v51, %v3844_v6 }
 0x2b6   :  { %v13577_v13 = vpop.xlane.xlu1 %3051  ;;  %v3846_v0 = vsel %vm3750_vm3, %v3665_v55, %v3845_v38 }
 0x2b7   :  { %17859 = vst [vmem:[#allocation229_spill] sm:$0xff] %v13577_v13  ;;  %v3842_v39 = vsel %vm17493_vm6, %v3645_v1, %v3841_v48  ;;  %v3677_v50 = vrot.slane %v13577_v13, %v12899_v34  ;;  %v3847_v48 = vsel %vm3752_vm4, %v3669_v5, %v3846_v0 }
 0x2b8   :  { %v13583_v60 = vpop.xlane.xlu0 %3063 }
 0x2b9   :  { %17860 = vst [vmem:[#allocation230_spill] sm:$0xff] %v13583_v60  ;;  %v3693_v0 = vrot.slane %v13583_v60, %v12899_v34 }
 0x2ba   :  { %v13588_v23 = vpop.xlane.xlu1 %3084 }
 0x2bb   :  { %17861 = vst [vmem:[#allocation231_spill] sm:$0xff] %v13588_v23 }
 0x2bc   :  { %v13593_v62 = vpop.xlane.xlu0 %3069 }
 0x2bd   :  { %17862 = vst [vmem:[#allocation232_spill] sm:$0xff] %v13593_v62 }
 0x2be   :  { %v13604_v57 = vpop.xlane.xlu1 %3087 }
 0x2c0   :  { %v13611_v33 = vpop.xlane.xlu0 %3030 }
 0x2c1   :  { %v3649_v22 = vrot.slane %v13611_v33, %v12899_v34 }
 0x2c2   :  { %v13618_v21 = vpop.xlane.xlu1 %3093 }
 0x2c3   :  { %17863 = vst [vmem:[#allocation233_spill] sm:$0xff] %v13618_v21  ;;  %v3843_v7 = vsel %vm17492_vm7, %v3649_v22, %v3842_v39  ;;  %v3848_v22 = vsel %vm3754_vm5, %v3673_v37, %v3847_v48  ;;  %v3689_v37 = vrot.slane %v13559_v11, %v12899_v34 }
 0x2c4   :  { %v13629_v2 = vpop.xlane.xlu0 %3081  ;;  %v3918_v51 = vsel %vm3881_vm8, %v3843_v7, -inf  ;;  %v3849_v55 = vsel %vm17493_vm6, %v3677_v50, %v3848_v22  ;;  %v3685_v7 = vrot.slane %v13561_v15, %v12899_v34 }
 0x2c5   :  { %17864 = vst [vmem:[#allocation234_spill] sm:$0xff] %v13629_v2  ;;  %3919 = vmax.xlane.f32.xlu0 %v3918_v51 }
 0x2c6   :  { %v13632_v6 = vpop.xlane.xlu1 %3054  ;;  %v3851_v48 = vsel %vm3746_vm1, %v3689_v37, %v3685_v7  ;;  %v17872_v37 = vld [vmem:[#allocation26_spill] sm:$0xff] }
 0x2c7   :  { %17865 = vst [vmem:[#allocation235_spill] sm:$0xff] %v13632_v6  ;;  %v3681_v38 = vrot.slane %v13632_v6, %v12899_v34  ;;  %v3725_v6 = vrot.slane %v13604_v57, %v12899_v34 }
 0x2c8   :  { %v13638_v1 = vpop.xlane.xlu0 %3066 }
 0x2c9   :  { %17866 = vst [vmem:[#allocation236_spill] sm:$0xff] %v13638_v1  ;;  %v3850_v29 = vsel %vm17492_vm7, %v3681_v38, %v3849_v55  ;;  %v3697_v50 = vrot.slane %v13638_v1, %v12899_v34  ;;  %v3852_v38 = vsel %vm3748_vm2, %v3693_v0, %v3851_v48 }
 0x2ca   :  { %v3921_v39 = vsel %vm3881_vm8, %v3850_v29, -inf  ;;  %v13647_v5 = vpop.xlane.xlu1 %3090 }
 0x2cb   :  { %3922 = vmax.xlane.f32.xlu1 %v3921_v39  ;;  %17867 = vst [vmem:[#allocation237_spill] sm:$0xff] %v13647_v5  ;;  %v3853_v55 = vsel %vm3750_vm3, %v3697_v50, %v3852_v38  ;;  %v3701_v39 = vrot.slane %v13593_v62, %v12899_v34  ;;  %v13674_v50 = vsub.s32 3, %v17872_v37 }
 0x2cc   :  { %v13649_v51 = vpop.xlane.xlu0 %3072 }
 0x2cd   :  { %17868 = vst [vmem:[#allocation238_spill] sm:$0xff] %v13649_v51  ;;  %v3705_v29 = vrot.slane %v13649_v51, %v12899_v34  ;;  %v3854_v7 = vsel %vm3752_vm4, %v3701_v39, %v3853_v55  ;;  %v3717_v55 = vrot.slane %v13629_v2, %v12899_v34 }
 0x2ce   :  { %v13664_v60 = vpop.xlane.xlu1 %3096 }
 0x2cf   :  { %17870 = vst [vmem:[#allocation240_spill] sm:$0xff] %v13664_v60  ;;  %v3855_v48 = vsel %vm3754_vm5, %v3705_v29, %v3854_v7  ;;  %v3721_v29 = vrot.slane %v13588_v23, %v12899_v34  ;;  %v17874_v7 = vld [vmem:[#allocation99_spill] sm:$0xff] }
 0x2d0   :  { %v13657_v22 = vpop.xlane.xlu0 %3075 }
 0x2d1   :  { %17869 = vst [vmem:[#allocation239_spill] sm:$0xff] %v13657_v22  ;;  %v3709_v11 = vrot.slane %v13657_v22, %v12899_v34 }
 0x2d2   :  { %v13679_v62 = vpop.xlane.xlu1 %3099 }
 0x2d3   :  { %v3856_v38 = vsel %vm17493_vm6, %v3709_v11, %v3855_v48  ;;  %17873 = vst [vmem:[#allocation26_spill] sm:$0xff] %v13679_v62  ;;  %v13691_v11 = vsub.s32 1, %v17872_v37  ;;  %v3729_v48 = vrot.slane %v13647_v5, %v12899_v34 }
 0x2d4   :  { %v13668_v1 = vpop.xlane.xlu0 %3078 }
 0x2d5   :  { %17871 = vst [vmem:[#allocation241_spill] sm:$0xff] %v13668_v1  ;;  %v3713_v0 = vrot.slane %v13668_v1, %v12899_v34 }
 0x2d7   :  { %v3857_v51 = vsel %vm17492_vm7, %v3713_v0, %v3856_v38 }
 0x2d8   :  { %v13681_v15 = vpop.xlane.xlu0 %3889  ;;  %v3924_v22 = vsel %vm3881_vm8, %v3857_v51, -inf  ;;  %v3858_v51 = vsel %vm3746_vm1, %v3721_v29, %v3717_v55  ;;  %v3737_v29 = vrot.slane %v13664_v60, %v12899_v34 }
 0x2d9   :  { %v4013_v39 = vrot.slane %v13681_v15, %v11393_v18  ;;  %v4025_v1 = vrot.slane %v13681_v15, %v13674_v50  ;;  %3925 = vmax.xlane.f32.xlu0 %v3924_v22  ;;  %v13702_v22 = vpop.xlane.xlu1 %3102  ;;  %v4017_v13 = vrot.slane %v13681_v15, %v13691_v11  ;;  %v3859_v23 = vsel %vm3748_vm2, %v3725_v6, %v3858_v51 }
 0x2da   :  { %17875 = vst [vmem:[#allocation99_spill] sm:$0xff] %v13702_v22  ;;  %v3860_v55 = vsel %vm3750_vm3, %v3729_v48, %v3859_v23  ;;  %v3745_v6 = vrot.slane %v13702_v22, %v12899_v34  ;;  %v13721_v51 = vsub.s32 4, %v17872_v37 }
 0x2db   :  { %v4602_v0 = vsub.f32 %v17874_v7, %v4013_v39  ;;  %v4605_v38 = vsub.f32 %v12371_v59, %v4025_v1  ;;  %v13708_v39 = vsub.s32 2, %v17872_v37  ;;  %v3733_v1 = vrot.slane %v13618_v21, %v12899_v34 }
 0x2dc   :  { %v3741_v7 = vrot.slane %v13679_v62, %v12899_v34  ;;  %v13738_v34 = vsub.s32 5, %v17872_v37 }
 0x2dd   :  { %v4746_v2 = vmul.f32 1.442695, %v4602_v0  ;;  %v4752_v59 = vmul.f32 1.442695, %v4605_v38  ;;  %v17876_v0 = vld [vmem:[#allocation100_spill] sm:$0xff]  ;;  %v4021_v23 = vrot.slane %v13681_v15, %v13708_v39  ;;  %v13725_v48 = vpop.xlane.xlu1 %3892  ;;  %v13728_v38 = vpop.xlane.xlu0 %3883 }
 0x2de   :  { %v4603_v5 = vsub.f32 %v17876_v0, %v4017_v13  ;;  %v4045_v0 = vrot.slane %v13725_v48, %v11393_v18  ;;  %v3949_v21 = vrot.slane %v13728_v38, %v11393_v18 }
 0x2df   :  { %10513 = vpow2.f32 %v4746_v2  ;;  %v3861_v2 = vsel %vm3752_vm4, %v3733_v1, %v3860_v55  ;;  %v4029_v55 = vrot.slane %v13681_v15, %v13721_v51 }
 0x2e0   :  { %10515 = vpow2.f32 %v4752_v59  ;;  %v3862_v62 = vsel %vm3754_vm5, %v3737_v29, %v3861_v2  ;;  %v4748_v60 = vmul.f32 1.442695, %v4603_v5  ;;  %v4604_v59 = vsub.f32 %v12367_v19, %v4021_v23 }
 0x2e1   :  { %v3863_v13 = vsel %vm17493_vm6, %v3741_v7, %v3862_v62  ;;  %v4586_v62 = vsub.f32 %v12327_v53, %v3949_v21  ;;  %v4053_v29 = vrot.slane %v13725_v48, %v13708_v39  ;;  %v4610_v1 = vsub.f32 %v12539_v26, %v4045_v0 }
 0x2e2   :  { %v3864_v22 = vsel %vm17492_vm7, %v3745_v6, %v3863_v13  ;;  %10517 = vpow2.f32 %v4748_v60  ;;  %v13749_v7 = vsub.s32 6, %v17872_v37  ;;  %v4033_v6 = vrot.slane %v13681_v15, %v13738_v34 }
 0x2e3   :  { %v3927_v5 = vsel %vm3881_vm8, %v3864_v22, -inf  ;;  %v4606_v2 = vsub.f32 %v12401_v25, %v4029_v55  ;;  %v4750_v19 = vmul.f32 1.442695, %v4604_v59  ;;  %v4714_v23 = vmul.f32 1.442695, %v4586_v62 }
 0x2e4   :  { %3928 = vmax.xlane.f32.xlu1 %v3927_v5  ;;  %v13755_v60 = vsub.s32 7, %v17872_v37  ;;  %v4061_v53 = vrot.slane %v13725_v48, %v13721_v51  ;;  %v4612_v21 = vsub.f32 %v12622_v58, %v4053_v29  ;;  %v4762_v26 = vmul.f32 1.442695, %v4610_v1 }
 0x2e5   :  { %10519 = vpow2.f32 %v4714_v23  ;;  %v4037_v13 = vrot.slane %v13681_v15, %v13749_v7  ;;  %v4607_v0 = vsub.f32 %v12418_v30, %v4033_v6  ;;  %v4754_v25 = vmul.f32 1.442695, %v4606_v2 }
 0x2e6   :  { %10521 = vpow2.f32 %v4750_v19  ;;  %v4065_v37 = vrot.slane %v13725_v48, %v13738_v34  ;;  %v4614_v59 = vsub.f32 %v12652_v42, %v4061_v53  ;;  %v4766_v5 = vmul.f32 1.442695, %v4612_v21 }
 0x2e7   :  { %10523 = vpow2.f32 %v4762_v26  ;;  %v4041_v58 = vrot.slane %v13681_v15, %v13755_v60  ;;  %v4608_v62 = vsub.f32 %v12507_v44, %v4037_v13  ;;  %v4756_v29 = vmul.f32 1.442695, %v4607_v0  ;;  %v13781_v13 = vpop.xlane.xlu1 %3886 }
 0x2e8   :  { %10525 = vpow2.f32 %v4754_v25  ;;  %v4069_v30 = vrot.slane %v13725_v48, %v13749_v7  ;;  %v4615_v6 = vsub.f32 %v12667_v41, %v4065_v37  ;;  %v4770_v2 = vmul.f32 1.442695, %v4614_v59 }
 0x2e9   :  { %10527 = vpow2.f32 %v4766_v5  ;;  %v4609_v42 = vsub.f32 %v12522_v45, %v4041_v58  ;;  %v4758_v19 = vmul.f32 1.442695, %v4608_v62  ;;  %v3953_v23 = vrot.slane %v13728_v38, %v13691_v11  ;;  %v17877_v45 = vld [vmem:[#allocation113_spill] sm:$0xff]  ;;  %v17878_v5 = vld [vmem:[#allocation104_spill] sm:$0xff] }
 0x2ea   :  { %10529 = vpow2.f32 %v4756_v29  ;;  %v4073_v44 = vrot.slane %v13725_v48, %v13755_v60  ;;  %v4616_v15 = vsub.f32 %v17797_v16, %v4069_v30  ;;  %v3957_v21 = vrot.slane %v13728_v38, %v13708_v39 }
 0x2eb   :  { %10531 = vpow2.f32 %v4770_v2  ;;  %v4760_v41 = vmul.f32 1.442695, %v4609_v42  ;;  %v4587_v26 = vsub.f32 %v17877_v45, %v3953_v23  ;;  %v3993_v16 = vrot.slane %v13781_v13, %v13674_v50  ;;  %v13801_v45 = vpop.xlane.xlu0 %3901 }
 0x2ec   :  { %v10514_v22 = vpop.eup %10513  ;;  %10533 = vpow2.f32 %v4758_v19  ;;  %v4617_v25 = vsub.f32 %v17805_v31, %v4073_v44  ;;  %v3961_v59 = vrot.slane %v13728_v38, %v13674_v50  ;;  %v4588_v58 = vsub.f32 %v17878_v5, %v3957_v21 }
 0x2ed   :  { %v10516_v55 = vpop.eup %10515  ;;  %v4716_v62 = vmul.f32 1.442695, %v4587_v26  ;;  %v4001_v31 = vrot.slane %v13781_v13, %v13738_v34  ;;  %v4597_v30 = vsub.f32 %v12700_v54, %v3993_v16  ;;  %v3965_v2 = vrot.slane %v13728_v38, %v13721_v51 }
 0x2ee   :  { %v4589_v42 = vsub.f32 %v12459_v8, %v3961_v59  ;;  %v4718_v19 = vmul.f32 1.442695, %v4588_v58  ;;  %v4005_v44 = vrot.slane %v13781_v13, %v13749_v7  ;;  %v3969_v54 = vrot.slane %v13728_v38, %v13738_v34 }
 0x2ef   :  { %5147 = vperm.xlu0 %10375, %v10514_v22   ;;  %v10518_v1 = vpop.eup %10517  ;;  %v4772_v22 = vmul.f32 1.442695, %v4615_v6  ;;  %v4009_v26 = vrot.slane %v13781_v13, %v13755_v60 }
 0x2f0   :  { %v4720_v8 = vmul.f32 1.442695, %v4589_v42 }
 0x2f1   :  { %10535 = vpow2.f32 %v4772_v22  ;;  %v4736_v22 = vmul.f32 1.442695, %v4597_v30  ;;  %v4601_v59 = vsub.f32 %v17810_v28, %v4009_v26 }
 0x2f2   :  { %v10520_v53 = vpop.eup %10519  ;;  %10537 = vpow2.f32 %v4760_v41  ;;  %v4590_v41 = vsub.f32 %v12478_v56, %v3965_v2  ;;  %v4591_v56 = vsub.f32 %v12491_v10, %v3969_v54 }
 0x2f3   :  { %5156 = vperm.xlu0 %10375, %v10516_v55   ;;  %v10522_v0 = vpop.eup %10521  ;;  %v4774_v55 = vmul.f32 1.442695, %v4616_v15  ;;  %v4599_v15 = vsub.f32 %v17804_v24, %v4001_v31  ;;  %v4744_v28 = vmul.f32 1.442695, %v4601_v59  ;;  %v17883_v59 = vld [vmem:[#allocation184_spill] sm:$0xff] }
 0x2f4   :  { %v10524_v37 = vpop.eup %10523  ;;  %v4722_v16 = vmul.f32 1.442695, %v4590_v41  ;;  %v4724_v10 = vmul.f32 1.442695, %v4591_v56  ;;  %v17880_v41 = vld [vmem:[#allocation121_spill] sm:$0xff]  ;;  %v17882_v56 = vld [vmem:[#allocation127_spill] sm:$0xff] }
 0x2f5   :  { %5150 = vperm.xlu1 %10376, %v10518_v1   ;;  %v10526_v29 = vpop.eup %10525  ;;  %10539 = vpow2.f32 %v4774_v55  ;;  %v4776_v1 = vmul.f32 1.442695, %v4617_v25  ;;  %v4740_v24 = vmul.f32 1.442695, %v4599_v15  ;;  %v3973_v55 = vrot.slane %v13728_v38, %v13749_v7 }
 0x2f6   :  { %v10528_v6 = vpop.eup %10527  ;;  %10541 = vpow2.f32 %v4716_v62  ;;  %v3977_v62 = vrot.slane %v13728_v38, %v13755_v60  ;;  %v4049_v38 = vrot.slane %v13725_v48, %v13691_v11 }
 0x2f7   :  { %5099 = vperm.xlu0 %10375, %v10520_v53   ;;  %v10530_v23 = vpop.eup %10529  ;;  %10543 = vpow2.f32 %v4776_v1  ;;  %v13815_v1 = vpop.xlane.xlu0 %3895 }
 0x2f8   :  { %v10532_v53 = vpop.eup %10531  ;;  %10545 = vpow2.f32 %v4718_v19  ;;  %v13823_v19 = vpop.xlane.xlu1 %3904 }
 0x2f9   :  { %5153 = vperm.xlu1 %10376, %v10522_v0   ;;  %v10534_v21 = vpop.eup %10533  ;;  %v4600_v0 = vsub.f32 %v17807_v27, %v4005_v44  ;;  %10547 = vpow2.f32 %v4736_v22  ;;  %v4145_v27 = vrot.slane %v13801_v45, %v13691_v11  ;;  %v4057_v44 = vrot.slane %v13725_v48, %v13674_v50 }
 0x2fa   :  { %10549 = vpow2.f32 %v4720_v8  ;;  %v4177_v22 = vrot.slane %v13823_v19, %v13691_v11  ;;  %v4611_v8 = vsub.f32 %v17880_v41, %v4049_v38  ;;  %v3985_v48 = vrot.slane %v13781_v13, %v13691_v11  ;;  %v17886_v38 = vld [vmem:[#allocation139_spill] sm:$0xff] }
 0x2fb   :  { %5171 = vperm.xlu0 %10375, %v10524_v37   ;;  %10551 = vpow2.f32 %v4740_v24  ;;  %v4742_v5 = vmul.f32 1.442695, %v4600_v0  ;;  %v4635_v30 = vsub.f32 %v12801_v35, %v4145_v27  ;;  %v3981_v35 = vrot.slane %v13781_v13, %v11393_v18  ;;  %v17881_v0 = vld [vmem:[#allocation132_spill] sm:$0xff]  ;;  %v17888_v41 = vld [vmem:[#allocation147_spill] sm:$0xff] }
 0x2fc   :  { %10553 = vpow2.f32 %v4722_v16  ;;  %v4613_v24 = vsub.f32 %v17881_v0, %v4057_v44  ;;  %v4185_v44 = vrot.slane %v13823_v19, %v13674_v50  ;;  %v17889_v0 = vld [vmem:[#allocation160_spill] sm:$0xff] }
 0x2fd   :  { %5159 = vperm.xlu1 %10376, %v10526_v29   ;;  %v4592_v29 = vsub.f32 %v17800_v63, %v3973_v55  ;;  %10555 = vpow2.f32 %v4742_v5  ;;  %v4593_v63 = vsub.f32 %v17809_v40, %v3977_v62  ;;  %v4812_v15 = vmul.f32 1.442695, %v4635_v30  ;;  %v17885_v30 = vld [vmem:[#allocation136_spill] sm:$0xff] }
 0x2fe   :  { %v10536_v25 = vpop.eup %10535  ;;  %10557 = vpow2.f32 %v4724_v10  ;;  %v3997_v55 = vrot.slane %v13781_v13, %v13721_v51  ;;  %v4594_v16 = vsub.f32 %v17882_v56, %v3981_v35  ;;  %v4643_v5 = vsub.f32 %v17883_v59, %v4177_v22  ;;  %v17887_v35 = vld [vmem:[#allocation186_spill] sm:$0xff]  ;;  %v17890_v56 = vld [vmem:[#allocation165_spill] sm:$0xff] }
 0x2ff   :  { %5177 = vperm.xlu0 %10375, %v10528_v6   ;;  %v10538_v37 = vpop.eup %10537  ;;  %v4081_v6 = vrot.slane %v13815_v1, %v13691_v11  ;;  %v4726_v42 = vmul.f32 1.442695, %v4592_v29  ;;  %10559 = vpow2.f32 %v4744_v28  ;;  %v4764_v62 = vmul.f32 1.442695, %v4611_v8  ;;  %v17884_v29 = vld [vmem:[#allocation129_spill] sm:$0xff] }
 0x300   :  { %v4595_v10 = vsub.f32 %v17884_v29, %v3985_v48  ;;  %v4828_v22 = vmul.f32 1.442695, %v4643_v5  ;;  %v4645_v59 = vsub.f32 %v13236_v4, %v4185_v44 }
 0x301   :  { %5162 = vperm.xlu1 %10376, %v10530_v23   ;;  %10561 = vpow2.f32 %v4726_v42  ;;  %v4730_v42 = vmul.f32 1.442695, %v4594_v16 }
 0x302   :  { %v10540_v58 = vpop.eup %10539  ;;  %10563 = vpow2.f32 %v4812_v15 }
 0x303   :  { %5183 = vperm.xlu0 %10375, %v10532_v53   ;;  %v10542_v31 = vpop.eup %10541  ;;  %v17879_v53 = vld [vmem:[#allocation158_spill] sm:$0xff] }
 0x304   :  { %v10544_v2 = vpop.eup %10543  ;;  %v4619_v40 = vsub.f32 %v17879_v53, %v4081_v6 }
 0x305   :  { %5165 = vperm.xlu1 %10376, %v10534_v21   ;;  %v10546_v23 = vpop.eup %10545  ;;  %v4728_v21 = vmul.f32 1.442695, %v4593_v63  ;;  %v4598_v63 = vsub.f32 %v17886_v38, %v3997_v55  ;;  %v4165_v55 = vrot.slane %v13801_v45, %v13749_v7  ;;  %v4193_v38 = vrot.slane %v13823_v19, %v13738_v34 }
 0x306   :  { %v10548_v54 = vpop.eup %10547  ;;  %v4780_v27 = vmul.f32 1.442695, %v4619_v40  ;;  %v4732_v40 = vmul.f32 1.442695, %v4595_v10 }
 0x307   :  { %5186 = vperm.xlu0 %10375, %v10536_v25   ;;  %v10550_v26 = vpop.eup %10549  ;;  %v3989_v25 = vrot.slane %v13781_v13, %v13708_v39  ;;  %10565 = vpow2.f32 %v4728_v21  ;;  %v4768_v13 = vmul.f32 1.442695, %v4613_v24  ;;  %v4640_v4 = vsub.f32 %v13084_v46, %v4165_v55 }
 0x308   :  { %10567 = vpow2.f32 %v4780_v27  ;;  %v4201_v46 = vrot.slane %v13823_v19, %v13755_v60  ;;  %v4097_v55 = vrot.slane %v13815_v1, %v13738_v34 }
 0x309   :  { %5168 = vperm.xlu1 %10376, %v10538_v37   ;;  %v4181_v37 = vrot.slane %v13823_v19, %v13708_v39  ;;  %v4596_v6 = vsub.f32 %v17885_v30, %v3989_v25  ;;  %10569 = vpow2.f32 %v4764_v62  ;;  %v4738_v25 = vmul.f32 1.442695, %v4598_v63  ;;  %v17891_v62 = vld [vmem:[#allocation167_spill] sm:$0xff] }
 0x30a   :  { %10571 = vpow2.f32 %v4768_v13 }
 0x30b   :  { %5189 = vperm.xlu0 %10375, %v10540_v58   ;;  %v10552_v58 = vpop.eup %10551  ;;  %v4644_v15 = vsub.f32 %v17887_v35, %v4181_v37  ;;  %v4734_v48 = vmul.f32 1.442695, %v4596_v6  ;;  %10573 = vpow2.f32 %v4730_v42  ;;  %v4189_v37 = vrot.slane %v13823_v19, %v13721_v51 }
 0x30c   :  { %v10554_v28 = vpop.eup %10553  ;;  %10575 = vpow2.f32 %v4828_v22  ;;  %v4173_v6 = vrot.slane %v13823_v19, %v11393_v18  ;;  %v4832_v42 = vmul.f32 1.442695, %v4645_v59 }
 0x30d   :  { %5102 = vperm.xlu1 %10376, %v10542_v31   ;;  %v4141_v31 = vrot.slane %v13801_v45, %v11393_v18  ;;  %v10556_v53 = vpop.eup %10555  ;;  %v4830_v5 = vmul.f32 1.442695, %v4644_v15  ;;  %10577 = vpow2.f32 %v4732_v40  ;;  %v4646_v63 = vsub.f32 %v13252_v61, %v4189_v37 }
 0x30e   :  { %v10558_v21 = vpop.eup %10557  ;;  %10579 = vpow2.f32 %v4734_v48  ;;  %v4822_v61 = vmul.f32 1.442695, %v4640_v4 }
 0x30f   :  { %5192 = vperm.xlu0 %10375, %v10544_v2   ;;  %v4149_v2 = vrot.slane %v13801_v45, %v13708_v39  ;;  %v4634_v8 = vsub.f32 %v17888_v41, %v4141_v31  ;;  %v10560_v27 = vpop.eup %10559  ;;  %10581 = vpow2.f32 %v4738_v25  ;;  %v4647_v41 = vsub.f32 %v13270_v43, %v4193_v38 }
 0x310   :  { %v10562_v31 = vpop.eup %10561  ;;  %10583 = vpow2.f32 %v4830_v5  ;;  %v17895_v5 = vld [vmem:[#allocation171_spill] sm:$0xff]  ;;  %v4623_v38 = vsub.f32 %v13064_v32, %v4097_v55 }
 0x311   :  { %5105 = vperm.xlu1 %10376, %v10546_v23   ;;  %v4153_v23 = vrot.slane %v13801_v45, %v13674_v50  ;;  %v4636_v24 = vsub.f32 %v17889_v0, %v4149_v2  ;;  %v4810_v10 = vmul.f32 1.442695, %v4634_v8  ;;  %v4649_v0 = vsub.f32 %v13347_v47, %v4201_v46 }
 0x312   :  { %v4836_v59 = vmul.f32 1.442695, %v4647_v41  ;;  %v4101_v47 = vrot.slane %v13815_v1, %v13749_v7 }
 0x313   :  { %5132 = vperm.xlu0 %10375, %v10548_v54   ;;  %v4157_v54 = vrot.slane %v13801_v45, %v13721_v51  ;;  %v4637_v16 = vsub.f32 %v17890_v56, %v4153_v23  ;;  %v4814_v30 = vmul.f32 1.442695, %v4636_v24  ;;  %v10564_v23 = vpop.eup %10563  ;;  %10585 = vpow2.f32 %v4810_v10  ;;  %v17896_v10 = vld [vmem:[#allocation175_spill] sm:$0xff] }
 0x314   :  { %v10566_v15 = vpop.eup %10565  ;;  %v4093_v24 = vrot.slane %v13815_v1, %v13721_v51 }
 0x315   :  { %5108 = vperm.xlu1 %10376, %v10550_v26   ;;  %v4161_v26 = vrot.slane %v13801_v45, %v13738_v34  ;;  %v4638_v29 = vsub.f32 %v17891_v62, %v4157_v54  ;;  %v4816_v2 = vmul.f32 1.442695, %v4637_v16  ;;  %10587 = vpow2.f32 %v4814_v30  ;;  %v10568_v48 = vpop.eup %10567  ;;  %v13898_v16 = vpop.xlane.xlu1 %3898  ;;  %v17897_v30 = vld [vmem:[#allocation177_spill] sm:$0xff] }
 0x316   :  { %v4077_v54 = vrot.slane %v13815_v1, %v11393_v18  ;;  %v10570_v43 = vpop.eup %10569  ;;  %v4109_v4 = vrot.slane %v13898_v16, %v11393_v18  ;;  %v4129_v41 = vrot.slane %v13898_v16, %v13738_v34 }
 0x317   :  { %5138 = vperm.xlu0 %10375, %v10552_v58   ;;  %v4169_v58 = vrot.slane %v13801_v45, %v13755_v60  ;;  %v4197_v45 = vrot.slane %v13823_v19, %v13749_v7  ;;  %v4818_v35 = vmul.f32 1.442695, %v4638_v29  ;;  %10589 = vpow2.f32 %v4816_v2  ;;  %v10572_v37 = vpop.eup %10571 }
 0x318   :  { %10591 = vpow2.f32 %v4832_v42  ;;  %v4834_v19 = vmul.f32 1.442695, %v4646_v63  ;;  %v4105_v29 = vrot.slane %v13815_v1, %v13755_v60  ;;  %v4113_v63 = vrot.slane %v13898_v16, %v13691_v11 }
 0x319   :  { %5111 = vperm.xlu1 %10376, %v10554_v28   ;;  %v17892_v28 = vld [vmem:[#allocation169_spill] sm:$0xff]  ;;  %v4641_v44 = vsub.f32 %v13106_v52, %v4169_v58  ;;  %v4085_v52 = vrot.slane %v13815_v1, %v13708_v39  ;;  %v4648_v8 = vsub.f32 %v13340_v3, %v4197_v45  ;;  %10593 = vpow2.f32 %v4818_v35  ;;  %v10574_v58 = vpop.eup %10573 }
 0x31a   :  { %v4639_v13 = vsub.f32 %v17892_v28, %v4161_v26  ;;  %v17894_v3 = vld [vmem:[#allocation157_spill] sm:$0xff]  ;;  %v10576_v28 = vpop.eup %10575  ;;  %v4624_v42 = vsub.f32 %v13160_v12, %v4101_v47  ;;  %v4625_v32 = vsub.f32 %v13179_v17, %v4105_v29  ;;  %v4125_v12 = vrot.slane %v13898_v16, %v13721_v51  ;;  %v17900_v47 = vld [vmem:[#allocation123_spill] sm:$0xff] }
 0x31b   :  { %5141 = vperm.xlu0 %10375, %v10556_v53   ;;  %v17893_v53 = vld [vmem:[#allocation183_spill] sm:$0xff]  ;;  %v4824_v26 = vmul.f32 1.442695, %v4641_v44  ;;  %v4618_v56 = vsub.f32 %v17894_v3, %v4077_v54  ;;  %v4838_v62 = vmul.f32 1.442695, %v4648_v8  ;;  %v10578_v2 = vpop.eup %10577  ;;  %v4117_v44 = vrot.slane %v13898_v16, %v13708_v39  ;;  %v17898_v17 = vld [vmem:[#allocation185_spill] sm:$0xff]  ;;  %v13930_v8 = vpop.xlane.xlu0 %3913 }
 0x31c   :  { %v4820_v22 = vmul.f32 1.442695, %v4639_v13  ;;  %v4642_v40 = vsub.f32 %v17893_v53, %v4173_v6  ;;  %v4840_v13 = vmul.f32 1.442695, %v4649_v0  ;;  %v4622_v6 = vsub.f32 %v17897_v30, %v4093_v24 }
 0x31d   :  { %5114 = vperm.xlu1 %10376, %v10558_v21   ;;  %v4089_v21 = vrot.slane %v13815_v1, %v13674_v50  ;;  %v4778_v45 = vmul.f32 1.442695, %v4618_v56  ;;  %v13912_v1 = vpop.eup %10579  ;;  %v4792_v24 = vmul.f32 1.442695, %v4625_v32  ;;  %v4630_v3 = vsub.f32 %v13312_v14, %v4125_v12  ;;  %v17905_v12 = vld [vmem:[#allocation188_spill] sm:$0xff] }
 0x31e   :  { %10595 = vpow2.f32 %v4820_v22  ;;  %v4826_v25 = vmul.f32 1.442695, %v4642_v40  ;;  %v13917_v35 = vpop.eup %10581  ;;  %v4786_v53 = vmul.f32 1.442695, %v4622_v6  ;;  %v4626_v40 = vsub.f32 %v13193_v49, %v4109_v4  ;;  %v17899_v49 = vld [vmem:[#allocation143_spill] sm:$0xff] }
 0x31f   :  { %5144 = vperm.xlu0 %10375, %v10560_v27   ;;  %10597 = vpow2.f32 %v4822_v61  ;;  %v4620_v27 = vsub.f32 %v17895_v5, %v4085_v52  ;;  %v10584_v22 = vpop.eup %10583  ;;  %v4788_v61 = vmul.f32 1.442695, %v4623_v38  ;;  %v4627_v52 = vsub.f32 %v17898_v17, %v4113_v63 }
 0x320   :  { %10599 = vpow2.f32 %v4834_v19  ;;  %v13925_v54 = vpop.eup %10585  ;;  %v4794_v56 = vmul.f32 1.442695, %v4626_v40  ;;  %v4631_v5 = vsub.f32 %v17900_v47, %v4129_v41  ;;  %v4277_v29 = vrot.slane %v13930_v8, %v13708_v39 }
 0x321   :  { %5117 = vperm.xlu1 %10376, %v10562_v31   ;;  %v4621_v31 = vsub.f32 %v17896_v10, %v4089_v21  ;;  %10601 = vpow2.f32 %v4824_v26  ;;  %v4790_v21 = vmul.f32 1.442695, %v4624_v42  ;;  %v4628_v26 = vsub.f32 %v17899_v49, %v4117_v44  ;;  %v17904_v44 = vld [vmem:[#allocation145_spill] sm:$0xff]  ;;  %v17907_v49 = vld [vmem:[#allocation190_spill] sm:$0xff] }
 0x322   :  { %10603 = vpow2.f32 %v4826_v25  ;;  %v13932_v19 = vpop.eup %10587  ;;  %v4281_v30 = vrot.slane %v13930_v8, %v13674_v50  ;;  %v4802_v4 = vmul.f32 1.442695, %v4630_v3  ;;  %v4285_v38 = vrot.slane %v13930_v8, %v13721_v51 }
 0x323   :  { %5246 = vperm.xlu0 %10375, %v10564_v23   ;;  %10605 = vpow2.f32 %v4836_v59  ;;  %v4782_v23 = vmul.f32 1.442695, %v4620_v27  ;;  %v4784_v46 = vmul.f32 1.442695, %v4621_v31  ;;  %v4796_v27 = vmul.f32 1.442695, %v4627_v52 }
 0x324   :  { %10607 = vpow2.f32 %v4838_v62  ;;  %v13937_v0 = vpop.eup %10589  ;;  %v4798_v14 = vmul.f32 1.442695, %v4628_v26  ;;  %v17902_v31 = vld [vmem:[#allocation125_spill] sm:$0xff]  ;;  %v4668_v40 = vsub.f32 %v17905_v12, %v4277_v29  ;;  %v4297_v17 = vrot.slane %v13930_v8, %v13755_v60 }
 0x325   :  { %5120 = vperm.xlu1 %10376, %v10566_v15   ;;  %v4121_v15 = vrot.slane %v13898_v16, %v13674_v50  ;;  %10609 = vpow2.f32 %v4840_v13  ;;  %v10592_v55 = vpop.eup %10591  ;;  %v17906_v52 = vld [vmem:[#allocation189_spill] sm:$0xff]  ;;  %v4670_v26 = vsub.f32 %v17907_v49, %v4285_v38 }
 0x326   :  { %10611 = vpow2.f32 %v4778_v45  ;;  %v13945_v59 = vpop.eup %10593  ;;  %v17903_v45 = vld [vmem:[#allocation141_spill] sm:$0xff] }
 0x327   :  { %5198 = vperm.xlu0 %10375, %v10568_v48   ;;  %10613 = vpow2.f32 %v4782_v23  ;;  %v4133_v48 = vrot.slane %v13898_v16, %v13749_v7  ;;  %v4629_v25 = vsub.f32 %v13297_v9, %v4121_v15  ;;  %v17901_v9 = vld [vmem:[#allocation151_spill] sm:$0xff]  ;;  %v4289_v23 = vrot.slane %v13930_v8, %v13738_v34 }
 0x328   :  { %10615 = vpow2.f32 %v4784_v46  ;;  %v13968_v46 = vpop.xlane.xlu0 %3907 }
 0x329   :  { %5174 = vperm.xlu1 %10376, %v10570_v43   ;;  %v4137_v43 = vrot.slane %v13898_v16, %v13755_v60  ;;  %10617 = vpow2.f32 %v4786_v53  ;;  %v4632_v62 = vsub.f32 %v17901_v9, %v4133_v48  ;;  %v4800_v13 = vmul.f32 1.442695, %v4629_v25  ;;  %v17910_v9 = vld [vmem:[#allocation197_spill] sm:$0xff] }
 0x32a   :  { %10619 = vpow2.f32 %v4788_v61  ;;  %v4293_v53 = vrot.slane %v13930_v8, %v13749_v7  ;;  %v4217_v29 = vrot.slane %v13968_v46, %v13674_v50  ;;  %v4225_v38 = vrot.slane %v13968_v46, %v13738_v34 }
 0x32b   :  { %5270 = vperm.xlu0 %10375, %v10576_v28   ;;  %v13950_v16 = vpop.eup %10595  ;;  %10621 = vpow2.f32 %v4790_v21  ;;  %v4633_v28 = vsub.f32 %v17902_v31, %v4137_v43  ;;  %v4669_v21 = vsub.f32 %v17906_v52, %v4281_v30  ;;  %v4205_v43 = vrot.slane %v13968_v46, %v11393_v18  ;;  %v17911_v30 = vld [vmem:[#allocation155_spill] sm:$0xff] }
 0x32c   :  { %v13955_v10 = vpop.eup %10597  ;;  %10623 = vpow2.f32 %v4792_v24 }
 0x32d   :  { %5180 = vperm.xlu1 %10376, %v10572_v37   ;;  %v4269_v37 = vrot.slane %v13930_v8, %v11393_v18  ;;  %v10600_v6 = vpop.eup %10599  ;;  %10625 = vpow2.f32 %v4794_v56  ;;  %v4808_v41 = vmul.f32 1.442695, %v4633_v28  ;;  %v4209_v56 = vrot.slane %v13968_v46, %v13691_v11 }
 0x32e   :  { %v13963_v42 = vpop.eup %10601  ;;  %10627 = vpow2.f32 %v4796_v27  ;;  %v4213_v27 = vrot.slane %v13968_v46, %v13708_v39  ;;  %v4882_v28 = vmul.f32 1.442695, %v4670_v26 }
 0x32f   :  { %5273 = vperm.xlu0 %10375, %v10584_v22   ;;  %v4666_v63 = vsub.f32 %v17903_v45, %v4269_v37  ;;  %v13970_v15 = vpop.eup %10603  ;;  %10629 = vpow2.f32 %v4798_v14  ;;  %v4806_v22 = vmul.f32 1.442695, %v4632_v62  ;;  %v17909_v37 = vld [vmem:[#allocation196_spill] sm:$0xff]  ;;  %v4673_v62 = vsub.f32 %v17910_v9, %v4297_v17  ;;  %v17912_v45 = vld [vmem:[#allocation187_spill] sm:$0xff] }
 0x330   :  { %v10606_v61 = vpop.eup %10605  ;;  %10631 = vpow2.f32 %v4800_v13  ;;  %v4672_v47 = vsub.f32 %v17909_v37, %v4293_v53  ;;  %v4880_v14 = vmul.f32 1.442695, %v4669_v21  ;;  %v4221_v13 = vrot.slane %v13968_v46, %v13721_v51  ;;  %v17915_v21 = vld [vmem:[#allocation194_spill] sm:$0xff] }
 0x331   :  { %5123 = vperm.xlu1 %10376, %v10574_v58   ;;  %v4273_v58 = vrot.slane %v13930_v8, %v13691_v11  ;;  %v10608_v48 = vpop.eup %10607  ;;  %10633 = vpow2.f32 %v4802_v4  ;;  %v4874_v24 = vmul.f32 1.442695, %v4666_v63  ;;  %v4651_v63 = vsub.f32 %v17912_v45, %v4209_v56 }
 0x332   :  { %v10610_v25 = vpop.eup %10609 }
 0x333   :  { %5276 = vperm.xlu0 %10375, %v10592_v55   ;;  %v4667_v32 = vsub.f32 %v17904_v44, %v4273_v58  ;;  %v17908_v55 = vld [vmem:[#allocation191_spill] sm:$0xff]  ;;  %v13985_v8 = vpop.eup %10611  ;;  %v4886_v44 = vmul.f32 1.442695, %v4672_v47 }
 0x334   :  { %v13991_v58 = vpop.eup %10613 }
 0x335   :  { %5126 = vperm.xlu1 %10376, %v10578_v2   ;;  %v4804_v2 = vmul.f32 1.442695, %v4631_v5  ;;  %v4876_v3 = vmul.f32 1.442695, %v4667_v32  ;;  %v4878_v5 = vmul.f32 1.442695, %v4668_v40  ;;  %v13996_v31 = vpop.eup %10615  ;;  %v4229_v32 = vrot.slane %v13968_v46, %v13749_v7 }
 0x336   :  { %v14001_v4 = vpop.eup %10617  ;;  %v4888_v40 = vmul.f32 1.442695, %v4673_v62 }
 0x337   :  { %5279 = vperm.xlu0 %10375, %v10600_v6   ;;  %10635 = vpow2.f32 %v4804_v2  ;;  %v4650_v6 = vsub.f32 %v17911_v30, %v4205_v43  ;;  %v14006_v2 = vpop.xlane.xlu1 %3916 }
 0x338   :  { %10637 = vpow2.f32 %v4806_v22  ;;  %v17913_v22 = vld [vmem:[#allocation192_spill] sm:$0xff]  ;;  %v4301_v26 = vrot.slane %v14006_v2, %v11393_v18  ;;  %v4309_v47 = vrot.slane %v14006_v2, %v13708_v39 }
 0x339   :  { %5129 = vperm.xlu1 %10376, %v13912_v1   ;;  %v4671_v1 = vsub.f32 %v17908_v55, %v4289_v23  ;;  %10639 = vpow2.f32 %v4808_v41  ;;  %v14008_v23 = vpop.eup %10619  ;;  %v4652_v53 = vsub.f32 %v17913_v22, %v4213_v27  ;;  %v17914_v41 = vld [vmem:[#allocation193_spill] sm:$0xff]  ;;  %v4842_v49 = vmul.f32 1.442695, %v4650_v6 }
 0x33a   :  { %10641 = vpow2.f32 %v4874_v24  ;;  %v14014_v12 = vpop.eup %10621  ;;  %v4653_v17 = vsub.f32 %v17914_v41, %v4217_v29  ;;  %v4844_v55 = vmul.f32 1.442695, %v4651_v63  ;;  %v17918_v27 = vld [vmem:[#allocation201_spill] sm:$0xff]  ;;  %v4325_v22 = vrot.slane %v14006_v2, %v13749_v7 }
 0x33b   :  { %5282 = vperm.xlu0 %10375, %v10606_v61   ;;  %10643 = vpow2.f32 %v4876_v3  ;;  %v4233_v61 = vrot.slane %v13968_v46, %v13755_v60  ;;  %v14019_v52 = vpop.eup %10623  ;;  %v4305_v46 = vrot.slane %v14006_v2, %v13691_v11  ;;  %v17917_v3 = vld [vmem:[#allocation200_spill] sm:$0xff]  ;;  %v4846_v37 = vmul.f32 1.442695, %v4652_v53  ;;  %v14044_v63 = vpop.xlane.xlu1 %3910 }
 0x33c   :  { %10645 = vpow2.f32 %v4878_v5  ;;  %v14024_v24 = vpop.eup %10625  ;;  %v4656_v56 = vsub.f32 %v17917_v3, %v4229_v32  ;;  %v4848_v62 = vmul.f32 1.442695, %v4653_v17  ;;  %v17921_v53 = vld [vmem:[#allocation204_spill] sm:$0xff]  ;;  %v4329_v17 = vrot.slane %v14006_v2, %v13755_v60 }
 0x33d   :  { %5135 = vperm.xlu1 %10376, %v13917_v35   ;;  %v4884_v35 = vmul.f32 1.442695, %v4671_v1  ;;  %10647 = vpow2.f32 %v4880_v14  ;;  %v10628_v1 = vpop.eup %10627  ;;  %v4657_v9 = vsub.f32 %v17918_v27, %v4233_v61  ;;  %v4313_v14 = vrot.slane %v14006_v2, %v13674_v50 }
 0x33e   :  { %10649 = vpow2.f32 %v4882_v28  ;;  %v10630_v5 = vpop.eup %10629  ;;  %v4317_v28 = vrot.slane %v14006_v2, %v13721_v51  ;;  %v4854_v32 = vmul.f32 1.442695, %v4656_v56 }
 0x33f   :  { %5285 = vperm.xlu0 %10375, %v10608_v48   ;;  %v4654_v48 = vsub.f32 %v17915_v21, %v4221_v13  ;;  %10651 = vpow2.f32 %v4884_v35  ;;  %v10632_v29 = vpop.eup %10631  ;;  %v17919_v13 = vld [vmem:[#allocation198_spill] sm:$0xff]  ;;  %v4321_v35 = vrot.slane %v14006_v2, %v13738_v34  ;;  %v4856_v41 = vmul.f32 1.442695, %v4657_v9  ;;  %v17922_v21 = vld [vmem:[#allocation205_spill] sm:$0xff] }
 0x340   :  { %10653 = vpow2.f32 %v4886_v44  ;;  %v4674_v30 = vsub.f32 %v17919_v13, %v4301_v26  ;;  %v14039_v6 = vpop.eup %10633  ;;  %v17923_v26 = vld [vmem:[#allocation206_spill] sm:$0xff]  ;;  %v4241_v2 = vrot.slane %v14044_v63, %v13691_v11  ;;  %v4245_v9 = vrot.slane %v14044_v63, %v13708_v39 }
 0x341   :  { %5243 = vperm.xlu1 %10376, %v13925_v54   ;;  %v17916_v54 = vld [vmem:[#allocation195_spill] sm:$0xff]  ;;  %10655 = vpow2.f32 %v4888_v40  ;;  %v4676_v40 = vsub.f32 %v17921_v53, %v4309_v47 }
 0x342   :  { %v4655_v43 = vsub.f32 %v17916_v54, %v4225_v38  ;;  %10657 = vpow2.f32 %v4842_v49  ;;  %v17920_v38 = vld [vmem:[#allocation199_spill] sm:$0xff]  ;;  %v4678_v54 = vsub.f32 %v17923_v26, %v4317_v28 }
 0x343   :  { %5288 = vperm.xlu0 %10375, %v10610_v25   ;;  %v4850_v25 = vmul.f32 1.442695, %v4654_v48  ;;  %10659 = vpow2.f32 %v4844_v55  ;;  %v4675_v45 = vsub.f32 %v17920_v38, %v4305_v46  ;;  %v4677_v48 = vsub.f32 %v17922_v21, %v4313_v14  ;;  %v17926_v14 = vld [vmem:[#allocation213_spill] sm:$0xff] }
 0x344   :  { %v14046_v44 = vpop.eup %10635  ;;  %10661 = vpow2.f32 %v4846_v37  ;;  %v4237_v55 = vrot.slane %v14044_v63, %v11393_v18  ;;  %v17925_v37 = vld [vmem:[#allocation212_spill] sm:$0xff]  ;;  %v4894_v27 = vmul.f32 1.442695, %v4676_v40  ;;  %v4261_v21 = vrot.slane %v14044_v63, %v13749_v7 }
 0x345   :  { %5249 = vperm.xlu1 %10376, %v13932_v19   ;;  %v4852_v19 = vmul.f32 1.442695, %v4655_v43  ;;  %v14052_v61 = vpop.eup %10637  ;;  %10663 = vpow2.f32 %v4848_v62  ;;  %v4890_v43 = vmul.f32 1.442695, %v4674_v30  ;;  %v4892_v3 = vmul.f32 1.442695, %v4675_v45 }
 0x346   :  { %v14057_v49 = vpop.eup %10639  ;;  %10665 = vpow2.f32 %v4850_v25  ;;  %v4680_v47 = vsub.f32 %v17925_v37, %v4325_v22  ;;  %v4681_v25 = vsub.f32 %v17926_v14, %v4329_v17  ;;  %v4896_v28 = vmul.f32 1.442695, %v4677_v48  ;;  %v17928_v22 = vld [vmem:[#allocation203_spill] sm:$0xff]  ;;  %v17929_v48 = vld [vmem:[#allocation208_spill] sm:$0xff] }
 0x347   :  { %5222 = vperm.xlu0 %10375, %v10628_v1   ;;  %v14062_v46 = vpop.eup %10641  ;;  %10667 = vpow2.f32 %v4852_v19  ;;  %v4898_v30 = vmul.f32 1.442695, %v4678_v54  ;;  %v4253_v19 = vrot.slane %v14044_v63, %v13721_v51  ;;  %v4659_v53 = vsub.f32 %v17928_v22, %v4241_v2 }
 0x348   :  { %v14067_v56 = vpop.eup %10643  ;;  %10669 = vpow2.f32 %v4854_v32  ;;  %v4257_v32 = vrot.slane %v14044_v63, %v13738_v34  ;;  %v4902_v17 = vmul.f32 1.442695, %v4680_v47  ;;  %v4660_v26 = vsub.f32 %v17929_v48, %v4245_v9 }
 0x349   :  { %5252 = vperm.xlu1 %10376, %v13937_v0   ;;  %v17924_v0 = vld [vmem:[#allocation207_spill] sm:$0xff]  ;;  %v14073_v62 = vpop.eup %10645  ;;  %10671 = vpow2.f32 %v4856_v41  ;;  %v4860_v14 = vmul.f32 1.442695, %v4659_v53 }
 0x34a   :  { %v4679_v1 = vsub.f32 %v17924_v0, %v4321_v35  ;;  %v14078_v13 = vpop.eup %10647  ;;  %10673 = vpow2.f32 %v4890_v43  ;;  %v17927_v35 = vld [vmem:[#allocation202_spill] sm:$0xff]  ;;  %v4904_v43 = vmul.f32 1.442695, %v4681_v25  ;;  %v17930_v0 = vld [vmem:[#allocation209_spill] sm:$0xff] }
 0x34b   :  { %5225 = vperm.xlu0 %10375, %v10630_v5   ;;  %v4249_v5 = vrot.slane %v14044_v63, %v13674_v50  ;;  %v4658_v38 = vsub.f32 %v17927_v35, %v4237_v55  ;;  %v14083_v45 = vpop.eup %10649  ;;  %10675 = vpow2.f32 %v4892_v3  ;;  %v4265_v55 = vrot.slane %v14044_v63, %v13755_v60  ;;  %v17931_v3 = vld [vmem:[#allocation210_spill] sm:$0xff] }
 0x34c   :  { %v14090_v41 = vpop.eup %10651  ;;  %10677 = vpow2.f32 %v4894_v27  ;;  %v4662_v2 = vsub.f32 %v17931_v3, %v4253_v19 }
 0x34d   :  { %5255 = vperm.xlu1 %10376, %v13945_v59   ;;  %v4900_v59 = vmul.f32 1.442695, %v4679_v1  ;;  %v14096_v54 = vpop.eup %10653  ;;  %10679 = vpow2.f32 %v4896_v28  ;;  %v4858_v37 = vmul.f32 1.442695, %v4658_v38  ;;  %v17933_v28 = vld [vmem:[#allocation214_spill] sm:$0xff]  ;;  %v17934_v38 = vld [vmem:[#allocation215_spill] sm:$0xff] }
 0x34e   :  { %v14088_v40 = vpop.xlane.xlu0 %3919  ;;  %v14101_v1 = vpop.eup %10655  ;;  %10681 = vpow2.f32 %v4898_v30  ;;  %v4862_v30 = vmul.f32 1.442695, %v4660_v26  ;;  %v4866_v53 = vmul.f32 1.442695, %v4662_v2 }
 0x34f   :  { %5228 = vperm.xlu0 %10375, %v10632_v29   ;;  %v4661_v29 = vsub.f32 %v17930_v0, %v4249_v5  ;;  %v4333_v47 = vrot.slane %v14088_v40, %v11393_v18  ;;  %v14106_v27 = vpop.eup %10657  ;;  %10683 = vpow2.f32 %v4900_v59  ;;  %v4337_v63 = vrot.slane %v14088_v40, %v13691_v11 }
 0x350   :  { %v14112_v25 = vpop.eup %10659  ;;  %10685 = vpow2.f32 %v4902_v17  ;;  %v4664_v5 = vsub.f32 %v17933_v28, %v4261_v21  ;;  %v4341_v19 = vrot.slane %v14088_v40, %v13708_v39  ;;  %v4665_v59 = vsub.f32 %v17934_v38, %v4265_v55  ;;  %v17936_v55 = vld [vmem:[#allocation217_spill] sm:$0xff] }
 0x351   :  { %5258 = vperm.xlu1 %10376, %v13950_v16   ;;  %v17932_v16 = vld [vmem:[#allocation211_spill] sm:$0xff]  ;;  %v14118_v35 = vpop.eup %10661  ;;  %10687 = vpow2.f32 %v4904_v43  ;;  %v4349_v17 = vrot.slane %v14088_v40, %v13721_v51  ;;  %v4353_v43 = vrot.slane %v14088_v40, %v13738_v34  ;;  %v4683_v0 = vsub.f32 %v17936_v55, %v4337_v63  ;;  %v17940_v28 = vld [vmem:[#allocation225_spill] sm:$0xff] }
 0x352   :  { %v4663_v9 = vsub.f32 %v17932_v16, %v4257_v32  ;;  %v4864_v32 = vmul.f32 1.442695, %v4661_v29  ;;  %v14123_v22 = vpop.eup %10663  ;;  %10689 = vpow2.f32 %v4858_v37  ;;  %v4870_v2 = vmul.f32 1.442695, %v4664_v5  ;;  %v17942_v5 = vld [vmem:[#allocation220_spill] sm:$0xff] }
 0x353   :  { %5231 = vperm.xlu0 %10375, %v14039_v6   ;;  %v4345_v6 = vrot.slane %v14088_v40, %v13674_v50  ;;  %v14128_v48 = vpop.eup %10665  ;;  %10691 = vpow2.f32 %v4860_v14  ;;  %v4357_v37 = vrot.slane %v14088_v40, %v13749_v7  ;;  %v4872_v14 = vmul.f32 1.442695, %v4665_v59 }
 0x354   :  { %v4868_v26 = vmul.f32 1.442695, %v4663_v9  ;;  %v14133_v29 = vpop.xlane.xlu1 %3922  ;;  %v14136_v3 = vpop.eup %10667  ;;  %10693 = vpow2.f32 %v4862_v30  ;;  %v4361_v63 = vrot.slane %v14088_v40, %v13755_v60  ;;  %v4686_v30 = vsub.f32 %v17942_v5, %v4349_v17 }
 0x355   :  { %5261 = vperm.xlu1 %10376, %v13955_v10   ;;  %v17935_v10 = vld [vmem:[#allocation216_spill] sm:$0xff]  ;;  %17937 = vst [vmem:[#allocation100_spill] sm:$0xff] %v14136_v3  ;;  %v14142_v9 = vpop.eup %10669  ;;  %10695 = vpow2.f32 %v4864_v32  ;;  %v4908_v59 = vmul.f32 1.442695, %v4683_v0  ;;  %v4369_v40 = vrot.slane %v14133_v29, %v13691_v11 }
 0x356   :  { %v4682_v21 = vsub.f32 %v17935_v10, %v4333_v47  ;;  %v17938_v47 = vld [vmem:[#allocation218_spill] sm:$0xff]  ;;  %17939 = vst [vmem:[#allocation113_spill] sm:$0xff] %v14142_v9  ;;  %v14147_v38 = vpop.eup %10671  ;;  %10697 = vpow2.f32 %v4866_v53  ;;  %v17945_v53 = vld [vmem:[#allocation228_spill] sm:$0xff] }
 0x357   :  { %5234 = vperm.xlu0 %10375, %v14046_v44   ;;  %v4684_v16 = vsub.f32 %v17938_v47, %v4341_v19  ;;  %v4685_v44 = vsub.f32 %v17940_v28, %v4345_v6  ;;  %17941 = vst [vmem:[#allocation104_spill] sm:$0xff] %v14147_v38  ;;  %v4365_v19 = vrot.slane %v14133_v29, %v11393_v18  ;;  %v14152_v55 = vpop.eup %10673  ;;  %10699 = vpow2.f32 %v4868_v26 }
 0x358   :  { %v4906_v10 = vmul.f32 1.442695, %v4682_v21  ;;  %17943 = vst [vmem:[#allocation158_spill] sm:$0xff] %v14152_v55  ;;  %v14158_v6 = vpop.eup %10675  ;;  %10701 = vpow2.f32 %v4870_v2  ;;  %v4688_v17 = vsub.f32 %v17945_v53, %v4357_v37  ;;  %v4373_v47 = vrot.slane %v14133_v29, %v13708_v39  ;;  %v17955_v55 = vld [vmem:[#allocation230_spill] sm:$0xff] }
 0x359   :  { %5264 = vperm.xlu1 %10376, %v13963_v42   ;;  %v17944_v42 = vld [vmem:[#allocation227_spill] sm:$0xff]  ;;  %v4910_v21 = vmul.f32 1.442695, %v4684_v16  ;;  %v14164_v26 = vpop.eup %10677  ;;  %10703 = vpow2.f32 %v4872_v14  ;;  %v4912_v0 = vmul.f32 1.442695, %v4685_v44  ;;  %v4381_v37 = vrot.slane %v14133_v29, %v13721_v51  ;;  %v17946_v16 = vld [vmem:[#allocation222_spill] sm:$0xff] }
 0x35a   :  { %v4687_v32 = vsub.f32 %v17944_v42, %v4353_v43  ;;  %v4689_v43 = vsub.f32 %v13611_v33, %v4361_v63  ;;  %v14169_v28 = vpop.eup %10679  ;;  %10705 = vpow2.f32 %v4906_v10  ;;  %v4914_v2 = vmul.f32 1.442695, %v4686_v30  ;;  %v17947_v14 = vld [vmem:[#allocation219_spill] sm:$0xff]  ;;  %v17948_v30 = vld [vmem:[#allocation221_spill] sm:$0xff] }
 0x35b   :  { %5237 = vperm.xlu0 %10375, %v14052_v61   ;;  %v4377_v61 = vrot.slane %v14133_v29, %v13674_v50  ;;  %v4690_v5 = vsub.f32 %v17946_v16, %v4365_v19  ;;  %v14174_v42 = vpop.eup %10681  ;;  %10707 = vpow2.f32 %v4908_v59  ;;  %v4691_v53 = vsub.f32 %v17947_v14, %v4369_v40  ;;  %v17949_v59 = vld [vmem:[#allocation226_spill] sm:$0xff] }
 0x35c   :  { %v14178_v33 = vpop.eup %10683  ;;  %10709 = vpow2.f32 %v4910_v21  ;;  %v4918_v63 = vmul.f32 1.442695, %v4688_v17  ;;  %v4385_v44 = vrot.slane %v14133_v29, %v13738_v34  ;;  %v4692_v10 = vsub.f32 %v17948_v30, %v4373_v47 }
 0x35d   :  { %5195 = vperm.xlu1 %10376, %v13985_v8   ;;  %v4916_v8 = vmul.f32 1.442695, %v4687_v32  ;;  %v14186_v16 = vpop.eup %10685  ;;  %10711 = vpow2.f32 %v4912_v0  ;;  %v4920_v32 = vmul.f32 1.442695, %v4689_v43  ;;  %v4693_v40 = vsub.f32 %v17949_v59, %v4377_v61 }
 0x35e   :  { %v14191_v21 = vpop.eup %10687  ;;  %10713 = vpow2.f32 %v4914_v2  ;;  %v4393_v17 = vrot.slane %v14133_v29, %v13755_v60  ;;  %v4694_v47 = vsub.f32 %v13563_v20, %v4381_v37  ;;  %v4924_v30 = vmul.f32 1.442695, %v4691_v53  ;;  %v17951_v37 = vld [vmem:[#allocation229_spill] sm:$0xff] }
 0x35f   :  { %5240 = vperm.xlu0 %10375, %v14057_v49   ;;  %v4389_v49 = vrot.slane %v14133_v29, %v13749_v7  ;;  %v14196_v14 = vpop.eup %10689  ;;  %10715 = vpow2.f32 %v4916_v8  ;;  %v4695_v61 = vsub.f32 %v13571_v36, %v4385_v44  ;;  %v4926_v2 = vmul.f32 1.442695, %v4692_v10 }
 0x360   :  { %17950 = vst [vmem:[#allocation121_spill] sm:$0xff] %v14196_v14  ;;  %v14201_v0 = vpop.eup %10691  ;;  %10717 = vpow2.f32 %v4918_v63  ;;  %v4928_v8 = vmul.f32 1.442695, %v4693_v40  ;;  %v17952_v63 = vld [vmem:[#allocation235_spill] sm:$0xff]  ;;  %v4930_v36 = vmul.f32 1.442695, %v4694_v47 }
 0x361   :  { %5201 = vperm.xlu1 %10376, %v13991_v58   ;;  %v4922_v58 = vmul.f32 1.442695, %v4690_v5  ;;  %v14207_v29 = vpop.eup %10693  ;;  %10719 = vpow2.f32 %v4920_v32  ;;  %v4696_v5 = vsub.f32 %v17951_v37, %v4389_v49  ;;  %v4697_v59 = vsub.f32 %v17952_v63, %v4393_v17  ;;  %v17953_v49 = vld [vmem:[#allocation224_spill] sm:$0xff] }
 0x362   :  { %v14184_v19 = vpop.xlane.xlu0 %3925  ;;  %v14212_v53 = vpop.eup %10695  ;;  %v4932_v17 = vmul.f32 1.442695, %v4695_v61  ;;  %v17957_v61 = vld [vmem:[#allocation27_spill] sm:$0xff] }
 0x363   :  { %v4397_v43 = vrot.slane %v14184_v19, %v11393_v18  ;;  %5342 = vperm.xlu0 %10375, %v14067_v56   ;;  %v4401_v20 = vrot.slane %v14184_v19, %v13691_v11  ;;  %v4405_v56 = vrot.slane %v14184_v19, %v13708_v39  ;;  %10721 = vpow2.f32 %v4922_v58  ;;  %v14219_v10 = vpop.eup %10697  ;;  %v17954_v58 = vld [vmem:[#allocation223_spill] sm:$0xff] }
 0x364   :  { %10723 = vpow2.f32 %v4924_v30  ;;  %v4413_v32 = vrot.slane %v14184_v19, %v13721_v51  ;;  %v14225_v37 = vpop.eup %10699  ;;  %v4417_v47 = vrot.slane %v14184_v19, %v13738_v34  ;;  %v4934_v30 = vmul.f32 1.442695, %v4696_v5 }
 0x365   :  { %5204 = vperm.xlu1 %10376, %v13996_v31   ;;  %v4409_v31 = vrot.slane %v14184_v19, %v13674_v50  ;;  %v4698_v40 = vsub.f32 %v17953_v49, %v4397_v43  ;;  %10725 = vpow2.f32 %v4926_v2  ;;  %v4699_v63 = vsub.f32 %v17954_v58, %v4401_v20  ;;  %v14231_v14 = vpop.eup %10701  ;;  %v17956_v49 = vld [vmem:[#allocation236_spill] sm:$0xff] }
 0x366   :  { %10727 = vpow2.f32 %v4928_v8  ;;  %v4700_v38 = vsub.f32 %v17955_v55, %v4405_v56  ;;  %v14234_v43 = vpop.eup %10703  ;;  %v17958_v9 = vunpack.c.l.bf16 %v17957_v61  ;;  %v4421_v20 = vrot.slane %v14184_v19, %v13749_v7  ;;  %v17960_v8 = vld [vmem:[#allocation232_spill] sm:$0xff] }
 0x367   :  { %5294 = vperm.xlu0 %10375, %v14112_v25   ;;  %10729 = vpow2.f32 %v4930_v36  ;;  %v4936_v25 = vmul.f32 1.442695, %v4697_v59  ;;  %v4701_v2 = vsub.f32 %v17956_v49, %v4409_v31  ;;  %v14240_v3 = vpop.eup %10705  ;;  %v4425_v5 = vrot.slane %v14184_v19, %v13755_v60  ;;  %v17961_v36 = vld [vmem:[#allocation238_spill] sm:$0xff] }
 0x368   :  { %17959 = vst [vmem:[#allocation132_spill] sm:$0xff] %v14240_v3  ;;  %v4702_v55 = vsub.f32 %v17960_v8, %v4413_v32  ;;  %v4938_v56 = vmul.f32 1.442695, %v4698_v40  ;;  %v14248_v59 = vpop.eup %10707  ;;  %10731 = vpow2.f32 %v4932_v17  ;;  %v4703_v31 = vsub.f32 %v17961_v36, %v4417_v47  ;;  %v17965_v47 = vld [vmem:[#allocation239_spill] sm:$0xff]  ;;  %v17966_v8 = vld [vmem:[#allocation241_spill] sm:$0xff] }
 0x369   :  { %5207 = vperm.xlu1 %10376, %v14001_v4   ;;  %v4940_v58 = vmul.f32 1.442695, %v4699_v63  ;;  %v14256_v61 = vpop.eup %10709  ;;  %10733 = vpow2.f32 %v4934_v30  ;;  %v4942_v19 = vmul.f32 1.442695, %v4700_v38  ;;  %v4704_v63 = vsub.f32 %v17965_v47, %v4421_v20  ;;  %v17969_v20 = vld [vmem:[#allocation32_spill] sm:$0xff] }
 0x36a   :  { %v14217_v44 = vpop.permute.xlu0 %5147  ;;  %17962 = vst [vmem:[#allocation127_spill] sm:$0xff] %v14256_v61  ;;  %v14258_v32 = vpop.eup %10711  ;;  %10735 = vpow2.f32 %v4936_v25  ;;  %v4705_v36 = vsub.f32 %v17966_v8, %v4425_v5  ;;  %v4948_v38 = vmul.f32 1.442695, %v4703_v31  ;;  %v17970_v5 = vunpack.c.l.bf16 %v17969_v20  ;;  %v17973_v8 = vld [vmem:[#allocation28_spill] sm:$0xff] }
 0x36b   :  { %v6330_v4 = vmul.f32 %v14217_v44, %v17958_v9  ;;  %5366 = vperm.xlu0 %10375, %v14158_v6   ;;  %17963 = vst [vmem:[#allocation184_spill] sm:$0xff] %v14258_v32  ;;  %v4944_v6 = vmul.f32 1.442695, %v4701_v2  ;;  %v14261_v17 = vpop.eup %10713  ;;  %10737 = vpow2.f32 %v4938_v56  ;;  %v17974_v20 = vunpack.c.l.bf16 %v17973_v8 }
 0x36c   :  { %17964 = vst [vmem:[#allocation129_spill] sm:$0xff] %v14261_v17  ;;  %v14266_v3 = vpop.eup %10715  ;;  %10739 = vpow2.f32 %v4940_v58  ;;  %v4950_v58 = vmul.f32 1.442695, %v4704_v63 }
 0x36d   :  { %v14251_v9 = vpop.xlane.xlu1 %3928  ;;  %5210 = vperm.xlu1 %10376, %v14008_v23   ;;  %v6554_v40 = vsel %vm2719_vm0, %v6330_v4, 0.0  ;;  %v4946_v23 = vmul.f32 1.442695, %v4702_v55  ;;  %17967 = vst [vmem:[#allocation136_spill] sm:$0xff] %v14266_v3  ;;  %v14271_v25 = vpop.eup %10717  ;;  %10741 = vpow2.f32 %v4942_v19  ;;  %v4952_v19 = vmul.f32 1.442695, %v4705_v36 }
 0x36e   :  { %v14254_v49 = vpop.permute.xlu0 %5156  ;;  %17968 = vst [vmem:[#allocation139_spill] sm:$0xff] %v14271_v25  ;;  %v4429_v2 = vrot.slane %v14251_v9, %v11393_v18  ;;  %v6555_v4 = vrot.slane %v6554_v40, 4  ;;  %10743 = vpow2.f32 %v4944_v6  ;;  %v4433_v56 = vrot.slane %v14251_v9, %v13691_v11  ;;  %v17976_v36 = vld [vmem:[#allocation234_spill] sm:$0xff] }
 0x36f   :  { %5369 = vperm.xlu0 %10375, %v14164_v26   ;;  %v6333_v55 = vmul.f32 %v14254_v49, %v17970_v5  ;;  %v14278_v26 = vpop.eup %10719  ;;  %10745 = vpow2.f32 %v4946_v23  ;;  %v4437_v18 = vrot.slane %v14251_v9, %v13708_v39  ;;  %v4441_v6 = vrot.slane %v14251_v9, %v13674_v50 }
 0x370   :  { %17971 = vst [vmem:[#allocation186_spill] sm:$0xff] %v14278_v26  ;;  %10747 = vpow2.f32 %v4948_v38  ;;  %v4445_v11 = vrot.slane %v14251_v9, %v13721_v51  ;;  %v4706_v38 = vsub.f32 %v17976_v36, %v4429_v2  ;;  %v6556_v5 = vadd.f32 %v6555_v4, %v6554_v40  ;;  %v17979_v26 = vld [vmem:[#allocation31_spill] sm:$0xff] }
 0x371   :  { %v14268_v30 = vpop.permute.xlu1 %5150  ;;  %5213 = vperm.xlu1 %10376, %v14014_v12   ;;  %v14284_v12 = vpop.eup %10721  ;;  %v6575_v50 = vsel %vm2719_vm0, %v6333_v55, 0.0  ;;  %v4453_v51 = vrot.slane %v14251_v9, %v13749_v7  ;;  %v4457_v8 = vrot.slane %v14251_v9, %v13755_v60  ;;  %v17980_v25 = vunpack.c.l.bf16 %v17979_v26  ;;  %v17982_v4 = vld [vmem:[#allocation159_spill] sm:$0xff]  ;;  %v17983_v60 = vld [vmem:[#allocation237_spill] sm:$0xff] }
 0x372   :  { %v14282_v31 = vpop.permute.xlu0 %5099  ;;  %17972 = vst [vmem:[#allocation147_spill] sm:$0xff] %v14284_v12  ;;  %v14289_v47 = vpop.eup %10723  ;;  %v6331_v23 = vmul.f32 %v14268_v30, %v17974_v20  ;;  %v17978_v20 = vld [vmem:[#allocation231_spill] sm:$0xff]  ;;  %10749 = vpow2.f32 %v4950_v58  ;;  %v4708_v40 = vsub.f32 %v13604_v57, %v4437_v18  ;;  %v5549_v55 = vrot.slane %v14217_v44, %v17982_v4  ;;  %v17984_v26 = vld [vmem:[#allocation233_spill] sm:$0xff]  ;;  %v17986_v58 = vld [vmem:[#allocation240_spill] sm:$0xff] }
 0x373   :  { %5372 = vperm.xlu0 %10375, %v14169_v28   ;;  %v14301_v39 = vpop.eup %10725  ;;  %v4449_v28 = vrot.slane %v14251_v9, %v13738_v34  ;;  %10751 = vpow2.f32 %v4952_v19  ;;  %v4709_v9 = vsub.f32 %v17983_v60, %v4441_v6  ;;  %v4954_v18 = vmul.f32 1.442695, %v4706_v38  ;;  %v17989_v6 = vld [vmem:[#allocation99_spill] sm:$0xff] }
 0x374   :  { %17975 = vst [vmem:[#allocation160_spill] sm:$0xff] %v14301_v39  ;;  %v14307_v12 = vpop.eup %10727  ;;  %v6576_v7 = vrot.slane %v6575_v50, 4  ;;  %v4713_v60 = vsub.f32 %v17989_v6, %v4457_v8 }
 0x375   :  { %v14298_v63 = vpop.permute.xlu1 %5153  ;;  %5216 = vperm.xlu1 %10376, %v14019_v52   ;;  %17977 = vst [vmem:[#allocation165_spill] sm:$0xff] %v14307_v12  ;;  %v4707_v52 = vsub.f32 %v17978_v20, %v4433_v56  ;;  %v14319_v2 = vpop.eup %10729  ;;  %v6561_v56 = vsel %vm2719_vm0, %v6331_v23, 0.0  ;;  %v4711_v44 = vsub.f32 %v17986_v58, %v4449_v28  ;;  %v6557_v20 = vrot.slane %v6556_v5, 2  ;;  %v17993_v58 = vld [vmem:[#allocation29_spill] sm:$0xff] }
 0x376   :  { %v6332_v3 = vmul.f32 %v14298_v63, %v17980_v25  ;;  %v14317_v34 = vpop.permute.xlu0 %5171  ;;  %17981 = vst [vmem:[#allocation167_spill] sm:$0xff] %v14319_v2  ;;  %v4710_v25 = vsub.f32 %v17984_v26, %v4445_v11  ;;  %v14333_v57 = vpop.eup %10731  ;;  %v6562_v61 = vrot.slane %v6561_v56, 4  ;;  %v17994_v2 = vunpack.c.l.bf16 %v17993_v58 }
 0x377   :  { %5375 = vperm.xlu0 %10375, %v14174_v42   ;;  %17985 = vst [vmem:[#allocation169_spill] sm:$0xff] %v14333_v57  ;;  %v14336_v17 = vpop.eup %10733  ;;  %v17988_v42 = vld [vmem:[#allocation26_spill] sm:$0xff]  ;;  %v4956_v11 = vmul.f32 1.442695, %v4707_v52  ;;  %v17991_v57 = vld [vmem:[#allocation33_spill] sm:$0xff]  ;;  %v5553_v52 = vrot.slane %v14268_v30, %v17982_v4  ;;  %10753 = vpow2.f32 %v4954_v18  ;;  %v6577_v58 = vadd.f32 %v6576_v7, %v6575_v50 }
 0x378   :  { %17987 = vst [vmem:[#allocation183_spill] sm:$0xff] %v14336_v17  ;;  %v4712_v19 = vsub.f32 %v17988_v42, %v4453_v51  ;;  %v6568_v23 = vsel %vm2719_vm0, %v6332_v3, 0.0  ;;  %v14343_v32 = vpop.eup %10735  ;;  %v17992_v28 = vunpack.c.l.bf16 %v17991_v57  ;;  %v6314_v17 = vmul.f32 %v14282_v31, %v17994_v2 }
 0x379   :  { %v14330_v36 = vpop.permute.xlu1 %5159  ;;  %5267 = vperm.xlu1 %10376, %v13970_v15   ;;  %17990 = vst [vmem:[#allocation157_spill] sm:$0xff] %v14343_v32  ;;  %v4958_v15 = vmul.f32 1.442695, %v4708_v40  ;;  %v14352_v51 = vpop.eup %10737  ;;  %v4960_v8 = vmul.f32 1.442695, %v4709_v9  ;;  %v17997_v40 = vld [vmem:[#allocation41_spill] sm:$0xff]  ;;  %v6558_v30 = vadd.f32 %v6557_v20, %v6556_v5  ;;  %10755 = vpow2.f32 %v4956_v11 }
 0x37a   :  { %v14341_v26 = vpop.permute.xlu0 %5177  ;;  %v6334_v38 = vmul.f32 %v14330_v36, %v17992_v28  ;;  %17995 = vst [vmem:[#allocation171_spill] sm:$0xff] %v14352_v51  ;;  %v4962_v3 = vmul.f32 1.442695, %v4710_v25  ;;  %v17998_v57 = vunpack.c.l.bf16 %v17997_v40  ;;  %v14362_v28 = vpop.eup %10739  ;;  %v4964_v2 = vmul.f32 1.442695, %v4711_v44  ;;  %v18001_v32 = vld [vmem:[#allocation34_spill] sm:$0xff] }
 0x37b   :  { %5378 = vperm.xlu0 %10375, %v14178_v33   ;;  %17999 = vst [vmem:[#allocation177_spill] sm:$0xff] %v14362_v28  ;;  %v6569_v33 = vrot.slane %v6568_v23, 4  ;;  %v14364_v51 = vpop.eup %10741  ;;  %v4966_v9 = vmul.f32 1.442695, %v4712_v19  ;;  %v6008_v25 = vsel %vm3746_vm1, %v5553_v52, %v5549_v55  ;;  %v18002_v12 = vunpack.c.l.bf16 %v18001_v32 }
 0x37c   :  { %v6338_v6 = vmul.f32 %v14317_v34, %v17998_v57  ;;  %18000 = vst [vmem:[#allocation185_spill] sm:$0xff] %v14364_v51  ;;  %v14372_v40 = vpop.eup %10743  ;;  %v6563_v57 = vadd.f32 %v6562_v61, %v6561_v56  ;;  %v6582_v44 = vsel %vm2719_vm0, %v6334_v38, 0.0  ;;  %v6442_v50 = vsel %vm2719_vm0, %v6314_v17, 0.0 }
 0x37d   :  { %v14356_v42 = vpop.permute.xlu1 %5162  ;;  %5219 = vperm.xlu1 %10376, %v14024_v24   ;;  %18004 = vst [vmem:[#allocation123_spill] sm:$0xff] %v14372_v40  ;;  %v14377_v7 = vpop.eup %10745  ;;  %10757 = vpow2.f32 %v4958_v15  ;;  %v5557_v32 = vrot.slane %v14298_v63, %v17982_v4  ;;  %v6570_v17 = vadd.f32 %v6569_v33, %v6568_v23  ;;  %v6578_v56 = vrot.slane %v6577_v58, 2  ;;  %v18010_v15 = vld [vmem:[#allocation39_spill] sm:$0xff] }
 0x37e   :  { %17996 = vst [vmem:[#allocation175_spill] sm:$0xff] %v14356_v42  ;;  %v6335_v24 = vmul.f32 %v14356_v42, %v18002_v12  ;;  %v14370_v39 = vpop.permute.xlu0 %5183  ;;  %18005 = vst [vmem:[#allocation151_spill] sm:$0xff] %v14377_v7  ;;  %v6610_v5 = vsel %vm2719_vm0, %v6338_v6, 0.0  ;;  %v14386_v61 = vpop.eup %10747  ;;  %10759 = vpow2.f32 %v4960_v8  ;;  %v6559_v19 = vrot.slane %v6558_v30, 1 }
 0x37f   :  { %18003 = vst [vmem:[#allocation143_spill] sm:$0xff] %v14370_v39  ;;  %5381 = vperm.xlu0 %10375, %v14186_v16   ;;  %18007 = vst [vmem:[#allocation141_spill] sm:$0xff] %v14386_v61  ;;  %v18008_v16 = vld [vmem:[#allocation47_spill] sm:$0xff]  ;;  %v6583_v11 = vrot.slane %v6582_v44, 4  ;;  %v6443_v63 = vrot.slane %v6442_v50, 4  ;;  %v18011_v38 = vunpack.c.l.bf16 %v18010_v15  ;;  %10761 = vpow2.f32 %v4962_v3  ;;  %v14397_v23 = vpop.eup %10749 }
 0x380   :  { %v6589_v12 = vsel %vm2719_vm0, %v6335_v24, 0.0  ;;  %v18009_v18 = vunpack.c.l.bf16 %v18008_v16  ;;  %v6611_v61 = vrot.slane %v6610_v5, 4  ;;  %18013 = vst [vmem:[#allocation188_spill] sm:$0xff] %v14397_v23  ;;  %10763 = vpow2.f32 %v4964_v2  ;;  %v14405_v15 = vpop.eup %10751 }
 0x381   :  { %v14383_v55 = vpop.permute.xlu1 %5165  ;;  %5339 = vperm.xlu1 %10376, %v14062_v46   ;;  %v6564_v46 = vrot.slane %v6563_v57, 2  ;;  %v6590_v24 = vrot.slane %v6589_v12, 4  ;;  %v4968_v8 = vmul.f32 1.442695, %v4713_v60  ;;  %v6009_v33 = vsel %vm3748_vm2, %v5557_v32, %v6008_v25  ;;  %18015 = vst [vmem:[#allocation190_spill] sm:$0xff] %v14405_v15  ;;  %v18016_v60 = vld [vmem:[#allocation40_spill] sm:$0xff] }
 0x382   :  { %18006 = vst [vmem:[#allocation125_spill] sm:$0xff] %v14383_v55  ;;  %v6340_v20 = vmul.f32 %v14341_v26, %v18009_v18  ;;  %v6336_v52 = vmul.f32 %v14383_v55, %v18011_v38  ;;  %v14394_v6 = vpop.permute.xlu0 %5186  ;;  %v6571_v3 = vrot.slane %v6570_v17, 2  ;;  %v6579_v38 = vadd.f32 %v6578_v56, %v6577_v58  ;;  %v18018_v32 = vld [vmem:[#allocation49_spill] sm:$0xff] }
 0x383   :  { %18012 = vst [vmem:[#allocation145_spill] sm:$0xff] %v14394_v6  ;;  %5384 = vperm.xlu0 %10375, %v14191_v21   ;;  %v6584_v23 = vadd.f32 %v6583_v11, %v6582_v44  ;;  %v6444_v2 = vadd.f32 %v6443_v63, %v6442_v50  ;;  %v18017_v40 = vunpack.c.l.bf16 %v18016_v60  ;;  %v18019_v16 = vunpack.c.l.bf16 %v18018_v32 }
 0x384   :  { %v6596_v7 = vsel %vm2719_vm0, %v6336_v52, 0.0  ;;  %v6624_v21 = vsel %vm2719_vm0, %v6340_v20, 0.0  ;;  %v14417_v15 = vadd.f32 %v6559_v19, %v6558_v30  ;;  %v6591_v58 = vadd.f32 %v6590_v24, %v6589_v12  ;;  %v18023_v19 = vld [vmem:[#allocation35_spill] sm:$0xff] }
 0x385   :  { %v14402_v18 = vpop.permute.xlu1 %5168  ;;  %5345 = vperm.xlu1 %10376, %v14073_v62   ;;  %v6342_v51 = vmul.f32 %v14370_v39, %v18019_v16  ;;  %v6565_v62 = vadd.f32 %v6564_v46, %v6563_v57  ;;  %v6612_v56 = vadd.f32 %v6611_v61, %v6610_v5  ;;  %v18022_v44 = vrot.slane %v14254_v49, %v17982_v4 }
 0x386   :  { %18014 = vst [vmem:[#allocation189_spill] sm:$0xff] %v14402_v18  ;;  %v6337_v25 = vmul.f32 %v14402_v18, %v18017_v40  ;;  %v14415_v28 = vpop.permute.xlu0 %5189  ;;  %18021 = vst [vmem:[#allocation196_spill] sm:$0xff] %v14417_v15  ;;  %v5565_v40 = vrot.slane %v14330_v36, %v17982_v4  ;;  %v6597_v20 = vrot.slane %v6596_v7, 4  ;;  %v6625_v11 = vrot.slane %v6624_v21, 4 }
 0x387   :  { %18020 = vst [vmem:[#allocation191_spill] sm:$0xff] %v14415_v28  ;;  %5318 = vperm.xlu0 %10375, %v14201_v0   ;;  %v6010_v50 = vsel %vm3750_vm3, %v18022_v44, %v6009_v33  ;;  %10765 = vpow2.f32 %v4966_v9  ;;  %v6572_v30 = vadd.f32 %v6571_v3, %v6570_v17  ;;  %v6580_v57 = vrot.slane %v6579_v38, 1  ;;  %v14430_v0 = vpop.eup %10753  ;;  %v18027_v44 = vld [vmem:[#allocation50_spill] sm:$0xff] }
 0x388   :  { %v6603_v12 = vsel %vm2719_vm0, %v6337_v25, 0.0  ;;  %v6585_v5 = vrot.slane %v6584_v23, 2  ;;  %v6445_v49 = vrot.slane %v6444_v2, 2  ;;  %v6638_v61 = vsel %vm2719_vm0, %v6342_v51, 0.0  ;;  %v14439_v17 = vpop.eup %10755 }
 0x389   :  { %v14426_v63 = vpop.permute.xlu1 %5102  ;;  %5348 = vperm.xlu1 %10376, %v14078_v13   ;;  %v18024_v52 = vunpack.c.l.bf16 %v18023_v19  ;;  %10767 = vpow2.f32 %v4968_v8  ;;  %v6566_v24 = vrot.slane %v6565_v62, 1  ;;  %v6592_v13 = vrot.slane %v6591_v58, 2 }
 0x38a   :  { %v14436_v46 = vpop.permute.xlu0 %5192  ;;  %v6613_v9 = vrot.slane %v6612_v56, 2  ;;  %v14442_v33 = vsel %vm3752_vm4, %v5565_v40, %v6010_v50  ;;  %v6598_v16 = vadd.f32 %v6597_v20, %v6596_v7  ;;  %v6626_v3 = vadd.f32 %v6625_v11, %v6624_v21  ;;  %v14447_v25 = vpop.eup %10757 }
 0x38b   :  { %v6315_v36 = vmul.f32 %v14426_v63, %v18024_v52  ;;  %18025 = vst [vmem:[#allocation197_spill] sm:$0xff] %v14436_v46  ;;  %5321 = vperm.xlu0 %10375, %v14207_v29   ;;  %v6604_v51 = vrot.slane %v6603_v12, 4  ;;  %v14449_v8 = vadd.f32 %v6580_v57, %v6579_v38  ;;  %v6639_v29 = vrot.slane %v6638_v61, 4  ;;  %v14456_v40 = vpop.eup %10759 }
 0x38c   :  { %v18028_v19 = vunpack.c.l.bf16 %v18027_v44  ;;  %v6573_v7 = vrot.slane %v6572_v30, 1  ;;  %v6586_v21 = vadd.f32 %v6585_v5, %v6584_v23  ;;  %v6446_v20 = vadd.f32 %v6445_v49, %v6444_v2  ;;  %v14466_v44 = vpop.eup %10761 }
 0x38d   :  { %v14444_v60 = vpop.permute.xlu1 %5105  ;;  %5351 = vperm.xlu1 %10376, %v14083_v45   ;;  %18026 = vst [vmem:[#allocation155_spill] sm:$0xff] %v14449_v8  ;;  %v6449_v11 = vsel %vm2719_vm0, %v6315_v36, 0.0  ;;  %v14461_v52 = vadd.f32 %v6566_v24, %v6565_v62  ;;  %v6593_v57 = vadd.f32 %v6592_v13, %v6591_v58  ;;  %v6614_v32 = vadd.f32 %v6613_v9, %v6612_v56  ;;  %v14473_v62 = vpop.eup %10763  ;;  %v18030_v56 = vld [vmem:[#allocation30_spill] sm:$0xff] }
 0x38e   :  { %v6343_v50 = vmul.f32 %v14394_v6, %v18028_v19  ;;  %v14459_v45 = vpop.permute.xlu0 %5132  ;;  %v6599_v19 = vrot.slane %v6598_v16, 2  ;;  %v6627_v2 = vrot.slane %v6626_v3, 2  ;;  %v6605_v5 = vadd.f32 %v6604_v51, %v6603_v12 }
 0x38f   :  { %18029 = vst [vmem:[#allocation187_spill] sm:$0xff] %v14461_v52  ;;  %5324 = vperm.xlu0 %10375, %v14212_v53   ;;  %v6640_v36 = vadd.f32 %v6639_v29, %v6638_v61  ;;  %v6450_v24 = vrot.slane %v6449_v11, 4  ;;  %v18031_v53 = vunpack.c.l.bf16 %v18030_v56  ;;  %v14479_v9 = vadd.f32 %v6573_v7, %v6572_v30  ;;  %v18033_v29 = vld [vmem:[#allocation55_spill] sm:$0xff] }
 0x390   :  { %v6645_v58 = vsel %vm2719_vm0, %v6343_v50, 0.0  ;;  %v6587_v38 = vrot.slane %v6586_v21, 1  ;;  %v6447_v23 = vrot.slane %v6446_v20, 1  ;;  %v6615_v8 = vrot.slane %v6614_v32, 1 }
 0x391   :  { %v14470_v49 = vpop.permute.xlu1 %5108  ;;  %5354 = vperm.xlu1 %10376, %v14090_v41   ;;  %v6316_v13 = vmul.f32 %v14444_v60, %v18031_v53  ;;  %18032 = vst [vmem:[#allocation192_spill] sm:$0xff] %v14479_v9  ;;  %v6594_v41 = vrot.slane %v6593_v57, 1  ;;  %v18034_v50 = vunpack.c.l.bf16 %v18033_v29  ;;  %v6600_v30 = vadd.f32 %v6599_v19, %v6598_v16  ;;  %v18035_v9 = vld [vmem:[#allocation36_spill] sm:$0xff] }
 0x392   :  { %v14483_v51 = vpop.permute.xlu0 %5138  ;;  %v6628_v7 = vadd.f32 %v6627_v2, %v6626_v3  ;;  %v6646_v53 = vrot.slane %v6645_v58, 4  ;;  %v18036_v52 = vunpack.c.l.bf16 %v18035_v9  ;;  %v6606_v55 = vrot.slane %v6605_v5, 2  ;;  %v18039_v3 = vld [vmem:[#allocation56_spill] sm:$0xff] }
 0x393   :  { %v6344_v56 = vmul.f32 %v14415_v28, %v18034_v50  ;;  %5327 = vperm.xlu0 %10375, %v14219_v10   ;;  %v6641_v42 = vrot.slane %v6640_v36, 2  ;;  %v6451_v61 = vadd.f32 %v6450_v24, %v6449_v11  ;;  %v6456_v29 = vsel %vm2719_vm0, %v6316_v13, 0.0  ;;  %v18091_v28 = vld [vmem:[#allocation45_spill] sm:$0xff] }
 0x394   :  { %v6317_v12 = vmul.f32 %v14470_v49, %v18036_v52  ;;  %v14498_v39 = vpop.eup %10765  ;;  %v14500_v50 = vadd.f32 %v6587_v38, %v6586_v21  ;;  %v14502_v10 = vadd.f32 %v6447_v23, %v6446_v20  ;;  %v18040_v52 = vunpack.c.l.bf16 %v18039_v3 }
 0x395   :  { %v14494_v15 = vpop.permute.xlu1 %5111  ;;  %5357 = vperm.xlu1 %10376, %v14096_v54   ;;  %v14511_v54 = vadd.f32 %v6594_v41, %v6593_v57  ;;  %v14513_v11 = vadd.f32 %v6615_v8, %v6614_v32  ;;  %v5489_v24 = vrot.slane %v14426_v63, %v17982_v4  ;;  %v6652_v21 = vsel %vm2719_vm0, %v6344_v56, 0.0 }
 0x396   :  { %18037 = vst [vmem:[#allocation193_spill] sm:$0xff] %v14500_v50  ;;  %18038 = vst [vmem:[#allocation194_spill] sm:$0xff] %v14502_v10  ;;  %v6345_v19 = vmul.f32 %v14436_v46, %v18040_v52  ;;  %v14509_v2 = vpop.permute.xlu0 %5141  ;;  %v14519_v20 = vpop.eup %10767  ;;  %v6629_v38 = vrot.slane %v6628_v7, 1  ;;  %v6647_v23 = vadd.f32 %v6646_v53, %v6645_v58  ;;  %v6457_v13 = vrot.slane %v6456_v29, 4  ;;  %v18044_v52 = vld [vmem:[#allocation37_spill] sm:$0xff] }
 0x397   :  { %18041 = vst [vmem:[#allocation195_spill] sm:$0xff] %v14511_v54  ;;  %18042 = vst [vmem:[#allocation200_spill] sm:$0xff] %v14513_v11  ;;  %5330 = vperm.xlu0 %10375, %v14225_v37   ;;  %v6463_v9 = vsel %vm2719_vm0, %v6317_v12, 0.0  ;;  %v6601_v8 = vrot.slane %v6600_v30, 1  ;;  %v6607_v32 = vadd.f32 %v6606_v55, %v6605_v5  ;;  %v6642_v57 = vadd.f32 %v6641_v42, %v6640_v36  ;;  %v18046_v11 = vld [vmem:[#allocation52_spill] sm:$0xff] }
 0x398   :  { %v6452_v41 = vrot.slane %v6451_v61, 2  ;;  %v6653_v63 = vrot.slane %v6652_v21, 4  ;;  %v6659_v56 = vsel %vm2719_vm0, %v6345_v19, 0.0  ;;  %v18045_v37 = vunpack.c.l.bf16 %v18044_v52 }
 0x399   :  { %v14522_v3 = vpop.permute.xlu1 %5114  ;;  %5360 = vperm.xlu1 %10376, %v14101_v1   ;;  %v18047_v58 = vunpack.c.l.bf16 %v18046_v11  ;;  %v18048_v1 = vrot.slane %v14282_v31, %v17982_v4  ;;  %v5493_v5 = vrot.slane %v14444_v60, %v17982_v4  ;;  %v6464_v36 = vrot.slane %v6463_v9, 4 }
 0x39a   :  { %18043 = vst [vmem:[#allocation201_spill] sm:$0xff] %v14522_v3  ;;  %v6318_v16 = vmul.f32 %v14494_v15, %v18045_v37  ;;  %v14532_v12 = vpop.permute.xlu0 %5144  ;;  %v14543_v19 = vadd.f32 %v6629_v38, %v6628_v7  ;;  %v6648_v11 = vrot.slane %v6647_v23, 2  ;;  %v6458_v52 = vadd.f32 %v6457_v13, %v6456_v29  ;;  %v18050_v37 = vld [vmem:[#allocation38_spill] sm:$0xff] }
 0x39b   :  { %v6325_v53 = vmul.f32 %v14459_v45, %v18047_v58  ;;  %v5994_v55 = vsel %vm3746_vm1, %v5489_v24, %v18048_v1  ;;  %5333 = vperm.xlu0 %10375, %v14231_v14   ;;  %v18051_v58 = vunpack.c.l.bf16 %v18050_v37  ;;  %v14551_v24 = vadd.f32 %v6601_v8, %v6600_v30 }
 0x39c   :  { %18049 = vst [vmem:[#allocation198_spill] sm:$0xff] %v14543_v19  ;;  %v6608_v1 = vrot.slane %v6607_v32, 1  ;;  %v6643_v42 = vrot.slane %v6642_v57, 1  ;;  %v6660_v60 = vrot.slane %v6659_v56, 4  ;;  %v6453_v54 = vadd.f32 %v6452_v41, %v6451_v61 }
 0x39d   :  { %v6319_v10 = vmul.f32 %v14522_v3, %v18051_v58  ;;  %v14548_v31 = vpop.permute.xlu1 %5117  ;;  %5291 = vperm.xlu1 %10376, %v14106_v27   ;;  %18053 = vst [vmem:[#allocation204_spill] sm:$0xff] %v14551_v24  ;;  %v6654_v50 = vadd.f32 %v6653_v63, %v6652_v21  ;;  %v6470_v14 = vsel %vm2719_vm0, %v6318_v16, 0.0  ;;  %v6519_v7 = vsel %vm2719_vm0, %v6325_v53, 0.0  ;;  %v18054_v27 = vld [vmem:[#allocation54_spill] sm:$0xff] }
 0x39e   :  { %18052 = vst [vmem:[#allocation199_spill] sm:$0xff] %v14548_v31  ;;  %v14555_v29 = vpop.permute.xlu0 %5246  ;;  %v5995_v38 = vsel %vm3748_vm2, %v5493_v5, %v5994_v55  ;;  %v6465_v37 = vadd.f32 %v6464_v36, %v6463_v9  ;;  %v18055_v30 = vunpack.c.l.bf16 %v18054_v27  ;;  %v6649_v61 = vadd.f32 %v6648_v11, %v6647_v23  ;;  %v18059_v23 = vld [vmem:[#allocation43_spill] sm:$0xff] }
 0x39f   :  { %5336 = vperm.xlu0 %10375, %v14234_v43   ;;  %v6459_v21 = vrot.slane %v6458_v52, 2  ;;  %v5497_v16 = vrot.slane %v14470_v49, %v17982_v4  ;;  %v6477_v41 = vsel %vm2719_vm0, %v6319_v10, 0.0  ;;  %v14570_v53 = vadd.f32 %v6608_v1, %v6607_v32 }
 0x3a0   :  { %v6327_v8 = vmul.f32 %v14483_v51, %v18055_v30  ;;  %v6661_v9 = vadd.f32 %v6660_v60, %v6659_v56  ;;  %v6471_v55 = vrot.slane %v6470_v14, 4  ;;  %v6520_v5 = vrot.slane %v6519_v7, 4 }
 0x3a1   :  { %v14567_v63 = vpop.permute.xlu1 %5120  ;;  %5297 = vperm.xlu1 %10376, %v14118_v35   ;;  %18057 = vst [vmem:[#allocation206_spill] sm:$0xff] %v14570_v53  ;;  %v14572_v36 = vadd.f32 %v6643_v42, %v6642_v57  ;;  %v6454_v58 = vrot.slane %v6453_v54, 1  ;;  %v6655_v43 = vrot.slane %v6654_v50, 2  ;;  %v18060_v11 = vunpack.c.l.bf16 %v18059_v23  ;;  %v18061_v35 = vld [vmem:[#allocation59_spill] sm:$0xff] }
 0x3a2   :  { %18056 = vst [vmem:[#allocation205_spill] sm:$0xff] %v14567_v63  ;;  %v14577_v49 = vpop.permute.xlu0 %5198  ;;  %v6466_v10 = vrot.slane %v6465_v37, 2  ;;  %v6478_v30 = vrot.slane %v6477_v41, 4  ;;  %v6533_v13 = vsel %vm2719_vm0, %v6327_v8, 0.0  ;;  %v18062_v32 = vunpack.c.l.bf16 %v18061_v35 }
 0x3a3   :  { %18058 = vst [vmem:[#allocation207_spill] sm:$0xff] %v14572_v36  ;;  %v6320_v27 = vmul.f32 %v14548_v31, %v18060_v11  ;;  %5390 = vperm.xlu0 %10375, %v14248_v59   ;;  %v6650_v57 = vrot.slane %v6649_v61, 1  ;;  %v6460_v42 = vadd.f32 %v6459_v21, %v6458_v52  ;;  %v5996_v1 = vsel %vm3750_vm3, %v5497_v16, %v5995_v38  ;;  %v18064_v21 = vld [vmem:[#allocation44_spill] sm:$0xff] }
 0x3a4   :  { %v6328_v56 = vmul.f32 %v14509_v2, %v18062_v32  ;;  %v5501_v60 = vrot.slane %v14494_v15, %v17982_v4  ;;  %v6662_v11 = vrot.slane %v6661_v9, 2  ;;  %v6472_v36 = vadd.f32 %v6471_v55, %v6470_v14 }
 0x3a5   :  { %v14587_v23 = vpop.permute.xlu1 %5174  ;;  %5300 = vperm.xlu1 %10376, %v14123_v22   ;;  %v6521_v8 = vadd.f32 %v6520_v5, %v6519_v7  ;;  %v6484_v35 = vsel %vm2719_vm0, %v6320_v27, 0.0  ;;  %v14591_v19 = vadd.f32 %v6454_v58, %v6453_v54  ;;  %v6534_v52 = vrot.slane %v6533_v13, 4 }
 0x3a6   :  { %v18065_v38 = vunpack.c.l.bf16 %v18064_v21  ;;  %v14598_v15 = vpop.permute.xlu0 %5270  ;;  %v6656_v32 = vadd.f32 %v6655_v43, %v6654_v50  ;;  %v6467_v53 = vadd.f32 %v6466_v10, %v6465_v37  ;;  %v6479_v22 = vadd.f32 %v6478_v30, %v6477_v41  ;;  %v18068_v10 = vld [vmem:[#allocation60_spill] sm:$0xff]  ;;  %v18070_v30 = vld [vmem:[#allocation42_spill] sm:$0xff] }
 0x3a7   :  { %18063 = vst [vmem:[#allocation212_spill] sm:$0xff] %v14591_v19  ;;  %v6540_v14 = vsel %vm2719_vm0, %v6328_v56, 0.0  ;;  %5414 = vperm.xlu0 %10375, %v14289_v47   ;;  %v14602_v7 = vadd.f32 %v6650_v57, %v6649_v61  ;;  %v6461_v54 = vrot.slane %v6460_v42, 1  ;;  %v14605_v55 = vsel %vm3752_vm4, %v5501_v60, %v5996_v1 }
 0x3a8   :  { %v6321_v16 = vmul.f32 %v14567_v63, %v18065_v38  ;;  %18067 = vst [vmem:[#allocation202_spill] sm:$0xff] %v14605_v55  ;;  %v6485_v5 = vrot.slane %v6484_v35, 4  ;;  %v6663_v27 = vadd.f32 %v6662_v11, %v6661_v9  ;;  %v6473_v21 = vrot.slane %v6472_v36, 2  ;;  %v18072_v11 = vld [vmem:[#allocation160_spill] sm:$0xff] }
 0x3a9   :  { %18066 = vst [vmem:[#allocation213_spill] sm:$0xff] %v14602_v7  ;;  %v14607_v58 = vpop.permute.xlu1 %5180  ;;  %5303 = vperm.xlu1 %10376, %v14128_v48   ;;  %v6522_v50 = vrot.slane %v6521_v8, 2  ;;  %v6535_v41 = vadd.f32 %v6534_v52, %v6533_v13  ;;  %v6541_v43 = vrot.slane %v6540_v14, 4  ;;  %v18069_v47 = vunpack.c.l.bf16 %v18068_v10 }
 0x3aa   :  { %v6491_v37 = vsel %vm2719_vm0, %v6321_v16, 0.0  ;;  %v18071_v56 = vunpack.c.l.bf16 %v18070_v30  ;;  %v14617_v1 = vpop.permute.xlu0 %5273  ;;  %v6657_v60 = vrot.slane %v6656_v32, 1  ;;  %v6468_v38 = vrot.slane %v6467_v53, 1  ;;  %v18074_v30 = vld [vmem:[#allocation100_spill] sm:$0xff] }
 0x3ab   :  { %v6329_v61 = vmul.f32 %v14532_v12, %v18069_v47  ;;  %v6480_v9 = vrot.slane %v6479_v22, 2  ;;  %5417 = vperm.xlu0 %10375, %v18072_v11   ;;  %v14622_v13 = vadd.f32 %v6461_v54, %v6460_v42  ;;  %v6486_v16 = vadd.f32 %v6485_v5, %v6484_v35 }
 0x3ac   :  { %v6339_v57 = vmul.f32 %v14587_v23, %v18071_v56  ;;  %v6492_v10 = vrot.slane %v6491_v37, 4  ;;  %v6664_v56 = vrot.slane %v6663_v27, 1  ;;  %v6474_v59 = vadd.f32 %v6473_v21, %v6472_v36  ;;  %v18086_v36 = vld [vmem:[#allocation62_spill] sm:$0xff] }
 0x3ad   :  { %18073 = vst [vmem:[#allocation203_spill] sm:$0xff] %v14622_v13  ;;  %v14626_v47 = vpop.permute.xlu1 %5123  ;;  %5306 = vperm.xlu1 %10376, %v18074_v30   ;;  %v6523_v7 = vadd.f32 %v6522_v50, %v6521_v8  ;;  %v6536_v19 = vrot.slane %v6535_v41, 2  ;;  %v6542_v24 = vadd.f32 %v6541_v43, %v6540_v14  ;;  %v6547_v42 = vsel %vm2719_vm0, %v6329_v61, 0.0  ;;  %v18078_v8 = vld [vmem:[#allocation177_spill] sm:$0xff]  ;;  %v18079_v30 = vld [vmem:[#allocation58_spill] sm:$0xff]  ;;  %v18081_v61 = vld [vmem:[#allocation48_spill] sm:$0xff] }
 0x3ae   :  { %v6617_v54 = vsel %vm2719_vm0, %v6339_v57, 0.0  ;;  %v14633_v11 = vpop.permute.xlu0 %5276  ;;  %v14635_v35 = vadd.f32 %v6657_v60, %v6656_v32  ;;  %v14637_v5 = vadd.f32 %v6468_v38, %v6467_v53  ;;  %v6481_v52 = vadd.f32 %v6480_v9, %v6479_v22  ;;  %v18083_v53 = vld [vmem:[#allocation113_spill] sm:$0xff]  ;;  %v18089_v13 = vld [vmem:[#allocation104_spill] sm:$0xff] }
 0x3af   :  { %18075 = vst [vmem:[#allocation208_spill] sm:$0xff] %v14633_v11  ;;  %5438 = vperm.xlu0 %10375, %v18078_v8   ;;  %v6487_v21 = vrot.slane %v6486_v16, 2  ;;  %v6493_v50 = vadd.f32 %v6492_v10, %v6491_v37  ;;  %v18080_v14 = vunpack.c.l.bf16 %v18079_v30  ;;  %v18082_v57 = vunpack.c.l.bf16 %v18081_v61 }
 0x3b0   :  { %18076 = vst [vmem:[#allocation209_spill] sm:$0xff] %v14635_v35  ;;  %18077 = vst [vmem:[#allocation210_spill] sm:$0xff] %v14637_v5  ;;  %v6475_v22 = vrot.slane %v6474_v59, 1  ;;  %v6548_v38 = vrot.slane %v6547_v42, 4  ;;  %v6618_v9 = vrot.slane %v6617_v54, 4  ;;  %v14653_v8 = vadd.f32 %v6664_v56, %v6663_v27  ;;  %v18088_v5 = vld [vmem:[#allocation165_spill] sm:$0xff] }
 0x3b1   :  { %v6363_v43 = vmul.f32 %v14555_v29, %v18080_v14  ;;  %v6341_v48 = vmul.f32 %v14607_v58, %v18082_v57  ;;  %v14648_v32 = vpop.permute.xlu1 %5126  ;;  %5309 = vperm.xlu1 %10376, %v18083_v53   ;;  %v6524_v37 = vrot.slane %v6523_v7, 1  ;;  %v6537_v10 = vadd.f32 %v6536_v19, %v6535_v41 }
 0x3b2   :  { %18084 = vst [vmem:[#allocation211_spill] sm:$0xff] %v14653_v8  ;;  %v6543_v30 = vrot.slane %v6542_v24, 2  ;;  %v14655_v14 = vpop.permute.xlu0 %5279  ;;  %v6482_v61 = vrot.slane %v6481_v52, 1  ;;  %v5585_v53 = vrot.slane %v14587_v23, %v17982_v4  ;;  %v18087_v35 = vunpack.c.l.bf16 %v18086_v36 }
 0x3b3   :  { %18085 = vst [vmem:[#allocation214_spill] sm:$0xff] %v14655_v14  ;;  %5420 = vperm.xlu0 %10375, %v18088_v5   ;;  %v6488_v27 = vadd.f32 %v6487_v21, %v6486_v16  ;;  %v6494_v56 = vrot.slane %v6493_v50, 2  ;;  %v6785_v19 = vsel %vm2719_vm0, %v6363_v43, 0.0  ;;  %v6631_v41 = vsel %vm2719_vm0, %v6341_v48, 0.0 }
 0x3b4   :  { %v6347_v60 = vmul.f32 %v14577_v49, %v18087_v35  ;;  %v14670_v57 = vadd.f32 %v6475_v22, %v6474_v59  ;;  %v6549_v46 = vadd.f32 %v6548_v38, %v6547_v42  ;;  %v6619_v23 = vadd.f32 %v6618_v9, %v6617_v54 }
 0x3b5   :  { %v14667_v8 = vpop.permute.xlu1 %5129  ;;  %5312 = vperm.xlu1 %10376, %v18089_v13   ;;  %v18092_v36 = vunpack.c.l.bf16 %v18091_v28  ;;  %v14675_v6 = vadd.f32 %v6524_v37, %v6523_v7  ;;  %v6538_v16 = vrot.slane %v6537_v10, 1  ;;  %v6544_v5 = vadd.f32 %v6543_v30, %v6542_v24  ;;  %v18095_v13 = vld [vmem:[#allocation74_spill] sm:$0xff]  ;;  %v18097_v28 = vld [vmem:[#allocation167_spill] sm:$0xff] }
 0x3b6   :  { %18090 = vst [vmem:[#allocation215_spill] sm:$0xff] %v14670_v57  ;;  %v14679_v48 = vpop.permute.xlu0 %5282  ;;  %v6786_v43 = vrot.slane %v6785_v19, 4  ;;  %v6632_v63 = vrot.slane %v6631_v41, 4  ;;  %v6673_v59 = vsel %vm2719_vm0, %v6347_v60, 0.0  ;;  %v18096_v42 = vunpack.c.l.bf16 %v18095_v13  ;;  %v18100_v30 = vld [vmem:[#allocation158_spill] sm:$0xff] }
 0x3b7   :  { %v6322_v35 = vmul.f32 %v14626_v47, %v18092_v36  ;;  %18093 = vst [vmem:[#allocation216_spill] sm:$0xff] %v14675_v6  ;;  %18094 = vst [vmem:[#allocation217_spill] sm:$0xff] %v14679_v48  ;;  %5423 = vperm.xlu0 %10375, %v18097_v28   ;;  %v14686_v22 = vadd.f32 %v6482_v61, %v6481_v52  ;;  %v6489_v7 = vrot.slane %v6488_v27, 1  ;;  %v6550_v60 = vrot.slane %v6549_v46, 2  ;;  %v18104_v28 = vld [vmem:[#allocation79_spill] sm:$0xff]  ;;  %v18126_v6 = vld [vmem:[#allocation81_spill] sm:$0xff] }
 0x3b8   :  { %v6371_v54 = vmul.f32 %v14598_v15, %v18096_v42  ;;  %v6495_v38 = vadd.f32 %v6494_v56, %v6493_v50  ;;  %v18099_v24 = vrot.slane %v14317_v34, %v17982_v4  ;;  %v6620_v36 = vrot.slane %v6619_v23, 2  ;;  %v18101_v42 = vld [vmem:[#allocation46_spill] sm:$0xff] }
 0x3b9   :  { %18098 = vst [vmem:[#allocation218_spill] sm:$0xff] %v14686_v22  ;;  %v14692_v37 = vpop.permute.xlu1 %5135  ;;  %5363 = vperm.xlu1 %10376, %v18100_v30   ;;  %v6498_v13 = vsel %vm2719_vm0, %v6322_v35, 0.0  ;;  %v18102_v21 = vunpack.c.l.bf16 %v18101_v42  ;;  %v14699_v61 = vadd.f32 %v6538_v16, %v6537_v10  ;;  %v6545_v50 = vrot.slane %v6544_v5, 1  ;;  %v18107_v42 = vld [vmem:[#allocation169_spill] sm:$0xff]  ;;  %v18111_v10 = vld [vmem:[#allocation51_spill] sm:$0xff] }
 0x3ba   :  { %v6015_v9 = vsel %vm3746_vm1, %v5585_v53, %v18099_v24  ;;  %v6674_v56 = vrot.slane %v6673_v59, 4  ;;  %v18105_v34 = vunpack.c.l.bf16 %v18104_v28  ;;  %v14704_v24 = vpop.permute.xlu0 %5285  ;;  %v6787_v22 = vadd.f32 %v6786_v43, %v6785_v19  ;;  %v18110_v43 = vld [vmem:[#allocation121_spill] sm:$0xff] }
 0x3bb   :  { %v6323_v52 = vmul.f32 %v14648_v32, %v18102_v21  ;;  %18103 = vst [vmem:[#allocation225_spill] sm:$0xff] %v14699_v61  ;;  %18106 = vst [vmem:[#allocation220_spill] sm:$0xff] %v14704_v24  ;;  %v5593_v30 = vrot.slane %v14607_v58, %v17982_v4  ;;  %v6633_v57 = vadd.f32 %v6632_v63, %v6631_v41  ;;  %v6841_v35 = vsel %vm2719_vm0, %v6371_v54, 0.0 }
 0x3bc   :  { %v6372_v53 = vmul.f32 %v14617_v1, %v18105_v34  ;;  %5426 = vperm.xlu0 %10375, %v18107_v42   ;;  %v14710_v21 = vadd.f32 %v6489_v7, %v6488_v27  ;;  %v18109_v16 = vrot.slane %v14341_v26, %v17982_v4  ;;  %v6499_v34 = vrot.slane %v6498_v13, 4 }
 0x3bd   :  { %v14718_v19 = vpop.permute.xlu1 %5243  ;;  %5315 = vperm.xlu1 %10376, %v18110_v43   ;;  %v6496_v63 = vrot.slane %v6495_v38, 1  ;;  %v6551_v58 = vadd.f32 %v6550_v60, %v6549_v46  ;;  %v6621_v41 = vadd.f32 %v6620_v36, %v6619_v23  ;;  %v6505_v54 = vsel %vm2719_vm0, %v6323_v52, 0.0  ;;  %v18116_v23 = vld [vmem:[#allocation183_spill] sm:$0xff]  ;;  %v18117_v52 = vld [vmem:[#allocation80_spill] sm:$0xff] }
 0x3be   :  { %18108 = vst [vmem:[#allocation227_spill] sm:$0xff] %v14710_v21  ;;  %v6016_v28 = vsel %vm3748_vm2, %v18109_v16, %v6015_v9  ;;  %v6675_v27 = vadd.f32 %v6674_v56, %v6673_v59  ;;  %v6842_v7 = vrot.slane %v6841_v35, 4  ;;  %v6848_v42 = vsel %vm2719_vm0, %v6372_v53, 0.0  ;;  %v14726_v61 = vpop.permute.xlu0 %5288 }
 0x3bf   :  { %v18112_v21 = vunpack.c.l.bf16 %v18111_v10  ;;  %18113 = vst [vmem:[#allocation228_spill] sm:$0xff] %v14726_v61  ;;  %v14728_v9 = vadd.f32 %v6545_v50, %v6544_v5  ;;  %v6788_v16 = vrot.slane %v6787_v22, 2  ;;  %v14731_v43 = vsel %vm3750_vm3, %v5593_v30, %v6016_v28  ;;  %v18119_v5 = vld [vmem:[#allocation132_spill] sm:$0xff] }
 0x3c0   :  { %18115 = vst [vmem:[#allocation219_spill] sm:$0xff] %v14731_v43  ;;  %v6634_v46 = vrot.slane %v6633_v57, 2  ;;  %5429 = vperm.xlu0 %10375, %v18116_v23   ;;  %v6500_v60 = vadd.f32 %v6499_v34, %v6498_v13  ;;  %v6506_v36 = vrot.slane %v6505_v54, 4  ;;  %v18118_v56 = vunpack.c.l.bf16 %v18117_v52  ;;  %v18122_v43 = vld [vmem:[#allocation53_spill] sm:$0xff] }
 0x3c1   :  { %v6324_v26 = vmul.f32 %v14667_v8, %v18112_v21  ;;  %18114 = vst [vmem:[#allocation222_spill] sm:$0xff] %v14728_v9  ;;  %v14739_v21 = vpop.permute.xlu1 %5249  ;;  %5387 = vperm.xlu1 %10376, %v18119_v5   ;;  %v14742_v50 = vadd.f32 %v6496_v63, %v6495_v38  ;;  %v6552_v30 = vrot.slane %v6551_v58, 1  ;;  %v5517_v10 = vrot.slane %v14626_v47, %v17982_v4  ;;  %v18121_v63 = vld [vmem:[#allocation157_spill] sm:$0xff] }
 0x3c2   :  { %v6373_v53 = vmul.f32 %v14633_v11, %v18118_v56  ;;  %v6849_v28 = vrot.slane %v6848_v42, 4  ;;  %v6622_v23 = vrot.slane %v6621_v41, 1  ;;  %v6676_v9 = vrot.slane %v6675_v27, 2  ;;  %v14747_v34 = vpop.permute.xlu0 %5222 }
 0x3c3   :  { %18120 = vst [vmem:[#allocation221_spill] sm:$0xff] %v14742_v50  ;;  %v6843_v59 = vadd.f32 %v6842_v7, %v6841_v35  ;;  %v6512_v13 = vsel %vm2719_vm0, %v6324_v26, 0.0  ;;  %v6789_v52 = vadd.f32 %v6788_v16, %v6787_v22  ;;  %v6635_v56 = vadd.f32 %v6634_v46, %v6633_v57  ;;  %v18124_v22 = vld [vmem:[#allocation127_spill] sm:$0xff] }
 0x3c4   :  { %v5521_v38 = vrot.slane %v14648_v32, %v17982_v4  ;;  %5432 = vperm.xlu0 %10375, %v18121_v63   ;;  %v6501_v5 = vrot.slane %v6500_v60, 2  ;;  %v6507_v47 = vadd.f32 %v6506_v36, %v6505_v54  ;;  %v6855_v50 = vsel %vm2719_vm0, %v6373_v53, 0.0  ;;  %v18129_v53 = vld [vmem:[#allocation57_spill] sm:$0xff] }
 0x3c5   :  { %v18123_v35 = vunpack.c.l.bf16 %v18122_v43  ;;  %v14758_v26 = vpop.permute.xlu1 %5252  ;;  %5393 = vperm.xlu1 %10376, %v18124_v22   ;;  %v14761_v57 = vadd.f32 %v6552_v30, %v6551_v58  ;;  %v6850_v16 = vadd.f32 %v6849_v28, %v6848_v42  ;;  %v6513_v46 = vrot.slane %v6512_v13, 4  ;;  %v18131_v28 = vld [vmem:[#allocation184_spill] sm:$0xff] }
 0x3c6   :  { %v18127_v32 = vunpack.c.l.bf16 %v18126_v6  ;;  %v14766_v31 = vadd.f32 %v6622_v23, %v6621_v41  ;;  %v6677_v54 = vadd.f32 %v6676_v9, %v6675_v27  ;;  %v6844_v36 = vrot.slane %v6843_v59, 2  ;;  %v14771_v3 = vpop.permute.xlu0 %5225 }
 0x3c7   :  { %v6326_v7 = vmul.f32 %v14692_v37, %v18123_v35  ;;  %18125 = vst [vmem:[#allocation226_spill] sm:$0xff] %v14761_v57  ;;  %v18130_v43 = vunpack.c.l.bf16 %v18129_v53  ;;  %v6790_v55 = vrot.slane %v6789_v52, 1  ;;  %v6636_v22 = vrot.slane %v6635_v56, 1 }
 0x3c8   :  { %v6374_v63 = vmul.f32 %v14655_v14, %v18127_v32  ;;  %18128 = vst [vmem:[#allocation229_spill] sm:$0xff] %v14766_v31  ;;  %v6001_v58 = vsel %vm3746_vm1, %v5521_v38, %v5517_v10  ;;  %v6856_v42 = vrot.slane %v6855_v50, 4  ;;  %5462 = vperm.xlu0 %10375, %v14439_v17   ;;  %v6502_v6 = vadd.f32 %v6501_v5, %v6500_v60  ;;  %v18132_v60 = vld [vmem:[#allocation82_spill] sm:$0xff] }
 0x3c9   :  { %v6362_v35 = vmul.f32 %v14718_v19, %v18130_v43  ;;  %v6508_v30 = vrot.slane %v6507_v47, 2  ;;  %v5525_v41 = vrot.slane %v14667_v8, %v17982_v4  ;;  %v6526_v27 = vsel %vm2719_vm0, %v6326_v7, 0.0  ;;  %v14778_v9 = vpop.permute.xlu1 %5255  ;;  %5396 = vperm.xlu1 %10376, %v18131_v28  }
 0x3ca   :  { %v6851_v23 = vrot.slane %v6850_v16, 2  ;;  %v6514_v32 = vadd.f32 %v6513_v46, %v6512_v13  ;;  %v6862_v53 = vsel %vm2719_vm0, %v6374_v63, 0.0  ;;  %v6678_v38 = vrot.slane %v6677_v54, 1  ;;  %v14788_v7 = vpop.permute.xlu0 %5228  ;;  %v18136_v13 = vld [vmem:[#allocation63_spill] sm:$0xff] }
 0x3cb   :  { %v6778_v10 = vsel %vm2719_vm0, %v6362_v35, 0.0  ;;  %v6845_v43 = vadd.f32 %v6844_v36, %v6843_v59  ;;  %v18133_v5 = vunpack.c.l.bf16 %v18132_v60  ;;  %18134 = vst [vmem:[#allocation235_spill] sm:$0xff] %v14788_v7  ;;  %v14790_v31 = vadd.f32 %v6790_v55, %v6789_v52 }
 0x3cc   :  { %v6857_v28 = vadd.f32 %v6856_v42, %v6855_v50  ;;  %v6527_v57 = vrot.slane %v6526_v27, 4  ;;  %v18137_v46 = vunpack.c.l.bf16 %v18136_v13  ;;  %5465 = vperm.xlu0 %10375, %v14447_v25   ;;  %v14796_v59 = vadd.f32 %v6636_v22, %v6635_v56 }
 0x3cd   :  { %v6375_v8 = vmul.f32 %v14679_v48, %v18133_v5  ;;  %18135 = vst [vmem:[#allocation224_spill] sm:$0xff] %v14790_v31  ;;  %v6503_v36 = vrot.slane %v6502_v6, 1  ;;  %v6863_v35 = vrot.slane %v6862_v53, 4  ;;  %v6779_v17 = vrot.slane %v6778_v10, 4  ;;  %v14798_v60 = vpop.permute.xlu1 %5258  ;;  %v18140_v5 = vld [vmem:[#allocation129_spill] sm:$0xff] }
 0x3ce   :  { %v6364_v63 = vmul.f32 %v14739_v21, %v18137_v46  ;;  %18138 = vst [vmem:[#allocation223_spill] sm:$0xff] %v14796_v59  ;;  %18139 = vst [vmem:[#allocation230_spill] sm:$0xff] %v14798_v60  ;;  %5399 = vperm.xlu1 %10376, %v18140_v5   ;;  %v6509_v18 = vadd.f32 %v6508_v30, %v6507_v47  ;;  %v6852_v55 = vadd.f32 %v6851_v23, %v6850_v16  ;;  %v14807_v22 = vpop.permute.xlu0 %5231  ;;  %v18143_v5 = vld [vmem:[#allocation87_spill] sm:$0xff] }
 0x3cf   :  { %v6002_v50 = vsel %vm3748_vm2, %v5525_v41, %v6001_v58  ;;  %v6515_v52 = vrot.slane %v6514_v32, 2  ;;  %v14802_v42 = vadd.f32 %v6678_v38, %v6677_v54  ;;  %v6846_v13 = vrot.slane %v6845_v43, 1  ;;  %18142 = vst [vmem:[#allocation27_spill] sm:$0xff] %v14807_v22  ;;  %v18147_v38 = vld [vmem:[#allocation136_spill] sm:$0xff] }
 0x3d0   :  { %v6869_v56 = vsel %vm2719_vm0, %v6375_v8, 0.0  ;;  %v6858_v46 = vrot.slane %v6857_v28, 2  ;;  %v6528_v31 = vadd.f32 %v6527_v57, %v6526_v27  ;;  %v6792_v59 = vsel %vm2719_vm0, %v6364_v63, 0.0  ;;  %5468 = vperm.xlu0 %10375, %v14456_v40  }
 0x3d1   :  { %18141 = vst [vmem:[#allocation236_spill] sm:$0xff] %v14802_v42  ;;  %v18144_v47 = vunpack.c.l.bf16 %v18143_v5  ;;  %v14814_v54 = vadd.f32 %v6503_v36, %v6502_v6  ;;  %v5533_v58 = vrot.slane %v14692_v37, %v17982_v4  ;;  %v6864_v30 = vadd.f32 %v6863_v35, %v6862_v53  ;;  %v14818_v23 = vpop.permute.xlu1 %5261 }
 0x3d2   :  { %v6780_v41 = vadd.f32 %v6779_v17, %v6778_v10  ;;  %18146 = vst [vmem:[#allocation238_spill] sm:$0xff] %v14818_v23  ;;  %5402 = vperm.xlu1 %10376, %v18147_v38   ;;  %v6510_v57 = vrot.slane %v6509_v18, 1  ;;  %v6853_v27 = vrot.slane %v6852_v55, 1  ;;  %v6516_v8 = vadd.f32 %v6515_v52, %v6514_v32  ;;  %v14830_v10 = vpop.permute.xlu0 %5234 }
 0x3d3   :  { %v6376_v16 = vmul.f32 %v14704_v24, %v18144_v47  ;;  %18145 = vst [vmem:[#allocation232_spill] sm:$0xff] %v14814_v54  ;;  %v6870_v63 = vrot.slane %v6869_v56, 4  ;;  %v14821_v5 = vadd.f32 %v6846_v13, %v6845_v43  ;;  %v18149_v40 = vrot.slane %v14459_v45, %v17982_v4  ;;  %v18150_v47 = vld [vmem:[#allocation64_spill] sm:$0xff]  ;;  %18152 = vst [vmem:[#allocation241_spill] sm:$0xff] %v14830_v10 }
 0x3d4   :  { %v6793_v36 = vrot.slane %v6792_v59, 4  ;;  %v18151_v37 = vunpack.c.l.bf16 %v18150_v47  ;;  %v6859_v17 = vadd.f32 %v6858_v46, %v6857_v28  ;;  %v6529_v35 = vrot.slane %v6528_v31, 2  ;;  %5471 = vperm.xlu0 %10375, %v14466_v44  }
 0x3d5   :  { %18148 = vst [vmem:[#allocation239_spill] sm:$0xff] %v14821_v5  ;;  %v6003_v6 = vsel %vm3750_vm3, %v18149_v40, %v6002_v50  ;;  %v5677_v32 = vrot.slane %v14718_v19, %v17982_v4  ;;  %v6876_v43 = vsel %vm2719_vm0, %v6376_v16, 0.0  ;;  %v6865_v52 = vrot.slane %v6864_v30, 2  ;;  %v14841_v38 = vpop.permute.xlu1 %5264  ;;  %v18154_v40 = vld [vmem:[#allocation139_spill] sm:$0xff] }
 0x3d6   :  { %v6365_v53 = vmul.f32 %v14758_v26, %v18151_v37  ;;  %v14837_v45 = vsel %vm3752_vm4, %v5533_v58, %v6003_v6  ;;  %v6781_v13 = vrot.slane %v6780_v41, 2  ;;  %18153 = vst [vmem:[#allocation32_spill] sm:$0xff] %v14841_v38  ;;  %5405 = vperm.xlu1 %10376, %v18154_v40   ;;  %v14844_v28 = vadd.f32 %v6510_v57, %v6509_v18  ;;  %v18157_v6 = vld [vmem:[#allocation88_spill] sm:$0xff]  ;;  %v14852_v25 = vpop.permute.xlu0 %5237 }
 0x3d7   :  { %v14846_v46 = vadd.f32 %v6853_v27, %v6852_v55  ;;  %v6517_v19 = vrot.slane %v6516_v8, 1  ;;  %v6871_v16 = vadd.f32 %v6870_v63, %v6869_v56  ;;  %v6794_v47 = vadd.f32 %v6793_v36, %v6792_v59  ;;  %18159 = vst [vmem:[#allocation231_spill] sm:$0xff] %v14852_v25  ;;  %v18161_v63 = vld [vmem:[#allocation65_spill] sm:$0xff] }
 0x3d8   :  { %18155 = vst [vmem:[#allocation28_spill] sm:$0xff] %v14844_v28  ;;  %v6877_v44 = vrot.slane %v6876_v43, 4  ;;  %v6799_v58 = vsel %vm2719_vm0, %v6365_v53, 0.0  ;;  %v18158_v37 = vunpack.c.l.bf16 %v18157_v6  ;;  %v6860_v5 = vrot.slane %v6859_v17, 1  ;;  %5474 = vperm.xlu0 %10375, %v14473_v62  }
 0x3d9   :  { %18156 = vst [vmem:[#allocation234_spill] sm:$0xff] %v14846_v46  ;;  %v6530_v42 = vadd.f32 %v6529_v35, %v6528_v31  ;;  %v18160_v18 = vrot.slane %v14555_v29, %v17982_v4  ;;  %v5685_v56 = vrot.slane %v14739_v21, %v17982_v4  ;;  %v6866_v59 = vadd.f32 %v6865_v52, %v6864_v30  ;;  %v14866_v31 = vpop.permute.xlu1 %5195  ;;  %v18163_v35 = vld [vmem:[#allocation186_spill] sm:$0xff]  ;;  %v18174_v46 = vld [vmem:[#allocation71_spill] sm:$0xff] }
 0x3da   :  { %v6377_v50 = vmul.f32 %v14726_v61, %v18158_v37  ;;  %v6782_v57 = vadd.f32 %v6781_v13, %v6780_v41  ;;  %v18162_v36 = vunpack.c.l.bf16 %v18161_v63  ;;  %5408 = vperm.xlu1 %10376, %v18163_v35   ;;  %v14869_v29 = vadd.f32 %v6517_v19, %v6516_v8  ;;  %v18165_v21 = vld [vmem:[#allocation78_spill] sm:$0xff]  ;;  %v14878_v63 = vpop.permute.xlu0 %5240 }
 0x3db   :  { %v6036_v55 = vsel %vm3746_vm1, %v18160_v18, %v5677_v32  ;;  %v6872_v32 = vrot.slane %v6871_v16, 2  ;;  %v6800_v40 = vrot.slane %v6799_v58, 4  ;;  %v18166_v6 = vunpack.c.l.bf16 %v18165_v21  ;;  %v18167_v13 = vld [vmem:[#allocation66_spill] sm:$0xff]  ;;  %18169 = vst [vmem:[#allocation159_spill] sm:$0xff] %v14878_v63 }
 0x3dc   :  { %v6366_v53 = vmul.f32 %v14778_v9, %v18162_v36  ;;  %18164 = vst [vmem:[#allocation31_spill] sm:$0xff] %v14869_v29  ;;  %v6795_v30 = vrot.slane %v6794_v47, 2  ;;  %v6878_v41 = vadd.f32 %v6877_v44, %v6876_v43  ;;  %v6883_v52 = vsel %vm2719_vm0, %v6377_v50, 0.0  ;;  %5477 = vperm.xlu0 %10375, %v14498_v39   ;;  %v18171_v44 = vld [vmem:[#allocation83_spill] sm:$0xff] }
 0x3dd   :  { %v6355_v62 = vmul.f32 %v14747_v34, %v18166_v6  ;;  %v18168_v37 = vunpack.c.l.bf16 %v18167_v13  ;;  %v14880_v36 = vadd.f32 %v6860_v5, %v6859_v17  ;;  %v6531_v8 = vrot.slane %v6530_v42, 1  ;;  %v18173_v5 = vld [vmem:[#allocation147_spill] sm:$0xff] }
 0x3de   :  { %v6037_v19 = vsel %vm3748_vm2, %v5685_v56, %v6036_v55  ;;  %v5689_v35 = vrot.slane %v14758_v26, %v17982_v4  ;;  %v6867_v21 = vrot.slane %v6866_v59, 1  ;;  %v6783_v43 = vrot.slane %v6782_v57, 1  ;;  %5411 = vperm.xlu1 %10376, %v18173_v5  }
 0x3df   :  { %v6367_v18 = vmul.f32 %v14798_v60, %v18168_v37  ;;  %18170 = vst [vmem:[#allocation237_spill] sm:$0xff] %v14880_v36  ;;  %v6806_v50 = vsel %vm2719_vm0, %v6366_v53, 0.0  ;;  %v18172_v6 = vunpack.c.l.bf16 %v18171_v44  ;;  %v14890_v37 = vpop.permute.xlu1 %5201  ;;  %v6801_v17 = vadd.f32 %v6800_v40, %v6799_v58  ;;  %v14898_v44 = vpop.permute.xlu0 %5342 }
 0x3e0   :  { %v6884_v27 = vrot.slane %v6883_v52, 4  ;;  %v6729_v55 = vsel %vm2719_vm0, %v6355_v62, 0.0  ;;  %v6873_v56 = vadd.f32 %v6872_v32, %v6871_v16  ;;  %v6796_v39 = vadd.f32 %v6795_v30, %v6794_v47  ;;  %5480 = vperm.xlu0 %10375, %v14519_v20   ;;  %v18177_v32 = vld [vmem:[#allocation84_spill] sm:$0xff] }
 0x3e1   :  { %v6356_v13 = vmul.f32 %v14771_v3, %v18172_v6  ;;  %v6813_v26 = vsel %vm2719_vm0, %v6367_v18, 0.0  ;;  %v6879_v36 = vrot.slane %v6878_v41, 2  ;;  %v18175_v29 = vunpack.c.l.bf16 %v18174_v46 }
 0x3e2   :  { %v14900_v6 = vadd.f32 %v6531_v8, %v6530_v42  ;;  %v6038_v58 = vsel %vm3750_vm3, %v5689_v35, %v6037_v19  ;;  %v6807_v40 = vrot.slane %v6806_v50, 4  ;;  %v6730_v62 = vrot.slane %v6729_v55, 4  ;;  %v18179_v42 = vld [vmem:[#allocation171_spill] sm:$0xff] }
 0x3e3   :  { %v6368_v53 = vmul.f32 %v14818_v23, %v18175_v29  ;;  %v6814_v16 = vrot.slane %v6813_v26, 4  ;;  %v6736_v47 = vsel %vm2719_vm0, %v6356_v13, 0.0  ;;  %v18178_v46 = vunpack.c.l.bf16 %v18177_v32  ;;  %v14910_v30 = vpop.permute.xlu1 %5204  ;;  %5435 = vperm.xlu1 %10376, %v18179_v42  }
 0x3e4   :  { %18176 = vst [vmem:[#allocation233_spill] sm:$0xff] %v14900_v6  ;;  %v14913_v18 = vadd.f32 %v6867_v21, %v6866_v59  ;;  %v14915_v8 = vadd.f32 %v6783_v43, %v6782_v57  ;;  %v6802_v19 = vrot.slane %v6801_v17, 2  ;;  %v6885_v35 = vadd.f32 %v6884_v27, %v6883_v52 }
 0x3e5   :  { %v6357_v29 = vmul.f32 %v14788_v7, %v18178_v46  ;;  %v6874_v5 = vrot.slane %v6873_v56, 1  ;;  %v6797_v20 = vrot.slane %v6796_v39, 1  ;;  %v6880_v6 = vadd.f32 %v6879_v36, %v6878_v41  ;;  %v18182_v46 = vld [vmem:[#allocation72_spill] sm:$0xff]  ;;  %v18184_v41 = vld [vmem:[#allocation185_spill] sm:$0xff]  ;;  %v14929_v36 = vpop.permute.xlu0 %5294 }
 0x3e6   :  { %18180 = vst [vmem:[#allocation240_spill] sm:$0xff] %v14913_v18  ;;  %18181 = vst [vmem:[#allocation26_spill] sm:$0xff] %v14915_v8  ;;  %v6820_v28 = vsel %vm2719_vm0, %v6368_v53, 0.0  ;;  %v6808_v13 = vadd.f32 %v6807_v40, %v6806_v50  ;;  %v6737_v54 = vrot.slane %v6736_v47, 4  ;;  %v18183_v24 = vunpack.c.l.bf16 %v18182_v46  ;;  %v18191_v53 = vld [vmem:[#allocation61_spill] sm:$0xff] }
 0x3e7   :  { %v6743_v32 = vsel %vm2719_vm0, %v6357_v29, 0.0  ;;  %v5693_v57 = vrot.slane %v14778_v9, %v17982_v4  ;;  %v6731_v27 = vadd.f32 %v6730_v62, %v6729_v55  ;;  %v6815_v52 = vadd.f32 %v6814_v16, %v6813_v26  ;;  %v14926_v21 = vpop.permute.xlu1 %5207  ;;  %5441 = vperm.xlu1 %10376, %v18184_v41   ;;  %18185 = vst [vmem:[#allocation99_spill] sm:$0xff] %v14929_v36  ;;  %v18188_v9 = vld [vmem:[#allocation85_spill] sm:$0xff] }
 0x3e8   :  { %v6369_v48 = vmul.f32 %v14841_v38, %v18183_v24  ;;  %v6803_v43 = vadd.f32 %v6802_v19, %v6801_v17  ;;  %v6886_v50 = vrot.slane %v6885_v35, 2  ;;  %v6821_v24 = vrot.slane %v6820_v28, 4 }
 0x3e9   :  { %v14933_v40 = vadd.f32 %v6874_v5, %v6873_v56  ;;  %v14935_v29 = vadd.f32 %v6797_v20, %v6796_v39  ;;  %v6744_v42 = vrot.slane %v6743_v32, 4  ;;  %v18189_v55 = vunpack.c.l.bf16 %v18188_v9  ;;  %v18193_v20 = vld [vmem:[#allocation123_spill] sm:$0xff]  ;;  %v14956_v8 = vpop.permute.xlu0 %5366 }
 0x3ea   :  { %v6881_v62 = vrot.slane %v6880_v6, 1  ;;  %v6809_v16 = vrot.slane %v6808_v13, 2  ;;  %v6738_v46 = vadd.f32 %v6737_v54, %v6736_v47  ;;  %v6827_v41 = vsel %vm2719_vm0, %v6369_v48, 0.0 }
 0x3eb   :  { %18186 = vst [vmem:[#allocation33_spill] sm:$0xff] %v14933_v40  ;;  %18187 = vst [vmem:[#allocation29_spill] sm:$0xff] %v14935_v29  ;;  %v6358_v26 = vmul.f32 %v14807_v22, %v18189_v55  ;;  %v14942_v17 = vsel %vm3752_vm4, %v5693_v57, %v6038_v58  ;;  %v6732_v19 = vrot.slane %v6731_v27, 2  ;;  %v6816_v59 = vrot.slane %v6815_v52, 2  ;;  %v14947_v5 = vpop.permute.xlu1 %5210  ;;  %5444 = vperm.xlu1 %10376, %v18193_v20   ;;  %v18194_v57 = vld [vmem:[#allocation86_spill] sm:$0xff] }
 0x3ec   :  { %18190 = vst [vmem:[#allocation41_spill] sm:$0xff] %v14942_v17  ;;  %v18192_v56 = vunpack.c.l.bf16 %v18191_v53  ;;  %v6804_v9 = vrot.slane %v6803_v43, 1  ;;  %v6887_v55 = vadd.f32 %v6886_v50, %v6885_v35  ;;  %v6822_v47 = vadd.f32 %v6821_v24, %v6820_v28 }
 0x3ed   :  { %v6745_v48 = vadd.f32 %v6744_v42, %v6743_v32  ;;  %v6828_v40 = vrot.slane %v6827_v41, 4  ;;  %v6750_v58 = vsel %vm2719_vm0, %v6358_v26, 0.0  ;;  %v18195_v18 = vunpack.c.l.bf16 %v18194_v57  ;;  %v18197_v32 = vld [vmem:[#allocation67_spill] sm:$0xff] }
 0x3ee   :  { %v6346_v39 = vmul.f32 %v14866_v31, %v18192_v56  ;;  %v14958_v56 = vadd.f32 %v6881_v62, %v6880_v6  ;;  %v6810_v29 = vadd.f32 %v6809_v16, %v6808_v13  ;;  %v6739_v50 = vrot.slane %v6738_v46, 2  ;;  %v18201_v13 = vld [vmem:[#allocation141_spill] sm:$0xff] }
 0x3ef   :  { %v6359_v53 = vmul.f32 %v14830_v10, %v18195_v18  ;;  %v6733_v20 = vadd.f32 %v6732_v19, %v6731_v27  ;;  %v6817_v54 = vadd.f32 %v6816_v59, %v6815_v52  ;;  %v18198_v24 = vunpack.c.l.bf16 %v18197_v32  ;;  %v14966_v26 = vpop.permute.xlu1 %5213  ;;  %v18199_v18 = vld [vmem:[#allocation151_spill] sm:$0xff]  ;;  %v18246_v10 = vld [vmem:[#allocation77_spill] sm:$0xff] }
 0x3f0   :  { %18196 = vst [vmem:[#allocation34_spill] sm:$0xff] %v14958_v56  ;;  %v6666_v28 = vsel %vm2719_vm0, %v6346_v39, 0.0  ;;  %5447 = vperm.xlu1 %10376, %v18199_v18   ;;  %v14969_v57 = vadd.f32 %v6804_v9, %v6803_v43  ;;  %v6888_v6 = vrot.slane %v6887_v55, 1  ;;  %v6751_v62 = vrot.slane %v6750_v58, 4 }
 0x3f1   :  { %v6348_v42 = vmul.f32 %v14890_v37, %v18198_v24  ;;  %v6823_v16 = vrot.slane %v6822_v47, 2  ;;  %v6746_v27 = vrot.slane %v6745_v48, 2  ;;  %v6829_v59 = vadd.f32 %v6828_v40, %v6827_v41  ;;  %v14982_v40 = vpop.permute.xlu0 %5369 }
 0x3f2   :  { %18200 = vst [vmem:[#allocation47_spill] sm:$0xff] %v14969_v57  ;;  %v6757_v52 = vsel %vm2719_vm0, %v6359_v53, 0.0  ;;  %v6811_v19 = vrot.slane %v6810_v29, 1  ;;  %v6740_v39 = vadd.f32 %v6739_v50, %v6738_v46  ;;  %v6667_v32 = vrot.slane %v6666_v28, 4  ;;  %v18203_v50 = vld [vmem:[#allocation91_spill] sm:$0xff] }
 0x3f3   :  { %v6680_v24 = vsel %vm2719_vm0, %v6348_v42, 0.0  ;;  %v6734_v35 = vrot.slane %v6733_v20, 1  ;;  %v6818_v56 = vrot.slane %v6817_v54, 1  ;;  %v14979_v18 = vpop.permute.xlu1 %5216  ;;  %v14984_v41 = vadd.f32 %v6888_v6, %v6887_v55  ;;  %v18208_v6 = vld [vmem:[#allocation68_spill] sm:$0xff] }
 0x3f4   :  { %5450 = vperm.xlu1 %10376, %v18201_v13   ;;  %v6752_v46 = vadd.f32 %v6751_v62, %v6750_v58  ;;  %v6758_v53 = vrot.slane %v6757_v52, 4  ;;  %v18204_v42 = vunpack.c.l.bf16 %v18203_v50  ;;  %v6824_v61 = vadd.f32 %v6823_v16, %v6822_v47 }
 0x3f5   :  { %18202 = vst [vmem:[#allocation39_spill] sm:$0xff] %v14984_v41  ;;  %v6747_v14 = vadd.f32 %v6746_v27, %v6745_v48  ;;  %v6830_v43 = vrot.slane %v6829_v59, 2  ;;  %v6681_v11 = vrot.slane %v6680_v24, 4  ;;  %v14989_v7 = vadd.f32 %v6811_v19, %v6810_v29 }
 0x3f6   :  { %v6360_v57 = vmul.f32 %v14852_v25, %v18204_v42  ;;  %v6741_v9 = vrot.slane %v6740_v39, 1  ;;  %v5613_v13 = vrot.slane %v14866_v31, %v17982_v4  ;;  %v6668_v38 = vadd.f32 %v6667_v32, %v6666_v28  ;;  %v18210_v28 = vld [vmem:[#allocation92_spill] sm:$0xff]  ;;  %v15009_v32 = vpop.permute.xlu0 %5372 }
 0x3f7   :  { %18205 = vst [vmem:[#allocation40_spill] sm:$0xff] %v14989_v7  ;;  %v14993_v23 = vadd.f32 %v6734_v35, %v6733_v20  ;;  %v14995_v55 = vadd.f32 %v6818_v56, %v6817_v54  ;;  %v18209_v62 = vunpack.c.l.bf16 %v18208_v6  ;;  %v15002_v48 = vpop.permute.xlu1 %5267  ;;  %v6753_v29 = vrot.slane %v6752_v46, 2 }
 0x3f8   :  { %5459 = vperm.xlu1 %10376, %v14430_v0   ;;  %v6759_v16 = vadd.f32 %v6758_v53, %v6757_v52  ;;  %v6764_v31 = vsel %vm2719_vm0, %v6360_v57, 0.0  ;;  %v18211_v35 = vunpack.c.l.bf16 %v18210_v28  ;;  %v6825_v56 = vrot.slane %v6824_v61, 1  ;;  %v18214_v53 = vld [vmem:[#allocation69_spill] sm:$0xff]  ;;  %v18217_v28 = vld [vmem:[#allocation90_spill] sm:$0xff] }
 0x3f9   :  { %18206 = vst [vmem:[#allocation49_spill] sm:$0xff] %v14993_v23  ;;  %18207 = vst [vmem:[#allocation35_spill] sm:$0xff] %v14995_v55  ;;  %v6349_v47 = vmul.f32 %v14910_v30, %v18209_v62  ;;  %v6748_v20 = vrot.slane %v6747_v14, 1  ;;  %v6831_v27 = vadd.f32 %v6830_v43, %v6829_v59  ;;  %v6682_v19 = vadd.f32 %v6681_v11, %v6680_v24  ;;  %v18216_v43 = vld [vmem:[#allocation188_spill] sm:$0xff] }
 0x3fa   :  { %v6361_v54 = vmul.f32 %v14878_v63, %v18211_v35  ;;  %v15011_v50 = vadd.f32 %v6741_v9, %v6740_v39  ;;  %v18213_v42 = vrot.slane %v14577_v49, %v17982_v4  ;;  %v6669_v52 = vrot.slane %v6668_v38, 2 }
 0x3fb   :  { %v18215_v57 = vunpack.c.l.bf16 %v18214_v53  ;;  %v5621_v11 = vrot.slane %v14890_v37, %v17982_v4  ;;  %v6765_v59 = vrot.slane %v6764_v31, 4  ;;  %v6687_v39 = vsel %vm2719_vm0, %v6349_v47, 0.0  ;;  %v15025_v24 = vpop.permute.xlu1 %5219 }
 0x3fc   :  { %18212 = vst [vmem:[#allocation50_spill] sm:$0xff] %v15011_v50  ;;  %v6022_v0 = vsel %vm3746_vm1, %v18213_v42, %v5613_v13  ;;  %5453 = vperm.xlu1 %10376, %v18216_v43   ;;  %v6754_v49 = vadd.f32 %v6753_v29, %v6752_v46  ;;  %v6760_v9 = vrot.slane %v6759_v16, 2  ;;  %v6771_v13 = vsel %vm2719_vm0, %v6361_v54, 0.0 }
 0x3fd   :  { %v6350_v6 = vmul.f32 %v14926_v21, %v18215_v57  ;;  %v18218_v35 = vunpack.c.l.bf16 %v18217_v28  ;;  %v15032_v53 = vadd.f32 %v6825_v56, %v6824_v61  ;;  %v15034_v57 = vadd.f32 %v6748_v20, %v6747_v14  ;;  %v18221_v28 = vld [vmem:[#allocation70_spill] sm:$0xff]  ;;  %v15043_v56 = vpop.permute.xlu0 %5375 }
 0x3fe   :  { %v6832_v37 = vrot.slane %v6831_v27, 1  ;;  %v6683_v62 = vrot.slane %v6682_v19, 2  ;;  %v6670_v58 = vadd.f32 %v6669_v52, %v6668_v38  ;;  %v5625_v47 = vrot.slane %v14910_v30, %v17982_v4  ;;  %v18223_v20 = vld [vmem:[#allocation190_spill] sm:$0xff] }
 0x3ff   :  { %v6395_v42 = vmul.f32 %v14898_v44, %v18218_v35  ;;  %18219 = vst [vmem:[#allocation30_spill] sm:$0xff] %v15032_v53  ;;  %18220 = vst [vmem:[#allocation55_spill] sm:$0xff] %v15034_v57  ;;  %v6688_v41 = vrot.slane %v6687_v39, 4  ;;  %v6694_v46 = vsel %vm2719_vm0, %v6350_v6, 0.0  ;;  %v6023_v29 = vsel %vm3748_vm2, %v5621_v11, %v6022_v0  ;;  %v15045_v14 = vpop.permute.xlu1 %5339  ;;  %v18224_v35 = vld [vmem:[#allocation94_spill] sm:$0xff] }
 0x400   :  { %v6766_v54 = vadd.f32 %v6765_v59, %v6764_v31  ;;  %v6772_v43 = vrot.slane %v6771_v13, 4  ;;  %v18222_v55 = vunpack.c.l.bf16 %v18221_v28  ;;  %5456 = vperm.xlu1 %10376, %v18223_v20   ;;  %v6755_v38 = vrot.slane %v6754_v49, 1 }
 0x401   :  { %v6761_v52 = vadd.f32 %v6760_v9, %v6759_v16  ;;  %v7009_v30 = vsel %vm2719_vm0, %v6395_v42, 0.0  ;;  %v18225_v6 = vunpack.c.l.bf16 %v18224_v35  ;;  %v15052_v31 = vadd.f32 %v6832_v37, %v6831_v27 }
 0x402   :  { %v6351_v61 = vmul.f32 %v14947_v5, %v18222_v55  ;;  %v6684_v11 = vadd.f32 %v6683_v62, %v6682_v19  ;;  %v6695_v59 = vrot.slane %v6694_v46, 4  ;;  %v6671_v28 = vrot.slane %v6670_v58, 1  ;;  %v15073_v55 = vpop.permute.xlu0 %5378 }
 0x403   :  { %v6379_v0 = vmul.f32 %v14929_v36, %v18225_v6  ;;  %18226 = vst [vmem:[#allocation36_spill] sm:$0xff] %v15052_v31  ;;  %v6024_v53 = vsel %vm3750_vm3, %v5625_v47, %v6023_v29  ;;  %v6689_v7 = vadd.f32 %v6688_v41, %v6687_v39  ;;  %v6767_v9 = vrot.slane %v6766_v54, 2  ;;  %v15060_v6 = vpop.permute.xlu1 %5345  ;;  %v18228_v39 = vld [vmem:[#allocation75_spill] sm:$0xff]  ;;  %18232 = vst [vmem:[#allocation37_spill] sm:$0xff] %v15073_v55 }
 0x404   :  { %v6773_v42 = vadd.f32 %v6772_v43, %v6771_v13  ;;  %v7010_v20 = vrot.slane %v7009_v30, 4  ;;  %v6701_v35 = vsel %vm2719_vm0, %v6351_v61, 0.0  ;;  %v15062_v27 = vadd.f32 %v6755_v38, %v6754_v49  ;;  %v18230_v13 = vld [vmem:[#allocation109_spill] sm:$0xff] }
 0x405   :  { %v6762_v19 = vrot.slane %v6761_v52, 1  ;;  %v5629_v62 = vrot.slane %v14926_v21, %v17982_v4  ;;  %v6897_v37 = vsel %vm2719_vm0, %v6379_v0, 0.0  ;;  %v6685_v47 = vrot.slane %v6684_v11, 1 }
 0x406   :  { %18227 = vst [vmem:[#allocation56_spill] sm:$0xff] %v15062_v27  ;;  %v6696_v41 = vadd.f32 %v6695_v59, %v6694_v46  ;;  %v18229_v29 = vunpack.c.l.bf16 %v18228_v39  ;;  %v18231_v43 = vunpack.c.l.bf16 %v18230_v13  ;;  %v15075_v49 = vadd.f32 %v6671_v28, %v6670_v58  ;;  %v18234_v27 = vld [vmem:[#allocation76_spill] sm:$0xff]  ;;  %v18237_v28 = vld [vmem:[#allocation115_spill] sm:$0xff] }
 0x407   :  { %v6690_v38 = vrot.slane %v6689_v7, 2  ;;  %v6702_v31 = vrot.slane %v6701_v35, 4  ;;  %v18235_v21 = vunpack.c.l.bf16 %v18234_v27  ;;  %v6768_v57 = vadd.f32 %v6767_v9, %v6766_v54  ;;  %v15080_v50 = vpop.permute.xlu1 %5348 }
 0x408   :  { %v6352_v16 = vmul.f32 %v14966_v26, %v18229_v29  ;;  %v6403_v61 = vmul.f32 %v14956_v8, %v18231_v43  ;;  %18233 = vst [vmem:[#allocation52_spill] sm:$0xff] %v15075_v49  ;;  %v6774_v46 = vrot.slane %v6773_v42, 2  ;;  %v7011_v59 = vadd.f32 %v7010_v20, %v7009_v30 }
 0x409   :  { %v6353_v0 = vmul.f32 %v14979_v18, %v18235_v21  ;;  %v6898_v39 = vrot.slane %v6897_v37, 4  ;;  %v15082_v29 = vadd.f32 %v6762_v19, %v6761_v52  ;;  %v15085_v13 = vsel %vm3752_vm4, %v5629_v62, %v6024_v53 }
 0x40a   :  { %v18238_v43 = vunpack.c.l.bf16 %v18237_v28  ;;  %v15092_v23 = vadd.f32 %v6685_v47, %v6684_v11  ;;  %v6697_v54 = vrot.slane %v6696_v41, 2  ;;  %v6708_v30 = vsel %vm2719_vm0, %v6352_v16, 0.0  ;;  %v15098_v28 = vpop.permute.xlu0 %5381 }
 0x40b   :  { %18236 = vst [vmem:[#allocation38_spill] sm:$0xff] %v15082_v29  ;;  %v7065_v9 = vsel %vm2719_vm0, %v6403_v61, 0.0  ;;  %v6691_v20 = vadd.f32 %v6690_v38, %v6689_v7  ;;  %v6703_v52 = vadd.f32 %v6702_v31, %v6701_v35  ;;  %v6715_v19 = vsel %vm2719_vm0, %v6353_v0, 0.0  ;;  %18240 = vst [vmem:[#allocation43_spill] sm:$0xff] %v15098_v28  ;;  %v18241_v61 = vld [vmem:[#allocation73_spill] sm:$0xff] }
 0x40c   :  { %v6404_v27 = vmul.f32 %v14982_v40, %v18238_v43  ;;  %18239 = vst [vmem:[#allocation54_spill] sm:$0xff] %v15092_v23  ;;  %v6769_v62 = vrot.slane %v6768_v57, 1  ;;  %v6775_v21 = vadd.f32 %v6774_v46, %v6773_v42  ;;  %v7012_v58 = vrot.slane %v7011_v59, 2  ;;  %v15100_v43 = vpop.permute.xlu1 %5351 }
 0x40d   :  { %v6899_v29 = vadd.f32 %v6898_v39, %v6897_v37  ;;  %v6709_v16 = vrot.slane %v6708_v30, 4  ;;  %v7066_v47 = vrot.slane %v7065_v9, 4  ;;  %v18242_v7 = vunpack.c.l.bf16 %v18241_v61 }
 0x40e   :  { %v7072_v53 = vsel %vm2719_vm0, %v6404_v27, 0.0  ;;  %v6698_v35 = vadd.f32 %v6697_v54, %v6696_v41  ;;  %v6716_v42 = vrot.slane %v6715_v19, 4  ;;  %v6692_v37 = vrot.slane %v6691_v20, 1  ;;  %v18243_v27 = vld [vmem:[#allocation116_spill] sm:$0xff] }
 0x40f   :  { %v6370_v31 = vmul.f32 %v15002_v48, %v18242_v7  ;;  %v7073_v0 = vrot.slane %v7072_v53, 4  ;;  %v6704_v46 = vrot.slane %v6703_v52, 2  ;;  %v18244_v23 = vunpack.c.l.bf16 %v18243_v27 }
 0x410   :  { %v15113_v49 = vadd.f32 %v6769_v62, %v6768_v57  ;;  %v6776_v63 = vrot.slane %v6775_v21, 1  ;;  %v7013_v61 = vadd.f32 %v7012_v58, %v7011_v59  ;;  %v6900_v25 = vrot.slane %v6899_v29, 2  ;;  %v15115_v7 = vpop.permute.xlu1 %5354 }
 0x411   :  { %v6834_v39 = vsel %vm2719_vm0, %v6370_v31, 0.0  ;;  %v6405_v11 = vmul.f32 %v15009_v32, %v18244_v23  ;;  %v6710_v41 = vadd.f32 %v6709_v16, %v6708_v30  ;;  %v7067_v54 = vadd.f32 %v7066_v47, %v7065_v9  ;;  %v15121_v23 = vpop.permute.xlu0 %5384 }
 0x412   :  { %18245 = vst [vmem:[#allocation59_spill] sm:$0xff] %v15113_v49  ;;  %v18247_v22 = vunpack.c.l.bf16 %v18246_v10  ;;  %v6699_v31 = vrot.slane %v6698_v35, 1  ;;  %v6717_v60 = vadd.f32 %v6716_v42, %v6715_v19  ;;  %v7074_v27 = vadd.f32 %v7073_v0, %v7072_v53  ;;  %18248 = vst [vmem:[#allocation44_spill] sm:$0xff] %v15121_v23 }
 0x413   :  { %v7079_v38 = vsel %vm2719_vm0, %v6405_v11, 0.0  ;;  %v6835_v17 = vrot.slane %v6834_v39, 4  ;;  %v15123_v57 = vadd.f32 %v6692_v37, %v6691_v20  ;;  %v6705_v59 = vadd.f32 %v6704_v46, %v6703_v52  ;;  %v18251_v20 = vld [vmem:[#allocation117_spill] sm:$0xff] }
 0x414   :  { %v6354_v36 = vmul.f32 %v15025_v24, %v18247_v22  ;;  %v7014_v9 = vrot.slane %v7013_v61, 1  ;;  %v6901_v62 = vadd.f32 %v6900_v25, %v6899_v29  ;;  %v7080_v10 = vrot.slane %v7079_v38, 4  ;;  %v15130_v11 = vpop.permute.xlu1 %5357  ;;  %v18255_v25 = vld [vmem:[#allocation89_spill] sm:$0xff] }
 0x415   :  { %18249 = vst [vmem:[#allocation60_spill] sm:$0xff] %v15123_v57  ;;  %v15132_v19 = vadd.f32 %v6776_v63, %v6775_v21  ;;  %v6711_v53 = vrot.slane %v6710_v41, 2  ;;  %v7068_v16 = vrot.slane %v7067_v54, 2  ;;  %v18252_v47 = vunpack.c.l.bf16 %v18251_v20 }
 0x416   :  { %v6722_v22 = vsel %vm2719_vm0, %v6354_v36, 0.0  ;;  %v15137_v42 = vadd.f32 %v6699_v31, %v6698_v35  ;;  %v6718_v0 = vrot.slane %v6717_v60, 2  ;;  %v7075_v37 = vrot.slane %v7074_v27, 2  ;;  %v15147_v35 = vpop.permute.xlu0 %5318 }
 0x417   :  { %18250 = vst [vmem:[#allocation42_spill] sm:$0xff] %v15132_v19  ;;  %v6406_v52 = vmul.f32 %v15043_v56, %v18252_v47  ;;  %v6836_v46 = vadd.f32 %v6835_v17, %v6834_v39  ;;  %v6706_v30 = vrot.slane %v6705_v59, 1  ;;  %v5709_v36 = vrot.slane %v15002_v48, %v17982_v4 }
 0x418   :  { %18253 = vst [vmem:[#allocation160_spill] sm:$0xff] %v15137_v42  ;;  %v6723_v63 = vrot.slane %v6722_v22, 4  ;;  %v15143_v29 = vadd.f32 %v7014_v9, %v7013_v61  ;;  %v6902_v21 = vrot.slane %v6901_v62, 1  ;;  %v7081_v47 = vadd.f32 %v7080_v10, %v7079_v38  ;;  %v15149_v31 = vpop.permute.xlu1 %5360  ;;  %v18259_v10 = vld [vmem:[#allocation118_spill] sm:$0xff] }
 0x419   :  { %v6712_v17 = vadd.f32 %v6711_v53, %v6710_v41  ;;  %v7069_v39 = vadd.f32 %v7068_v16, %v7067_v54  ;;  %v7086_v58 = vsel %vm2719_vm0, %v6406_v52, 0.0  ;;  %v18256_v19 = vunpack.c.l.bf16 %v18255_v25  ;;  %v18261_v52 = vld [vmem:[#allocation95_spill] sm:$0xff] }
 0x41a   :  { %18254 = vst [vmem:[#allocation100_spill] sm:$0xff] %v15143_v29  ;;  %v6719_v49 = vadd.f32 %v6718_v0, %v6717_v60  ;;  %v7076_v61 = vadd.f32 %v7075_v37, %v7074_v27  ;;  %v6837_v9 = vrot.slane %v6836_v46, 2  ;;  %v5645_v29 = vrot.slane %v15025_v24, %v17982_v4 }
 0x41b   :  { %v6394_v48 = vmul.f32 %v15045_v14, %v18256_v19  ;;  %v15157_v20 = vadd.f32 %v6706_v30, %v6705_v59  ;;  %v18258_v38 = vrot.slane %v14598_v15, %v17982_v4  ;;  %v6724_v54 = vadd.f32 %v6723_v63, %v6722_v22 }
 0x41c   :  { %v18260_v53 = vunpack.c.l.bf16 %v18259_v10  ;;  %v7082_v27 = vrot.slane %v7081_v47, 2  ;;  %v7087_v19 = vrot.slane %v7086_v58, 4  ;;  %v18262_v0 = vunpack.c.l.bf16 %v18261_v52  ;;  %v15171_v59 = vpop.permute.xlu1 %5291 }
 0x41d   :  { %18257 = vst [vmem:[#allocation177_spill] sm:$0xff] %v15157_v20  ;;  %v6043_v41 = vsel %vm3746_vm1, %v18258_v38, %v5709_v36  ;;  %v15173_v30 = vadd.f32 %v6902_v21, %v6901_v62  ;;  %v6713_v15 = vrot.slane %v6712_v17, 1  ;;  %v7070_v37 = vrot.slane %v7069_v39, 1 }
 0x41e   :  { %v6407_v16 = vmul.f32 %v15073_v55, %v18260_v53  ;;  %v6396_v24 = vmul.f32 %v15060_v6, %v18262_v0  ;;  %v7002_v22 = vsel %vm2719_vm0, %v6394_v48, 0.0  ;;  %v6720_v25 = vrot.slane %v6719_v49, 1  ;;  %v15180_v53 = vpop.permute.xlu0 %5321 }
 0x41f   :  { %18263 = vst [vmem:[#allocation58_spill] sm:$0xff] %v15173_v30  ;;  %v7077_v36 = vrot.slane %v7076_v61, 1  ;;  %v6838_v63 = vadd.f32 %v6837_v9, %v6836_v46  ;;  %v18264_v38 = vrot.slane %v14747_v34, %v17982_v4  ;;  %v18265_v52 = vrot.slane %v14617_v1, %v17982_v4 }
 0x420   :  { %v6725_v21 = vrot.slane %v6724_v54, 2  ;;  %v5805_v48 = vrot.slane %v15045_v14, %v17982_v4  ;;  %v7093_v0 = vsel %vm2719_vm0, %v6407_v16, 0.0  ;;  %v7083_v46 = vadd.f32 %v7082_v27, %v7081_v47  ;;  %v15208_v27 = vpop.permute.xlu1 %5297 }
 0x421   :  { %v6029_v10 = vsel %vm3746_vm1, %v18264_v38, %v5645_v29  ;;  %v15186_v62 = vsel %vm3748_vm2, %v18265_v52, %v6043_v41  ;;  %v7088_v9 = vadd.f32 %v7087_v19, %v7086_v58  ;;  %v7003_v60 = vrot.slane %v7002_v22, 4 }
 0x422   :  { %v7016_v34 = vsel %vm2719_vm0, %v6396_v24, 0.0  ;;  %v15192_v29 = vadd.f32 %v6713_v15, %v6712_v17  ;;  %v15194_v38 = vadd.f32 %v7070_v37, %v7069_v39  ;;  %v18268_v1 = vrot.slane %v14771_v3, %v17982_v4 }
 0x423   :  { %v15204_v52 = vadd.f32 %v6720_v25, %v6719_v49  ;;  %v15206_v47 = vadd.f32 %v7077_v36, %v7076_v61  ;;  %v6839_v58 = vrot.slane %v6838_v63, 1  ;;  %v7094_v16 = vrot.slane %v7093_v0, 4  ;;  %v15221_v36 = vpop.permute.xlu0 %5324 }
 0x424   :  { %18266 = vst [vmem:[#allocation48_spill] sm:$0xff] %v15192_v29  ;;  %18267 = vst [vmem:[#allocation113_spill] sm:$0xff] %v15194_v38  ;;  %v15200_v41 = vsel %vm3748_vm2, %v18268_v1, %v6029_v10  ;;  %v6726_v17 = vadd.f32 %v6725_v21, %v6724_v54  ;;  %v18271_v39 = vrot.slane %v14898_v44, %v17982_v4  ;;  %v7017_v24 = vrot.slane %v7016_v34, 4  ;;  %v18273_v54 = vld [vmem:[#allocation126_spill] sm:$0xff]  ;;  %v18313_v29 = vld [vmem:[#allocation107_spill] sm:$0xff] }
 0x425   :  { %18269 = vst [vmem:[#allocation62_spill] sm:$0xff] %v15204_v52  ;;  %18270 = vst [vmem:[#allocation165_spill] sm:$0xff] %v15206_v47  ;;  %v5813_v19 = vrot.slane %v15060_v6, %v17982_v4  ;;  %v7084_v15 = vrot.slane %v7083_v46, 1  ;;  %v7089_v37 = vrot.slane %v7088_v9, 2  ;;  %v7004_v49 = vadd.f32 %v7003_v60, %v7002_v22  ;;  %v18275_v6 = vld [vmem:[#allocation96_spill] sm:$0xff] }
 0x426   :  { %v6064_v3 = vsel %vm3746_vm1, %v18271_v39, %v5805_v48  ;;  %v18272_v61 = vrot.slane %v14483_v51, %v17982_v4  ;;  %v18274_v10 = vunpack.c.l.bf16 %v18273_v54  ;;  %v18276_v48 = vunpack.c.l.bf16 %v18275_v6  ;;  %v18279_v39 = vld [vmem:[#allocation128_spill] sm:$0xff] }
 0x427   :  { %v18277_v60 = vrot.slane %v14509_v2, %v17982_v4  ;;  %v15235_v22 = vadd.f32 %v6839_v58, %v6838_v63  ;;  %v18281_v54 = vrot.slane %v14532_v12, %v17982_v4  ;;  %v6727_v6 = vrot.slane %v6726_v17, 1 }
 0x428   :  { %v6005_v25 = vsel %vm3754_vm5, %v18272_v61, %v14837_v45  ;;  %v6408_v21 = vmul.f32 %v15098_v28, %v18274_v10  ;;  %v6397_v1 = vmul.f32 %v15080_v50, %v18276_v48  ;;  %v7095_v45 = vadd.f32 %v7094_v16, %v7093_v0  ;;  %v18283_v0 = vld [vmem:[#allocation97_spill] sm:$0xff] }
 0x429   :  { %v6006_v51 = vsel %vm17493_vm6, %v18277_v60, %v6005_v25  ;;  %18278 = vst [vmem:[#allocation104_spill] sm:$0xff] %v15235_v22  ;;  %v18280_v61 = vunpack.c.l.bf16 %v18279_v39  ;;  %v6065_v48 = vsel %vm3748_vm2, %v5813_v19, %v6064_v3  ;;  %v7018_v14 = vadd.f32 %v7017_v24, %v7016_v34  ;;  %v15251_v60 = vpop.permute.xlu1 %5300  ;;  %v18285_v3 = vld [vmem:[#allocation175_spill] sm:$0xff] }
 0x42a   :  { %v6007_v10 = vsel %vm17492_vm7, %v18281_v54, %v6006_v51  ;;  %v15246_v47 = vadd.f32 %v7084_v15, %v7083_v46  ;;  %v7090_v63 = vadd.f32 %v7089_v37, %v7088_v9  ;;  %v7005_v58 = vrot.slane %v7004_v49, 2  ;;  %v18287_v15 = vld [vmem:[#allocation114_spill] sm:$0xff]  ;;  %v15270_v54 = vpop.permute.xlu0 %5327 }
 0x42b   :  { %v6409_v44 = vmul.f32 %v15121_v23, %v18280_v61  ;;  %v6125_v2 = vsel %vm3881_vm8, %v6007_v10, 0.0  ;;  %v18284_v16 = vunpack.c.l.bf16 %v18283_v0  ;;  %v7100_v12 = vsel %vm2719_vm0, %v6408_v21, 0.0  ;;  %v18289_v61 = vld [vmem:[#allocation125_spill] sm:$0xff] }
 0x42c   :  { %18282 = vst [vmem:[#allocation45_spill] sm:$0xff] %v15246_v47  ;;  %6126 = vadd.xlane.f32.xlu0 %v6125_v2  ;;  %v5817_v51 = vrot.slane %v15080_v50, %v17982_v4  ;;  %v7023_v34 = vsel %vm2719_vm0, %v6397_v1, 0.0  ;;  %v18286_v46 = vrot.slane %v18285_v3, %v17982_v4  ;;  %v7096_v19 = vrot.slane %v7095_v45, 2  ;;  %v18292_v2 = vld [vmem:[#allocation189_spill] sm:$0xff] }
 0x42d   :  { %v6398_v25 = vmul.f32 %v15100_v43, %v18284_v16  ;;  %v7107_v24 = vsel %vm2719_vm0, %v6409_v44, 0.0  ;;  %v18288_v37 = vunpack.c.l.bf16 %v18287_v15  ;;  %v18290_v21 = vrot.slane %v18289_v61, %v17982_v4 }
 0x42e   :  { %v6012_v9 = vsel %vm3754_vm5, %v18286_v46, %v14442_v33  ;;  %v15272_v1 = vadd.f32 %v6727_v6, %v6726_v17  ;;  %v7019_v10 = vrot.slane %v7018_v14, 2  ;;  %v18293_v44 = vrot.slane %v18292_v2, %v17982_v4  ;;  %v18294_v17 = vld [vmem:[#allocation98_spill] sm:$0xff] }
 0x42f   :  { %v6387_v39 = vmul.f32 %v15147_v35, %v18288_v37  ;;  %v6013_v50 = vsel %vm17493_vm6, %v18290_v21, %v6012_v9  ;;  %v7101_v16 = vrot.slane %v7100_v12, 4  ;;  %v7024_v3 = vrot.slane %v7023_v34, 4  ;;  %v18296_v21 = vld [vmem:[#allocation119_spill] sm:$0xff] }
 0x430   :  { %18291 = vst [vmem:[#allocation74_spill] sm:$0xff] %v15272_v1  ;;  %v6014_v0 = vsel %vm17492_vm7, %v18293_v44, %v6013_v50  ;;  %v7030_v46 = vsel %vm2719_vm0, %v6398_v25, 0.0  ;;  %v7006_v9 = vadd.f32 %v7005_v58, %v7004_v49  ;;  %v7108_v37 = vrot.slane %v7107_v24, 4  ;;  %v15292_v44 = vpop.permute.xlu1 %5303 }
 0x431   :  { %v6128_v15 = vsel %vm3881_vm8, %v6014_v0, 0.0  ;;  %v18295_v6 = vunpack.c.l.bf16 %v18294_v17  ;;  %v18297_v33 = vunpack.c.l.bf16 %v18296_v21  ;;  %v7091_v2 = vrot.slane %v7090_v63, 1 }
 0x432   :  { %6129 = vadd.xlane.f32.xlu0 %v6128_v15  ;;  %v7097_v38 = vadd.f32 %v7096_v19, %v7095_v45  ;;  %v15289_v50 = vsel %vm3750_vm3, %v5817_v51, %v6065_v48  ;;  %v6953_v25 = vsel %vm2719_vm0, %v6387_v39, 0.0  ;;  %v7031_v49 = vrot.slane %v7030_v46, 4  ;;  %v15305_v39 = vpop.permute.xlu0 %5330 }
 0x433   :  { %v6399_v61 = vmul.f32 %v15115_v7, %v18295_v6  ;;  %v6388_v47 = vmul.f32 %v15180_v53, %v18297_v33  ;;  %v18298_v15 = vrot.slane %v14947_v5, %v17982_v4  ;;  %v7020_v17 = vadd.f32 %v7019_v10, %v7018_v14  ;;  %v18301_v5 = vld [vmem:[#allocation106_spill] sm:$0xff] }
 0x434   :  { %v7102_v45 = vadd.f32 %v7101_v16, %v7100_v12  ;;  %v7025_v19 = vadd.f32 %v7024_v3, %v7023_v34  ;;  %v18299_v48 = vrot.slane %v14966_v26, %v17982_v4  ;;  %v7109_v6 = vadd.f32 %v7108_v37, %v7107_v24  ;;  %v18304_v3 = vld [vmem:[#allocation120_spill] sm:$0xff] }
 0x435   :  { %v7037_v58 = vsel %vm2719_vm0, %v6399_v61, 0.0  ;;  %v6960_v0 = vsel %vm2719_vm0, %v6388_v47, 0.0  ;;  %v6026_v33 = vsel %vm3754_vm5, %v18298_v15, %v15085_v13  ;;  %v6954_v61 = vrot.slane %v6953_v25, 4 }
 0x436   :  { %v6027_v51 = vsel %vm17493_vm6, %v18299_v48, %v6026_v33  ;;  %v18300_v47 = vrot.slane %v14979_v18, %v17982_v4  ;;  %v18302_v30 = vunpack.c.l.bf16 %v18301_v5  ;;  %v7007_v14 = vrot.slane %v7006_v9, 1  ;;  %v18307_v5 = vld [vmem:[#allocation230_spill] sm:$0xff]  ;;  %v15335_v22 = vpop.permute.xlu0 %5333 }
 0x437   :  { %v7038_v12 = vrot.slane %v7037_v58, 4  ;;  %v6961_v34 = vrot.slane %v6960_v0, 4  ;;  %v15315_v10 = vadd.f32 %v7091_v2, %v7090_v63  ;;  %v7032_v16 = vadd.f32 %v7031_v49, %v7030_v46  ;;  %v18306_v2 = vld [vmem:[#allocation41_spill] sm:$0xff] }
 0x438   :  { %v6028_v21 = vsel %vm17492_vm7, %v18300_v47, %v6027_v51  ;;  %v6400_v13 = vmul.f32 %v15130_v11, %v18302_v30  ;;  %v18305_v18 = vunpack.c.l.bf16 %v18304_v3  ;;  %v7098_v15 = vrot.slane %v7097_v38, 1  ;;  %v15323_v51 = vpop.permute.xlu1 %5306 }
 0x439   :  { %v6134_v26 = vsel %vm3881_vm8, %v6028_v21, 0.0  ;;  %18303 = vst [vmem:[#allocation167_spill] sm:$0xff] %v15315_v10  ;;  %v7103_v33 = vrot.slane %v7102_v45, 2  ;;  %v7026_v48 = vrot.slane %v7025_v19, 2  ;;  %v7021_v47 = vrot.slane %v7020_v17, 1 }
 0x43a   :  { %6135 = vadd.xlane.f32.xlu0 %v6134_v26  ;;  %v6389_v37 = vmul.f32 %v15221_v36, %v18305_v18  ;;  %v7044_v30 = vsel %vm2719_vm0, %v6400_v13, 0.0  ;;  %v7110_v21 = vrot.slane %v7109_v6, 2  ;;  %v6955_v63 = vadd.f32 %v6954_v61, %v6953_v25  ;;  %v18309_v18 = vld [vmem:[#allocation238_spill] sm:$0xff]  ;;  %v18311_v25 = vld [vmem:[#allocation32_spill] sm:$0xff] }
 0x43b   :  { %v18308_v24 = vrot.slane %v18307_v5, %v17982_v4  ;;  %v7039_v49 = vadd.f32 %v7038_v12, %v7037_v58  ;;  %v6962_v26 = vadd.f32 %v6961_v34, %v6960_v0  ;;  %v18310_v10 = vrot.slane %v18309_v18, %v17982_v4  ;;  %v18316_v18 = vld [vmem:[#allocation122_spill] sm:$0xff] }
 0x43c   :  { %v6967_v3 = vsel %vm2719_vm0, %v6389_v37, 0.0  ;;  %v7033_v1 = vrot.slane %v7032_v16, 2  ;;  %v7045_v52 = vrot.slane %v7044_v30, 4  ;;  %v18312_v61 = vrot.slane %v18311_v25, %v17982_v4 }
 0x43d   :  { %v6040_v46 = vsel %vm3754_vm5, %v18308_v24, %v18306_v2  ;;  %v18314_v24 = vunpack.c.l.bf16 %v18313_v29  ;;  %v7104_v0 = vadd.f32 %v7103_v33, %v7102_v45  ;;  %v7027_v12 = vadd.f32 %v7026_v48, %v7025_v19  ;;  %v15356_v33 = vpop.permute.xlu1 %5309 }
 0x43e   :  { %v6041_v13 = vsel %vm17493_vm6, %v18310_v10, %v6040_v46  ;;  %v5821_v34 = vrot.slane %v15100_v43, %v17982_v4  ;;  %v15347_v37 = vadd.f32 %v7007_v14, %v7006_v9  ;;  %v6956_v2 = vrot.slane %v6955_v63, 2 }
 0x43f   :  { %v6042_v5 = vsel %vm17492_vm7, %v18312_v61, %v6041_v13  ;;  %v6401_v58 = vmul.f32 %v15149_v31, %v18314_v24  ;;  %v6968_v46 = vrot.slane %v6967_v3, 4  ;;  %v18317_v25 = vunpack.c.l.bf16 %v18316_v18 }
 0x440   :  { %v6140_v10 = vsel %vm3881_vm8, %v6042_v5, 0.0  ;;  %18315 = vst [vmem:[#allocation158_spill] sm:$0xff] %v15347_v37  ;;  %v15352_v61 = vadd.f32 %v7098_v15, %v7097_v38  ;;  %v15354_v29 = vadd.f32 %v7021_v47, %v7020_v17  ;;  %v7040_v45 = vrot.slane %v7039_v49, 2  ;;  %v15365_v17 = vpop.permute.xlu0 %5336  ;;  %v18342_v37 = vld [vmem:[#allocation205_spill] sm:$0xff] }
 0x441   :  { %6141 = vadd.xlane.f32.xlu0 %v6140_v10  ;;  %v6390_v13 = vmul.f32 %v15270_v54, %v18317_v25  ;;  %v6963_v19 = vrot.slane %v6962_v26, 2  ;;  %v7111_v43 = vadd.f32 %v7110_v21, %v7109_v6  ;;  %v7034_v48 = vadd.f32 %v7033_v1, %v7032_v16  ;;  %v18320_v6 = vld [vmem:[#allocation93_spill] sm:$0xff] }
 0x442   :  { %18318 = vst [vmem:[#allocation46_spill] sm:$0xff] %v15352_v61  ;;  %18319 = vst [vmem:[#allocation79_spill] sm:$0xff] %v15354_v29  ;;  %v7046_v5 = vadd.f32 %v7045_v52, %v7044_v30  ;;  %v7051_v9 = vsel %vm2719_vm0, %v6401_v58, 0.0  ;;  %v7105_v14 = vrot.slane %v7104_v0, 1  ;;  %v7028_v24 = vrot.slane %v7027_v12, 1  ;;  %v18322_v58 = vld [vmem:[#allocation124_spill] sm:$0xff] }
 0x443   :  { %v15361_v10 = vsel %vm3752_vm4, %v5821_v34, %v15289_v50  ;;  %v6957_v15 = vadd.f32 %v6956_v2, %v6955_v63  ;;  %v6969_v47 = vadd.f32 %v6968_v46, %v6967_v3  ;;  %v6974_v18 = vsel %vm2719_vm0, %v6390_v13, 0.0 }
 0x444   :  { %v18321_v1 = vunpack.c.l.bf16 %v18320_v6  ;;  %v7041_v16 = vadd.f32 %v7040_v45, %v7039_v49  ;;  %v6964_v30 = vadd.f32 %v6963_v19, %v6962_v26  ;;  %v7052_v21 = vrot.slane %v7051_v9, 4  ;;  %v15382_v26 = vpop.permute.xlu1 %5312 }
 0x445   :  { %v18323_v25 = vunpack.c.l.bf16 %v18322_v58  ;;  %v7112_v34 = vrot.slane %v7111_v43, 1  ;;  %v7035_v61 = vrot.slane %v7034_v48, 1  ;;  %v7047_v63 = vrot.slane %v7046_v5, 2 }
 0x446   :  { %v6378_v52 = vmul.f32 %v15171_v59, %v18321_v1  ;;  %v15376_v3 = vadd.f32 %v7105_v14, %v7104_v0  ;;  %v15378_v2 = vadd.f32 %v7028_v24, %v7027_v12  ;;  %v6975_v49 = vrot.slane %v6974_v18, 4  ;;  %v15388_v12 = vpop.permute.xlu0 %5390 }
 0x447   :  { %v6391_v50 = vmul.f32 %v15305_v39, %v18323_v25  ;;  %v6958_v13 = vrot.slane %v6957_v15, 1  ;;  %v6970_v19 = vrot.slane %v6969_v47, 2  ;;  %v7042_v1 = vrot.slane %v7041_v16, 1 }
 0x448   :  { %18324 = vst [vmem:[#allocation169_spill] sm:$0xff] %v15376_v3  ;;  %18325 = vst [vmem:[#allocation121_spill] sm:$0xff] %v15378_v2  ;;  %v6890_v6 = vsel %vm2719_vm0, %v6378_v52, 0.0  ;;  %v6965_v58 = vrot.slane %v6964_v30, 1  ;;  %v7053_v25 = vadd.f32 %v7052_v21, %v7051_v9  ;;  %v15390_v14 = vadd.f32 %v7112_v34, %v7111_v43  ;;  %v18329_v43 = vld [vmem:[#allocation101_spill] sm:$0xff] }
 0x449   :  { %v6981_v0 = vsel %vm2719_vm0, %v6391_v50, 0.0  ;;  %v15392_v24 = vadd.f32 %v7035_v61, %v7034_v48  ;;  %v7048_v46 = vadd.f32 %v7047_v63, %v7046_v5  ;;  %v6976_v3 = vadd.f32 %v6975_v49, %v6974_v18  ;;  %v15411_v49 = vpop.permute.xlu1 %5363 }
 0x44a   :  { %18326 = vst [vmem:[#allocation51_spill] sm:$0xff] %v15390_v14  ;;  %v5741_v52 = vrot.slane %v15171_v59, %v17982_v4  ;;  %v6891_v9 = vrot.slane %v6890_v6, 4  ;;  %v15400_v21 = vadd.f32 %v6958_v13, %v6957_v15  ;;  %v6971_v50 = vadd.f32 %v6970_v19, %v6969_v47  ;;  %v18333_v47 = vld [vmem:[#allocation130_spill] sm:$0xff]  ;;  %v18340_v14 = vld [vmem:[#allocation199_spill] sm:$0xff] }
 0x44b   :  { %18327 = vst [vmem:[#allocation183_spill] sm:$0xff] %v15392_v24  ;;  %v6982_v2 = vrot.slane %v6981_v0, 4  ;;  %v18330_v34 = vunpack.c.l.bf16 %v18329_v43  ;;  %v15405_v48 = vadd.f32 %v7042_v1, %v7041_v16  ;;  %v15407_v5 = vadd.f32 %v6965_v58, %v6964_v30  ;;  %v18335_v43 = vld [vmem:[#allocation202_spill] sm:$0xff]  ;;  %v18338_v58 = vld [vmem:[#allocation99_spill] sm:$0xff] }
 0x44c   :  { %18328 = vst [vmem:[#allocation80_spill] sm:$0xff] %v15400_v21  ;;  %v7054_v63 = vrot.slane %v7053_v25, 2  ;;  %v7049_v59 = vrot.slane %v7048_v46, 1  ;;  %v5749_v15 = vrot.slane %v15208_v27, %v17982_v4  ;;  %v18334_v13 = vunpack.c.l.bf16 %v18333_v47 }
 0x44d   :  { %v6380_v61 = vmul.f32 %v15208_v27, %v18330_v34  ;;  %18331 = vst [vmem:[#allocation132_spill] sm:$0xff] %v15405_v48  ;;  %18332 = vst [vmem:[#allocation157_spill] sm:$0xff] %v15407_v5  ;;  %v18336_v34 = vld [vmem:[#allocation201_spill] sm:$0xff]  ;;  %v6977_v1 = vrot.slane %v6976_v3, 2  ;;  %v18339_v18 = vrot.slane %v18338_v58, %v17982_v4  ;;  %v6892_v45 = vadd.f32 %v6891_v9, %v6890_v6  ;;  %v15431_v48 = vpop.permute.xlu0 %5414 }
 0x44e   :  { %v6392_v19 = vmul.f32 %v15335_v22, %v18334_v13  ;;  %v18337_v16 = vrot.slane %v18336_v34, %v17982_v4  ;;  %v18341_v27 = vrot.slane %v18340_v14, %v17982_v4  ;;  %v6972_v13 = vrot.slane %v6971_v50, 1 }
 0x44f   :  { %v6050_v38 = vsel %vm3746_vm1, %v18339_v18, %v5741_v52  ;;  %v6983_v24 = vadd.f32 %v6982_v2, %v6981_v0  ;;  %v6904_v34 = vsel %vm2719_vm0, %v6380_v61, 0.0  ;;  %v7055_v58 = vadd.f32 %v7054_v63, %v7053_v25  ;;  %v18344_v52 = vld [vmem:[#allocation102_spill] sm:$0xff] }
 0x450   :  { %v5998_v30 = vsel %vm3754_vm5, %v18337_v16, %v18335_v43  ;;  %v18343_v43 = vrot.slane %v18342_v37, %v17982_v4  ;;  %v18345_v9 = vunpack.c.l.bf16 %v18344_v52  ;;  %v6051_v2 = vsel %vm3748_vm2, %v5749_v15, %v6050_v38  ;;  %v18347_v37 = vld [vmem:[#allocation131_spill] sm:$0xff] }
 0x451   :  { %v5999_v47 = vsel %vm17493_vm6, %v18341_v27, %v5998_v30  ;;  %v15444_v30 = vadd.f32 %v7049_v59, %v7048_v46  ;;  %v6988_v0 = vsel %vm2719_vm0, %v6392_v19, 0.0  ;;  %v18348_v61 = vunpack.c.l.bf16 %v18347_v37  ;;  %v18350_v52 = vld [vmem:[#allocation143_spill] sm:$0xff]  ;;  %v15456_v46 = vpop.permute.xlu1 %5315  ;;  %v18355_v37 = vld [vmem:[#allocation145_spill] sm:$0xff] }
 0x452   :  { %v6000_v16 = vsel %vm17492_vm7, %v18343_v43, %v5999_v47  ;;  %v6381_v14 = vmul.f32 %v15251_v60, %v18345_v9  ;;  %v6978_v63 = vadd.f32 %v6977_v1, %v6976_v3  ;;  %v6893_v27 = vrot.slane %v6892_v45, 2  ;;  %v18349_v43 = vld [vmem:[#allocation219_spill] sm:$0xff] }
 0x453   :  { %v6122_v18 = vsel %vm3881_vm8, %v6000_v16, 0.0  ;;  %18346 = vst [vmem:[#allocation53_spill] sm:$0xff] %v15444_v30  ;;  %v6393_v25 = vmul.f32 %v15365_v17, %v18348_v61  ;;  %v6905_v47 = vrot.slane %v6904_v34, 4  ;;  %v18351_v9 = vrot.slane %v18350_v52, %v17982_v4  ;;  %v18353_v15 = vld [vmem:[#allocation103_spill] sm:$0xff] }
 0x454   :  { %6123 = vadd.xlane.f32.xlu1 %v6122_v18  ;;  %v15458_v59 = vadd.f32 %v6972_v13, %v6971_v50  ;;  %v6984_v38 = vrot.slane %v6983_v24, 2  ;;  %v18354_v19 = vunpack.c.l.bf16 %v18353_v15  ;;  %v18356_v3 = vrot.slane %v18355_v37, %v17982_v4  ;;  %v18357_v30 = vld [vmem:[#allocation191_spill] sm:$0xff]  ;;  %v15472_v13 = vpop.permute.xlu0 %5417 }
 0x455   :  { %v6018_v16 = vsel %vm3752_vm4, %v18351_v9, %v18349_v43  ;;  %v7056_v61 = vrot.slane %v7055_v58, 1  ;;  %v6989_v6 = vrot.slane %v6988_v0, 4  ;;  %v6911_v52 = vsel %vm2719_vm0, %v6381_v14, 0.0 }
 0x456   :  { %18352 = vst [vmem:[#allocation127_spill] sm:$0xff] %v15458_v59  ;;  %v6382_v18 = vmul.f32 %v15292_v44, %v18354_v19  ;;  %v6019_v1 = vsel %vm3754_vm5, %v18356_v3, %v6018_v16  ;;  %v18358_v43 = vrot.slane %v18357_v30, %v17982_v4  ;;  %v5753_v9 = vrot.slane %v15251_v60, %v17982_v4  ;;  %v18359_v19 = vld [vmem:[#allocation197_spill] sm:$0xff]  ;;  %v18361_v3 = vld [vmem:[#allocation134_spill] sm:$0xff] }
 0x457   :  { %v6995_v15 = vsel %vm2719_vm0, %v6393_v25, 0.0  ;;  %v18360_v37 = vrot.slane %v18359_v19, %v17982_v4  ;;  %v18362_v29 = vunpack.c.l.bf16 %v18361_v3  ;;  %v6979_v59 = vrot.slane %v6978_v63, 1  ;;  %v18363_v25 = vld [vmem:[#allocation235_spill] sm:$0xff] }
 0x458   :  { %v6020_v50 = vsel %vm17493_vm6, %v18358_v43, %v6019_v1  ;;  %v6894_v30 = vadd.f32 %v6893_v27, %v6892_v45  ;;  %v6906_v5 = vadd.f32 %v6905_v47, %v6904_v34  ;;  %v6985_v43 = vadd.f32 %v6984_v38, %v6983_v24  ;;  %v18365_v45 = vld [vmem:[#allocation27_spill] sm:$0xff]  ;;  %v15497_v27 = vpop.permute.xlu1 %5387 }
 0x459   :  { %v6021_v16 = vsel %vm17492_vm7, %v18360_v37, %v6020_v50  ;;  %v6411_v14 = vmul.f32 %v15388_v12, %v18362_v29  ;;  %v6912_v21 = vrot.slane %v6911_v52, 4  ;;  %v6918_v60 = vsel %vm2719_vm0, %v6382_v18, 0.0  ;;  %v18368_v18 = vld [vmem:[#allocation105_spill] sm:$0xff] }
 0x45a   :  { %v6131_v1 = vsel %vm3881_vm8, %v6021_v16, 0.0  ;;  %v18364_v19 = vrot.slane %v18363_v25, %v17982_v4  ;;  %v6990_v29 = vadd.f32 %v6989_v6, %v6988_v0  ;;  %v6996_v3 = vrot.slane %v6995_v15, 4 }
 0x45b   :  { %6132 = vadd.xlane.f32.xlu1 %v6131_v1  ;;  %v18366_v34 = vrot.slane %v18365_v45, %v17982_v4  ;;  %v15499_v47 = vadd.f32 %v7056_v61, %v7055_v58  ;;  %v7121_v38 = vsel %vm2719_vm0, %v6411_v14, 0.0  ;;  %v18369_v16 = vunpack.c.l.bf16 %v18368_v18  ;;  %v18370_v1 = vld [vmem:[#allocation241_spill] sm:$0xff]  ;;  %v18373_v18 = vld [vmem:[#allocation231_spill] sm:$0xff] }
 0x45c   :  { %v6031_v50 = vsel %vm3750_vm3, %v18364_v19, %v15200_v41  ;;  %v18371_v25 = vrot.slane %v18370_v1, %v17982_v4  ;;  %v15509_v0 = vadd.f32 %v6979_v59, %v6978_v63  ;;  %v6895_v19 = vrot.slane %v6894_v30, 1  ;;  %v10449_v58 = vld [vmem:[#allocation5 + $0x78] sm:$0xff]   ;;  %v18382_v63 = vld [vmem:[#allocation110_spill] sm:$0xff] }
 0x45d   :  { %v6032_v24 = vsel %vm3752_vm4, %v18366_v34, %v6031_v50  ;;  %18367 = vst [vmem:[#allocation81_spill] sm:$0xff] %v15499_v47  ;;  %v6383_v41 = vmul.f32 %v15323_v51, %v18369_v16  ;;  %v6052_v50 = vsel %vm3750_vm3, %v5753_v9, %v6051_v2  ;;  %v6919_v45 = vrot.slane %v6918_v60, 4  ;;  %v15512_v34 = vpop.permute.xlu0 %5438  ;;  %10027 = vmatprep.subr.bf16.mxu1 %v10449_v58  ;;  %v10450_v2 = vld [vmem:[#allocation5 + $0x38] sm:$0xff]  }
 0x45e   :  { %v6033_v6 = vsel %vm3754_vm5, %v18371_v25, %v6032_v24  ;;  %18372 = vst [vmem:[#allocation57_spill] sm:$0xff] %v15509_v0  ;;  %v6986_v61 = vrot.slane %v6985_v43, 1  ;;  %v6907_v14 = vrot.slane %v6906_v5, 2  ;;  %v6913_v37 = vadd.f32 %v6912_v21, %v6911_v52  ;;  %v18375_v25 = vld [vmem:[#allocation159_spill] sm:$0xff]  ;;  %v18377_v52 = vld [vmem:[#allocation137_spill] sm:$0xff]  ;;  %10028 = vmatpush3.bf16.msra.mxu1 %v10450_v2 }
 0x45f   :  { %v18374_v16 = vrot.slane %v18373_v18, %v17982_v4  ;;  %v6991_v1 = vrot.slane %v6990_v29, 2  ;;  %v6997_v59 = vadd.f32 %v6996_v3, %v6995_v15  ;;  %v7122_v24 = vrot.slane %v7121_v38, 4 }
 0x460   :  { %v6925_v9 = vsel %vm2719_vm0, %v6383_v41, 0.0  ;;  %v18376_v0 = vrot.slane %v18375_v25, %v17982_v4  ;;  %v18378_v20 = vunpack.c.l.bf16 %v18377_v52  ;;  %v15533_v3 = vadd.f32 %v6895_v19, %v6894_v30 }
 0x461   :  { %v6034_v47 = vsel %vm17493_vm6, %v18374_v16, %v6033_v6  ;;  %v18379_v6 = vld [vmem:[#allocation208_spill] sm:$0xff]  ;;  %v6920_v58 = vadd.f32 %v6919_v45, %v6918_v60  ;;  %v18383_v42 = vunpack.c.l.bf16 %v18382_v63  ;;  %v6908_v52 = vadd.f32 %v6907_v14, %v6906_v5 }
 0x462   :  { %v6035_v21 = vsel %vm17492_vm7, %v18376_v0, %v6034_v47  ;;  %v6419_v18 = vmul.f32 %v15431_v48, %v18378_v20  ;;  %v18380_v16 = vrot.slane %v18379_v6, %v17982_v4  ;;  %18381 = vst [vmem:[#allocation184_spill] sm:$0xff] %v15533_v3  ;;  %v15539_v47 = vpop.permute.xlu1 %5393  ;;  %v10451_v0 = vld [vmem:[#allocation5 + $0x70] sm:$0xff]   ;;  %v15541_v20 = vadd.f32 %v6986_v61, %v6985_v43  ;;  %v18385_v6 = vld [vmem:[#allocation214_spill] sm:$0xff]  ;;  %v15553_v43 = vpop.permute.xlu0 %5420 }
 0x463   :  { %v6137_v41 = vsel %vm3881_vm8, %v6035_v21, 0.0  ;;  %v6384_v25 = vmul.f32 %v15356_v33, %v18383_v42  ;;  %v6914_v57 = vrot.slane %v6913_v37, 2  ;;  %v6992_v60 = vadd.f32 %v6991_v1, %v6990_v29  ;;  %v18387_v42 = vld [vmem:[#allocation217_spill] sm:$0xff]  ;;  %10029 = vmatprep.subr.bf16.mxu1 %v10451_v0  ;;  %v10452_v5 = vld [vmem:[#allocation5 + $0x30] sm:$0xff]  }
 0x464   :  { %v6045_v15 = vsel %vm3750_vm3, %v18380_v16, %v15186_v62  ;;  %18384 = vst [vmem:[#allocation82_spill] sm:$0xff] %v15541_v20  ;;  %6138 = vadd.xlane.f32.xlu1 %v6137_v41  ;;  %v18386_v62 = vrot.slane %v18385_v6, %v17982_v4  ;;  %v5757_v19 = vrot.slane %v15292_v44, %v17982_v4  ;;  %v6926_v45 = vrot.slane %v6925_v9, 4  ;;  %v18389_v16 = vld [vmem:[#allocation220_spill] sm:$0xff] }
 0x465   :  { %v18388_v63 = vrot.slane %v18387_v42, %v17982_v4  ;;  %v6998_v61 = vrot.slane %v6997_v59, 2  ;;  %v7123_v14 = vadd.f32 %v7122_v24, %v7121_v38  ;;  %v7177_v21 = vsel %vm2719_vm0, %v6419_v18, 0.0  ;;  %v18391_v6 = vld [vmem:[#allocation228_spill] sm:$0xff]  ;;  %10030 = vmatpush3.bf16.msra.mxu1 %v10452_v5  ;;  %v10453_v38 = vld [vmem:[#allocation5 + $0x68] sm:$0xff]  }
 0x466   :  { %v6046_v30 = vsel %vm3752_vm4, %v18386_v62, %v6045_v15  ;;  %v18390_v29 = vrot.slane %v18389_v16, %v17982_v4  ;;  %v6921_v44 = vrot.slane %v6920_v58, 2  ;;  %v5761_v15 = vrot.slane %v15323_v51, %v17982_v4  ;;  %v18393_v42 = vld [vmem:[#allocation140_spill] sm:$0xff]  ;;  %v15576_v5 = vpop.permute.xlu1 %5396  ;;  %10031 = vmatprep.subr.bf16.mxu1 %v10453_v38 }
 0x467   :  { %v6047_v2 = vsel %vm3754_vm5, %v18388_v63, %v6046_v30  ;;  %v6932_v41 = vsel %vm2719_vm0, %v6384_v25, 0.0  ;;  %v18392_v62 = vrot.slane %v18391_v6, %v17982_v4  ;;  %v6915_v24 = vadd.f32 %v6914_v57, %v6913_v37  ;;  %v10454_v57 = vld [vmem:[#allocation5 + $0x28] sm:$0xff]  }
 0x468   :  { %v6048_v1 = vsel %vm17493_vm6, %v18390_v29, %v6047_v2  ;;  %v5765_v18 = vrot.slane %v15356_v33, %v17982_v4  ;;  %v18394_v63 = vunpack.c.l.bf16 %v18393_v42  ;;  %v6053_v51 = vsel %vm3752_vm4, %v5757_v19, %v6052_v50  ;;  %v18395_v6 = vld [vmem:[#allocation111_spill] sm:$0xff]  ;;  %v15582_v19 = vpop.permute.xlu0 %5423 }
 0x469   :  { %v6049_v0 = vsel %vm17492_vm7, %v18392_v62, %v6048_v1  ;;  %v6927_v25 = vadd.f32 %v6926_v45, %v6925_v9  ;;  %v7178_v16 = vrot.slane %v7177_v21, 4  ;;  %v5769_v29 = vrot.slane %v15382_v26, %v17982_v4  ;;  %10032 = vmatpush3.bf16.msra.mxu1 %v10454_v57  ;;  %v10455_v45 = vld [vmem:[#allocation5 + $0x60] sm:$0xff]  }
 0x46a   :  { %v6143_v30 = vsel %vm3881_vm8, %v6049_v0, 0.0  ;;  %v6420_v2 = vmul.f32 %v15472_v13, %v18394_v63  ;;  %v6999_v37 = vadd.f32 %v6998_v61, %v6997_v59  ;;  %v7124_v1 = vrot.slane %v7123_v14, 2  ;;  %v18397_v59 = vld [vmem:[#allocation144_spill] sm:$0xff]  ;;  %10033 = vmatprep.subr.bf16.mxu1 %v10455_v45 }
 0x46b   :  { %6144 = vadd.xlane.f32.xlu1 %v6143_v30  ;;  %v6933_v33 = vrot.slane %v6932_v41, 4  ;;  %v18396_v62 = vunpack.c.l.bf16 %v18395_v6  ;;  %v6909_v42 = vrot.slane %v6908_v52, 1  ;;  %v6993_v63 = vrot.slane %v6992_v60, 1 }
 0x46c   :  { %v6922_v50 = vadd.f32 %v6921_v44, %v6920_v58  ;;  %v6054_v9 = vsel %vm3754_vm5, %v5761_v15, %v6053_v51  ;;  %v6916_v30 = vrot.slane %v6915_v24, 1  ;;  %v7184_v20 = vsel %vm2719_vm0, %v6420_v2, 0.0  ;;  %v10456_v15 = vld [vmem:[#allocation5 + $0x20] sm:$0xff]  }
 0x46d   :  { %v6385_v0 = vmul.f32 %v15382_v26, %v18396_v62  ;;  %v18398_v61 = vunpack.c.l.bf16 %v18397_v59  ;;  %v6055_v6 = vsel %vm17493_vm6, %v5765_v18, %v6054_v9  ;;  %v6928_v26 = vrot.slane %v6927_v25, 2  ;;  %v18399_v62 = vld [vmem:[#allocation108_spill] sm:$0xff]  ;;  %10034 = vmatpush3.bf16.msra.mxu1 %v10456_v15  ;;  %v10458_v9 = vld [vmem:[#allocation5 + $0x18] sm:$0xff]  }
 0x46e   :  { %v7179_v38 = vadd.f32 %v7178_v16, %v7177_v21  ;;  %v18400_v23 = vunpack.c.l.bf16 %v18399_v62  ;;  %v6056_v44 = vsel %vm17492_vm7, %v5769_v29, %v6055_v6  ;;  %v7000_v51 = vrot.slane %v6999_v37, 1  ;;  %v15597_v21 = vpop.permute.xlu1 %5399  ;;  %v10457_v16 = vld [vmem:[#allocation5 + $0x58] sm:$0xff]   ;;  %v10460_v62 = vld [vmem:[#allocation5 + $0x50] sm:$0xff]  }
 0x46f   :  { %v6427_v3 = vmul.f32 %v15512_v34, %v18398_v61  ;;  %v7125_v57 = vadd.f32 %v7124_v1, %v7123_v14  ;;  %v6934_v28 = vadd.f32 %v6933_v33, %v6932_v41  ;;  %v6939_v2 = vsel %vm2719_vm0, %v6385_v0, 0.0  ;;  %10035 = vmatprep.subr.bf16.mxu1 %v10457_v16 }
 0x470   :  { %v6402_v58 = vmul.f32 %v15411_v49, %v18400_v23  ;;  %v15594_v59 = vadd.f32 %v6909_v42, %v6908_v52  ;;  %v6923_v61 = vrot.slane %v6922_v50, 1  ;;  %v7185_v55 = vrot.slane %v7184_v20, 4  ;;  %v15607_v42 = vpop.permute.xlu0 %5426 }
 0x471   :  { %v6146_v18 = vsel %vm3881_vm8, %v6056_v44, 0.0  ;;  %v15599_v23 = vadd.f32 %v6993_v63, %v6992_v60  ;;  %v15601_v29 = vadd.f32 %v6916_v30, %v6915_v24  ;;  %v7233_v41 = vsel %vm2719_vm0, %v6427_v3, 0.0  ;;  %10036 = vmatpush3.bf16.msra.mxu1 %v10458_v9  ;;  %v18403_v44 = vld [vmem:[#allocation150_spill] sm:$0xff] }
 0x472   :  { %6147 = vadd.xlane.f32.xlu0 %v6146_v18  ;;  %v6929_v52 = vadd.f32 %v6928_v26, %v6927_v25  ;;  %v7180_v1 = vrot.slane %v7179_v38, 2  ;;  %v6940_v33 = vrot.slane %v6939_v2, 4  ;;  %v7058_v0 = vsel %vm2719_vm0, %v6402_v58, 0.0  ;;  %v10459_v26 = vld [vmem:[#allocation7 + $0x38] sm:$0xff]   ;;  %v18405_v18 = vld [vmem:[#allocation112_spill] sm:$0xff]  ;;  %v15630_v14 = vpop.permute.xlu1 %5402  ;;  %10037 = vmatprep.subr.bf16.mxu1 %v10460_v62 }
 0x473   :  { %18401 = vst [vmem:[#allocation63_spill] sm:$0xff] %v15599_v23  ;;  %v15609_v45 = vadd.f32 %v7000_v51, %v6999_v37  ;;  %v7126_v60 = vrot.slane %v7125_v57, 1  ;;  %v6935_v63 = vrot.slane %v6934_v28, 2  ;;  %v15613_v30 = vadd.f32 %v6923_v61, %v6922_v50  ;;  %10251 = vmatprep.subr.bf16.mxu0 %v10459_v26  ;;  %v18536_v23 = vld [vmem:[#allocation226_spill] sm:$0xff] }
 0x474   :  { %v7186_v3 = vadd.f32 %v7185_v55, %v7184_v20  ;;  %v7234_v6 = vrot.slane %v7233_v41, 4  ;;  %v5773_v25 = vrot.slane %v15456_v46, %v17982_v4  ;;  %v7059_v37 = vrot.slane %v7058_v0, 4  ;;  %10252 = vmatpush3.bf16.msra.mxu0 %v10459_v26 }
 0x475   :  { %18402 = vst [vmem:[#allocation129_spill] sm:$0xff] %v15609_v45  ;;  %v18404_v15 = vunpack.c.l.bf16 %v18403_v44  ;;  %v18406_v16 = vunpack.c.l.bf16 %v18405_v18  ;;  %v6930_v55 = vrot.slane %v6929_v52, 1  ;;  %v7181_v20 = vadd.f32 %v7180_v1, %v7179_v38  ;;  %v10461_v44 = vld [vmem:[#allocation5 + $0x10] sm:$0xff]  }
 0x476   :  { %v6941_v61 = vadd.f32 %v6940_v33, %v6939_v2  ;;  %v18407_v9 = vrot.slane %v15115_v7, %v17982_v4  ;;  %v15632_v58 = vadd.f32 %v7126_v60, %v7125_v57  ;;  %v18409_v38 = vrot.slane %v15130_v11, %v17982_v4  ;;  %v15648_v60 = vpop.permute.xlu0 %5429  ;;  %10038 = vmatpush3.bf16.msra.mxu1 %v10461_v44  ;;  %v10463_v11 = vld [vmem:[#allocation5 + $0x48] sm:$0xff]  }
 0x477   :  { %v6421_v51 = vmul.f32 %v15553_v43, %v18404_v15  ;;  %v6386_v50 = vmul.f32 %v15456_v46, %v18406_v16  ;;  %v6936_v15 = vadd.f32 %v6935_v63, %v6934_v28  ;;  %v5837_v46 = vrot.slane %v15411_v49, %v17982_v4  ;;  %v10462_v49 = vld [vmem:[#allocation7 + $0x30] sm:$0xff]   ;;  %v10464_v16 = vld [vmem:[#allocation5 + $0x8] sm:$0xff]   ;;  %10039 = vmatprep.subr.bf16.mxu1 %v10463_v11 }
 0x478   :  { %v6068_v24 = vsel %vm3754_vm5, %v18407_v9, %v15361_v10  ;;  %18408 = vst [vmem:[#allocation87_spill] sm:$0xff] %v15632_v58  ;;  %v7187_v7 = vrot.slane %v7186_v3, 2  ;;  %v7235_v1 = vadd.f32 %v7234_v6, %v7233_v41  ;;  %v18410_v10 = vrot.slane %v15147_v35, %v17982_v4  ;;  %10253 = vmatprep.subr.bf16.mxu0 %v10462_v49  ;;  %v18421_v11 = vld [vmem:[#allocation135_spill] sm:$0xff] }
 0x479   :  { %v6069_v2 = vsel %vm17493_vm6, %v18409_v38, %v6068_v24  ;;  %v18411_v57 = vrot.slane %v15149_v31, %v17982_v4  ;;  %v7060_v63 = vadd.f32 %v7059_v37, %v7058_v0  ;;  %v7191_v24 = vsel %vm2719_vm0, %v6421_v51, 0.0  ;;  %v18413_v31 = vld [vmem:[#allocation148_spill] sm:$0xff]  ;;  %v18416_v51 = vld [vmem:[#allocation133_spill] sm:$0xff]  ;;  %10254 = vmatpush3.bf16.msra.mxu0 %v10462_v49 }
 0x47a   :  { %v6057_v33 = vsel %vm3746_vm1, %v18410_v10, %v5773_v25  ;;  %v6946_v41 = vsel %vm2719_vm0, %v6386_v50, 0.0  ;;  %v15653_v35 = vadd.f32 %v6930_v55, %v6929_v52  ;;  %v7182_v25 = vrot.slane %v7181_v20, 1  ;;  %v18418_v55 = vld [vmem:[#allocation153_spill] sm:$0xff]  ;;  %10040 = vmatpush3.bf16.msra.mxu1 %v10464_v16 }
 0x47b   :  { %v6070_v28 = vsel %vm17492_vm7, %v18411_v57, %v6069_v2  ;;  %v6942_v26 = vrot.slane %v6941_v61, 2  ;;  %v18414_v62 = vunpack.c.l.bf16 %v18413_v31  ;;  %v6937_v9 = vrot.slane %v6936_v15, 1  ;;  %v10466_v31 = vld [vmem:[#allocation5 + $0x40] sm:$0xff]  }
 0x47c   :  { %v6152_v6 = vsel %vm3881_vm8, %v6070_v28, 0.0  ;;  %18412 = vst [vmem:[#allocation136_spill] sm:$0xff] %v15653_v35  ;;  %v18415_v0 = vrot.slane %v15180_v53, %v17982_v4  ;;  %v18417_v50 = vunpack.c.l.bf16 %v18416_v51  ;;  %v18419_v44 = vunpack.c.l.bf16 %v18418_v55  ;;  %v15686_v55 = vpop.permute.xlu0 %5432  ;;  %10041 = vmatprep.subr.bf16.mxu1 %v10466_v31  ;;  %v10469_v31 = vld [vmem:[#allocation7 + $0x20] sm:$0xff]  }
 0x47d   :  { %6153 = vadd.xlane.f32.xlu0 %v6152_v6  ;;  %v6422_v18 = vmul.f32 %v15582_v19, %v18414_v62  ;;  %v7188_v2 = vadd.f32 %v7187_v7, %v7186_v3  ;;  %v18420_v10 = vrot.slane %v14956_v8, %v17982_v4  ;;  %v7192_v28 = vrot.slane %v7191_v24, 4  ;;  %v15672_v6 = vpop.permute.xlu1 %5405  ;;  %v18436_v62 = vld [vmem:[#allocation149_spill] sm:$0xff] }
 0x47e   :  { %v6058_v37 = vsel %vm3748_vm2, %v18415_v0, %v6057_v33  ;;  %v6410_v52 = vmul.f32 %v15497_v27, %v18417_v50  ;;  %v6423_v38 = vmul.f32 %v15607_v42, %v18419_v44  ;;  %v6947_v53 = vrot.slane %v6946_v41, 4  ;;  %v10465_v33 = vld [vmem:[#allocation7 + $0x28] sm:$0xff]   ;;  %v10467_v44 = vld [vmem:[#allocation5] sm:$0xff]  }
 0x47f   :  { %v6071_v57 = vsel %vm3746_vm1, %v18420_v10, %v5837_v46  ;;  %v7236_v0 = vrot.slane %v7235_v1, 2  ;;  %v7061_v51 = vrot.slane %v7060_v63, 2  ;;  %v18422_v49 = vunpack.c.l.bf16 %v18421_v11  ;;  %10255 = vmatprep.subr.bf16.mxu0 %v10465_v33  ;;  %10042 = vmatpush3.bf16.msra.mxu1 %v10467_v44 }
 0x480   :  { %v15679_v7 = vadd.f32 %v7182_v25, %v7181_v20  ;;  %v6943_v8 = vadd.f32 %v6942_v26, %v6941_v61  ;;  %v18424_v46 = vrot.slane %v15221_v36, %v17982_v4  ;;  %v7198_v16 = vsel %vm2719_vm0, %v6422_v18, 0.0  ;;  %10256 = vmatpush3.bf16.msra.mxu0 %v10465_v33  ;;  %v15722_v44 = vpop.permute.xlu0 %5462 }
 0x481   :  { %v6412_v3 = vmul.f32 %v15539_v47, %v18422_v49  ;;  %v15688_v10 = vadd.f32 %v6937_v9, %v6936_v15  ;;  %v18426_v11 = vrot.slane %v14982_v40, %v17982_v4  ;;  %v7114_v61 = vsel %vm2719_vm0, %v6410_v52, 0.0  ;;  %10257 = vmatprep.subr.bf16.mxu0 %v10469_v31 }
 0x482   :  { %18423 = vst [vmem:[#allocation64_spill] sm:$0xff] %v15679_v7  ;;  %v6059_v50 = vsel %vm3750_vm3, %v18424_v46, %v6058_v37  ;;  %v7205_v36 = vsel %vm2719_vm0, %v6423_v38, 0.0  ;;  %v7189_v25 = vrot.slane %v7188_v2, 1  ;;  %v7193_v26 = vadd.f32 %v7192_v28, %v7191_v24 }
 0x483   :  { %18425 = vst [vmem:[#allocation139_spill] sm:$0xff] %v15688_v10  ;;  %v6072_v20 = vsel %vm3748_vm2, %v18426_v11, %v6071_v57  ;;  %v6948_v18 = vadd.f32 %v6947_v53, %v6946_v41  ;;  %v7128_v37 = vsel %vm2719_vm0, %v6412_v3, 0.0  ;;  %v7237_v49 = vadd.f32 %v7236_v0, %v7235_v1  ;;  %v15705_v41 = vpop.permute.xlu1 %5408 }
 0x484   :  { %v7062_v15 = vadd.f32 %v7061_v51, %v7060_v63  ;;  %v7199_v9 = vrot.slane %v7198_v16, 4  ;;  %v18427_v40 = vrot.slane %v15270_v54, %v17982_v4  ;;  %v6944_v46 = vrot.slane %v6943_v8, 1  ;;  %v18430_v54 = vld [vmem:[#allocation156_spill] sm:$0xff]  ;;  %10258 = vmatpush3.bf16.msra.mxu0 %v10469_v31 }
 0x485   :  { %v7115_v52 = vrot.slane %v7114_v61, 4  ;;  %v7206_v11 = vrot.slane %v7205_v36, 4  ;;  %v18428_v38 = vrot.slane %v15305_v39, %v17982_v4  ;;  %v18429_v1 = vrot.slane %v15009_v32, %v17982_v4 }
 0x486   :  { %v6060_v57 = vsel %vm3752_vm4, %v18427_v40, %v6059_v50  ;;  %v7129_v28 = vrot.slane %v7128_v37, 4  ;;  %v18431_v53 = vunpack.c.l.bf16 %v18430_v54  ;;  %v18432_v0 = vrot.slane %v15335_v22, %v17982_v4 }
 0x487   :  { %v6061_v24 = vsel %vm3754_vm5, %v18428_v38, %v6060_v57  ;;  %v6073_v63 = vsel %vm3750_vm3, %v18429_v1, %v6072_v20  ;;  %v15718_v51 = vadd.f32 %v7189_v25, %v7188_v2  ;;  %v7194_v50 = vrot.slane %v7193_v26, 2  ;;  %v10470_v20 = vld [vmem:[#allocation7 + $0x18] sm:$0xff]  }
 0x488   :  { %v6424_v33 = vmul.f32 %v15648_v60, %v18431_v53  ;;  %v6062_v39 = vsel %vm17493_vm6, %v18432_v0, %v6061_v24  ;;  %v6949_v32 = vrot.slane %v6948_v18, 2  ;;  %v7238_v40 = vrot.slane %v7237_v49, 1  ;;  %10259 = vmatprep.subr.bf16.mxu0 %v10470_v20 }
 0x489   :  { %18433 = vst [vmem:[#allocation88_spill] sm:$0xff] %v15718_v51  ;;  %v7063_v57 = vrot.slane %v7062_v15, 1  ;;  %v7200_v38 = vadd.f32 %v7199_v9, %v7198_v16  ;;  %v18434_v1 = vrot.slane %v15365_v17, %v17982_v4  ;;  %v15728_v24 = vadd.f32 %v6944_v46, %v6943_v8  ;;  %10260 = vmatpush3.bf16.msra.mxu0 %v10470_v20 }
 0x48a   :  { %v5869_v2 = vrot.slane %v15497_v27, %v17982_v4  ;;  %v7116_v25 = vadd.f32 %v7115_v52, %v7114_v61  ;;  %v7207_v31 = vadd.f32 %v7206_v11, %v7205_v36  ;;  %v7130_v54 = vadd.f32 %v7129_v28, %v7128_v37  ;;  %v15741_v61 = vpop.permute.xlu1 %5411  ;;  %v10472_v36 = vld [vmem:[#allocation7 + $0x10] sm:$0xff]  }
 0x48b   :  { %v6063_v22 = vsel %vm17492_vm7, %v18434_v1, %v6062_v39  ;;  %18435 = vst [vmem:[#allocation65_spill] sm:$0xff] %v15728_v24  ;;  %v7212_v53 = vsel %vm2719_vm0, %v6424_v33, 0.0  ;;  %v18437_v16 = vunpack.c.l.bf16 %v18436_v62  ;;  %v7195_v17 = vadd.f32 %v7194_v50, %v7193_v26  ;;  %10261 = vmatprep.subr.bf16.mxu0 %v10472_v36  ;;  %v18444_v1 = vld [vmem:[#allocation43_spill] sm:$0xff]  ;;  %v18448_v28 = vld [vmem:[#allocation44_spill] sm:$0xff] }
 0x48c   :  { %v6149_v0 = vsel %vm3881_vm8, %v6063_v22, 0.0  ;;  %v6950_v39 = vadd.f32 %v6949_v32, %v6948_v18  ;;  %v5877_v27 = vrot.slane %v15539_v47, %v17982_v4  ;;  %v15743_v37 = vadd.f32 %v7238_v40, %v7237_v49  ;;  %v15757_v49 = vpop.permute.xlu0 %5465 }
 0x48d   :  { %v6413_v9 = vmul.f32 %v15576_v5, %v18437_v16  ;;  %6150 = vadd.xlane.f32.xlu1 %v6149_v0  ;;  %v15745_v46 = vadd.f32 %v7063_v57, %v7062_v15  ;;  %v7201_v62 = vrot.slane %v7200_v38, 2  ;;  %v18440_v52 = vrot.slane %v15043_v56, %v17982_v4  ;;  %v18442_v56 = vld [vmem:[#allocation37_spill] sm:$0xff]  ;;  %10262 = vmatpush3.bf16.msra.mxu0 %v10472_v36  ;;  %v10473_v0 = vld [vmem:[#allocation7 + $0x8] sm:$0xff]  }
 0x48e   :  { %18438 = vst [vmem:[#allocation186_spill] sm:$0xff] %v15743_v37  ;;  %v18441_v18 = vrot.slane %v15388_v12, %v17982_v4  ;;  %v7117_v47 = vrot.slane %v7116_v25, 2  ;;  %v7213_v33 = vrot.slane %v7212_v53, 4  ;;  %v7208_v15 = vrot.slane %v7207_v31, 2  ;;  %10263 = vmatprep.subr.bf16.mxu0 %v10473_v0 }
 0x48f   :  { %18439 = vst [vmem:[#allocation78_spill] sm:$0xff] %v15745_v46  ;;  %v6074_v26 = vsel %vm3752_vm4, %v18440_v52, %v6073_v63  ;;  %v7131_v50 = vrot.slane %v7130_v54, 2  ;;  %v7135_v32 = vsel %vm2719_vm0, %v6413_v9, 0.0  ;;  %v18443_v63 = vrot.slane %v18442_v56, %v17982_v4  ;;  %v18446_v52 = vld [vmem:[#allocation172_spill] sm:$0xff] }
 0x490   :  { %v6078_v11 = vsel %vm3746_vm1, %v18441_v18, %v5869_v2  ;;  %v7196_v12 = vrot.slane %v7195_v17, 1  ;;  %v6951_v40 = vrot.slane %v6950_v39, 1  ;;  %v18445_v22 = vrot.slane %v18444_v1, %v17982_v4 }
 0x491   :  { %v6075_v20 = vsel %vm3754_vm5, %v18443_v63, %v6074_v26  ;;  %v6079_v57 = vsel %vm3748_vm2, %v5877_v27, %v6078_v11  ;;  %v7202_v16 = vadd.f32 %v7201_v62, %v7200_v38  ;;  %v18447_v18 = vunpack.c.l.bf16 %v18446_v52  ;;  %v18450_v26 = vld [vmem:[#allocation138_spill] sm:$0xff]  ;;  %10264 = vmatpush3.bf16.msra.mxu0 %v10473_v0 }
 0x492   :  { %v6076_v2 = vsel %vm17493_vm6, %v18445_v22, %v6075_v20  ;;  %v18449_v56 = vrot.slane %v18448_v28, %v17982_v4  ;;  %v18451_v63 = vunpack.c.l.bf16 %v18450_v26  ;;  %v7118_v11 = vadd.f32 %v7117_v47, %v7116_v25  ;;  %v15780_v22 = vpop.permute.xlu1 %5435  ;;  %v18452_v52 = vld [vmem:[#allocation162_spill] sm:$0xff]  ;;  %v18455_v47 = vld [vmem:[#allocation152_spill] sm:$0xff] }
 0x493   :  { %v6425_v9 = vmul.f32 %v15686_v55, %v18447_v18  ;;  %v7214_v8 = vadd.f32 %v7213_v33, %v7212_v53  ;;  %v7136_v1 = vrot.slane %v7135_v32, 4  ;;  %v7209_v38 = vadd.f32 %v7208_v15, %v7207_v31  ;;  %v15794_v31 = vpop.permute.xlu0 %5468 }
 0x494   :  { %v6077_v36 = vsel %vm17492_vm7, %v18449_v56, %v6076_v2  ;;  %v6414_v27 = vmul.f32 %v15597_v21, %v18451_v63  ;;  %v7132_v62 = vadd.f32 %v7131_v50, %v7130_v54  ;;  %v18453_v18 = vunpack.c.l.bf16 %v18452_v52  ;;  %v10475_v54 = vld [vmem:[#allocation7] sm:$0xff]  }
 0x495   :  { %v6155_v20 = vsel %vm3881_vm8, %v6077_v36, 0.0  ;;  %v15785_v2 = vadd.f32 %v7196_v12, %v7195_v17  ;;  %v5881_v53 = vrot.slane %v15576_v5, %v17982_v4  ;;  %v18456_v33 = vunpack.c.l.bf16 %v18455_v47  ;;  %v18457_v17 = vld [vmem:[#allocation164_spill] sm:$0xff]  ;;  %10265 = vmatprep.subr.bf16.mxu0 %v10475_v54 }
 0x496   :  { %6156 = vadd.xlane.f32.xlu1 %v6155_v20  ;;  %v6435_v28 = vmul.f32 %v15722_v44, %v18453_v18  ;;  %v7203_v15 = vrot.slane %v7202_v16, 1  ;;  %v7219_v50 = vsel %vm2719_vm0, %v6425_v9, 0.0  ;;  %v7142_v0 = vsel %vm2719_vm0, %v6414_v27, 0.0  ;;  %10266 = vmatpush3.bf16.msra.mxu0 %v10475_v54 }
 0x497   :  { %18454 = vst [vmem:[#allocation66_spill] sm:$0xff] %v15785_v2  ;;  %v6415_v56 = vmul.f32 %v15630_v14, %v18456_v33  ;;  %v18458_v12 = vunpack.c.l.bf16 %v18457_v17  ;;  %v15801_v26 = vadd.f32 %v6951_v40, %v6950_v39  ;;  %v7119_v63 = vrot.slane %v7118_v11, 1  ;;  %v18460_v33 = vld [vmem:[#allocation154_spill] sm:$0xff]  ;;  %v15809_v40 = vpop.permute.xlu1 %5441 }
 0x498   :  { %v7215_v5 = vrot.slane %v7214_v8, 2  ;;  %v7137_v20 = vadd.f32 %v7136_v1, %v7135_v32  ;;  %v7210_v52 = vrot.slane %v7209_v38, 1  ;;  %v7133_v18 = vrot.slane %v7132_v62, 1 }
 0x499   :  { %v6436_v36 = vmul.f32 %v15757_v49, %v18458_v12  ;;  %18459 = vst [vmem:[#allocation83_spill] sm:$0xff] %v15801_v26  ;;  %v7289_v47 = vsel %vm2719_vm0, %v6435_v28, 0.0  ;;  %v18461_v25 = vunpack.c.l.bf16 %v18460_v33  ;;  %v7220_v27 = vrot.slane %v7219_v50, 4 }
 0x49a   :  { %v7143_v3 = vrot.slane %v7142_v0, 4  ;;  %v7149_v17 = vsel %vm2719_vm0, %v6415_v56, 0.0  ;;  %v15811_v12 = vadd.f32 %v7203_v15, %v7202_v16  ;;  %v6080_v32 = vsel %vm3750_vm3, %v5881_v53, %v6079_v57  ;;  %v15819_v56 = vpop.permute.xlu0 %5471  ;;  %v18464_v15 = vld [vmem:[#allocation166_spill] sm:$0xff] }
 0x49b   :  { %v6416_v9 = vmul.f32 %v15672_v6, %v18461_v25  ;;  %v7296_v39 = vsel %vm2719_vm0, %v6436_v36, 0.0  ;;  %v5885_v28 = vrot.slane %v15597_v21, %v17982_v4  ;;  %v7216_v25 = vadd.f32 %v7215_v5, %v7214_v8 }
 0x49c   :  { %18462 = vst [vmem:[#allocation147_spill] sm:$0xff] %v15811_v12  ;;  %v7138_v54 = vrot.slane %v7137_v20, 2  ;;  %v7290_v33 = vrot.slane %v7289_v47, 4  ;;  %v15821_v36 = vadd.f32 %v7119_v63, %v7118_v11  ;;  %v7150_v2 = vrot.slane %v7149_v17, 4  ;;  %v18470_v63 = vld [vmem:[#allocation168_spill] sm:$0xff] }
 0x49d   :  { %v7156_v37 = vsel %vm2719_vm0, %v6416_v9, 0.0  ;;  %v7297_v16 = vrot.slane %v7296_v39, 4  ;;  %v18465_v12 = vunpack.c.l.bf16 %v18464_v15  ;;  %v15826_v53 = vadd.f32 %v7210_v52, %v7209_v38  ;;  %v18468_v9 = vld [vmem:[#allocation174_spill] sm:$0xff] }
 0x49e   :  { %18463 = vst [vmem:[#allocation71_spill] sm:$0xff] %v15821_v36  ;;  %v15828_v1 = vadd.f32 %v7133_v18, %v7132_v62  ;;  %v7221_v21 = vadd.f32 %v7220_v27, %v7219_v50  ;;  %v7144_v8 = vadd.f32 %v7143_v3, %v7142_v0  ;;  %v6081_v5 = vsel %vm3752_vm4, %v5885_v28, %v6080_v32  ;;  %v15839_v62 = vpop.permute.xlu1 %5444 }
 0x49f   :  { %v6417_v57 = vmul.f32 %v15705_v41, %v18465_v12  ;;  %18466 = vst [vmem:[#allocation84_spill] sm:$0xff] %v15826_v53  ;;  %v7157_v51 = vrot.slane %v7156_v37, 4  ;;  %v18469_v7 = vunpack.c.l.bf16 %v18468_v9  ;;  %v18471_v36 = vunpack.c.l.bf16 %v18470_v63 }
 0x4a0   :  { %18467 = vst [vmem:[#allocation171_spill] sm:$0xff] %v15828_v1  ;;  %v7217_v15 = vrot.slane %v7216_v25, 1  ;;  %v7139_v46 = vadd.f32 %v7138_v54, %v7137_v20  ;;  %v7291_v12 = vadd.f32 %v7290_v33, %v7289_v47  ;;  %v5889_v38 = vrot.slane %v15630_v14, %v17982_v4 }
 0x4a1   :  { %v6437_v11 = vmul.f32 %v15794_v31, %v18469_v7  ;;  %v6438_v58 = vmul.f32 %v15819_v56, %v18471_v36  ;;  %v7151_v3 = vadd.f32 %v7150_v2, %v7149_v17  ;;  %v7298_v50 = vadd.f32 %v7297_v16, %v7296_v39  ;;  %v18472_v2 = vld [vmem:[#allocation142_spill] sm:$0xff] }
 0x4a2   :  { %v5893_v0 = vrot.slane %v15672_v6, %v17982_v4  ;;  %v7163_v52 = vsel %vm2719_vm0, %v6417_v57, 0.0  ;;  %v7222_v7 = vrot.slane %v7221_v21, 2  ;;  %v7145_v18 = vrot.slane %v7144_v8, 2  ;;  %v15863_v63 = vpop.permute.xlu1 %5447 }
 0x4a3   :  { %v5897_v27 = vrot.slane %v15705_v41, %v17982_v4  ;;  %v5901_v20 = vrot.slane %v15741_v61, %v17982_v4  ;;  %v7158_v47 = vadd.f32 %v7157_v51, %v7156_v37  ;;  %v7303_v14 = vsel %vm2719_vm0, %v6437_v11, 0.0  ;;  %v15856_v51 = vpop.permute.xlu0 %5474 }
 0x4a4   :  { %v7310_v32 = vsel %vm2719_vm0, %v6438_v58, 0.0  ;;  %v18473_v17 = vunpack.c.l.bf16 %v18472_v2  ;;  %v7140_v6 = vrot.slane %v7139_v46, 1  ;;  %v7292_v28 = vrot.slane %v7291_v12, 2 }
 0x4a5   :  { %v6082_v54 = vsel %vm3754_vm5, %v5889_v38, %v6081_v5  ;;  %v7164_v33 = vrot.slane %v7163_v52, 4  ;;  %v7152_v36 = vrot.slane %v7151_v3, 2  ;;  %v7299_v16 = vrot.slane %v7298_v50, 2 }
 0x4a6   :  { %v6418_v39 = vmul.f32 %v15741_v61, %v18473_v17  ;;  %v6083_v57 = vsel %vm17493_vm6, %v5893_v0, %v6082_v54  ;;  %v7304_v37 = vrot.slane %v7303_v14, 4  ;;  %v7311_v9 = vrot.slane %v7310_v32, 4 }
 0x4a7   :  { %v18474_v58 = vrot.slane %v15431_v48, %v17982_v4  ;;  %v6084_v11 = vsel %vm17492_vm7, %v5897_v27, %v6083_v57  ;;  %v7223_v5 = vadd.f32 %v7222_v7, %v7221_v21  ;;  %v7146_v38 = vadd.f32 %v7145_v18, %v7144_v8  ;;  %v18477_v57 = vld [vmem:[#allocation178_spill] sm:$0xff] }
 0x4a8   :  { %v7170_v41 = vsel %vm2719_vm0, %v6418_v39, 0.0  ;;  %v7159_v2 = vrot.slane %v7158_v47, 2  ;;  %v6158_v17 = vsel %vm3881_vm8, %v6084_v11, 0.0  ;;  %v5969_v0 = vrot.slane %v15722_v44, %v17982_v4 }
 0x4a9   :  { %v6085_v61 = vsel %vm3746_vm1, %v18474_v58, %v5901_v20  ;;  %v7293_v39 = vadd.f32 %v7292_v28, %v7291_v12  ;;  %v7165_v54 = vadd.f32 %v7164_v33, %v7163_v52  ;;  %v7171_v53 = vrot.slane %v7170_v41, 4  ;;  %6159 = vadd.xlane.f32.xlu0 %v6158_v17  ;;  %v18483_v17 = vld [vmem:[#allocation180_spill] sm:$0xff] }
 0x4aa   :  { %v15868_v1 = vadd.f32 %v7217_v15, %v7216_v25  ;;  %v7153_v48 = vadd.f32 %v7152_v36, %v7151_v3  ;;  %v7300_v20 = vadd.f32 %v7299_v16, %v7298_v50  ;;  %v18476_v27 = vrot.slane %v15472_v13, %v17982_v4  ;;  %v15881_v50 = vpop.permute.xlu0 %5477 }
 0x4ab   :  { %v5973_v8 = vrot.slane %v15757_v49, %v17982_v4  ;;  %v7305_v7 = vadd.f32 %v7304_v37, %v7303_v14  ;;  %v7312_v18 = vadd.f32 %v7311_v9, %v7310_v32  ;;  %v18478_v58 = vunpack.c.l.bf16 %v18477_v57  ;;  %v15887_v32 = vpop.permute.xlu1 %5450 }
 0x4ac   :  { %18475 = vst [vmem:[#allocation72_spill] sm:$0xff] %v15868_v1  ;;  %v6086_v21 = vsel %vm3748_vm2, %v18476_v27, %v6085_v61  ;;  %v15879_v52 = vadd.f32 %v7140_v6, %v7139_v46  ;;  %v7224_v25 = vrot.slane %v7223_v5, 1  ;;  %v7147_v15 = vrot.slane %v7146_v38, 1  ;;  %v18481_v6 = vld [vmem:[#allocation146_spill] sm:$0xff] }
 0x4ad   :  { %v6439_v12 = vmul.f32 %v15856_v51, %v18478_v58  ;;  %v7160_v3 = vadd.f32 %v7159_v2, %v7158_v47  ;;  %v7294_v28 = vrot.slane %v7293_v39, 1  ;;  %v7166_v13 = vrot.slane %v7165_v54, 2 }
 0x4ae   :  { %18479 = vst [vmem:[#allocation185_spill] sm:$0xff] %v15879_v52  ;;  %v18480_v33 = vrot.slane %v15553_v43, %v17982_v4  ;;  %v7172_v14 = vadd.f32 %v7171_v53, %v7170_v41  ;;  %v7154_v16 = vrot.slane %v7153_v48, 1  ;;  %v7301_v37 = vrot.slane %v7300_v20, 1 }
 0x4af   :  { %v5977_v46 = vrot.slane %v15794_v31, %v17982_v4  ;;  %v18482_v9 = vunpack.c.l.bf16 %v18481_v6  ;;  %v7306_v61 = vrot.slane %v7305_v7, 2  ;;  %v7313_v11 = vrot.slane %v7312_v18, 2 }
 0x4b0   :  { %v6087_v36 = vsel %vm3750_vm3, %v18480_v33, %v6086_v21  ;;  %v7317_v2 = vsel %vm2719_vm0, %v6439_v12, 0.0  ;;  %v18484_v43 = vunpack.c.l.bf16 %v18483_v17  ;;  %v15898_v53 = vadd.f32 %v7224_v25, %v7223_v5 }
 0x4b1   :  { %v6426_v47 = vmul.f32 %v15780_v22, %v18482_v9  ;;  %v15900_v41 = vadd.f32 %v7147_v15, %v7146_v38  ;;  %v7161_v21 = vrot.slane %v7160_v3, 1  ;;  %v18487_v57 = vrot.slane %v15582_v19, %v17982_v4  ;;  %v15913_v38 = vpop.permute.xlu0 %5480 }
 0x4b2   :  { %v6440_v27 = vmul.f32 %v15881_v50, %v18484_v43  ;;  %18485 = vst [vmem:[#allocation85_spill] sm:$0xff] %v15898_v53  ;;  %v15906_v33 = vadd.f32 %v7294_v28, %v7293_v39  ;;  %v7167_v6 = vadd.f32 %v7166_v13, %v7165_v54  ;;  %v5981_v12 = vrot.slane %v15819_v56, %v17982_v4 }
 0x4b3   :  { %18486 = vst [vmem:[#allocation61_spill] sm:$0xff] %v15900_v41  ;;  %v6088_v58 = vsel %vm3752_vm4, %v18487_v57, %v6087_v36  ;;  %v7173_v9 = vrot.slane %v7172_v14, 2  ;;  %v15910_v17 = vadd.f32 %v7154_v16, %v7153_v48  ;;  %v7318_v43 = vrot.slane %v7317_v2, 4  ;;  %v5460_v48 = vpop.permute.xlu1 %5459  ;;  %v18495_v16 = vld [vmem:[#allocation161_spill] sm:$0xff]  ;;  %v18531_v41 = vld [vmem:[#allocation31_spill] sm:$0xff] }
 0x4b4   :  { %18488 = vst [vmem:[#allocation123_spill] sm:$0xff] %v15906_v33  ;;  %v7226_v5 = vsel %vm2719_vm0, %v6426_v47, 0.0  ;;  %v18490_v25 = vrot.slane %v15607_v42, %v17982_v4  ;;  %v15919_v15 = vadd.f32 %v7301_v37, %v7300_v20  ;;  %v15921_v39 = vadd.f32 %v7306_v61, %v7305_v7 }
 0x4b5   :  { %18489 = vst [vmem:[#allocation86_spill] sm:$0xff] %v15910_v17  ;;  %v15923_v54 = vadd.f32 %v7313_v11, %v7312_v18  ;;  %v7324_v28 = vsel %vm2719_vm0, %v6440_v27, 0.0  ;;  %v15926_v13 = vadd.f32 %v7161_v21, %v7160_v3  ;;  %v5933_v36 = vrot.slane %v15780_v22, %v17982_v4  ;;  %v18498_v11 = vld [vmem:[#allocation182_spill] sm:$0xff] }
 0x4b6   :  { %v6089_v19 = vsel %vm3754_vm5, %v18490_v25, %v6088_v58  ;;  %18491 = vst [vmem:[#allocation67_spill] sm:$0xff] %v15919_v15  ;;  %18492 = vst [vmem:[#allocation151_spill] sm:$0xff] %v15921_v39  ;;  %v18496_v47 = vunpack.c.l.bf16 %v18495_v16  ;;  %v18497_v20 = vrot.slane %v15648_v60, %v17982_v4  ;;  %v7168_v37 = vrot.slane %v7167_v6, 1  ;;  %v18501_v25 = vld [vmem:[#allocation173_spill] sm:$0xff] }
 0x4b7   :  { %18493 = vst [vmem:[#allocation141_spill] sm:$0xff] %v15923_v54  ;;  %18494 = vst [vmem:[#allocation91_spill] sm:$0xff] %v15926_v13  ;;  %v7174_v18 = vadd.f32 %v7173_v9, %v7172_v14  ;;  %v7227_v61 = vrot.slane %v7226_v5, 4  ;;  %v18499_v27 = vunpack.c.l.bf16 %v18498_v11  ;;  %v7319_v21 = vadd.f32 %v7318_v43, %v7317_v2  ;;  %v18530_v13 = vld [vmem:[#allocation28_spill] sm:$0xff] }
 0x4b8   :  { %v6428_v42 = vmul.f32 %v15809_v40, %v18496_v47  ;;  %v6090_v7 = vsel %vm17493_vm6, %v18497_v20, %v6089_v19  ;;  %v7325_v57 = vrot.slane %v7324_v28, 4  ;;  %v18500_v22 = vrot.slane %v15686_v55, %v17982_v4 }
 0x4b9   :  { %v6441_v3 = vmul.f32 %v15913_v38, %v18499_v27  ;;  %v18502_v16 = vunpack.c.l.bf16 %v18501_v25  ;;  %v5985_v9 = vrot.slane %v15856_v51, %v17982_v4  ;;  %v5989_v2 = vrot.slane %v15881_v50, %v17982_v4  ;;  %v5454_v50 = vpop.permute.xlu1 %5453 }
 0x4ba   :  { %v6091_v58 = vsel %vm17492_vm7, %v18500_v22, %v6090_v7  ;;  %v18503_v43 = vrot.slane %v15512_v34, %v17982_v4  ;;  %v5941_v47 = vrot.slane %v15809_v40, %v17982_v4  ;;  %v7240_v20 = vsel %vm2719_vm0, %v6428_v42, 0.0  ;;  %v18505_v42 = vld [vmem:[#allocation163_spill] sm:$0xff] }
 0x4bb   :  { %v6429_v60 = vmul.f32 %v15839_v62, %v18502_v16  ;;  %v6161_v7 = vsel %vm3881_vm8, %v6091_v58, 0.0  ;;  %v15961_v11 = vadd.f32 %v7168_v37, %v7167_v6  ;;  %v7175_v27 = vrot.slane %v7174_v18, 1  ;;  %v18507_v37 = vld [vmem:[#allocation176_spill] sm:$0xff] }
 0x4bc   :  { %v6092_v55 = vsel %vm3746_vm1, %v18503_v43, %v5933_v36  ;;  %v7228_v22 = vadd.f32 %v7227_v61, %v7226_v5  ;;  %v7331_v51 = vsel %vm2719_vm0, %v6441_v3, 0.0  ;;  %6162 = vadd.xlane.f32.xlu1 %v6161_v7  ;;  %v7320_v25 = vrot.slane %v7319_v21, 2 }
 0x4bd   :  { %18504 = vst [vmem:[#allocation68_spill] sm:$0xff] %v15961_v11  ;;  %v7326_v16 = vadd.f32 %v7325_v57, %v7324_v28  ;;  %v7247_v34 = vsel %vm2719_vm0, %v6429_v60, 0.0  ;;  %v5965_v36 = vrot.slane %v5460_v48, %v17982_v4  ;;  %v7241_v43 = vrot.slane %v7240_v20, 4  ;;  %v18509_v57 = vld [vmem:[#allocation170_spill] sm:$0xff] }
 0x4be   :  { %v5993_v40 = vrot.slane %v15913_v38, %v17982_v4  ;;  %v18506_v58 = vunpack.c.l.bf16 %v18505_v42  ;;  %v18508_v5 = vunpack.c.l.bf16 %v18507_v37  ;;  %v6093_v3 = vsel %vm3748_vm2, %v5941_v47, %v6092_v55 }
 0x4bf   :  { %v7332_v7 = vrot.slane %v7331_v51, 4  ;;  %v6099_v28 = vsel %vm3746_vm1, %v5969_v0, %v5965_v36  ;;  %v18510_v60 = vunpack.c.l.bf16 %v18509_v57  ;;  %v7229_v38 = vrot.slane %v7228_v22, 2  ;;  %v6127_v57 = vpop.xlane.xlu0 %6126 }
 0x4c0   :  { %v6430_v6 = vmul.f32 %v15863_v63, %v18506_v58  ;;  %v6431_v61 = vmul.f32 %v15887_v32, %v18508_v5  ;;  %v5945_v42 = vrot.slane %v15839_v62, %v17982_v4  ;;  %v7248_v58 = vrot.slane %v7247_v34, 4  ;;  %v5457_v5 = vpop.permute.xlu1 %5456 }
 0x4c1   :  { %v6434_v14 = vmul.f32 %v5460_v48, %v18510_v60  ;;  %v6100_v37 = vsel %vm3748_vm2, %v5973_v8, %v6099_v28  ;;  %v15987_v55 = vadd.f32 %v7175_v27, %v7174_v18  ;;  %v15989_v47 = vadd.f32 %v7320_v25, %v7319_v21 }
 0x4c2   :  { %v7327_v44 = vrot.slane %v7326_v16, 2  ;;  %v6101_v0 = vsel %vm3750_vm3, %v5977_v46, %v6100_v37  ;;  %v7242_v48 = vadd.f32 %v7241_v43, %v7240_v20  ;;  %v5949_v62 = vrot.slane %v15863_v63, %v17982_v4 }
 0x4c3   :  { %18511 = vst [vmem:[#allocation92_spill] sm:$0xff] %v15987_v55  ;;  %18512 = vst [vmem:[#allocation69_spill] sm:$0xff] %v15989_v47  ;;  %v7254_v36 = vsel %vm2719_vm0, %v6430_v6, 0.0  ;;  %v7261_v49 = vsel %vm2719_vm0, %v6431_v61, 0.0  ;;  %v7333_v8 = vadd.f32 %v7332_v7, %v7331_v51  ;;  %v5953_v18 = vrot.slane %v15887_v32, %v17982_v4  ;;  %v18515_v61 = vld [vmem:[#allocation179_spill] sm:$0xff]  ;;  %v18529_v55 = vld [vmem:[#allocation232_spill] sm:$0xff] }
 0x4c4   :  { %v7282_v21 = vsel %vm2719_vm0, %v6434_v14, 0.0  ;;  %v6102_v31 = vsel %vm3752_vm4, %v5981_v12, %v6101_v0  ;;  %v16006_v46 = vadd.f32 %v7229_v38, %v7228_v22  ;;  %v6094_v63 = vsel %vm3750_vm3, %v5945_v42, %v6093_v3  ;;  %v18517_v38 = vld [vmem:[#allocation181_spill] sm:$0xff]  ;;  %v16037_v0 = vld [vmem:[%s17195_s3 + $0x10] sm:$0xff] }
 0x4c5   :  { %v7249_v20 = vadd.f32 %v7248_v58, %v7247_v34  ;;  %v5957_v27 = vrot.slane %v5454_v50, %v17982_v4  ;;  %v7255_v25 = vrot.slane %v7254_v36, 4  ;;  %v7262_v43 = vrot.slane %v7261_v49, 4 }
 0x4c6   :  { %18513 = vst [vmem:[#allocation188_spill] sm:$0xff] %v16006_v46  ;;  %v5961_v51 = vrot.slane %v5457_v5, %v17982_v4  ;;  %v6103_v32 = vsel %vm3754_vm5, %v5985_v9, %v6102_v31  ;;  %v16012_v6 = vadd.f32 %v7327_v44, %v7326_v16  ;;  %v6095_v14 = vsel %vm3752_vm4, %v5949_v62, %v6094_v63 }
 0x4c7   :  { %v7283_v56 = vrot.slane %v7282_v21, 4  ;;  %v18516_v12 = vunpack.c.l.bf16 %v18515_v61  ;;  %v7243_v7 = vrot.slane %v7242_v48, 2  ;;  %v7334_v28 = vrot.slane %v7333_v8, 2  ;;  %v16090_v61 = vld [vmem:[%s17195_s3 + $0x40] sm:$0xff] }
 0x4c8   :  { %18514 = vst [vmem:[#allocation90_spill] sm:$0xff] %v16012_v6  ;;  %v6096_v34 = vsel %vm3754_vm5, %v5953_v18, %v6095_v14  ;;  %v6104_v3 = vsel %vm17493_vm6, %v5989_v2, %v6103_v32  ;;  %v7250_v4 = vrot.slane %v7249_v20, 2  ;;  %v18518_v9 = vunpack.c.l.bf16 %v18517_v38  ;;  %v16032_v2 = vld [vmem:[%s17195_s3 + $0x8] sm:$0xff]  ;;  %v16126_v38 = vld [vmem:[%s17195_s3 + $0x60] sm:$0xff] }
 0x4c9   :  { %v6432_v22 = vmul.f32 %v5454_v50, %v18516_v12  ;;  %v6097_v42 = vsel %vm17493_vm6, %v5957_v27, %v6096_v34  ;;  %v16023_v58 = vadd.f32 %v7255_v25, %v7254_v36  ;;  %v16025_v37 = vadd.f32 %v7262_v43, %v7261_v49  ;;  %v16055_v27 = vld [vmem:[%s17195_s3] sm:$0xff]  ;;  %v6130_v43 = vpop.xlane.xlu0 %6129  ;;  %v16095_v12 = vld [vmem:[%s17195_s3 + $0x38] sm:$0xff] }
 0x4ca   :  { %v6433_v16 = vmul.f32 %v5457_v5, %v18518_v9  ;;  %v6105_v50 = vsel %vm17492_vm7, %v5993_v40, %v6104_v3  ;;  %v6098_v44 = vsel %vm17492_vm7, %v5961_v51, %v6097_v42  ;;  %v16040_v36 = vadd.f32 %v7283_v56, %v7282_v21  ;;  %v16060_v21 = vld [vmem:[%s17195_s3 + $0x20] sm:$0xff]  ;;  %v16077_v51 = vld [vmem:[%s17195_s3 + $0x30] sm:$0xff]  ;;  %v16085_v56 = vld [vmem:[%s17195_s3 + $0x28] sm:$0xff] }
 0x4cb   :  { %18519 = vst [vmem:[#allocation70_spill] sm:$0xff] %v16023_v58  ;;  %18520 = vst [vmem:[#allocation190_spill] sm:$0xff] %v16025_v37  ;;  %v16043_v49 = vsel %vm2719_vm0, %v6432_v22, 0.0  ;;  %v6167_v40 = vsel %vm3881_vm8, %v6105_v50, 0.0  ;;  %v16047_v18 = vadd.f32 %v7243_v7, %v7242_v48  ;;  %v16049_v31 = vadd.f32 %v7334_v28, %v7333_v8  ;;  %v16065_v48 = vld [vmem:[%s17195_s3 + $0x18] sm:$0xff]  ;;  %v16104_v7 = vld [vmem:[%s17195_s3 + $0x50] sm:$0xff] }
 0x4cc   :  { %18521 = vst [vmem:[#allocation94_spill] sm:$0xff] %v16040_v36  ;;  %18522 = vst [vmem:[#allocation75_spill] sm:$0xff] %v16043_v49  ;;  %6168 = vadd.xlane.f32.xlu1 %v6167_v40  ;;  %v6164_v63 = vsel %vm3881_vm8, %v6098_v44, 0.0  ;;  %v16067_v8 = vadd.f32 %v7250_v4, %v7249_v20  ;;  %v16070_v25 = vsel %vm2719_vm0, %v6433_v16, 0.0  ;;  %vm9414_vm9 = vcmp.eq.s32.totalorder %v16032_v2, 1  ;;  %v16109_v28 = vld [vmem:[%s17195_s3 + $0x48] sm:$0xff] }
 0x4cd   :  { %18523 = vst [vmem:[#allocation109_spill] sm:$0xff] %v16047_v18  ;;  %18524 = vst [vmem:[#allocation76_spill] sm:$0xff] %v16049_v31  ;;  %6165 = vadd.xlane.f32.xlu0 %v6164_v63  ;;  %vm9415_vm10 = vcmp.eq.s32.totalorder %v16037_v0, 1  ;;  %10769 = vrcp.f32 %v6127_v57  ;;  %vm9413_vm11 = vcmp.eq.s32.totalorder %v16055_v27, 1  ;;  %vm9417_vm12 = vcmp.eq.s32.totalorder %v16060_v21, 1  ;;  %v16131_v9 = vld [vmem:[%s17195_s3 + $0x58] sm:$0xff] }
 0x4ce   :  { %18525 = vst [vmem:[#allocation115_spill] sm:$0xff] %v16067_v8  ;;  %18526 = vst [vmem:[#allocation73_spill] sm:$0xff] %v16070_v25  ;;  %vm9416_vm13 = vcmp.eq.s32.totalorder %v16065_v48, 1  ;;  %v18527_v3 = vmov 0   ;;  %vm9419_vm14 = vcmp.eq.s32.totalorder %v16077_v51, 1  ;;  %10771 = vrcp.f32 %v6130_v43  ;;  %v16139_v16 = vld [vmem:[%s17195_s3 + $0x70] sm:$0xff]  ;;  %v6136_v43 = vpop.xlane.xlu0 %6135 }
 0x4cf   :  { %v16115_v57 = vsel %vm9414_vm9, 1, %v18527_v3  ;;  %v16120_v4 = vsel %vm9415_vm10, 1, %v18527_v3  ;;  %vm9418_vm15 = vcmp.eq.s32.totalorder %v16085_v56, 1  ;;  %vm9421_vm0 = vcmp.eq.s32.totalorder %v16090_v61, 1  ;;  %v16160_v40 = vld [vmem:[%s17195_s3 + $0x68] sm:$0xff]  ;;  %v16165_v63 = vld [vmem:[%s17195_s3 + $0x78] sm:$0xff] }
 0x4d0   :  { %vm9420_vm8 = vcmp.eq.s32.totalorder %v16095_v12, 1  ;;  %v16144_v42 = vsel %vm9413_vm11, 1, %v18527_v3  ;;  %v16149_v50 = vsel %vm9417_vm12, 1, %v18527_v3  ;;  %v16154_v44 = vsel %vm9416_vm13, 1, %v18527_v3  ;;  %v18532_v36 = vld [vmem:[#allocation216_spill] sm:$0xff]  ;;  %v18533_v58 = vld [vmem:[#allocation233_spill] sm:$0xff] }
 0x4d1   :  { %vm9423_vm9 = vcmp.eq.s32.totalorder %v16104_v7, 1  ;;  %v16168_v5 = vsel %vm9419_vm14, 1, %v18527_v3  ;;  %vm9422_vm10 = vcmp.eq.s32.totalorder %v16109_v28, 1  ;;  %vm9425_vm11 = vcmp.eq.s32.totalorder %v16126_v38, 1  ;;  %v18534_v49 = vld [vmem:[#allocation225_spill] sm:$0xff] }
 0x4d2   :  { %vm9424_vm12 = vcmp.eq.s32.totalorder %v16131_v9, 1  ;;  %v16174_v62 = vsel %vm9418_vm15, 1, %v18527_v3  ;;  %v16177_v60 = vsel %vm9421_vm0, 1, %v18527_v3  ;;  %v16180_v19 = vsel %vm9420_vm8, 1, %v18527_v3  ;;  %v6142_v33 = vpop.xlane.xlu0 %6141 }
 0x4d3   :  { %vm9427_vm13 = vcmp.eq.s32.totalorder %v16139_v16, 1  ;;  %v16184_v22 = vsel %vm9423_vm9, 1, %v18527_v3  ;;  %vm9426_vm14 = vcmp.eq.s32.totalorder %v16160_v40, 1  ;;  %vm9397_vm7 = vcmp.eq.s32.totalorder %v16055_v27, 0 }
 0x4d4   :  { %vm9428_vm6 = vcmp.eq.s32.totalorder %v16165_v63, 1  ;;  %10773 = vrcp.f32 %v6136_v43  ;;  %v16190_v14 = vsel %vm9422_vm10, 1, %v18527_v3  ;;  %v16193_v32 = vsel %vm9425_vm11, 1, %v18527_v3 }
 0x4d5   :  { %v16196_v34 = vsel %vm9424_vm12, 1, %v18527_v3  ;;  %v16199_v20 = vsel %vm9427_vm13, 1, %v18527_v3  ;;  %vm9399_vm15 = vcmp.eq.s32.totalorder %v16037_v0, 0  ;;  %vm9398_vm0 = vcmp.eq.s32.totalorder %v16032_v2, 0  ;;  %v10801_v2 = vld [vmem:[%s17192_s0] sm:$0xff]  ;;  %v10802_v0 = vld [vmem:[%s17192_s0 + $0x14] sm:$0xff] }
 0x4d6   :  { %vm9401_vm8 = vcmp.eq.s32.totalorder %v16060_v21, 0  ;;  %v16205_v27 = vsel %vm9426_vm14, 1, %v18527_v3  ;;  %v16208_v43 = vsel %vm9397_vm7, 1, %v18527_v3  ;;  %v16211_v15 = vsel %vm9428_vm6, 1, %v18527_v3 }
 0x4d7   :  { %vm9400_vm9 = vcmp.eq.s32.totalorder %v16065_v48, 0  ;;  %vm9403_vm10 = vcmp.eq.s32.totalorder %v16077_v51, 0  ;;  %v9857_v21 = vcombine.high %v10801_v2, %v10802_v0  ;;  %vm9402_vm7 = vcmp.eq.s32.totalorder %v16085_v56, 0  ;;  %v10803_v2 = vld [vmem:[%s17192_s0 + $0x28] sm:$0xff]  ;;  %v10804_v0 = vld [vmem:[%s17192_s0 + $0x3c] sm:$0xff] }
 0x4d8   :  { %vm9405_vm11 = vcmp.eq.s32.totalorder %v16090_v61, 0  ;;  %v16224_v6 = vsel %vm9399_vm15, 1, %v18527_v3  ;;  %v16227_v48 = vsel %vm9398_vm0, 1, %v18527_v3  ;;  %v16230_v46 = vsel %vm9401_vm8, 1, %v18527_v3 }
 0x4d9   :  { %vm9404_vm6 = vcmp.eq.s32.totalorder %v16095_v12, 0  ;;  %v16234_v54 = vsel %vm9400_vm9, 1, %v18527_v3  ;;  %8891 = vmatprep.mubr.bf16.mxu1 %v9857_v21  ;;  %vm9407_vm12 = vcmp.eq.s32.totalorder %v16104_v7, 0  ;;  %v9858_v8 = vcombine.high %v10803_v2, %v10804_v0  ;;  %v18528_v21 = vld [vmem:[#allocation18_spill] sm:$0xff]  ;;  %v10805_v2 = vld [vmem:[%s17192_s0 + $0x50] sm:$0xff] }
 0x4da   :  { %v10770_v47 = vpop.eup %10769  ;;  %vm9406_vm13 = vcmp.eq.s32.totalorder %v16109_v28, 0  ;;  %10775 = vrcp.f32 %v6142_v33  ;;  %v16247_v12 = vsel %vm9403_vm10, 1, %v18527_v3  ;;  %v16252_v7 = vsel %vm9402_vm7, 1, %v18527_v3  ;;  %8892 = vmatmul.mubr.bf16.vlgmr.msra.gmra.mxu1 %v18528_v21 }
 0x4db   :  { %v16258_v39 = vsel %vm9405_vm11, 1, %v18527_v3  ;;  %v16262_v33 = vsel %vm9404_vm6, 1, %v18527_v3  ;;  %v16265_v51 = vsel %vm9407_vm12, 1, %v18527_v3  ;;  %8899 = vmatprep.mubr.bf16.mxu1 %v9858_v8  ;;  %v16268_v56 = vsel %vm9406_vm13, 1, %v18527_v3  ;;  %v16271_v28 = vpop.eup %10771  ;;  %v10806_v8 = vld [vmem:[%s17192_s0 + $0x64] sm:$0xff] }
 0x4dc   :  { %vm9409_vm14 = vcmp.eq.s32.totalorder %v16126_v38, 0  ;;  %vm9408_vm15 = vcmp.eq.s32.totalorder %v16131_v9, 0  ;;  %vm9411_vm0 = vcmp.eq.s32.totalorder %v16139_v16, 0  ;;  %v7361_v61 = vrot.slane %v10770_v47, 1 }
 0x4dd   :  { %9449 = vperm.xlu1 %10376, %v16115_v57   ;;  %v7362_v57 = vrot.slane %v10770_v47, 2  ;;  %v9859_v0 = vcombine.high %v10805_v2, %v10806_v8  ;;  %v7363_v21 = vrot.slane %v10770_v47, 3  ;;  %v7364_v31 = vrot.slane %v10770_v47, 4  ;;  %v18535_v2 = vld [vmem:[#allocation222_spill] sm:$0xff] }
 0x4de   :  { %v7365_v18 = vrot.slane %v10770_v47, 5  ;;  %v7366_v53 = vrot.slane %v10770_v47, 6  ;;  %v7367_v1 = vrot.slane %v10770_v47, 7  ;;  %v7602_v11 = vmul.f32 %v10770_v47, %v18529_v55 }
 0x4df   :  { %v7603_v17 = vmul.f32 %v7361_v61, %v18530_v13  ;;  %v7604_v52 = vmul.f32 %v7362_v57, %v18531_v41  ;;  %v7605_v37 = vmul.f32 %v7363_v21, %v18532_v36  ;;  %v7606_v25 = vmul.f32 %v7364_v31, %v18533_v58 }
 0x4e0   :  { %v7607_v45 = vmul.f32 %v7365_v18, %v18534_v49  ;;  %v7608_v8 = vmul.f32 %v7366_v53, %v18535_v2  ;;  %v7609_v26 = vmul.f32 %v7367_v1, %v18536_v23  ;;  %v7810_v24 = vpack.c.bf16 %v7602_v11, %v7602_v11  ;;  %v6124_v2 = vpop.xlane.xlu1 %6123 }
 0x4e1   :  { %9452 = vperm.xlu1 %10376, %v16120_v4   ;;  %v7811_v10 = vpack.c.bf16 %v7603_v17, %v7603_v17  ;;  %v16290_v35 = vpop.eup %10773  ;;  %v7812_v13 = vpack.c.bf16 %v7604_v52, %v7604_v52  ;;  %v7813_v55 = vpack.c.bf16 %v7605_v37, %v7605_v37  ;;  %v7814_v47 = vpack.c.bf16 %v7606_v25, %v7606_v25  ;;  %v18537_v4 = vld [vmem:[#allocation19_spill] sm:$0xff] }
 0x4e2   :  { %v7815_v41 = vpack.c.bf16 %v7607_v45, %v7607_v45  ;;  %8900 = vmatmul.mubr.bf16.gmra.mxu1 %v18537_v4  ;;  %vm9410_vm8 = vcmp.eq.s32.totalorder %v16160_v40, 0  ;;  %v7816_v58 = vpack.c.bf16 %v7608_v8, %v7608_v8  ;;  %v7817_v36 = vpack.c.bf16 %v7609_v26, %v7609_v26 }
 0x4e3   :  { %9446 = vperm.xlu0 %10375, %v16144_v42   ;;  %v8083_v49 = vunpack.c.l.b16 %v7811_v10  ;;  %v16299_v23 = vsel %vm9409_vm14, 1, %v18527_v3  ;;  %8907 = vmatprep.mubr.bf16.mxu1 %v9859_v0  ;;  %v8084_v1 = vunpack.c.l.b16 %v7812_v13  ;;  %v8085_v52 = vunpack.c.l.b16 %v7813_v55  ;;  %v18538_v13 = vld [vmem:[#allocation196_spill] sm:$0xff] }
 0x4e4   :  { %v8086_v53 = vunpack.c.l.b16 %v7814_v47  ;;  %v16304_v45 = vsel %vm9408_vm15, 1, %v18527_v3  ;;  %v16309_v10 = vsel %vm9411_vm0, 1, %v18527_v3  ;;  %v8082_v26 = vunpack.c.l.b16 %v7810_v24  ;;  %v18539_v47 = vld [vmem:[#allocation187_spill] sm:$0xff] }
 0x4e5   :  { %9458 = vperm.xlu1 %10376, %v16149_v50   ;;  %v8216_v17 = vrot.slane %v8083_v49, 7  ;;  %v16313_v11 = vsel %vm9410_vm8, 1, %v18527_v3  ;;  %v8087_v37 = vunpack.c.l.b16 %v7815_v41  ;;  %v8088_v18 = vunpack.c.l.b16 %v7816_v58  ;;  %v18540_v58 = vld [vmem:[#allocation20_spill] sm:$0xff] }
 0x4e6   :  { %v8218_v31 = vrot.slane %v8084_v1, 6  ;;  %v16315_v25 = vunpack.c.l.b16 %v7817_v36  ;;  %v8220_v9 = vrot.slane %v8085_v52, 5  ;;  %v8222_v42 = vrot.slane %v8086_v53, 4  ;;  %v18541_v36 = vld [vmem:[#allocation192_spill] sm:$0xff]  ;;  %v18542_v1 = vld [vmem:[#allocation155_spill] sm:$0xff] }
 0x4e7   :  { %9455 = vperm.xlu0 %10375, %v16154_v44   ;;  %v8217_v38 = vsel %vm3746_vm1, %v8216_v17, %v8082_v26  ;;  %v16318_v50 = vpop.eup %10775  ;;  %v7368_v16 = vrot.slane %v16271_v28, 1  ;;  %v7369_v44 = vrot.slane %v16271_v28, 2  ;;  %v7370_v40 = vrot.slane %v16271_v28, 3  ;;  %v18544_v26 = vld [vmem:[#allocation195_spill] sm:$0xff] }
 0x4e8   :  { %v8219_v24 = vsel %vm3748_vm2, %v8218_v31, %v8217_v38  ;;  %v7371_v57 = vrot.slane %v16271_v28, 4  ;;  %v7372_v0 = vrot.slane %v16271_v28, 5  ;;  %v7373_v21 = vrot.slane %v16271_v28, 6  ;;  %v18545_v31 = vld [vmem:[#allocation204_spill] sm:$0xff] }
 0x4e9   :  { %9464 = vperm.xlu1 %10376, %v16168_v5   ;;  %v8221_v61 = vsel %vm3750_vm3, %v8220_v9, %v8219_v24  ;;  %v7374_v8 = vrot.slane %v16271_v28, 7  ;;  %v7610_v55 = vmul.f32 %v16271_v28, %v18538_v13  ;;  %v7611_v41 = vmul.f32 %v7368_v16, %v18539_v47  ;;  %v18546_v9 = vld [vmem:[#allocation206_spill] sm:$0xff] }
 0x4ea   :  { %v8223_v5 = vsel %vm3752_vm4, %v8222_v42, %v8221_v61  ;;  %10777 = vrcp.f32 %v6124_v2  ;;  %v8224_v4 = vrot.slane %v8087_v37, 3  ;;  %8908 = vmatmul.mubr.bf16.gmra.mxu1 %v18540_v58  ;;  %v7612_v49 = vmul.f32 %v7369_v44, %v18541_v36 }
 0x4eb   :  { %9461 = vperm.xlu0 %10375, %v16174_v62   ;;  %v7613_v52 = vmul.f32 %v7370_v40, %v18542_v1  ;;  %vm9412_vm9 = vcmp.eq.s32.totalorder %v16165_v63, 0  ;;  %v18543_v62 = vld [vmem:[#allocation193_spill] sm:$0xff]  ;;  %v7615_v17 = vmul.f32 %v7372_v0, %v18544_v26  ;;  %v7616_v28 = vmul.f32 %v7373_v21, %v18545_v31  ;;  %v6133_v0 = vpop.xlane.xlu1 %6132 }
 0x4ec   :  { %v7614_v53 = vmul.f32 %v7371_v57, %v18543_v62  ;;  %v8225_v38 = vsel %vm3754_vm5, %v8224_v4, %v8223_v5  ;;  %v7617_v37 = vmul.f32 %v7374_v8, %v18546_v9  ;;  %v7818_v42 = vpack.c.bf16 %v7610_v55, %v7610_v55  ;;  %v10807_v1 = vld [vmem:[%s17192_s0 + $0x78] sm:$0xff] }
 0x4ed   :  { %9470 = vperm.xlu1 %10376, %v16177_v60   ;;  %v7819_v24 = vpack.c.bf16 %v7611_v41, %v7611_v41  ;;  %v7820_v16 = vpack.c.bf16 %v7612_v49, %v7612_v49  ;;  %v7821_v44 = vpack.c.bf16 %v7613_v52, %v7613_v52  ;;  %v7823_v60 = vpack.c.bf16 %v7615_v17, %v7615_v17  ;;  %v10808_v52 = vld [vmem:[%s17192_s0 + $0x8c] sm:$0xff] }
 0x4ee   :  { %v7822_v40 = vpack.c.bf16 %v7614_v53, %v7614_v53  ;;  %v8226_v61 = vrot.slane %v8088_v18, 2  ;;  %v7824_v2 = vpack.c.bf16 %v7616_v28, %v7616_v28  ;;  %v7825_v13 = vpack.c.bf16 %v7617_v37, %v7617_v37 }
 0x4ef   :  { %9467 = vperm.xlu0 %10375, %v16180_v19   ;;  %v8091_v57 = vunpack.c.l.b16 %v7819_v24  ;;  %v8228_v21 = vrot.slane %v16315_v25, 1  ;;  %v8092_v5 = vunpack.c.l.b16 %v7820_v16  ;;  %v8093_v47 = vunpack.c.l.b16 %v7821_v44  ;;  %v18549_v16 = vld [vmem:[#allocation21_spill] sm:$0xff] }
 0x4f0   :  { %v8094_v8 = vunpack.c.l.b16 %v7822_v40  ;;  %vm18547_vm10 = vcmask 1046534   ;;  %v8090_v41 = vunpack.c.l.b16 %v7818_v42  ;;  %v8095_v19 = vunpack.c.l.b16 %v7823_v60  ;;  %v18550_v40 = vld [vmem:[#allocation52_spill] sm:$0xff] }
 0x4f1   :  { %9476 = vperm.xlu1 %10376, %v16184_v22   ;;  %v8227_v55 = vsel %vm18547_vm10, %v8226_v61, %v8225_v38  ;;  %v8230_v4 = vrot.slane %v8091_v57, 7  ;;  %10779 = vrcp.f32 %v6133_v0  ;;  %v16350_v18 = vunpack.c.l.b16 %v7824_v2  ;;  %v18551_v2 = vld [vmem:[#allocation236_spill] sm:$0xff]  ;;  %v18552_v57 = vld [vmem:[#allocation54_spill] sm:$0xff]  ;;  %vm18563_vm11 = vmmov %vm18547_vm10 }
 0x4f2   :  { %v16352_v58 = vunpack.c.l.b16 %v7825_v13  ;;  %v8232_v36 = vrot.slane %v8092_v5, 6  ;;  %v8234_v49 = vrot.slane %v8093_v47, 5  ;;  %v8236_v25 = vrot.slane %v8094_v8, 4  ;;  %vm18571_vm6 = vmmov %vm18547_vm10 }
 0x4f3   :  { %9473 = vperm.xlu0 %10375, %v16190_v14   ;;  %v8231_v22 = vsel %vm3746_vm1, %v8230_v4, %v8090_v41  ;;  %v9860_v62 = vcombine.high %v10807_v1, %v10808_v52  ;;  %v7382_v53 = vrot.slane %v16290_v35, 1  ;;  %v7383_v26 = vrot.slane %v16290_v35, 2  ;;  %v18554_v41 = vld [vmem:[#allocation160_spill] sm:$0xff]  ;;  %v18557_v52 = vld [vmem:[#allocation203_spill] sm:$0xff]  ;;  %vm18581_vm14 = vmmov %vm18571_vm6 }
 0x4f4   :  { %v8233_v14 = vsel %vm3748_vm2, %v8232_v36, %v8231_v22  ;;  %v7384_v17 = vrot.slane %v16290_v35, 3  ;;  %vm18548_vm7 = vcmask 1047559   ;;  %v16372_v28 = vsel %vm9412_vm9, 1, %v18527_v3  ;;  %v18555_v22 = vld [vmem:[#allocation194_spill] sm:$0xff]  ;;  %vm18588_vm0 = vmmov %vm18571_vm6 }
 0x4f5   :  { %9482 = vperm.xlu1 %10376, %v16193_v32   ;;  %v16367_v31 = vsel %vm18548_vm7, %v8228_v21, %v8227_v55  ;;  %v8235_v38 = vsel %vm3750_vm3, %v8234_v49, %v8233_v14  ;;  %8915 = vmatprep.mubr.bf16.mxu1 %v9860_v62  ;;  %v7385_v32 = vrot.slane %v16290_v35, 4  ;;  %v8238_v37 = vrot.slane %v8095_v19, 3  ;;  %v18553_v21 = vld [vmem:[#allocation60_spill] sm:$0xff]  ;;  %v18558_v14 = vld [vmem:[#allocation210_spill] sm:$0xff]  ;;  %vm18573_vm12 = vmmov %vm18548_vm7 }
 0x4f6   :  { %v8237_v9 = vsel %vm3752_vm4, %v8236_v25, %v8235_v38  ;;  %v8240_v42 = vrot.slane %v16350_v18, 2  ;;  %v8242_v24 = vrot.slane %v16352_v58, 1  ;;  %8916 = vmatmul.mubr.bf16.gmra.mxu1 %v18549_v16  ;;  %v7386_v63 = vrot.slane %v16290_v35, 5  ;;  %v18556_v25 = vld [vmem:[#allocation212_spill] sm:$0xff]  ;;  %v18562_v16 = vld [vmem:[#allocation221_spill] sm:$0xff]  ;;  %vm18577_vm13 = vmmov %vm18548_vm7 }
 0x4f7   :  { %9479 = vperm.xlu0 %10375, %v16196_v34   ;;  %v7387_v3 = vrot.slane %v16290_v35, 6  ;;  %v7388_v44 = vrot.slane %v16290_v35, 7  ;;  %v16386_v60 = vmul.f32 %v16290_v35, %v18550_v40  ;;  %v10778_v34 = vpop.eup %10777  ;;  %v8239_v61 = vsel %vm3754_vm5, %v8238_v37, %v8237_v9  ;;  %v10489_v35 = vld [vmem:[#allocation5 + $0x128] sm:$0xff]   ;;  %vm18585_vm15 = vmmov %vm18548_vm7 }
 0x4f8   :  { %v16391_v13 = vmul.f32 %v7382_v53, %v18551_v2  ;;  %v16394_v0 = vmul.f32 %v7383_v26, %v18552_v57  ;;  %v16397_v5 = vmul.f32 %v7384_v17, %v18553_v21  ;;  %v7354_v47 = vrot.slane %v10778_v34, 1  ;;  %v6139_v26 = vpop.xlane.xlu1 %6138  ;;  %v18559_v17 = vld [vmem:[#allocation215_spill] sm:$0xff]  ;;  %vm18589_vm8 = vmmov %vm18588_vm0 }
 0x4f9   :  { %9488 = vperm.xlu1 %10376, %v16199_v20   ;;  %v7355_v8 = vrot.slane %v10778_v34, 2  ;;  %v7356_v55 = vrot.slane %v10778_v34, 3  ;;  %v16400_v19 = vmul.f32 %v7385_v32, %v18554_v41  ;;  %v7357_v20 = vrot.slane %v10778_v34, 4  ;;  %v18560_v32 = vld [vmem:[#allocation218_spill] sm:$0xff]  ;;  %vm18590_vm9 = vmmov %vm18548_vm7 }
 0x4fa   :  { %v7358_v4 = vrot.slane %v10778_v34, 5  ;;  %v7359_v18 = vrot.slane %v10778_v34, 6  ;;  %v7360_v36 = vrot.slane %v10778_v34, 7  ;;  %v7594_v49 = vmul.f32 %v10778_v34, %v18555_v22  ;;  %vm18591_vm10 = vmmov %vm18548_vm7 }
 0x4fb   :  { %9485 = vperm.xlu0 %10375, %v16205_v27   ;;  %v7595_v1 = vmul.f32 %v7354_v47, %v18556_v25  ;;  %v7596_v62 = vmul.f32 %v7355_v8, %v18557_v52  ;;  %v7597_v53 = vmul.f32 %v7356_v55, %v18558_v14  ;;  %v7598_v38 = vmul.f32 %v7357_v20, %v18559_v17  ;;  %v18561_v27 = vld [vmem:[#allocation227_spill] sm:$0xff]  ;;  %vm18608_vm7 = vmmov %vm18588_vm0 }
 0x4fc   :  { %v7599_v9 = vmul.f32 %v7358_v4, %v18560_v32  ;;  %v7600_v37 = vmul.f32 %v7359_v18, %v18561_v27  ;;  %v7601_v40 = vmul.f32 %v7360_v36, %v18562_v16  ;;  %v7802_v2 = vpack.c.bf16 %v7594_v49, %v7594_v49 }
 0x4fd   :  { %9542 = vperm.xlu1 %10376, %v16208_v43   ;;  %v7803_v57 = vpack.c.bf16 %v7595_v1, %v7595_v1  ;;  %v7804_v34 = vpack.c.bf16 %v7596_v62, %v7596_v62  ;;  %v7805_v21 = vpack.c.bf16 %v7597_v53, %v7597_v53  ;;  %v7806_v47 = vpack.c.bf16 %v7598_v38, %v7598_v38 }
 0x4fe   :  { %v7807_v8 = vpack.c.bf16 %v7599_v9, %v7599_v9  ;;  %v7808_v55 = vpack.c.bf16 %v7600_v37, %v7600_v37  ;;  %v16414_v43 = vsel %vm18563_vm11, %v8240_v42, %v8239_v61  ;;  %v10780_v41 = vpop.eup %10779  ;;  %10781 = vrcp.f32 %v6139_v26  ;;  %vm18610_vm11 = vmmov %vm18590_vm9 }
 0x4ff   :  { %9491 = vperm.xlu0 %10375, %v16211_v15   ;;  %v7809_v20 = vpack.c.bf16 %v7601_v40, %v7601_v40  ;;  %v8075_v4 = vunpack.c.l.b16 %v7803_v57  ;;  %v8076_v22 = vunpack.c.l.b16 %v7804_v34  ;;  %v8077_v18 = vunpack.c.l.b16 %v7805_v21  ;;  %v18565_v21 = vld [vmem:[#allocation229_spill] sm:$0xff] }
 0x500   :  { %v8078_v36 = vunpack.c.l.b16 %v7806_v47  ;;  %v8079_v49 = vunpack.c.l.b16 %v7807_v8  ;;  %v8080_v25 = vunpack.c.l.b16 %v7808_v55  ;;  %v8074_v1 = vunpack.c.l.b16 %v7802_v2  ;;  %v18564_v2 = vld [vmem:[#allocation200_spill] sm:$0xff]  ;;  %v18566_v8 = vld [vmem:[#allocation198_spill] sm:$0xff] }
 0x501   :  { %9548 = vperm.xlu1 %10376, %v16224_v6   ;;  %v8081_v52 = vunpack.c.l.b16 %v7809_v20  ;;  %v8202_v15 = vrot.slane %v8075_v4, 7  ;;  %v8204_v62 = vrot.slane %v8076_v22, 6  ;;  %v8206_v14 = vrot.slane %v8077_v18, 5  ;;  %v18568_v22 = vld [vmem:[#allocation207_spill] sm:$0xff] }
 0x502   :  { %v8208_v42 = vrot.slane %v8078_v36, 4  ;;  %v8210_v61 = vrot.slane %v8079_v49, 3  ;;  %v7375_v53 = vrot.slane %v10780_v41, 1  ;;  %v8212_v17 = vrot.slane %v8080_v25, 2  ;;  %v18569_v36 = vld [vmem:[#allocation213_spill] sm:$0xff] }
 0x503   :  { %9545 = vperm.xlu0 %10375, %v16227_v48   ;;  %v8203_v26 = vsel %vm3746_vm1, %v8202_v15, %v8074_v1  ;;  %v7376_v38 = vrot.slane %v10780_v41, 2  ;;  %v7377_v32 = vrot.slane %v10780_v41, 3  ;;  %v7378_v9 = vrot.slane %v10780_v41, 4  ;;  %v18570_v25 = vld [vmem:[#allocation209_spill] sm:$0xff] }
 0x504   :  { %v8205_v6 = vsel %vm3748_vm2, %v8204_v62, %v8203_v26  ;;  %v7379_v27 = vrot.slane %v10780_v41, 5  ;;  %v7380_v37 = vrot.slane %v10780_v41, 6  ;;  %v8214_v40 = vrot.slane %v8081_v52, 1 }
 0x505   :  { %9554 = vperm.xlu1 %10376, %v16230_v46   ;;  %v8207_v16 = vsel %vm3750_vm3, %v8206_v14, %v8205_v6  ;;  %v7381_v48 = vrot.slane %v10780_v41, 7  ;;  %v7618_v57 = vmul.f32 %v10780_v41, %v18564_v2  ;;  %v7619_v47 = vmul.f32 %v7375_v53, %v18565_v21  ;;  %v18567_v46 = vld [vmem:[#allocation223_spill] sm:$0xff]  ;;  %v10479_v14 = vld [vmem:[#allocation5 + $0xf8] sm:$0xff]  }
 0x506   :  { %v8209_v34 = vsel %vm3752_vm4, %v8208_v42, %v8207_v16  ;;  %v7620_v55 = vmul.f32 %v7376_v38, %v18566_v8  ;;  %v7621_v20 = vmul.f32 %v7377_v32, %v18567_v46  ;;  %v7622_v18 = vmul.f32 %v7378_v9, %v18568_v22  ;;  %v18572_v41 = vld [vmem:[#allocation211_spill] sm:$0xff]  ;;  %v6145_v42 = vpop.xlane.xlu1 %6144  ;;  %v10481_v32 = vld [vmem:[#allocation5 + $0x138] sm:$0xff]   ;;  %10091 = vmatprep.subr.bf16.mxu0 %v10479_v14 }
 0x507   :  { %9551 = vperm.xlu0 %10375, %v16234_v54   ;;  %v8211_v4 = vsel %vm3754_vm5, %v8210_v61, %v8209_v34  ;;  %v7623_v49 = vmul.f32 %v7379_v27, %v18569_v36  ;;  %v7624_v1 = vmul.f32 %v7380_v37, %v18570_v25  ;;  %v7625_v52 = vmul.f32 %v7381_v48, %v18572_v41  ;;  %v18574_v2 = vld [vmem:[#allocation177_spill] sm:$0xff] }
 0x508   :  { %v8213_v54 = vsel %vm18571_vm6, %v8212_v17, %v8211_v4  ;;  %v7826_v15 = vpack.c.bf16 %v7618_v57, %v7618_v57  ;;  %v7827_v62 = vpack.c.bf16 %v7619_v47, %v7619_v47  ;;  %v7828_v26 = vpack.c.bf16 %v7620_v55, %v7620_v55  ;;  %v6148_v17 = vpop.xlane.xlu0 %6147  ;;  %10283 = vmatprep.subr.bf16.mxu1 %v10481_v32  ;;  %v18576_v47 = vld [vmem:[#allocation62_spill] sm:$0xff]  ;;  %vm18611_vm6 = vmmov %vm18588_vm0 }
 0x509   :  { %9560 = vperm.xlu1 %10376, %v16247_v12   ;;  %v8215_v53 = vsel %vm18573_vm12, %v8214_v40, %v8213_v54  ;;  %v7829_v61 = vpack.c.bf16 %v7621_v20, %v7621_v20  ;;  %v7830_v38 = vpack.c.bf16 %v7622_v18, %v7622_v18  ;;  %v7831_v9 = vpack.c.bf16 %v7623_v49, %v7623_v49  ;;  %v10485_v40 = vld [vmem:[#allocation5 + $0x130] sm:$0xff]   ;;  %vm18612_vm12 = vmmov %vm18590_vm9 }
 0x50a   :  { %v8426_v6 = vpack.c.b16 %v16367_v31, %v8215_v53  ;;  %v7832_v12 = vpack.c.bf16 %v7624_v1, %v7624_v1  ;;  %v7833_v27 = vpack.c.bf16 %v7625_v52, %v7625_v52  ;;  %v8099_v37 = vunpack.c.l.b16 %v7827_v62  ;;  %v18575_v31 = vld [vmem:[#allocation48_spill] sm:$0xff]  ;;  %10284 = vmatpush3.bf16.msra.mxu1 %v10481_v32  ;;  %v18580_v32 = vld [vmem:[#allocation50_spill] sm:$0xff] }
 0x50b   :  { %9557 = vperm.xlu0 %10375, %v16252_v7   ;;  %v8100_v16 = vunpack.c.l.b16 %v7828_v26  ;;  %v8101_v48 = vunpack.c.l.b16 %v7829_v61  ;;  %v16441_v57 = vmul.f32 %v7386_v63, %v18574_v2  ;;  %v10782_v34 = vpop.eup %10781  ;;  %10783 = vrcp.f32 %v6145_v42  ;;  %10285 = vmatprep.subr.bf16.mxu1 %v10485_v40  ;;  %v18578_v26 = vld [vmem:[#allocation74_spill] sm:$0xff]  ;;  %v18586_v2 = vld [vmem:[#allocation59_spill] sm:$0xff] }
 0x50c   :  { %10267 = vmatprep.mubr.bf16.mxu0 %v8426_v6  ;;  %v8102_v7 = vunpack.c.l.b16 %v7830_v38  ;;  %v16447_v21 = vmul.f32 %v7387_v3, %v18575_v31  ;;  %v16452_v8 = vmul.f32 %v7388_v44, %v18576_v47  ;;  %v8098_v63 = vunpack.c.l.b16 %v7826_v15  ;;  %v18579_v38 = vld [vmem:[#allocation49_spill] sm:$0xff]  ;;  %v18587_v47 = vld [vmem:[#allocation42_spill] sm:$0xff] }
 0x50d   :  { %9566 = vperm.xlu1 %10376, %v16258_v39   ;;  %v8103_v55 = vunpack.c.l.b16 %v7831_v9  ;;  %v8244_v46 = vrot.slane %v8099_v37, 7  ;;  %v8246_v20 = vrot.slane %v8100_v16, 6  ;;  %10785 = vrcp.f32 %v6148_v17  ;;  %v18584_v17 = vld [vmem:[#allocation38_spill] sm:$0xff]  ;;  %v6154_v16 = vpop.xlane.xlu0 %6153 }
 0x50e   :  { %v8104_v39 = vunpack.c.l.b16 %v7832_v12  ;;  %v8105_v4 = vunpack.c.l.b16 %v7833_v27  ;;  %v8248_v22 = vrot.slane %v8101_v48, 5  ;;  %v8250_v18 = vrot.slane %v8102_v7, 4  ;;  %10286 = vmatpush3.bf16.msra.mxu1 %v10485_v40  ;;  %v18583_v12 = vld [vmem:[#allocation56_spill] sm:$0xff] }
 0x50f   :  { %9563 = vperm.xlu0 %10375, %v16262_v33   ;;  %v8245_v3 = vsel %vm3746_vm1, %v8244_v46, %v8098_v63  ;;  %v7389_v36 = vrot.slane %v10782_v34, 1  ;;  %v7390_v49 = vrot.slane %v10782_v34, 2  ;;  %v7391_v25 = vrot.slane %v10782_v34, 3  ;;  %10287 = vmatprep.subr.bf16.mxu1 %v10489_v35 }
 0x510   :  { %v8247_v44 = vsel %vm3748_vm2, %v8246_v20, %v8245_v3  ;;  %v7392_v1 = vrot.slane %v10782_v34, 4  ;;  %v7393_v54 = vrot.slane %v10782_v34, 5  ;;  %v8243_v33 = vsel %vm18577_vm13, %v8242_v24, %v16414_v43  ;;  %v10492_v43 = vld [vmem:[#allocation5 + $0x120] sm:$0xff]   ;;  %v10482_v20 = vld [vmem:[#allocation5 + $0xf0] sm:$0xff]   ;;  %vm18627_vm13 = vmmov %vm18588_vm0 }
 0x511   :  { %9572 = vperm.xlu1 %10376, %v16265_v51   ;;  %v8249_v41 = vsel %vm3750_vm3, %v8248_v22, %v8247_v44  ;;  %v8252_v52 = vrot.slane %v8103_v55, 3  ;;  %v7394_v15 = vrot.slane %v10782_v34, 6  ;;  %v8254_v51 = vrot.slane %v8104_v39, 2 }
 0x512   :  { %v8251_v62 = vsel %vm3752_vm4, %v8250_v18, %v8249_v41  ;;  %v8256_v14 = vrot.slane %v8105_v4, 1  ;;  %v7395_v42 = vrot.slane %v10782_v34, 7  ;;  %v7634_v61 = vmul.f32 %v10782_v34, %v18578_v26  ;;  %10288 = vmatpush3.bf16.msra.mxu1 %v10489_v35  ;;  %v10486_v26 = vld [vmem:[#allocation5 + $0xa8] sm:$0xff]  }
 0x513   :  { %9569 = vperm.xlu0 %10375, %v16268_v56   ;;  %v8253_v53 = vsel %vm3754_vm5, %v8252_v52, %v8251_v62  ;;  %v7635_v58 = vmul.f32 %v7389_v36, %v18579_v38  ;;  %v7636_v24 = vmul.f32 %v7390_v49, %v18580_v32  ;;  %v18582_v56 = vld [vmem:[#allocation55_spill] sm:$0xff]  ;;  %v7638_v27 = vmul.f32 %v7392_v1, %v18583_v12  ;;  %v10483_v49 = vld [vmem:[#allocation5 + $0xb0] sm:$0xff]  }
 0x514   :  { %v8255_v6 = vsel %vm18581_vm14, %v8254_v51, %v8253_v53  ;;  %v7637_v9 = vmul.f32 %v7391_v25, %v18582_v56  ;;  %v7639_v37 = vmul.f32 %v7393_v54, %v18584_v17  ;;  %v7640_v40 = vmul.f32 %v7394_v15, %v18586_v2  ;;  %10289 = vmatprep.subr.bf16.mxu1 %v10492_v43  ;;  %vm18628_vm14 = vmmov %vm18590_vm9 }
 0x515   :  { %9578 = vperm.xlu1 %10376, %v16299_v23   ;;  %v8257_v48 = vsel %vm18585_vm15, %v8256_v14, %v8255_v6  ;;  %v7835_v34 = vpack.c.bf16 %v16391_v13, %v16391_v13  ;;  %v7836_v7 = vpack.c.bf16 %v16394_v0, %v16394_v0  ;;  %v10480_v23 = vld [vmem:[#allocation5 + $0xb8] sm:$0xff]   ;;  %v7641_v63 = vmul.f32 %v7395_v42, %v18587_v47  ;;  %vm18629_vm15 = vmmov %vm18588_vm0 }
 0x516   :  { %v8427_v31 = vpack.c.b16 %v8257_v48, %v8243_v33  ;;  %v7834_v55 = vpack.c.bf16 %v16386_v60, %v16386_v60  ;;  %v7837_v46 = vpack.c.bf16 %v16397_v5, %v16397_v5  ;;  %v7838_v13 = vpack.c.bf16 %v16400_v19, %v16400_v19  ;;  %10290 = vmatpush3.bf16.msra.mxu1 %v10492_v43  ;;  %v10491_v47 = vld [vmem:[#allocation5 + $0xd8] sm:$0xff]  }
 0x517   :  { %9575 = vperm.xlu0 %10375, %v16304_v45   ;;  %v7839_v0 = vpack.c.bf16 %v16441_v57, %v16441_v57  ;;  %v7843_v39 = vpack.c.bf16 %v7635_v58, %v7635_v58  ;;  %v7844_v4 = vpack.c.bf16 %v7636_v24, %v7636_v24  ;;  %v10496_v45 = vld [vmem:[#allocation5 + $0x118] sm:$0xff]   ;;  %10787 = vrcp.f32 %v6154_v16  ;;  %v10488_v24 = vld [vmem:[#allocation5 + $0xe0] sm:$0xff]  }
 0x518   :  { %10268 = vmatmul.mubr.bf16.vlgmr.msra.gmra.mxu0 %v8427_v31  ;;  %v7840_v60 = vpack.c.bf16 %v16447_v21, %v16447_v21  ;;  %v7841_v5 = vpack.c.bf16 %v16452_v8, %v16452_v8  ;;  %v7842_v22 = vpack.c.bf16 %v7634_v61, %v7634_v61  ;;  %v16495_v3 = vpop.eup %10783  ;;  %v7845_v19 = vpack.c.bf16 %v7637_v9, %v7637_v9  ;;  %v10484_v21 = vld [vmem:[#allocation5 + $0xe8] sm:$0xff]   ;;  %v6151_v8 = vpop.xlane.xlu1 %6150 }
 0x519   :  { %9584 = vperm.xlu1 %10376, %v16309_v10   ;;  %v7846_v18 = vpack.c.bf16 %v7638_v27, %v7638_v27  ;;  %v8107_v57 = vunpack.c.l.b16 %v7835_v34  ;;  %v8108_v36 = vunpack.c.l.b16 %v7836_v7  ;;  %10092 = vmatpush3.bf16.msra.mxu0 %v10480_v23  ;;  %v7847_v10 = vpack.c.bf16 %v7639_v37, %v7639_v37 }
 0x51a   :  { %v7848_v35 = vpack.c.bf16 %v7640_v40, %v7640_v40  ;;  %v7849_v44 = vpack.c.bf16 %v7641_v63, %v7641_v63  ;;  %v8106_v25 = vunpack.c.l.b16 %v7834_v55  ;;  %10093 = vmatprep.subr.bf16.mxu0 %v10482_v20  ;;  %v16498_v1 = vpop.eup %10785  ;;  %v8109_v54 = vunpack.c.l.b16 %v7837_v46  ;;  %10291 = vmatprep.subr.bf16.mxu1 %v10496_v45  ;;  %v10490_v40 = vld [vmem:[#allocation5 + $0xa0] sm:$0xff]  }
 0x51b   :  { %9581 = vperm.xlu0 %10375, %v16313_v11   ;;  %v8110_v33 = vunpack.c.l.b16 %v7838_v13  ;;  %v8115_v41 = vunpack.c.l.b16 %v7843_v39  ;;  %v8116_v52 = vunpack.c.l.b16 %v7844_v4  ;;  %v8111_v15 = vunpack.c.l.b16 %v7839_v0  ;;  %10292 = vmatpush3.bf16.msra.mxu1 %v10496_v45 }
 0x51c   :  { %v8112_v62 = vunpack.c.l.b16 %v7840_v60  ;;  %v8113_v51 = vunpack.c.l.b16 %v7841_v5  ;;  %v8114_v14 = vunpack.c.l.b16 %v7842_v22  ;;  %10789 = vrcp.f32 %v6151_v8 }
 0x51d   :  { %v8117_v11 = vunpack.c.l.b16 %v7845_v19  ;;  %v8258_v42 = vrot.slane %v8107_v57, 7  ;;  %v8260_v53 = vrot.slane %v8108_v36, 6  ;;  %10094 = vmatpush3.bf16.msra.mxu0 %v10483_v49  ;;  %v8118_v61 = vunpack.c.l.b16 %v7846_v18  ;;  %v10493_v18 = vld [vmem:[#allocation5 + $0x98] sm:$0xff]   ;;  %v10499_v57 = vld [vmem:[#allocation5 + $0x110] sm:$0xff]  }
 0x51e   :  { %v8119_v38 = vunpack.c.l.b16 %v7847_v10  ;;  %v8120_v58 = vunpack.c.l.b16 %v7848_v35  ;;  %v8121_v32 = vunpack.c.l.b16 %v7849_v44  ;;  %10095 = vmatprep.subr.bf16.mxu0 %v10484_v21  ;;  %v8262_v6 = vrot.slane %v8109_v54, 5  ;;  %10293 = vmatprep.subr.bf16.mxu1 %v10499_v57 }
 0x51f   :  { %9587 = vperm.xlu0 %10375, %v16372_v28   ;;  %v8259_v43 = vsel %vm3746_vm1, %v8258_v42, %v8106_v25  ;;  %v8272_v56 = vrot.slane %v8115_v41, 7  ;;  %v8274_v9 = vrot.slane %v8116_v52, 6  ;;  %v8264_v27 = vrot.slane %v8110_v33, 4  ;;  %v6157_v36 = vpop.xlane.xlu1 %6156  ;;  %v10495_v33 = vld [vmem:[#allocation5 + $0xd0] sm:$0xff]   ;;  %10294 = vmatpush3.bf16.msra.mxu1 %v10499_v57 }
 0x520   :  { %v8261_v12 = vsel %vm3748_vm2, %v8260_v53, %v8259_v43  ;;  %v8266_v17 = vrot.slane %v8111_v15, 3  ;;  %v8268_v37 = vrot.slane %v8112_v62, 2  ;;  %v8270_v48 = vrot.slane %v8113_v51, 1  ;;  %v18592_v15 = vld [vmem:[#allocation224_spill] sm:$0xff]  ;;  %v18593_v51 = vld [vmem:[#allocation29_spill] sm:$0xff] }
 0x521   :  { %v8263_v16 = vsel %vm3750_vm3, %v8262_v6, %v8261_v12  ;;  %v8273_v28 = vsel %vm3746_vm1, %v8272_v56, %v8114_v14  ;;  %v8276_v2 = vrot.slane %v8117_v11, 5  ;;  %10096 = vmatpush3.bf16.msra.mxu0 %v10486_v26  ;;  %v8278_v23 = vrot.slane %v8118_v61, 4  ;;  %v10502_v11 = vld [vmem:[#allocation5 + $0x108] sm:$0xff]   ;;  %v10497_v61 = vld [vmem:[#allocation5 + $0x90] sm:$0xff]  }
 0x522   :  { %v8265_v34 = vsel %vm3752_vm4, %v8264_v27, %v8263_v16  ;;  %v8275_v7 = vsel %vm3748_vm2, %v8274_v9, %v8273_v28  ;;  %v8280_v31 = vrot.slane %v8119_v38, 3  ;;  %10097 = vmatprep.subr.bf16.mxu0 %v10488_v24  ;;  %v8282_v46 = vrot.slane %v8120_v58, 2  ;;  %v18594_v58 = vld [vmem:[#allocation26_spill] sm:$0xff]  ;;  %v18595_v24 = vld [vmem:[#allocation47_spill] sm:$0xff]  ;;  %10295 = vmatprep.subr.bf16.mxu1 %v10502_v11 }
 0x523   :  { %v8267_v63 = vsel %vm3754_vm5, %v8266_v17, %v8265_v34  ;;  %v8277_v55 = vsel %vm3750_vm3, %v8276_v2, %v8275_v7  ;;  %v8284_v20 = vrot.slane %v8121_v32, 1  ;;  %v7396_v39 = vrot.slane %v16318_v50, 1  ;;  %v18596_v6 = vld [vmem:[#allocation239_spill] sm:$0xff]  ;;  %v18597_v9 = vld [vmem:[#allocation234_spill] sm:$0xff]  ;;  %v18598_v17 = vld [vmem:[#allocation40_spill] sm:$0xff]  ;;  %10296 = vmatpush3.bf16.msra.mxu1 %v10502_v11 }
 0x524   :  { %v8269_v13 = vsel %vm18588_vm0, %v8268_v37, %v8267_v63  ;;  %v8279_v0 = vsel %vm3752_vm4, %v8278_v23, %v8277_v55  ;;  %v7397_v4 = vrot.slane %v16318_v50, 2  ;;  %v16513_v45 = vpop.eup %10787  ;;  %v7398_v5 = vrot.slane %v16318_v50, 3  ;;  %v10498_v27 = vld [vmem:[#allocation5 + $0xc8] sm:$0xff]   ;;  %v18600_v28 = vld [vmem:[#allocation30_spill] sm:$0xff]  ;;  %v18602_v7 = vld [vmem:[#allocation237_spill] sm:$0xff] }
 0x525   :  { %v8281_v60 = vsel %vm3754_vm5, %v8280_v31, %v8279_v0  ;;  %v7399_v22 = vrot.slane %v16318_v50, 4  ;;  %v7400_v19 = vrot.slane %v16318_v50, 5  ;;  %10098 = vmatpush3.bf16.msra.mxu0 %v10490_v40  ;;  %v7401_v10 = vrot.slane %v16318_v50, 6  ;;  %v18599_v16 = vld [vmem:[#allocation35_spill] sm:$0xff]  ;;  %v18601_v40 = vld [vmem:[#allocation36_spill] sm:$0xff]  ;;  %v18606_v0 = vld [vmem:[#allocation34_spill] sm:$0xff] }
 0x526   :  { %v8283_v49 = vsel %vm18589_vm8, %v8282_v46, %v8281_v60  ;;  %v7403_v35 = vrot.slane %v16495_v3, 1  ;;  %v7404_v44 = vrot.slane %v16495_v3, 2  ;;  %10099 = vmatprep.subr.bf16.mxu0 %v10491_v47  ;;  %v8271_v25 = vsel %vm18590_vm9, %v8270_v48, %v8269_v13  ;;  %v18603_v31 = vld [vmem:[#allocation240_spill] sm:$0xff]  ;;  %vm18630_vm0 = vmmov %vm18590_vm9 }
 0x527   :  { %v8285_v21 = vsel %vm18591_vm10, %v8284_v20, %v8283_v49  ;;  %v7402_v8 = vrot.slane %v16318_v50, 7  ;;  %v7405_v54 = vrot.slane %v16495_v3, 3  ;;  %v7406_v52 = vrot.slane %v16495_v3, 4  ;;  %v18604_v55 = vld [vmem:[#allocation104_spill] sm:$0xff]  ;;  %v18605_v20 = vld [vmem:[#allocation33_spill] sm:$0xff]  ;;  %v10501_v49 = vld [vmem:[#allocation5 + $0xc0] sm:$0xff]  }
 0x528   :  { %v8428_v41 = vpack.c.b16 %v8285_v21, %v8271_v25  ;;  %v7643_v62 = vmul.f32 %v7396_v39, %v18592_v15  ;;  %v7644_v14 = vmul.f32 %v7397_v4, %v18593_v51  ;;  %10791 = vrcp.f32 %v6157_v36  ;;  %v18607_v4 = vld [vmem:[#allocation39_spill] sm:$0xff]  ;;  %vm18651_vm8 = vmmov %vm18611_vm6 }
 0x529   :  { %v7407_v42 = vrot.slane %v16495_v3, 5  ;;  %v7408_v53 = vrot.slane %v16495_v3, 6  ;;  %v7409_v26 = vrot.slane %v16495_v3, 7  ;;  %10100 = vmatpush3.bf16.msra.mxu0 %v10493_v18  ;;  %v16533_v38 = vpop.eup %10789  ;;  %v7642_v32 = vmul.f32 %v16318_v50, %v18594_v58  ;;  %vm18658_vm9 = vmmov %vm18611_vm6 }
 0x52a   :  { %10271 = vmatprep.mubr.bf16.mxu0 %v8428_v41  ;;  %v7645_v43 = vmul.f32 %v7398_v5, %v18595_v24  ;;  %v7651_v56 = vmul.f32 %v7403_v35, %v18596_v6  ;;  %v7652_v12 = vmul.f32 %v7404_v44, %v18597_v9  ;;  %v7646_v37 = vmul.f32 %v7399_v22, %v18598_v17  ;;  %v10500_v5 = vld [vmem:[#allocation5 + $0x88] sm:$0xff]   ;;  %v10504_v22 = vld [vmem:[#allocation5 + $0x100] sm:$0xff]   ;;  %vm18659_vm10 = vmmov %vm18630_vm0 }
 0x52b   :  { %v7647_v48 = vmul.f32 %v7400_v19, %v18599_v16  ;;  %v7648_v2 = vmul.f32 %v7401_v10, %v18600_v28  ;;  %v7649_v34 = vmul.f32 %v7402_v8, %v18601_v40  ;;  %10101 = vmatprep.subr.bf16.mxu0 %v10495_v33  ;;  %v7653_v23 = vmul.f32 %v7405_v54, %v18602_v7 }
 0x52c   :  { %v7654_v50 = vmul.f32 %v7406_v52, %v18603_v31  ;;  %v7851_v47 = vpack.c.bf16 %v7643_v62, %v7643_v62  ;;  %v7852_v63 = vpack.c.bf16 %v7644_v14, %v7644_v14  ;;  %v7650_v46 = vmul.f32 %v16495_v3, %v18604_v55  ;;  %10297 = vmatprep.subr.bf16.mxu1 %v10504_v22  ;;  %v10503_v62 = vld [vmem:[#allocation5 + $0x80] sm:$0xff]  }
 0x52d   :  { %v7655_v13 = vmul.f32 %v7407_v42, %v18605_v20  ;;  %v7656_v39 = vmul.f32 %v7408_v53, %v18606_v0  ;;  %v7657_v60 = vmul.f32 %v7409_v26, %v18607_v4  ;;  %10102 = vmatpush3.bf16.msra.mxu0 %v10497_v61  ;;  %v7850_v19 = vpack.c.bf16 %v7642_v32, %v7642_v32  ;;  %v10809_v20 = vld [vmem:[%s17192_s0 + $0xa0] sm:$0xff] }
 0x52e   :  { %v7853_v18 = vpack.c.bf16 %v7645_v43, %v7645_v43  ;;  %v7859_v57 = vpack.c.bf16 %v7651_v56, %v7651_v56  ;;  %v7860_v36 = vpack.c.bf16 %v7652_v12, %v7652_v12  ;;  %10103 = vmatprep.subr.bf16.mxu0 %v10498_v27  ;;  %v7854_v10 = vpack.c.bf16 %v7646_v37, %v7646_v37  ;;  %v10812_v4 = vld [vmem:[%s17192_s0 + $0xdc] sm:$0xff] }
 0x52f   :  { %v7855_v35 = vpack.c.bf16 %v7647_v48, %v7647_v48  ;;  %v7856_v44 = vpack.c.bf16 %v7648_v2, %v7648_v2  ;;  %v7857_v25 = vpack.c.bf16 %v7649_v34, %v7649_v34  ;;  %v7861_v3 = vpack.c.bf16 %v7653_v23, %v7653_v23  ;;  %10298 = vmatpush3.bf16.msra.mxu1 %v10504_v22 }
 0x530   :  { %v7862_v21 = vpack.c.bf16 %v7654_v50, %v7654_v50  ;;  %v8123_v8 = vunpack.c.l.b16 %v7851_v47  ;;  %v8124_v54 = vunpack.c.l.b16 %v7852_v63  ;;  %v7858_v33 = vpack.c.bf16 %v7650_v46, %v7650_v46 }
 0x531   :  { %v7863_v41 = vpack.c.bf16 %v7655_v13, %v7655_v13  ;;  %v7864_v52 = vpack.c.bf16 %v7656_v39, %v7656_v39  ;;  %v7865_v15 = vpack.c.bf16 %v7657_v60, %v7657_v60  ;;  %10104 = vmatpush3.bf16.msra.mxu0 %v10500_v5  ;;  %v8122_v51 = vunpack.c.l.b16 %v7850_v19  ;;  %v10810_v13 = vld [vmem:[%s17192_s0 + $0xb4] sm:$0xff]  ;;  %v10811_v39 = vld [vmem:[%s17192_s0 + $0xc8] sm:$0xff] }
 0x532   :  { %v8125_v14 = vunpack.c.l.b16 %v7853_v18  ;;  %v8131_v42 = vunpack.c.l.b16 %v7859_v57  ;;  %v8132_v53 = vunpack.c.l.b16 %v7860_v36  ;;  %10105 = vmatprep.subr.bf16.mxu0 %v10501_v49  ;;  %v8126_v26 = vunpack.c.l.b16 %v7854_v10  ;;  %v6160_v46 = vpop.xlane.xlu0 %6159 }
 0x533   :  { %v8127_v61 = vunpack.c.l.b16 %v7855_v35  ;;  %v8128_v58 = vunpack.c.l.b16 %v7856_v44  ;;  %v8129_v11 = vunpack.c.l.b16 %v7857_v25  ;;  %v8133_v32 = vunpack.c.l.b16 %v7861_v3  ;;  %v18609_v44 = vld [vmem:[#allocation22_spill] sm:$0xff] }
 0x534   :  { %v8134_v24 = vunpack.c.l.b16 %v7862_v21  ;;  %v8286_v43 = vrot.slane %v8123_v8, 7  ;;  %v8288_v6 = vrot.slane %v8124_v54, 6  ;;  %v8130_v56 = vunpack.c.l.b16 %v7858_v33 }
 0x535   :  { %v8135_v9 = vunpack.c.l.b16 %v7863_v41  ;;  %v8136_v12 = vunpack.c.l.b16 %v7864_v52  ;;  %v8137_v27 = vunpack.c.l.b16 %v7865_v15  ;;  %10106 = vmatpush3.bf16.msra.mxu0 %v10503_v62  ;;  %v16551_v17 = vpop.eup %10791  ;;  %v8290_v16 = vrot.slane %v8125_v14, 5 }
 0x536   :  { %v8287_v37 = vsel %vm3746_vm1, %v8286_v43, %v8122_v51  ;;  %v8300_v48 = vrot.slane %v8131_v42, 7  ;;  %v8302_v28 = vrot.slane %v8132_v53, 6  ;;  %v8292_v40 = vrot.slane %v8126_v26, 4 }
 0x537   :  { %v8289_v2 = vsel %vm3748_vm2, %v8288_v6, %v8287_v37  ;;  %v8294_v34 = vrot.slane %v8127_v61, 3  ;;  %v8296_v7 = vrot.slane %v8128_v58, 2  ;;  %v8304_v50 = vrot.slane %v8133_v32, 5  ;;  %v18613_v58 = vld [vmem:[#allocation58_spill] sm:$0xff]  ;;  %v18614_v6 = vld [vmem:[#allocation184_spill] sm:$0xff] }
 0x538   :  { %v8291_v23 = vsel %vm3750_vm3, %v8290_v16, %v8289_v2  ;;  %v8301_v31 = vsel %vm3746_vm1, %v8300_v48, %v8130_v56  ;;  %v8306_v47 = vrot.slane %v8134_v24, 4  ;;  %v9861_v0 = vcombine.high %v10809_v20, %v10810_v13  ;;  %v18616_v16 = vld [vmem:[#allocation80_spill] sm:$0xff]  ;;  %v18624_v20 = vld [vmem:[#allocation23_spill] sm:$0xff] }
 0x539   :  { %v8293_v63 = vsel %vm3752_vm4, %v8292_v40, %v8291_v23  ;;  %v8303_v55 = vsel %vm3748_vm2, %v8302_v28, %v8301_v31  ;;  %v9862_v60 = vcombine.high %v10811_v39, %v10812_v4  ;;  %v8298_v22 = vrot.slane %v8129_v11, 1  ;;  %v18617_v28 = vld [vmem:[#allocation157_spill] sm:$0xff]  ;;  %v18618_v40 = vld [vmem:[#allocation139_spill] sm:$0xff] }
 0x53a   :  { %v8295_v5 = vsel %vm3754_vm5, %v8294_v34, %v8293_v63  ;;  %v8305_v19 = vsel %vm3750_vm3, %v8304_v50, %v8303_v55  ;;  %v8308_v18 = vrot.slane %v8135_v9, 3  ;;  %v8310_v49 = vrot.slane %v8136_v12, 2  ;;  %8923 = vmatprep.mubr.bf16.mxu1 %v9861_v0  ;;  %v18619_v34 = vld [vmem:[#allocation65_spill] sm:$0xff]  ;;  %v18620_v23 = vld [vmem:[#allocation83_spill] sm:$0xff] }
 0x53b   :  { %v8297_v57 = vsel %vm18608_vm7, %v8296_v7, %v8295_v5  ;;  %v8307_v36 = vsel %vm3752_vm4, %v8306_v47, %v8305_v19  ;;  %v8312_v10 = vrot.slane %v8137_v27, 1  ;;  %10793 = vrcp.f32 %v6160_v46  ;;  %8924 = vmatmul.mubr.bf16.gmra.mxu1 %v18609_v44  ;;  %v18615_v27 = vld [vmem:[#allocation136_spill] sm:$0xff]  ;;  %v18621_v50 = vld [vmem:[#allocation127_spill] sm:$0xff]  ;;  %v18626_v4 = vld [vmem:[#allocation129_spill] sm:$0xff] }
 0x53c   :  { %v8309_v35 = vsel %vm3754_vm5, %v8308_v18, %v8307_v36  ;;  %v7410_v25 = vrot.slane %v16498_v1, 1  ;;  %v7411_v3 = vrot.slane %v16498_v1, 2  ;;  %v8299_v21 = vsel %vm18610_vm11, %v8298_v22, %v8297_v57  ;;  %8931 = vmatprep.mubr.bf16.mxu1 %v9862_v60  ;;  %v18625_v0 = vld [vmem:[#allocation63_spill] sm:$0xff]  ;;  %vm18660_vm7 = vmmov %vm18630_vm0 }
 0x53d   :  { %v8311_v8 = vsel %vm18611_vm6, %v8310_v49, %v8309_v35  ;;  %v7412_v54 = vrot.slane %v16498_v1, 3  ;;  %v7413_v33 = vrot.slane %v16498_v1, 4  ;;  %v7414_v52 = vrot.slane %v16498_v1, 5  ;;  %vm18677_vm11 = vmmov %vm18611_vm6 }
 0x53e   :  { %v8313_v41 = vsel %vm18612_vm12, %v8312_v10, %v8311_v8  ;;  %v7417_v15 = vrot.slane %v16533_v38, 1  ;;  %v7418_v62 = vrot.slane %v16533_v38, 2  ;;  %v7415_v14 = vrot.slane %v16498_v1, 6  ;;  %vm18679_vm6 = vmmov %vm18630_vm0 }
 0x53f   :  { %v8429_v51 = vpack.c.b16 %v8313_v41, %v8299_v21  ;;  %v7416_v42 = vrot.slane %v16498_v1, 7  ;;  %v7419_v53 = vrot.slane %v16533_v38, 3  ;;  %v7420_v26 = vrot.slane %v16533_v38, 4  ;;  %vm18681_vm12 = vmmov %vm18651_vm8 }
 0x540   :  { %v7421_v61 = vrot.slane %v16533_v38, 5  ;;  %v7659_v11 = vmul.f32 %v7410_v25, %v18613_v58  ;;  %v7660_v32 = vmul.f32 %v7411_v3, %v15594_v59  ;;  %v7422_v24 = vrot.slane %v16533_v38, 6 }
 0x541   :  { %10272 = vmatmul.mubr.bf16.gmra.mxu0 %v8429_v51  ;;  %v7423_v43 = vrot.slane %v16533_v38, 7  ;;  %v7658_v56 = vmul.f32 %v16498_v1, %v18614_v6  ;;  %v7661_v9 = vmul.f32 %v7412_v54, %v15601_v29  ;;  %v7662_v12 = vmul.f32 %v7413_v33, %v15613_v30  ;;  %v18622_v1 = vld [vmem:[#allocation57_spill] sm:$0xff]  ;;  %v18623_v29 = vld [vmem:[#allocation82_spill] sm:$0xff] }
 0x542   :  { %v7663_v37 = vmul.f32 %v7414_v52, %v18615_v27  ;;  %v7667_v48 = vmul.f32 %v7417_v15, %v18616_v16  ;;  %v7668_v2 = vmul.f32 %v7418_v62, %v18617_v28  ;;  %v7664_v59 = vmul.f32 %v7415_v14, %v18618_v40 }
 0x543   :  { %v7665_v7 = vmul.f32 %v7416_v42, %v18619_v34  ;;  %v7666_v31 = vmul.f32 %v16533_v38, %v18620_v23  ;;  %v7669_v47 = vmul.f32 %v7419_v53, %v18621_v50  ;;  %v7670_v63 = vmul.f32 %v7420_v26, %v18622_v1  ;;  %8932 = vmatmul.mubr.bf16.gmra.mxu1 %v18624_v20 }
 0x544   :  { %v7671_v55 = vmul.f32 %v7421_v61, %v18623_v29  ;;  %v7867_v30 = vpack.c.bf16 %v7659_v11, %v7659_v11  ;;  %v7868_v46 = vpack.c.bf16 %v7660_v32, %v7660_v32  ;;  %v7672_v39 = vmul.f32 %v7422_v24, %v18625_v0 }
 0x545   :  { %v6163_v13 = vpop.xlane.xlu1 %6162  ;;  %v7673_v60 = vmul.f32 %v7423_v43, %v18626_v4  ;;  %v7866_v5 = vpack.c.bf16 %v7658_v56, %v7658_v56  ;;  %v7869_v22 = vpack.c.bf16 %v7661_v9, %v7661_v9  ;;  %v7870_v19 = vpack.c.bf16 %v7662_v12, %v7662_v12 }
 0x546   :  { %v7871_v18 = vpack.c.bf16 %v7663_v37, %v7663_v37  ;;  %v7875_v38 = vpack.c.bf16 %v7667_v48, %v7667_v48  ;;  %v7876_v57 = vpack.c.bf16 %v7668_v2, %v7668_v2  ;;  %v7872_v36 = vpack.c.bf16 %v7664_v59, %v7664_v59 }
 0x547   :  { %v7873_v49 = vpack.c.bf16 %v7665_v7, %v7665_v7  ;;  %v7874_v10 = vpack.c.bf16 %v7666_v31, %v7666_v31  ;;  %v7877_v35 = vpack.c.bf16 %v7669_v47, %v7669_v47  ;;  %10795 = vrcp.f32 %v6163_v13 }
 0x548   :  { %v7878_v44 = vpack.c.bf16 %v7670_v63, %v7670_v63  ;;  %v8139_v25 = vunpack.c.l.b16 %v7867_v30  ;;  %v8140_v3 = vunpack.c.l.b16 %v7868_v46  ;;  %v16613_v21 = vpop.eup %10793  ;;  %v7879_v8 = vpack.c.bf16 %v7671_v55, %v7671_v55 }
 0x549   :  { %v7880_v54 = vpack.c.bf16 %v7672_v39, %v7672_v39  ;;  %v7881_v33 = vpack.c.bf16 %v7673_v60, %v7673_v60  ;;  %v8138_v41 = vunpack.c.l.b16 %v7866_v5  ;;  %v8141_v52 = vunpack.c.l.b16 %v7869_v22 }
 0x54a   :  { %v8142_v15 = vunpack.c.l.b16 %v7870_v19  ;;  %v8147_v62 = vunpack.c.l.b16 %v7875_v38  ;;  %v8148_v51 = vunpack.c.l.b16 %v7876_v57  ;;  %v8143_v14 = vunpack.c.l.b16 %v7871_v18 }
 0x54b   :  { %v8144_v42 = vunpack.c.l.b16 %v7872_v36  ;;  %v8145_v53 = vunpack.c.l.b16 %v7873_v49  ;;  %v8149_v26 = vunpack.c.l.b16 %v7877_v35  ;;  %v8146_v61 = vunpack.c.l.b16 %v7874_v10 }
 0x54c   :  { %v8150_v58 = vunpack.c.l.b16 %v7878_v44  ;;  %v8314_v11 = vrot.slane %v8139_v25, 7  ;;  %v8316_v32 = vrot.slane %v8140_v3, 6  ;;  %v8151_v24 = vunpack.c.l.b16 %v7879_v8  ;;  %v18631_v25 = vld [vmem:[#allocation100_spill] sm:$0xff]  ;;  %v18632_v8 = vld [vmem:[#allocation79_spill] sm:$0xff] }
 0x54d   :  { %v8152_v43 = vunpack.c.l.b16 %v7880_v54  ;;  %v8153_v6 = vunpack.c.l.b16 %v7881_v33  ;;  %v8328_v56 = vrot.slane %v8147_v62, 7  ;;  %v8318_v12 = vrot.slane %v8141_v52, 5  ;;  %v18633_v52 = vld [vmem:[#allocation158_spill] sm:$0xff]  ;;  %v18634_v62 = vld [vmem:[#allocation121_spill] sm:$0xff] }
 0x54e   :  { %v8315_v9 = vsel %vm3746_vm1, %v8314_v11, %v8138_v41  ;;  %v8320_v27 = vrot.slane %v8142_v15, 4  ;;  %v8330_v37 = vrot.slane %v8148_v51, 6  ;;  %v8322_v48 = vrot.slane %v8143_v14, 3  ;;  %v18635_v14 = vld [vmem:[#allocation183_spill] sm:$0xff]  ;;  %v18638_v11 = vld [vmem:[#allocation165_spill] sm:$0xff] }
 0x54f   :  { %v8317_v16 = vsel %vm3748_vm2, %v8316_v32, %v8315_v9  ;;  %v8329_v28 = vsel %vm3746_vm1, %v8328_v56, %v8146_v61  ;;  %v8332_v2 = vrot.slane %v8149_v26, 5  ;;  %v8324_v59 = vrot.slane %v8144_v42, 2  ;;  %v18637_v61 = vld [vmem:[#allocation113_spill] sm:$0xff]  ;;  %v18641_v9 = vld [vmem:[#allocation78_spill] sm:$0xff] }
 0x550   :  { %v8319_v40 = vsel %vm3750_vm3, %v8318_v12, %v8317_v16  ;;  %v8331_v34 = vsel %vm3748_vm2, %v8330_v37, %v8329_v28  ;;  %v8334_v7 = vrot.slane %v8150_v58, 4  ;;  %v8326_v31 = vrot.slane %v8145_v53, 1  ;;  %v18636_v53 = vld [vmem:[#allocation132_spill] sm:$0xff] }
 0x551   :  { %v8321_v23 = vsel %vm3752_vm4, %v8320_v27, %v8319_v40  ;;  %v8333_v50 = vsel %vm3750_vm3, %v8332_v2, %v8331_v34  ;;  %v8336_v47 = vrot.slane %v8151_v24, 3  ;;  %v8338_v29 = vrot.slane %v8152_v43, 2  ;;  %v18639_v24 = vld [vmem:[#allocation53_spill] sm:$0xff] }
 0x552   :  { %v8323_v1 = vsel %vm3754_vm5, %v8322_v48, %v8321_v23  ;;  %v8335_v63 = vsel %vm3752_vm4, %v8334_v7, %v8333_v50  ;;  %v8340_v55 = vrot.slane %v8153_v6, 1  ;;  %v7424_v20 = vrot.slane %v16513_v45, 1  ;;  %v18640_v6 = vld [vmem:[#allocation81_spill] sm:$0xff]  ;;  %v18644_v48 = vld [vmem:[#allocation46_spill] sm:$0xff]  ;;  %v18646_v7 = vld [vmem:[#allocation51_spill] sm:$0xff] }
 0x553   :  { %v8325_v30 = vsel %vm18627_vm13, %v8324_v59, %v8323_v1  ;;  %v8337_v46 = vsel %vm3754_vm5, %v8336_v47, %v8335_v63  ;;  %v7425_v13 = vrot.slane %v16513_v45, 2  ;;  %v7426_v4 = vrot.slane %v16513_v45, 3  ;;  %v18642_v27 = vld [vmem:[#allocation45_spill] sm:$0xff]  ;;  %vm18685_vm13 = vmmov %vm18630_vm0 }
 0x554   :  { %v8327_v0 = vsel %vm18628_vm14, %v8326_v31, %v8325_v30  ;;  %v8339_v39 = vsel %vm18629_vm15, %v8338_v29, %v8337_v46  ;;  %v7427_v60 = vrot.slane %v16513_v45, 4  ;;  %v16632_v5 = vpop.eup %10795  ;;  %v7428_v19 = vrot.slane %v16513_v45, 5  ;;  %v18645_v59 = vld [vmem:[#allocation169_spill] sm:$0xff]  ;;  %vm18699_vm14 = vmmov %vm18651_vm8 }
 0x555   :  { %v8341_v22 = vsel %vm18630_vm0, %v8340_v55, %v8339_v39  ;;  %v7431_v18 = vrot.slane %v16551_v17, 1  ;;  %v7432_v38 = vrot.slane %v16551_v17, 2  ;;  %v7429_v36 = vrot.slane %v16513_v45, 6 }
 0x556   :  { %v8430_v57 = vpack.c.b16 %v8341_v22, %v8327_v0  ;;  %v7430_v49 = vrot.slane %v16513_v45, 7  ;;  %v7433_v10 = vrot.slane %v16551_v17, 3  ;;  %v7434_v35 = vrot.slane %v16551_v17, 4 }
 0x557   :  { %v7435_v44 = vrot.slane %v16551_v17, 5  ;;  %v7675_v3 = vmul.f32 %v7424_v20, %v18631_v25  ;;  %v7676_v54 = vmul.f32 %v7425_v13, %v18632_v8  ;;  %v7436_v33 = vrot.slane %v16551_v17, 6 }
 0x558   :  { %10275 = vmatprep.mubr.bf16.mxu0 %v8430_v57  ;;  %v7437_v41 = vrot.slane %v16551_v17, 7  ;;  %v7674_v15 = vmul.f32 %v16513_v45, %v18633_v52  ;;  %v7677_v51 = vmul.f32 %v7426_v4, %v18634_v62  ;;  %v7678_v42 = vmul.f32 %v7427_v60, %v18635_v14  ;;  %v18643_v45 = vld [vmem:[#allocation167_spill] sm:$0xff] }
 0x559   :  { %v7679_v26 = vmul.f32 %v7428_v19, %v18636_v53  ;;  %v7683_v58 = vmul.f32 %v7431_v18, %v18637_v61  ;;  %v7684_v32 = vmul.f32 %v7432_v38, %v18638_v11  ;;  %v7680_v43 = vmul.f32 %v7429_v36, %v18639_v24 }
 0x55a   :  { %v7681_v56 = vmul.f32 %v7430_v49, %v18640_v6  ;;  %v7682_v12 = vmul.f32 %v16551_v17, %v18641_v9  ;;  %v7685_v37 = vmul.f32 %v7433_v10, %v18642_v27  ;;  %v7686_v16 = vmul.f32 %v7434_v35, %v18643_v45  ;;  %v18647_v6 = vld [vmem:[#allocation75_spill] sm:$0xff]  ;;  %v18649_v45 = vld [vmem:[#allocation73_spill] sm:$0xff] }
 0x55b   :  { %v7687_v28 = vmul.f32 %v7435_v44, %v18644_v48  ;;  %v7883_v2 = vpack.c.bf16 %v7675_v3, %v7675_v3  ;;  %v7884_v40 = vpack.c.bf16 %v7676_v54, %v7676_v54  ;;  %v7688_v34 = vmul.f32 %v7436_v33, %v18645_v59  ;;  %v18652_v59 = vld [vmem:[#allocation70_spill] sm:$0xff] }
 0x55c   :  { %v7689_v23 = vmul.f32 %v7437_v41, %v18646_v7  ;;  %v7882_v31 = vpack.c.bf16 %v7674_v15, %v7674_v15  ;;  %v7885_v50 = vpack.c.bf16 %v7677_v51, %v7677_v51  ;;  %v7886_v47 = vpack.c.bf16 %v7678_v42, %v7678_v42 }
 0x55d   :  { %v7887_v1 = vpack.c.bf16 %v7679_v26, %v7679_v26  ;;  %v7891_v63 = vpack.c.bf16 %v7683_v58, %v7683_v58  ;;  %v7892_v29 = vpack.c.bf16 %v7684_v32, %v7684_v32  ;;  %v7888_v55 = vpack.c.bf16 %v7680_v43, %v7680_v43 }
 0x55e   :  { %v7889_v17 = vpack.c.bf16 %v7681_v56, %v7681_v56  ;;  %v7890_v30 = vpack.c.bf16 %v7682_v12, %v7682_v12  ;;  %v7893_v46 = vpack.c.bf16 %v7685_v37, %v7685_v37  ;;  %v7894_v20 = vpack.c.bf16 %v7686_v16, %v7686_v16 }
 0x55f   :  { %v7895_v13 = vpack.c.bf16 %v7687_v28, %v7687_v28  ;;  %v8155_v0 = vunpack.c.l.b16 %v7883_v2  ;;  %v8156_v39 = vunpack.c.l.b16 %v7884_v40  ;;  %v7896_v4 = vpack.c.bf16 %v7688_v34, %v7688_v34 }
 0x560   :  { %v7897_v60 = vpack.c.bf16 %v7689_v23, %v7689_v23  ;;  %v8154_v22 = vunpack.c.l.b16 %v7882_v31  ;;  %v8157_v19 = vunpack.c.l.b16 %v7885_v50  ;;  %v8158_v18 = vunpack.c.l.b16 %v7886_v47  ;;  %v18654_v47 = vld [vmem:[#allocation190_spill] sm:$0xff] }
 0x561   :  { %v8159_v38 = vunpack.c.l.b16 %v7887_v1  ;;  %v8163_v57 = vunpack.c.l.b16 %v7891_v63  ;;  %v8164_v36 = vunpack.c.l.b16 %v7892_v29  ;;  %v8160_v49 = vunpack.c.l.b16 %v7888_v55  ;;  %v18656_v29 = vld [vmem:[#allocation94_spill] sm:$0xff] }
 0x562   :  { %v8161_v10 = vunpack.c.l.b16 %v7889_v17  ;;  %v8165_v35 = vunpack.c.l.b16 %v7893_v46  ;;  %v8342_v44 = vrot.slane %v8155_v0, 7  ;;  %v8162_v25 = vunpack.c.l.b16 %v7890_v30  ;;  %v6169_v46 = vpop.xlane.xlu1 %6168 }
 0x563   :  { %v8166_v3 = vunpack.c.l.b16 %v7894_v20  ;;  %v8167_v8 = vunpack.c.l.b16 %v7895_v13  ;;  %v8344_v54 = vrot.slane %v8156_v39, 6  ;;  %v8168_v33 = vunpack.c.l.b16 %v7896_v4 }
 0x564   :  { %v8343_v41 = vsel %vm3746_vm1, %v8342_v44, %v8154_v22  ;;  %v8346_v52 = vrot.slane %v8157_v19, 5  ;;  %v8356_v15 = vrot.slane %v8163_v57, 7  ;;  %v8169_v62 = vunpack.c.l.b16 %v7897_v60  ;;  %v6166_v19 = vpop.xlane.xlu0 %6165 }
 0x565   :  { %v8345_v51 = vsel %vm3748_vm2, %v8344_v54, %v8343_v41  ;;  %v8348_v14 = vrot.slane %v8158_v18, 4  ;;  %v8358_v42 = vrot.slane %v8164_v36, 6  ;;  %v8350_v26 = vrot.slane %v8159_v38, 3 }
 0x566   :  { %v8347_v53 = vsel %vm3750_vm3, %v8346_v52, %v8345_v51  ;;  %v8357_v61 = vsel %vm3746_vm1, %v8356_v15, %v8162_v25  ;;  %v8360_v58 = vrot.slane %v8165_v35, 5  ;;  %v8352_v32 = vrot.slane %v8160_v49, 2  ;;  %v18661_v25 = vld [vmem:[#allocation87_spill] sm:$0xff] }
 0x567   :  { %v8349_v11 = vsel %vm3752_vm4, %v8348_v14, %v8347_v53  ;;  %v8359_v24 = vsel %vm3748_vm2, %v8358_v42, %v8357_v61  ;;  %v8362_v43 = vrot.slane %v8166_v3, 4  ;;  %v18648_v56 = vrot.slane %v18647_v6, 4  ;;  %v18664_v14 = vld [vmem:[#allocation64_spill] sm:$0xff]  ;;  %v18665_v53 = vld [vmem:[#allocation71_spill] sm:$0xff]  ;;  %v18666_v61 = vld [vmem:[#allocation61_spill] sm:$0xff] }
 0x568   :  { %v8351_v12 = vsel %vm3754_vm5, %v8350_v26, %v8349_v11  ;;  %v8361_v27 = vsel %vm3750_vm3, %v8360_v58, %v8359_v24  ;;  %v8364_v37 = vrot.slane %v8167_v8, 3  ;;  %v18650_v16 = vrot.slane %v18649_v45, 4  ;;  %v18667_v11 = vld [vmem:[#allocation86_spill] sm:$0xff]  ;;  %v18668_v24 = vld [vmem:[#allocation88_spill] sm:$0xff] }
 0x569   :  { %v16672_v9 = vadd.f32 %v18648_v56, %v18647_v6  ;;  %v8353_v28 = vsel %vm18651_vm8, %v8352_v32, %v8351_v12  ;;  %v8363_v2 = vsel %vm3752_vm4, %v8362_v43, %v8361_v27  ;;  %v8366_v40 = vrot.slane %v8168_v33, 2  ;;  %v18662_v33 = vld [vmem:[#allocation171_spill] sm:$0xff]  ;;  %v18670_v12 = vld [vmem:[#allocation68_spill] sm:$0xff] }
 0x56a   :  { %v16679_v48 = vadd.f32 %v18650_v16, %v18649_v45  ;;  %v18653_v34 = vrot.slane %v18652_v59, 2  ;;  %v8354_v23 = vrot.slane %v8161_v10, 1  ;;  %v8365_v31 = vsel %vm3754_vm5, %v8364_v37, %v8363_v2  ;;  %v18669_v6 = vld [vmem:[#allocation91_spill] sm:$0xff]  ;;  %v18671_v37 = vld [vmem:[#allocation66_spill] sm:$0xff] }
 0x56b   :  { %v8368_v50 = vrot.slane %v8169_v62, 1  ;;  %v18655_v1 = vrot.slane %v18654_v47, 2  ;;  %v18657_v55 = vrot.slane %v18656_v29, 2  ;;  %v8367_v30 = vsel %vm18658_vm9, %v8366_v40, %v8365_v31  ;;  %v18663_v62 = vld [vmem:[#allocation185_spill] sm:$0xff]  ;;  %v18673_v40 = vld [vmem:[#allocation147_spill] sm:$0xff]  ;;  %v18675_v31 = vld [vmem:[#allocation72_spill] sm:$0xff] }
 0x56c   :  { %v16686_v7 = vadd.f32 %v18653_v34, %v18652_v59  ;;  %v7438_v20 = vrot.slane %v16613_v21, 1  ;;  %v7271_v13 = vrot.slane %v16672_v9, 2  ;;  %v8355_v0 = vsel %vm18659_vm10, %v8354_v23, %v8353_v28  ;;  %v18672_v28 = vld [vmem:[#allocation92_spill] sm:$0xff] }
 0x56d   :  { %v16692_v63 = vadd.f32 %v18655_v1, %v18654_v47  ;;  %v16697_v17 = vadd.f32 %v18657_v55, %v18656_v29  ;;  %v8369_v39 = vsel %vm18660_vm7, %v8368_v50, %v8367_v30  ;;  %v7439_v4 = vrot.slane %v16613_v21, 2  ;;  %v18674_v34 = vld [vmem:[#allocation84_spill] sm:$0xff]  ;;  %v18676_v47 = vld [vmem:[#allocation85_spill] sm:$0xff] }
 0x56e   :  { %v7278_v60 = vrot.slane %v16679_v48, 2  ;;  %v8431_v22 = vpack.c.b16 %v8369_v39, %v8355_v0  ;;  %v7440_v18 = vrot.slane %v16613_v21, 3  ;;  %v7445_v38 = vrot.slane %v16632_v5, 1 }
 0x56f   :  { %10797 = vrcp.f32 %v6169_v46  ;;  %v7441_v57 = vrot.slane %v16613_v21, 4  ;;  %v7442_v36 = vrot.slane %v16613_v21, 5  ;;  %v7446_v49 = vrot.slane %v16632_v5, 2 }
 0x570   :  { %10276 = vmatmul.mubr.bf16.gmra.mxu0 %v8431_v22  ;;  %v7443_v10 = vrot.slane %v16613_v21, 6  ;;  %v7444_v35 = vrot.slane %v16613_v21, 7  ;;  %v7447_v44 = vrot.slane %v16632_v5, 3  ;;  %v7691_v3 = vmul.f32 %v7438_v20, %v18661_v25 }
 0x571   :  { %10799 = vrcp.f32 %v6166_v19  ;;  %v7448_v8 = vrot.slane %v16632_v5, 4  ;;  %v7449_v54 = vrot.slane %v16632_v5, 5  ;;  %v7692_v41 = vmul.f32 %v7439_v4, %v18662_v33 }
 0x572   :  { %v7450_v52 = vrot.slane %v16632_v5, 6  ;;  %v7451_v15 = vrot.slane %v16632_v5, 7  ;;  %v7693_v51 = vmul.f32 %v7440_v18, %v18663_v62  ;;  %v7699_v42 = vmul.f32 %v7445_v38, %v18664_v14 }
 0x573   :  { %v7690_v26 = vmul.f32 %v16613_v21, %v18665_v53  ;;  %v7694_v58 = vmul.f32 %v7441_v57, %v18666_v61  ;;  %v7695_v32 = vmul.f32 %v7442_v36, %v18667_v11  ;;  %v7700_v43 = vmul.f32 %v7446_v49, %v18668_v24 }
 0x574   :  { %v7696_v56 = vmul.f32 %v7443_v10, %v18669_v6  ;;  %v7697_v27 = vmul.f32 %v7444_v35, %v18670_v12  ;;  %v7701_v45 = vmul.f32 %v7447_v44, %v18671_v37  ;;  %v7899_v16 = vpack.c.bf16 %v7691_v3, %v7691_v3 }
 0x575   :  { %v7698_v2 = vmul.f32 %v16632_v5, %v18672_v28  ;;  %v7702_v59 = vmul.f32 %v7448_v8, %v18673_v40  ;;  %v7703_v21 = vmul.f32 %v7449_v54, %v18674_v34  ;;  %v7900_v23 = vpack.c.bf16 %v7692_v41, %v7692_v41 }
 0x576   :  { %v7704_v50 = vmul.f32 %v7450_v52, %v18675_v31  ;;  %v7705_v1 = vmul.f32 %v7451_v15, %v18676_v47  ;;  %v7901_v29 = vpack.c.bf16 %v7693_v51, %v7693_v51  ;;  %v7907_v55 = vpack.c.bf16 %v7699_v42, %v7699_v42 }
 0x577   :  { %v7898_v30 = vpack.c.bf16 %v7690_v26, %v7690_v26  ;;  %v7902_v46 = vpack.c.bf16 %v7694_v58, %v7694_v58  ;;  %v7903_v20 = vpack.c.bf16 %v7695_v32, %v7695_v32  ;;  %v7908_v0 = vpack.c.bf16 %v7700_v43, %v7700_v43 }
 0x578   :  { %v7904_v39 = vpack.c.bf16 %v7696_v56, %v7696_v56  ;;  %v7905_v4 = vpack.c.bf16 %v7697_v27, %v7697_v27  ;;  %v7909_v22 = vpack.c.bf16 %v7701_v45, %v7701_v45  ;;  %v8171_v19 = vunpack.c.l.b16 %v7899_v16 }
 0x579   :  { %v7906_v5 = vpack.c.bf16 %v7698_v2, %v7698_v2  ;;  %v7910_v18 = vpack.c.bf16 %v7702_v59, %v7702_v59  ;;  %v7911_v38 = vpack.c.bf16 %v7703_v21, %v7703_v21  ;;  %v8172_v57 = vunpack.c.l.b16 %v7900_v23 }
 0x57a   :  { %v7912_v36 = vpack.c.bf16 %v7704_v50, %v7704_v50  ;;  %v7913_v49 = vpack.c.bf16 %v7705_v1, %v7705_v1  ;;  %v8173_v10 = vunpack.c.l.b16 %v7901_v29  ;;  %v8179_v35 = vunpack.c.l.b16 %v7907_v55  ;;  %v18678_v1 = vld [vmem:[#allocation109_spill] sm:$0xff] }
 0x57b   :  { %v8170_v44 = vunpack.c.l.b16 %v7898_v30  ;;  %v8174_v25 = vunpack.c.l.b16 %v7902_v46  ;;  %v8175_v3 = vunpack.c.l.b16 %v7903_v20  ;;  %v8180_v8 = vunpack.c.l.b16 %v7908_v0  ;;  %v18680_v20 = vld [vmem:[#allocation76_spill] sm:$0xff] }
 0x57c   :  { %v16736_v54 = vpop.eup %10797  ;;  %v8176_v33 = vunpack.c.l.b16 %v7904_v39  ;;  %v8181_v41 = vunpack.c.l.b16 %v7909_v22  ;;  %v8370_v52 = vrot.slane %v8171_v19, 7  ;;  %v8372_v15 = vrot.slane %v8172_v57, 6  ;;  %v18682_v19 = vld [vmem:[#allocation151_spill] sm:$0xff] }
 0x57d   :  { %v8177_v62 = vunpack.c.l.b16 %v7905_v4  ;;  %v8178_v51 = vunpack.c.l.b16 %v7906_v5  ;;  %v8182_v14 = vunpack.c.l.b16 %v7910_v18  ;;  %v8183_v42 = vunpack.c.l.b16 %v7911_v38  ;;  %v10814_v4 = vld [vmem:[%s17192_s0 + $0x104] sm:$0xff] }
 0x57e   :  { %v16738_v53 = vpop.eup %10799  ;;  %v8371_v26 = vsel %vm3746_vm1, %v8370_v52, %v8170_v44  ;;  %v8374_v61 = vrot.slane %v8173_v10, 5  ;;  %v8384_v58 = vrot.slane %v8179_v35, 7  ;;  %v8386_v11 = vrot.slane %v8180_v8, 6  ;;  %v18684_v38 = vld [vmem:[#allocation115_spill] sm:$0xff]  ;;  %v18686_v44 = vld [vmem:[#allocation141_spill] sm:$0xff]  ;;  %v18690_v52 = vld [vmem:[#allocation188_spill] sm:$0xff] }
 0x57f   :  { %v8184_v32 = vunpack.c.l.b16 %v7912_v36  ;;  %v8185_v24 = vunpack.c.l.b16 %v7913_v49  ;;  %v8373_v43 = vsel %vm3748_vm2, %v8372_v15, %v8371_v26  ;;  %v8376_v6 = vrot.slane %v8174_v25, 4  ;;  %v18688_v8 = vld [vmem:[#allocation69_spill] sm:$0xff] }
 0x580   :  { %v8375_v56 = vsel %vm3750_vm3, %v8374_v61, %v8373_v43  ;;  %v8378_v12 = vrot.slane %v8175_v3, 3  ;;  %v8385_v27 = vsel %vm3746_vm1, %v8384_v58, %v8178_v51  ;;  %v8388_v37 = vrot.slane %v8181_v41, 5  ;;  %v18692_v51 = vld [vmem:[#allocation24_spill] sm:$0xff]  ;;  %v18693_v61 = vld [vmem:[#allocation90_spill] sm:$0xff] }
 0x581   :  { %v8377_v45 = vsel %vm3752_vm4, %v8376_v6, %v8375_v56  ;;  %v8380_v16 = vrot.slane %v8176_v33, 2  ;;  %v8387_v28 = vsel %vm3748_vm2, %v8386_v11, %v8385_v27  ;;  %v8390_v2 = vrot.slane %v8182_v14, 4  ;;  %v10815_v14 = vld [vmem:[%s17192_s0 + $0x118] sm:$0xff] }
 0x582   :  { %v8379_v40 = vsel %vm3754_vm5, %v8378_v12, %v8377_v45  ;;  %v8382_v59 = vrot.slane %v8177_v62, 1  ;;  %v8389_v34 = vsel %vm3750_vm3, %v8388_v37, %v8387_v28  ;;  %v8392_v21 = vrot.slane %v8183_v42, 3  ;;  %v10816_v42 = vld [vmem:[%s17192_s0 + $0x12c] sm:$0xff] }
 0x583   :  { %v7272_v23 = vadd.f32 %v7271_v13, %v16672_v9  ;;  %v8381_v31 = vsel %vm18677_vm11, %v8380_v16, %v8379_v40  ;;  %v8391_v50 = vsel %vm3752_vm4, %v8390_v2, %v8389_v34  ;;  %v8394_v47 = vrot.slane %v8184_v32, 2  ;;  %v10813_v13 = vld [vmem:[%s17192_s0 + $0xf0] sm:$0xff] }
 0x584   :  { %v7245_v29 = vrot.slane %v18678_v1, 1  ;;  %v8383_v55 = vsel %vm18679_vm6, %v8382_v59, %v8381_v31  ;;  %v8393_v30 = vsel %vm3754_vm5, %v8392_v21, %v8391_v50  ;;  %v8396_v46 = vrot.slane %v8185_v24, 1  ;;  %v18695_v50 = vld [vmem:[#allocation186_spill] sm:$0xff] }
 0x585   :  { %v7336_v0 = vrot.slane %v18680_v20, 1  ;;  %v7279_v39 = vadd.f32 %v7278_v60, %v16679_v48  ;;  %v8395_v9 = vsel %vm18681_vm12, %v8394_v47, %v8393_v30  ;;  %v9863_v22 = vcombine.high %v10813_v13, %v10814_v4  ;;  %v18698_v4 = vld [vmem:[#allocation67_spill] sm:$0xff] }
 0x586   :  { %v18683_v5 = vrot.slane %v18682_v19, 1  ;;  %v7252_v57 = vrot.slane %v18684_v38, 1  ;;  %v7259_v36 = vrot.slane %v16686_v7, 1  ;;  %v8397_v48 = vsel %vm18685_vm13, %v8396_v46, %v8395_v9  ;;  %v18697_v9 = vld [vmem:[#allocation123_spill] sm:$0xff] }
 0x587   :  { %v7266_v60 = vrot.slane %v16692_v63, 1  ;;  %v7287_v49 = vrot.slane %v16697_v17, 1  ;;  %v7273_v10 = vrot.slane %v7272_v23, 1  ;;  %v8432_v35 = vpack.c.b16 %v8397_v48, %v8383_v55  ;;  %8939 = vmatprep.mubr.bf16.mxu1 %v9863_v22 }
 0x588   :  { %v7309_v18 = vadd.f32 %v18683_v5, %v18682_v19  ;;  %v18687_v25 = vrot.slane %v18686_v44, 1  ;;  %v18689_v33 = vrot.slane %v18688_v8, 1  ;;  %v18691_v15 = vrot.slane %v18690_v52, 1  ;;  %8940 = vmatmul.mubr.bf16.gmra.mxu1 %v18692_v51 }
 0x589   :  { %v9864_v26 = vcombine.high %v10815_v14, %v10816_v42  ;;  %v18694_v58 = vrot.slane %v18693_v61, 1  ;;  %v7246_v32 = vadd.f32 %v7245_v29, %v18678_v1  ;;  %v7337_v24 = vadd.f32 %v7336_v0, %v18680_v20  ;;  %10279 = vmatprep.mubr.bf16.mxu0 %v8432_v35  ;;  %v18696_v20 = vld [vmem:[#allocation25_spill] sm:$0xff] }
 0x58a   :  { %v7316_v3 = vadd.f32 %v18687_v25, %v18686_v44  ;;  %v7323_v41 = vadd.f32 %v18689_v33, %v18688_v8  ;;  %v7232_v62 = vadd.f32 %v18691_v15, %v18690_v52  ;;  %v7280_v43 = vrot.slane %v7279_v39, 1 }
 0x58b   :  { %v7330_v11 = vadd.f32 %v18694_v58, %v18693_v61  ;;  %v7253_v6 = vadd.f32 %v7252_v57, %v18684_v38  ;;  %v7260_v56 = vadd.f32 %v7259_v36, %v16686_v7  ;;  %8947 = vmatprep.mubr.bf16.mxu1 %v9864_v26  ;;  %v7452_v12 = vrot.slane %v16738_v53, 1  ;;  %v10817_v36 = vld [vmem:[%s17192_s0 + $0x10] ss:$20 sps:$4 sm:$0xff]  }
 0x58c   :  { %v7453_v27 = vrot.slane %v16738_v53, 2  ;;  %v7267_v37 = vadd.f32 %v7266_v60, %v16692_v63  ;;  %v7288_v45 = vadd.f32 %v7287_v49, %v16697_v17  ;;  %v7274_v16 = vadd.f32 %v7273_v10, %v7272_v23 }
 0x58d   :  { %v7454_v28 = vrot.slane %v16738_v53, 3  ;;  %v7455_v2 = vrot.slane %v16738_v53, 4  ;;  %v7456_v40 = vrot.slane %v16738_v53, 5  ;;  %v7459_v59 = vrot.slane %v16736_v54, 1 }
 0x58e   :  { %v7460_v7 = vrot.slane %v16736_v54, 2  ;;  %v7281_v34 = vadd.f32 %v7280_v43, %v7279_v39  ;;  %v7457_v21 = vrot.slane %v16738_v53, 6  ;;  %v7458_v31 = vrot.slane %v16738_v53, 7 }
 0x58f   :  { %v7461_v63 = vrot.slane %v16736_v54, 3  ;;  %v7462_v17 = vrot.slane %v16736_v54, 4  ;;  %v7463_v23 = vrot.slane %v16736_v54, 5  ;;  %v7707_v47 = vmul.f32 %v7452_v12, %v18695_v50 }
 0x590   :  { %v7708_v1 = vmul.f32 %v7453_v27, %v7246_v32  ;;  %v7464_v29 = vrot.slane %v16736_v54, 6  ;;  %v7465_v55 = vrot.slane %v16736_v54, 7  ;;  %v7706_v30 = vmul.f32 %v16738_v53, %v7232_v62  ;;  %8948 = vmatmul.mubr.bf16.gmra.mxu1 %v18696_v20 }
 0x591   :  { %v7709_v46 = vmul.f32 %v7454_v28, %v7253_v6  ;;  %v7710_v0 = vmul.f32 %v7455_v2, %v7260_v56  ;;  %v7711_v39 = vmul.f32 %v7456_v40, %v7267_v37  ;;  %v7715_v13 = vmul.f32 %v7459_v59, %v18697_v9  ;;  %10299 = vmatprep.mubr.bf16.mxu1 %v10817_v36  ;;  %v10818_v56 = vld [vmem:[%s17192_s0 + $0x38] ss:$20 sps:$4 sm:$0xff]  }
 0x592   :  { %v7716_v22 = vmul.f32 %v7460_v7, %v18698_v4  ;;  %v7712_v19 = vmul.f32 %v7457_v21, %v7274_v16  ;;  %v7713_v5 = vmul.f32 %v7458_v31, %v7281_v34  ;;  %v7714_v38 = vmul.f32 %v16736_v54, %v7288_v45  ;;  %v10819_v16 = vld [vmem:[%s17192_s0 + $0x60] ss:$20 sps:$4 sm:$0xff]  }
 0x593   :  { %v7717_v57 = vmul.f32 %v7461_v63, %v7309_v18  ;;  %v7718_v53 = vmul.f32 %v7462_v17, %v7316_v3  ;;  %v7719_v48 = vmul.f32 %v7463_v23, %v7323_v41  ;;  %v7915_v60 = vpack.c.bf16 %v7707_v47, %v7707_v47 }
 0x594   :  { %v7916_v49 = vpack.c.bf16 %v7708_v1, %v7708_v1  ;;  %v7720_v10 = vmul.f32 %v7464_v29, %v7330_v11  ;;  %v7721_v35 = vmul.f32 %v7465_v55, %v7337_v24  ;;  %v7914_v44 = vpack.c.bf16 %v7706_v30, %v7706_v30 }
 0x595   :  { %v7917_v25 = vpack.c.bf16 %v7709_v46, %v7709_v46  ;;  %v7918_v8 = vpack.c.bf16 %v7710_v0, %v7710_v0  ;;  %v7919_v33 = vpack.c.bf16 %v7711_v39, %v7711_v39  ;;  %v7923_v52 = vpack.c.bf16 %v7715_v13, %v7715_v13 }
 0x596   :  { %v7924_v15 = vpack.c.bf16 %v7716_v22, %v7716_v22  ;;  %v7920_v62 = vpack.c.bf16 %v7712_v19, %v7712_v19  ;;  %v7921_v54 = vpack.c.bf16 %v7713_v5, %v7713_v5  ;;  %v7922_v18 = vpack.c.bf16 %v7714_v38, %v7714_v38  ;;  %v10820_v38 = vld [vmem:[%s17192_s0 + $0x88] ss:$20 sps:$4 sm:$0xff]  }
 0x597   :  { %v7925_v51 = vpack.c.bf16 %v7717_v57, %v7717_v57  ;;  %v7926_v14 = vpack.c.bf16 %v7718_v53, %v7718_v53  ;;  %v7927_v42 = vpack.c.bf16 %v7719_v48, %v7719_v48  ;;  %v8187_v26 = vunpack.c.l.b16 %v7915_v60  ;;  %v10821_v48 = vld [vmem:[%s17192_s0 + $0xb0] ss:$20 sps:$4 sm:$0xff]  }
 0x598   :  { %v8188_v61 = vunpack.c.l.b16 %v7916_v49  ;;  %v7928_v3 = vpack.c.bf16 %v7720_v10, %v7720_v10  ;;  %v7929_v41 = vpack.c.bf16 %v7721_v35, %v7721_v35  ;;  %v8186_v58 = vunpack.c.l.b16 %v7914_v44  ;;  %10300 = vmatmul.mubr.bf16.vlgmr.msra.gmra.mxu1 %v10818_v56  ;;  %v10822_v35 = vld [vmem:[%s17192_s0 + $0xc] ss:$20 sps:$4 sm:$0xff]  }
 0x599   :  { %v8189_v32 = vunpack.c.l.b16 %v7917_v25  ;;  %v8190_v11 = vunpack.c.l.b16 %v7918_v8  ;;  %v8191_v24 = vunpack.c.l.b16 %v7919_v33  ;;  %v8195_v43 = vunpack.c.l.b16 %v7923_v52  ;;  %10303 = vmatprep.mubr.bf16.mxu1 %v10819_v16  ;;  %v10823_v44 = vld [vmem:[%s17192_s0 + $0xd8] ss:$20 sps:$4 sm:$0xff]   ;;  %v10824_v25 = vld [vmem:[%s17192_s0 + $0x100] ss:$20 sps:$4 sm:$0xff]   ;;  %v10825_v8 = vld [vmem:[%s17192_s0 + $0x8] ss:$20 sps:$4 sm:$0xff]  }
 0x59a   :  { %v8196_v6 = vunpack.c.l.b16 %v7924_v15  ;;  %v8192_v12 = vunpack.c.l.b16 %v7920_v62  ;;  %v8193_v27 = vunpack.c.l.b16 %v7921_v54  ;;  %v8197_v37 = vunpack.c.l.b16 %v7925_v51  ;;  %v10826_v33 = vld [vmem:[%s17192_s0 + $0x34] ss:$20 sps:$4 sm:$0xff]   ;;  %v10828_v15 = vld [vmem:[%s17192_s0 + $0x30] ss:$20 sps:$4 sm:$0xff]   ;;  %v10830_v54 = vld [vmem:[%s17192_s0 + $0x58] ss:$20 sps:$4 sm:$0xff]  }
 0x59b   :  { %v8398_v45 = vrot.slane %v8187_v26, 7  ;;  %v8194_v28 = vunpack.c.l.b16 %v7922_v18  ;;  %v8198_v2 = vunpack.c.l.b16 %v7926_v14  ;;  %v8199_v40 = vunpack.c.l.b16 %v7927_v42  ;;  %v10827_v52 = vld [vmem:[%s17192_s0 + $0x128] ss:$20 sps:$4 sm:$0xff]   ;;  %v10831_v18 = vld [vmem:[%s17192_s0 + $0x84] ss:$20 sps:$4 sm:$0xff]  }
 0x59c   :  { %v8400_v59 = vrot.slane %v8188_v61, 6  ;;  %v8200_v7 = vunpack.c.l.b16 %v7928_v3  ;;  %v8402_v21 = vrot.slane %v8189_v32, 5  ;;  %v8412_v31 = vrot.slane %v8195_v43, 7  ;;  %v10829_v62 = vld [vmem:[%s17192_s0 + $0x5c] ss:$20 sps:$4 sm:$0xff]   ;;  %v16906_v43 = vpop.f32.mrf.mxu1 }
 0x59d   :  { %v8399_v34 = vsel %vm3746_vm1, %v8398_v45, %v8186_v58  ;;  %v8201_v63 = vunpack.c.l.b16 %v7929_v41  ;;  %v8404_v23 = vrot.slane %v8190_v11, 4  ;;  %v8414_v50 = vrot.slane %v8196_v6, 6  ;;  %v10832_v51 = vld [vmem:[%s17192_s0 + $0x80] ss:$20 sps:$4 sm:$0xff]   ;;  %v10834_v42 = vld [vmem:[%s17192_s0 + $0xa8] ss:$20 sps:$4 sm:$0xff]  }
 0x59e   :  { %v8401_v17 = vsel %vm3748_vm2, %v8400_v59, %v8399_v34  ;;  %v8406_v1 = vrot.slane %v8191_v24, 3  ;;  %v8413_v29 = vsel %vm3746_vm1, %v8412_v31, %v8194_v28  ;;  %v8416_v55 = vrot.slane %v8197_v37, 5  ;;  %vm18700_vm1 = vmmov %vm18630_vm0  ;;  %v10833_v14 = vld [vmem:[%s17192_s0 + $0xac] ss:$20 sps:$4 sm:$0xff]   ;;  %v10835_v26 = vld [vmem:[%s17192_s0 + $0xd4] ss:$20 sps:$4 sm:$0xff]   ;;  %v16908_v56 = vpop.f32.mrf.mxu1 }
 0x59f   :  { %v8403_v47 = vsel %vm3750_vm3, %v8402_v21, %v8401_v17  ;;  %v8408_v46 = vrot.slane %v8192_v12, 2  ;;  %v8415_v20 = vsel %vm3748_vm2, %v8414_v50, %v8413_v29  ;;  %v8418_v0 = vrot.slane %v8198_v2, 4  ;;  %vm18701_vm2 = vmmov %vm18651_vm8  ;;  %v10836_v61 = vld [vmem:[%s17192_s0 + $0xd0] ss:$20 sps:$4 sm:$0xff]   ;;  %v10838_v41 = vld [vmem:[%s17192_s0 + $0xf8] ss:$20 sps:$4 sm:$0xff]  }
 0x5a0   :  { %v8405_v30 = vsel %vm3752_vm4, %v8404_v23, %v8403_v47  ;;  %v8410_v9 = vrot.slane %v8193_v27, 1  ;;  %v8417_v13 = vsel %vm3750_vm3, %v8416_v55, %v8415_v20  ;;  %v8420_v4 = vrot.slane %v8199_v40, 3  ;;  %10304 = vmatmul.mubr.bf16.gmra.mxu1 %v10820_v38  ;;  %vm18702_vm3 = vmmov %vm18630_vm0  ;;  %v10837_v3 = vld [vmem:[%s17192_s0 + $0xfc] ss:$20 sps:$4 sm:$0xff]   ;;  %v10839_v58 = vld [vmem:[%s17192_s0 + $0x124] ss:$20 sps:$4 sm:$0xff]   ;;  %v16910_v12 = vpop.f32.mrf.mxu1 }
 0x5a1   :  { %v8407_v39 = vsel %vm3754_vm5, %v8406_v1, %v8405_v30  ;;  %v8419_v19 = vsel %vm3752_vm4, %v8418_v0, %v8417_v13  ;;  %v8422_v5 = vrot.slane %v8200_v7, 2  ;;  %v8424_v53 = vrot.slane %v8201_v63, 1  ;;  %10307 = vmatprep.mubr.bf16.mxu1 %v10821_v48  ;;  %v10840_v32 = vld [vmem:[%s17192_s0 + $0x120] ss:$20 sps:$4 sm:$0xff]   ;;  %v10505_v11 = vld [vmem:[#allocation8 + $0x38] sm:$0xff]   ;;  %v10507_v6 = vld [vmem:[#allocation8 + $0x28] sm:$0xff]  }
 0x5a2   :  { %v8409_v22 = vsel %vm18699_vm14, %v8408_v46, %v8407_v39  ;;  %v8421_v36 = vsel %vm3754_vm5, %v8420_v4, %v8419_v19  ;;  %10315 = vmatprep.subr.bf16.mxu0 %v10505_v11  ;;  %10347 = vmatprep.subr.bf16.mxu1 %v10505_v11  ;;  %v10506_v24 = vld [vmem:[#allocation8 + $0x30] sm:$0xff]   ;;  %v10508_v27 = vld [vmem:[#allocation8 + $0x20] sm:$0xff]   ;;  %v16912_v37 = vpop.f32.mrf.mxu1  ;;  %v10509_v16 = vld [vmem:[#allocation8 + $0x18] sm:$0xff]  }
 0x5a3   :  { %v8411_v57 = vsel %vm18700_vm1, %v8410_v9, %v8409_v22  ;;  %v8423_v60 = vsel %vm18701_vm2, %v8422_v5, %v8421_v36  ;;  %10355 = vmatpush3.bf16.msra.mxu1 %v10505_v11  ;;  %v10510_v2 = vld [vmem:[#allocation8 + $0x10] sm:$0xff]   ;;  %v10511_v40 = vld [vmem:[#allocation8 + $0x8] sm:$0xff]   ;;  %v10512_v7 = vld [vmem:[#allocation8] sm:$0xff]  }
 0x5a4   :  { %v8425_v49 = vsel %vm18702_vm3, %v8424_v53, %v8423_v60  ;;  %10348 = vmatprep.subr.bf16.mxu1 %v10506_v24  ;;  %v16914_v45 = vpop.f32.mrf.mxu1 }
 0x5a5   :  { %v8433_v10 = vpack.c.b16 %v8425_v49, %v8411_v57 }
 0x5a6   :  { %v16916_v28 = vpop.f32.mrf.mxu1 }
 0x5a7   :  { %10280 = vmatmul.mubr.bf16.gmra.mxu0 %v8433_v10  ;;  %10356 = vmatpush3.bf16.msra.mxu1 %v10506_v24 }
 0x5a8   :  { %8988 = vmatprep.mubr.bf16.mxu0 %v10822_v35  ;;  %10308 = vmatmul.mubr.bf16.gmra.mxu1 %v10823_v44  ;;  %v16918_v59 = vpop.f32.mrf.mxu1 }
 0x5a9   :  { %10311 = vmatprep.mubr.bf16.mxu1 %v10824_v25  ;;  %10349 = vmatprep.subr.bf16.mxu1 %v10507_v6 }
 0x5aa   :  { %v16920_v34 = vpop.f32.mrf.mxu1 }
 0x5ab   :  { %10357 = vmatpush3.bf16.msra.mxu1 %v10507_v6 }
 0x5ac   :  { %10350 = vmatprep.subr.bf16.mxu1 %v10508_v27  ;;  %v16922_v21 = vpop.f32.mrf.mxu1 }
 0x5ae   :  { %v16924_v31 = vpop.f32.mrf.mxu1 }
 0x5af   :  { %8989 = vmatmul.mubr.bf16.vlgmr.msra.gmra.mxu0 %v10825_v8  ;;  %10358 = vmatpush3.bf16.msra.mxu1 %v10508_v27 }
 0x5b0   :  { %8996 = vmatprep.mubr.bf16.mxu0 %v10826_v33  ;;  %10312 = vmatmul.mubr.bf16.gmra.mxu1 %v10827_v52  ;;  %v16926_v63 = vpop.f32.mrf.mxu1 }
 0x5b1   :  { %10316 = vmatpush3.bf16.msra.mxu0 %v10505_v11  ;;  %10351 = vmatprep.subr.bf16.mxu1 %v10509_v16 }
 0x5b2   :  { %10317 = vmatprep.subr.bf16.mxu0 %v10506_v24  ;;  %v16928_v17 = vpop.f32.mrf.mxu1 }
 0x5b3   :  { %10359 = vmatpush3.bf16.msra.mxu1 %v10509_v16 }
 0x5b4   :  { %10352 = vmatprep.subr.bf16.mxu1 %v10510_v2 }
 0x5b5   :  { %10318 = vmatpush3.bf16.msra.mxu0 %v10506_v24 }
 0x5b6   :  { %10319 = vmatprep.subr.bf16.mxu0 %v10507_v6  ;;  %v16930_v23 = vpop.f32.mrf.mxu1 }
 0x5b7   :  { %8997 = vmatmul.mubr.bf16.gmra.mxu0 %v10828_v15  ;;  %10360 = vmatpush3.bf16.msra.mxu1 %v10510_v2 }
 0x5b8   :  { %9004 = vmatprep.mubr.bf16.mxu0 %v10829_v62  ;;  %10353 = vmatprep.subr.bf16.mxu1 %v10511_v40  ;;  %v16932_v50 = vpop.f32.mrf.mxu1 }
 0x5b9   :  { %10320 = vmatpush3.bf16.msra.mxu0 %v10507_v6 }
 0x5ba   :  { %10321 = vmatprep.subr.bf16.mxu0 %v10508_v27  ;;  %v16934_v47 = vpop.f32.mrf.mxu1 }
 0x5bb   :  { %10361 = vmatpush3.bf16.msra.mxu1 %v10511_v40 }
 0x5bc   :  { %10354 = vmatprep.subr.bf16.mxu1 %v10512_v7  ;;  %v16936_v1 = vpop.f32.mrf.mxu1 }
 0x5bd   :  { %10322 = vmatpush3.bf16.msra.mxu0 %v10508_v27 }
 0x5be   :  { %10323 = vmatprep.subr.bf16.mxu0 %v10509_v16 }
 0x5bf   :  { %9005 = vmatmul.mubr.bf16.gmra.mxu0 %v10830_v54  ;;  %10362 = vmatpush3.bf16.msra.mxu1 %v10512_v7 }
 0x5c0   :  { %9012 = vmatprep.mubr.bf16.mxu0 %v10831_v18 }
 0x5c1   :  { %10324 = vmatpush3.bf16.msra.mxu0 %v10509_v16 }
 0x5c2   :  { %10325 = vmatprep.subr.bf16.mxu0 %v10510_v2 }
 0x5c5   :  { %10326 = vmatpush3.bf16.msra.mxu0 %v10510_v2 }
 0x5c6   :  { %10327 = vmatprep.subr.bf16.mxu0 %v10511_v40 }
 0x5c7   :  { %9013 = vmatmul.mubr.bf16.gmra.mxu0 %v10832_v51 }
 0x5c8   :  { %9020 = vmatprep.mubr.bf16.mxu0 %v10833_v14 }
 0x5c9   :  { %10328 = vmatpush3.bf16.msra.mxu0 %v10511_v40  ;;  %v10051_v40 = vadd.f32 %v16916_v28, %v16914_v45 }
 0x5ca   :  { %10329 = vmatprep.subr.bf16.mxu0 %v10512_v7 }
 0x5cd   :  { %10330 = vmatpush3.bf16.msra.mxu0 %v10512_v7 }
 0x5cf   :  { %9021 = vmatmul.mubr.bf16.gmra.mxu0 %v10834_v42 }
 0x5d0   :  { %9028 = vmatprep.mubr.bf16.mxu0 %v10835_v26 }
 0x5d7   :  { %9029 = vmatmul.mubr.bf16.gmra.mxu0 %v10836_v61  ;;  %v10045_v61 = vadd.f32 %v16908_v56, %v16906_v43  ;;  %v16999_v43 = vld [vmem:[%s17201_s9] ss:$0 sm:$0xff] }
 0x5d8   :  { %9036 = vmatprep.mubr.bf16.mxu0 %v10837_v3  ;;  %v10269_v46 = vpop.f32.mrf.mxu0 }
 0x5da   :  { %v8524_v0 = vpop.f32.mrf.mxu0 }
 0x5db   :  { %v8894_v11 = vadd.f32 %v10045_v61, %v8524_v0 }
 0x5dc   :  { %v10270_v9 = vpop.f32.mrf.mxu0 }
 0x5de   :  { %v8527_v4 = vpop.f32.mrf.mxu0 }
 0x5df   :  { %9037 = vmatmul.mubr.bf16.gmra.mxu0 %v10838_v41 }
 0x5e0   :  { %9044 = vmatprep.mubr.bf16.mxu0 %v10839_v58 }
 0x5e7   :  { %9045 = vmatmul.mubr.bf16.gmra.mxu0 %v10840_v32  ;;  %v10048_v32 = vadd.f32 %v16912_v37, %v16910_v12  ;;  %v10054_v37 = vadd.f32 %v16920_v34, %v16918_v59 }
 0x5e9   :  { %v8897_v7 = vadd.f32 %v10048_v32, %v8527_v4  ;;  %v10057_v32 = vadd.f32 %v16924_v31, %v16922_v21 }
 0x5fb   :  { %v16938_v29 = vpop.f32.mrf.mxu1 }
 0x5fd   :  { %v16940_v55 = vpop.f32.mrf.mxu1 }
 0x5ff   :  { %v16942_v30 = vpop.f32.mrf.mxu1 }
 0x601   :  { %v16944_v20 = vpop.f32.mrf.mxu1  ;;  %v16952_v19 = vpop.f32.mrf.mxu0 }
 0x603   :  { %v16946_v39 = vpop.f32.mrf.mxu1  ;;  %v16958_v57 = vpop.f32.mrf.mxu0 }
 0x605   :  { %v16948_v13 = vpop.f32.mrf.mxu1  ;;  %v16962_v53 = vpop.f32.mrf.mxu0 }
 0x607   :  { %v16950_v22 = vpop.f32.mrf.mxu1  ;;  %v16966_v60 = vpop.f32.mrf.mxu0 }
 0x609   :  { %v16954_v5 = vpop.f32.mrf.mxu1 }
 0x630   :  { %v16968_v49 = vpop.f32.mrf.mxu0 }
 0x632   :  { %v16972_v35 = vpop.f32.mrf.mxu0 }
 0x634   :  { %v16974_v25 = vpop.f32.mrf.mxu0 }
 0x636   :  { %v16976_v52 = vpop.f32.mrf.mxu0 }
 0x648   :  { %v16956_v38 = vpop.f32.mrf.mxu1 }
 0x64a   :  { %v16960_v36 = vpop.f32.mrf.mxu1 }
 0x64c   :  { %v16964_v48 = vpop.f32.mrf.mxu1 }
 0x64e   :  { %v16970_v10 = vpop.f32.mrf.mxu1 }
 0x650   :  { %v10085_v44 = vpop.f32.mrf.mxu1 }
 0x652   :  { %v10086_v8 = vpop.f32.mrf.mxu1 }
 0x653   :  { %v10087_v33 = vadd.f32 %v10086_v8, %v10085_v44 }
 0x654   :  { %v16978_v15 = vpop.f32.mrf.mxu1 }
 0x656   :  { %v16984_v51 = vpop.f32.mrf.mxu1 }
 0x658   :  { %v10301_v42 = vpop.f32.mrf.mxu1 }
 0x65a   :  { %v9087_v41 = vpop.f32.mrf.mxu1 }
 0x65c   :  { %v10302_v27 = vpop.f32.mrf.mxu1 }
 0x667   :  { %v10281_v62 = vpop.f32.mrf.mxu0 }
 0x668   :  { %v16980_v54 = vadd.f32 %v10281_v62, %v10087_v33  ;;  %v9090_v33 = vpop.f32.mrf.mxu1  ;;  %v8902_v62 = vadd.f32 %v10269_v46, %v10051_v40 }
 0x669   :  { %v16982_v18 = vpop.f32.mrf.mxu0 }
 0x66a   :  { %v10305_v4 = vpop.f32.mrf.mxu1 }
 0x66b   :  { %v16986_v14 = vpop.f32.mrf.mxu0 }
 0x66c   :  { %v9103_v46 = vpop.f32.mrf.mxu1 }
 0x66d   :  { %v16988_v26 = vpop.f32.mrf.mxu0 }
 0x66f   :  { %v10107_v3 = vpop.f32.mrf.mxu0 }
 0x671   :  { %v10108_v58 = vpop.f32.mrf.mxu0 }
 0x672   :  { %v10109_v24 = vadd.f32 %v10108_v58, %v10107_v3 }
 0x673   :  { %v10110_v6 = vpop.f32.mrf.mxu0 }
 0x674   :  { %v8991_v16 = vadd.f32 %v10109_v24, %v8894_v11  ;;  %v8905_v11 = vadd.f32 %v10270_v9, %v10054_v37  ;;  %v10306_v9 = vpop.f32.mrf.mxu1 }
 0x675   :  { %v10111_v2 = vpop.f32.mrf.mxu0 }
 0x676   :  { %v10112_v44 = vadd.f32 %v10111_v2, %v10110_v6  ;;  %v9088_v8 = vadd.f32 %v9087_v41, %v8991_v16 }
 0x677   :  { %v10113_v56 = vpop.f32.mrf.mxu0 }
 0x678   :  { %v8994_v12 = vadd.f32 %v10112_v44, %v8897_v7  ;;  %v9157_v61 = vadd.f32 %v16999_v43, %v9088_v8  ;;  %v10060_v44 = vadd.f32 %v16928_v17, %v16926_v63 }
 0x679   :  { %v10114_v0 = vpop.f32.mrf.mxu0 }
 0x67a   :  { %v10115_v3 = vadd.f32 %v10114_v0, %v10113_v56  ;;  %v9091_v45 = vadd.f32 %v9090_v33, %v8994_v12  ;;  %v9173_v6 = vmax.f32 %v9157_v61, 0.0  ;;  %v8910_v56 = vadd.f32 %v10057_v32, %v16958_v57 }
 0x67b   :  { %v10116_v28 = vpop.f32.mrf.mxu0  ;;  %v10063_v0 = vadd.f32 %v16932_v50, %v16930_v23 }
 0x67c   :  { %v8999_v41 = vadd.f32 %v10115_v3, %v8902_v62  ;;  %v9158_v58 = vadd.f32 %v16999_v43, %v9091_v45  ;;  %v8913_v62 = vadd.f32 %v10060_v44, %v16966_v60 }
 0x67d   :  { %v10117_v24 = vpop.f32.mrf.mxu0 }
 0x67e   :  { %v9096_v16 = vadd.f32 %v10301_v42, %v8999_v41  ;;  %v9174_v2 = vmax.f32 %v9158_v58, 0.0  ;;  %v10118_v59 = vadd.f32 %v10117_v24, %v10116_v28  ;;  %v9106_v28 = vpop.f32.mrf.mxu1  ;;  %v10066_v58 = vadd.f32 %v16936_v1, %v16934_v47 }
 0x67f   :  { %v10119_v34 = vpop.f32.mrf.mxu0 }
 0x680   :  { %v9002_v40 = vadd.f32 %v10118_v59, %v8905_v11  ;;  %v9189_v7 = vpack.c.bf16 %v9174_v2, %v9173_v6  ;;  %v9159_v33 = vadd.f32 %v16999_v43, %v9096_v16  ;;  %v8918_v11 = vadd.f32 %v16952_v19, %v10063_v0  ;;  %v10309_v6 = vpop.f32.mrf.mxu1 }
 0x681   :  { %v10120_v8 = vpop.f32.mrf.mxu0  ;;  %v8921_v59 = vadd.f32 %v16962_v53, %v10066_v58  ;;  %v10075_v0 = vadd.f32 %v16948_v13, %v16946_v39 }
 0x682   :  { %v9099_v12 = vadd.f32 %v10302_v27, %v9002_v40  ;;  %v10121_v21 = vadd.f32 %v10120_v8, %v10119_v34  ;;  %10331 = vmatprep.mubr.bf16.mxu0 %v9189_v7  ;;  %v9175_v63 = vmax.f32 %v9159_v33, 0.0  ;;  %v10069_v34 = vadd.f32 %v16940_v55, %v16938_v29  ;;  %v9119_v44 = vpop.f32.mrf.mxu1 }
 0x683   :  { %v10122_v31 = vpop.f32.mrf.mxu0  ;;  %v10072_v33 = vadd.f32 %v16944_v20, %v16942_v30 }
 0x684   :  { %v9160_v42 = vadd.f32 %v16999_v43, %v9099_v12  ;;  %v9007_v37 = vadd.f32 %v10121_v21, %v8910_v56  ;;  %v8926_v21 = vadd.f32 %v10069_v34, %v16972_v35 }
 0x685   :  { %v10123_v61 = vpop.f32.mrf.mxu0 }
 0x686   :  { %v9176_v17 = vmax.f32 %v9160_v42, 0.0  ;;  %v10124_v3 = vadd.f32 %v10123_v61, %v10122_v31  ;;  %v9104_v57 = vadd.f32 %v9103_v46, %v9007_v37  ;;  %v10310_v42 = vpop.f32.mrf.mxu1 }
 0x687   :  { %v10125_v45 = vpop.f32.mrf.mxu0 }
 0x688   :  { %v9190_v27 = vpack.c.bf16 %v9176_v17, %v9175_v63  ;;  %v9010_v41 = vadd.f32 %v10124_v3, %v8913_v62  ;;  %v9161_v24 = vadd.f32 %v16999_v43, %v9104_v57  ;;  %v8929_v62 = vadd.f32 %v10072_v33, %v16976_v52  ;;  %v9122_v17 = vpop.f32.mrf.mxu1 }
 0x689   :  { %v10126_v32 = vpop.f32.mrf.mxu0 }
 0x68a   :  { %v10127_v23 = vadd.f32 %v10126_v32, %v10125_v45  ;;  %v9107_v50 = vadd.f32 %v9106_v28, %v9010_v41  ;;  %10332 = vmatmul.mubr.bf16.vlgmr.msra.gmra.mxu0 %v9190_v27  ;;  %v9177_v47 = vmax.f32 %v9161_v24, 0.0  ;;  %v10078_v45 = vadd.f32 %v16954_v5, %v16950_v22  ;;  %v10313_v58 = vpop.f32.mrf.mxu1 }
 0x68b   :  { %v10128_v60 = vpop.f32.mrf.mxu0  ;;  %v8934_v27 = vadd.f32 %v16968_v49, %v10075_v0 }
 0x68c   :  { %v9015_v16 = vadd.f32 %v10127_v23, %v8918_v11  ;;  %v9162_v2 = vadd.f32 %v16999_v43, %v9107_v50  ;;  %v8937_v24 = vadd.f32 %v16974_v25, %v10078_v45  ;;  %v10081_v23 = vadd.f32 %v16960_v36, %v16956_v38 }
 0x68d   :  { %v10129_v46 = vpop.f32.mrf.mxu0 }
 0x68e   :  { %v9112_v1 = vadd.f32 %v10305_v4, %v9015_v16  ;;  %v9178_v40 = vmax.f32 %v9162_v2, 0.0  ;;  %v10130_v19 = vadd.f32 %v10129_v46, %v10128_v60  ;;  %v9135_v2 = vpop.f32.mrf.mxu1  ;;  %v10084_v46 = vadd.f32 %v16970_v10, %v16964_v48 }
 0x68f   :  { %v10131_v7 = vpop.f32.mrf.mxu0 }
 0x690   :  { %v9018_v8 = vadd.f32 %v10130_v19, %v8921_v59  ;;  %v9191_v56 = vpack.c.bf16 %v9178_v40, %v9177_v47  ;;  %v9163_v29 = vadd.f32 %v16999_v43, %v9112_v1  ;;  %v8942_v1 = vadd.f32 %v10081_v23, %v16982_v18  ;;  %v10314_v36 = vpop.f32.mrf.mxu1 }
 0x691   :  { %v10132_v12 = vpop.f32.mrf.mxu0 }
 0x692   :  { %v9115_v31 = vadd.f32 %v10306_v9, %v9018_v8  ;;  %v10133_v53 = vadd.f32 %v10132_v12, %v10131_v7  ;;  %10335 = vmatprep.mubr.bf16.mxu0 %v9191_v56  ;;  %v9179_v63 = vmax.f32 %v9163_v29, 0.0 }
 0x693   :  { %v10134_v55 = vpop.f32.mrf.mxu0 }
 0x694   :  { %v9023_v4 = vadd.f32 %v10133_v53, %v8926_v21  ;;  %v9164_v37 = vadd.f32 %v16999_v43, %v9115_v31  ;;  %v9138_v21 = vpop.f32.mrf.mxu1  ;;  %v10090_v53 = vadd.f32 %v16984_v51, %v16978_v15 }
 0x695   :  { %v10135_v61 = vpop.f32.mrf.mxu0 }
 0x696   :  { %v10136_v30 = vadd.f32 %v10135_v61, %v10134_v55  ;;  %v9120_v20 = vadd.f32 %v9119_v44, %v9023_v4  ;;  %v9180_v35 = vmax.f32 %v9164_v37, 0.0  ;;  %v8945_v44 = vadd.f32 %v10084_v46, %v16988_v26  ;;  %v10842_v46 = vld [vmem:[%s17192_s0] sm:$0xff] }
 0x697   :  { %v10137_v9 = vpop.f32.mrf.mxu0 }
 0x698   :  { %v9026_v3 = vadd.f32 %v10136_v30, %v8929_v62  ;;  %v9192_v57 = vpack.c.bf16 %v9180_v35, %v9179_v63  ;;  %v9165_v41 = vadd.f32 %v16999_v43, %v9120_v20  ;;  %v8953_v62 = vadd.f32 %v16986_v14, %v10090_v53  ;;  %v9447_v14 = vpop.permute.xlu0 %9446 }
 0x699   :  { %v10138_v28 = vpop.f32.mrf.mxu0  ;;  %vm9493_vm5 = vcmp.eq.s32.totalorder %v9447_v14, 1 }
 0x69a   :  { %v10139_v39 = vadd.f32 %v10138_v28, %v10137_v9  ;;  %v9123_v13 = vadd.f32 %v9122_v17, %v9026_v3  ;;  %10336 = vmatmul.mubr.bf16.gmra.mxu0 %v9192_v57  ;;  %v9181_v22 = vmax.f32 %v9165_v41, 0.0  ;;  %v17053_v28 = vpop.permute.xlu1 %9449 }
 0x69b   :  { %v10140_v52 = vpop.f32.mrf.mxu0  ;;  %vm9494_vm15 = vcmp.eq.s32.totalorder %v17053_v28, 1 }
 0x69c   :  { %v9031_v32 = vadd.f32 %v10139_v39, %v8934_v27  ;;  %v9166_v11 = vadd.f32 %v16999_v43, %v9123_v13  ;;  %v9456_v41 = vpop.permute.xlu0 %9455 }
 0x69d   :  { %v10141_v50 = vpop.f32.mrf.mxu0  ;;  %vm9496_vm0 = vcmp.eq.s32.totalorder %v9456_v41, 1 }
 0x69e   :  { %v9128_v5 = vadd.f32 %v10309_v6, %v9031_v32  ;;  %v9182_v60 = vmax.f32 %v9166_v11, 0.0  ;;  %v10142_v49 = vadd.f32 %v10141_v50, %v10140_v52  ;;  %v9453_v27 = vpop.permute.xlu1 %9452 }
 0x69f   :  { %v10143_v16 = vpop.f32.mrf.mxu0  ;;  %vm9495_vm4 = vcmp.eq.s32.totalorder %v9453_v27, 1 }
 0x6a0   :  { %v9034_v59 = vadd.f32 %v10142_v49, %v8937_v24  ;;  %v9193_v34 = vpack.c.bf16 %v9182_v60, %v9181_v22  ;;  %v9167_v25 = vadd.f32 %v16999_v43, %v9128_v5  ;;  %v17057_v13 = vpop.permute.xlu0 %9461 }
 0x6a1   :  { %v10144_v47 = vpop.f32.mrf.mxu0  ;;  %vm9498_vm14 = vcmp.eq.s32.totalorder %v17057_v13, 1 }
 0x6a2   :  { %v9131_v40 = vadd.f32 %v10310_v42, %v9034_v59  ;;  %v10145_v19 = vadd.f32 %v10144_v47, %v10143_v16  ;;  %10339 = vmatprep.mubr.bf16.mxu1 %v9193_v34  ;;  %v9183_v56 = vmax.f32 %v9167_v25, 0.0  ;;  %v17055_v39 = vpop.permute.xlu1 %9458  ;;  %v10841_v16 = vld [vmem:[%s17192_s0 + $0x28] sm:$0xff]  ;;  %v9383_v59 = vld [vmem:[#allocation2 + $0x10] sm:$0xff]  ;;  %v17085_v34 = vld [vmem:[%s17203_s11] ss:$0 sm:$0xff]  ;;  %v9669_v47 = vrot.slane %v10842_v46, 4 }
 0x6a3   :  { %v10146_v38 = vpop.f32.mrf.mxu0  ;;  %v9381_v25 = vld [vmem:[#allocation2] sm:$0xff]  ;;  %vm9497_vm11 = vcmp.eq.s32.totalorder %v17055_v39, 1 }
 0x6a4   :  { %v9168_v6 = vadd.f32 %v16999_v43, %v9131_v40  ;;  %v9039_v7 = vadd.f32 %v10145_v19, %v8942_v1  ;;  %v9623_v19 = vunpack.c.l.bf16 %v10841_v16 }
 0x6a5   :  { %v10147_v8 = vpop.f32.mrf.mxu0 }
 0x6a6   :  { %v9184_v33 = vmax.f32 %v9168_v6, 0.0  ;;  %v10148_v12 = vadd.f32 %v10147_v8, %v10146_v38  ;;  %v9136_v48 = vadd.f32 %v9135_v2, %v9039_v7  ;;  %v17059_v52 = vpop.permute.xlu1 %9464  ;;  %v9671_v2 = vrot.slane %v10841_v16, 4  ;;  %v9384_v8 = vld [vmem:[#allocation2 + $0x18] sm:$0xff]  ;;  %v9385_v16 = vld [vmem:[#allocation2 + $0x20] sm:$0xff] }
 0x6a7   :  { %v10149_v10 = vpop.f32.mrf.mxu0  ;;  %v9511_v7 = vsel %vm9495_vm4, %v9383_v59, 0.0  ;;  %vm9499_vm6 = vcmp.eq.s32.totalorder %v17059_v52, 1  ;;  %v9388_v52 = vld [vmem:[#allocation2 + $0x38] sm:$0xff] }
 0x6a8   :  { %v9194_v18 = vpack.c.bf16 %v9184_v33, %v9183_v56  ;;  %v9042_v31 = vadd.f32 %v10148_v12, %v8945_v44  ;;  %v9169_v55 = vadd.f32 %v16999_v43, %v9136_v48  ;;  %v9703_v38 = vunpack.c.l.bf16 %v9671_v2  ;;  %v10846_v2 = vld [vmem:[%s17192_s0 + $0x50] sm:$0xff] }
 0x6a9   :  { %v10150_v29 = vpop.f32.mrf.mxu0  ;;  %v9621_v12 = vunpack.c.l.bf16 %v10842_v46  ;;  %v9701_v48 = vunpack.c.l.bf16 %v9669_v47  ;;  %v9673_v59 = vrot.slane %v10846_v2, 4 }
 0x6aa   :  { %v10151_v42 = vadd.f32 %v10150_v29, %v10149_v10  ;;  %v9139_v4 = vadd.f32 %v9138_v21, %v9042_v31  ;;  %10340 = vmatmul.mubr.bf16.vlgmr.msra.gmra.mxu1 %v9194_v18  ;;  %v9185_v30 = vmax.f32 %v9169_v55, 0.0  ;;  %v17063_v32 = vpop.permute.xlu1 %9470  ;;  %v10844_v10 = vld [vmem:[%s17192_s0 + $0x14] sm:$0xff]  ;;  %v9509_v18 = vsel %vm9493_vm5, %v9381_v25, 0.0 }
 0x6ab   :  { %v10152_v37 = vpop.f32.mrf.mxu0  ;;  %v9670_v21 = vrot.slane %v10844_v10, 4  ;;  %vm9501_vm4 = vcmp.eq.s32.totalorder %v17063_v32, 1 }
 0x6ac   :  { %v9047_v26 = vadd.f32 %v10151_v42, %v16980_v54  ;;  %v9170_v0 = vadd.f32 %v16999_v43, %v9139_v4 }
 0x6ad   :  { %v10153_v61 = vpop.f32.mrf.mxu0 }
 0x6ae   :  { %v9144_v20 = vadd.f32 %v10313_v58, %v9047_v26  ;;  %v9186_v63 = vmax.f32 %v9170_v0, 0.0  ;;  %v10154_v35 = vadd.f32 %v10153_v61, %v10152_v37  ;;  %v17061_v58 = vpop.permute.xlu0 %9467  ;;  %v17067_v11 = vpop.permute.xlu1 %9476  ;;  %v9382_v26 = vld [vmem:[#allocation2 + $0x8] sm:$0xff]  ;;  %v9512_v0 = vsel %vm9496_vm0, %v9384_v8, 0.0 }
 0x6af   :  { %vm9500_vm12 = vcmp.eq.s32.totalorder %v17061_v58, 1  ;;  %v9705_v8 = vunpack.c.l.bf16 %v9673_v59  ;;  %vm9503_vm5 = vcmp.eq.s32.totalorder %v17067_v11, 1  ;;  %v9392_v11 = vld [vmem:[#allocation2 + $0x58] sm:$0xff] }
 0x6b0   :  { %v9050_v9 = vadd.f32 %v10154_v35, %v8953_v62  ;;  %v9195_v15 = vpack.c.bf16 %v9186_v63, %v9185_v30  ;;  %v9171_v17 = vadd.f32 %v16999_v43, %v9144_v20  ;;  %v9622_v35 = vunpack.c.l.bf16 %v10844_v10 }
 0x6b2   :  { %v9147_v51 = vadd.f32 %v10314_v36, %v9050_v9  ;;  %10343 = vmatprep.mubr.bf16.mxu1 %v9195_v15  ;;  %v9187_v57 = vmax.f32 %v9171_v17, 0.0  ;;  %v17071_v23 = vpop.permute.xlu1 %9482  ;;  %v10843_v36 = vld [vmem:[%s17192_s0 + $0x3c] sm:$0xff]  ;;  %v9702_v9 = vunpack.c.l.bf16 %v9670_v21  ;;  %v9510_v17 = vsel %vm9494_vm15, %v9382_v26, 0.0 }
 0x6b3   :  { %v9672_v6 = vrot.slane %v10843_v36, 4  ;;  %v9624_v4 = vunpack.c.l.bf16 %v10843_v36 }
 0x6b4   :  { %v9172_v3 = vadd.f32 %v16999_v43, %v9147_v51  ;;  %v17065_v43 = vpop.permute.xlu0 %9473 }
 0x6b5   :  { %v9704_v37 = vunpack.c.l.bf16 %v9672_v6 }
 0x6b6   :  { %v9188_v45 = vmax.f32 %v9172_v3, 0.0  ;;  %v17075_v22 = vpop.permute.xlu1 %9488 }
 0x6b8   :  { %v9196_v54 = vpack.c.bf16 %v9188_v45, %v9187_v57  ;;  %v17069_v24 = vpop.permute.xlu0 %9479 }
 0x6b9   :  { %vm9504_vm15 = vcmp.eq.s32.totalorder %v17069_v24, 1 }
 0x6ba   :  { %10344 = vmatmul.mubr.bf16.gmra.mxu1 %v9196_v54  ;;  %v9543_v60 = vpop.permute.xlu1 %9542 }
 0x6bb   :  { %vm9589_vm9 = vcmp.eq.s32.totalorder %v9543_v60, 1  ;;  %v10845_v60 = vld [vmem:[%s17192_s0 + $0x78] sm:$0xff] }
 0x6bc   :  { %v17073_v50 = vpop.permute.xlu0 %9485  ;;  %v9675_v28 = vrot.slane %v10845_v60, 4 }
 0x6be   :  { %v9549_v1 = vpop.permute.xlu1 %9548  ;;  %v9707_v25 = vunpack.c.l.bf16 %v9675_v28 }
 0x6bf   :  { %vm9591_vm8 = vcmp.eq.s32.totalorder %v9549_v1, 1  ;;  %v9627_v1 = vunpack.c.l.bf16 %v10845_v60 }
 0x6c0   :  { %v17077_v5 = vpop.permute.xlu0 %9491 }
 0x6c2   :  { %v9555_v45 = vpop.permute.xlu1 %9554 }
 0x6c3   :  { %vm9593_vm1 = vcmp.eq.s32.totalorder %v9555_v45, 1  ;;  %v9389_v45 = vld [vmem:[#allocation2 + $0x40] sm:$0xff] }
 0x6c4   :  { %v9546_v49 = vpop.permute.xlu0 %9545  ;;  %v9517_v59 = vsel %vm9501_vm4, %v9389_v45, 0.0 }
 0x6c5   :  { %vm9590_vm7 = vcmp.eq.s32.totalorder %v9546_v49, 1  ;;  %v9387_v49 = vld [vmem:[#allocation2 + $0x30] sm:$0xff] }
 0x6c6   :  { %v9561_v46 = vpop.permute.xlu1 %9560  ;;  %v9515_v36 = vsel %vm9499_vm6, %v9387_v49, 0.0  ;;  %v10851_v49 = vld [vmem:[%s17192_s0 + $0xdc] sm:$0xff]  ;;  %vm9507_vm6 = vcmp.eq.s32.totalorder %v17075_v22, 1 }
 0x6c7   :  { %vm9595_vm13 = vcmp.eq.s32.totalorder %v9561_v46, 1  ;;  %v9396_v22 = vld [vmem:[#allocation2 + $0x78] sm:$0xff] }
 0x6c8   :  { %v9552_v56 = vpop.permute.xlu0 %9551 }
 0x6c9   :  { %vm9592_vm10 = vcmp.eq.s32.totalorder %v9552_v56, 1  ;;  %v10848_v56 = vld [vmem:[%s17192_s0 + $0x64] sm:$0xff] }
 0x6cc   :  { %v9558_v41 = vpop.permute.xlu0 %9557 }
 0x6cd   :  { %vm9594_vm3 = vcmp.eq.s32.totalorder %v9558_v41, 1 }
 0x6d0   :  { %v9564_v6 = vpop.permute.xlu0 %9563 }
 0x6d1   :  { %vm9596_vm2 = vcmp.eq.s32.totalorder %v9564_v6, 1 }
 0x74a   :  { %v10333_v40 = vpop.f32.mrf.mxu0 }
 0x74b   :  { %v9311_v44 = vadd.f32 %v10333_v40, %v17085_v34  ;;  %v10847_v40 = vld [vmem:[%s17192_s0 + $0x8c] sm:$0xff] }
 0x74c   :  { %v9302_v33 = vpop.f32.mrf.mxu0 }
 0x74d   :  { %v9607_v31 = vsel %vm9591_vm8, %v9311_v44, %v9511_v7  ;;  %v9303_v53 = vadd.f32 %v17085_v34, %v9302_v33  ;;  %v9625_v44 = vunpack.c.l.bf16 %v10846_v2  ;;  %v9674_v33 = vrot.slane %v10848_v56, 4 }
 0x74e   :  { %v9639_v29 = vadd.f32 %v9623_v19, %v9607_v31  ;;  %v9719_v55 = vsub.f32 %v9703_v38, %v9607_v31  ;;  %v10334_v42 = vpop.f32.mrf.mxu0  ;;  %v9676_v19 = vrot.slane %v10847_v40, 4  ;;  %v9513_v38 = vsel %vm9497_vm11, %v9385_v16, 0.0 }
 0x74f   :  { %v9605_v62 = vsel %vm9589_vm9, %v9303_v53, %v9509_v18  ;;  %v9314_v61 = vadd.f32 %v10334_v42, %v17085_v34  ;;  %v9628_v31 = vunpack.c.l.bf16 %v10847_v40  ;;  %v9680_v2 = vrot.slane %v10851_v49, 4 }
 0x750   :  { %9655 = vst [vmem:[#allocation10 + $0x10] sm:$0xff] %v9639_v29  ;;  %9735 = vst [vmem:[#allocation11 + $0x10] sm:$0xff] %v9719_v55  ;;  %v9637_v30 = vadd.f32 %v9621_v12, %v9605_v62  ;;  %v9717_v20 = vsub.f32 %v9701_v48, %v9605_v62  ;;  %v9305_v63 = vpop.f32.mrf.mxu0  ;;  %v9708_v53 = vunpack.c.l.bf16 %v9676_v19  ;;  %v9386_v29 = vld [vmem:[#allocation2 + $0x28] sm:$0xff]  ;;  %v9516_v55 = vsel %vm9500_vm12, %v9388_v52, 0.0  ;;  %v10852_v19 = vld [vmem:[%s17192_s0 + $0xb4] sm:$0xff] }
 0x751   :  { %v9608_v15 = vsel %vm9592_vm10, %v9314_v61, %v9512_v0  ;;  %v9306_v51 = vadd.f32 %v17085_v34, %v9305_v63  ;;  %v9626_v62 = vunpack.c.l.bf16 %v10848_v56  ;;  %v9706_v61 = vunpack.c.l.bf16 %v9674_v33  ;;  %v9390_v56 = vld [vmem:[#allocation2 + $0x48] sm:$0xff] }
 0x752   :  { %9653 = vst [vmem:[#allocation10] sm:$0xff] %v9637_v30  ;;  %9733 = vst [vmem:[#allocation11] sm:$0xff] %v9717_v20  ;;  %v9640_v3 = vadd.f32 %v9624_v4, %v9608_v15  ;;  %v9720_v57 = vsub.f32 %v9704_v37, %v9608_v15  ;;  %v9514_v63 = vsel %vm9498_vm14, %v9386_v29, 0.0  ;;  %vm9502_vm8 = vcmp.eq.s32.totalorder %v17065_v43, 1  ;;  %v10853_v43 = vld [vmem:[%s17192_s0 + $0x118] sm:$0xff] }
 0x753   :  { %v9606_v54 = vsel %vm9590_vm7, %v9306_v51, %v9510_v17  ;;  %v9520_v33 = vsel %vm9504_vm15, %v9392_v11, 0.0  ;;  %vm9505_vm11 = vcmp.eq.s32.totalorder %v17071_v23, 1  ;;  %vm9508_vm12 = vcmp.eq.s32.totalorder %v17077_v5, 1 }
 0x754   :  { %9656 = vst [vmem:[#allocation10 + $0x18] sm:$0xff] %v9640_v3  ;;  %9736 = vst [vmem:[#allocation11 + $0x18] sm:$0xff] %v9720_v57  ;;  %v9638_v14 = vadd.f32 %v9622_v35, %v9606_v54  ;;  %v9718_v27 = vsub.f32 %v9702_v9, %v9606_v54  ;;  %v9567_v9 = vpop.permute.xlu1 %9566  ;;  %v9570_v3 = vpop.permute.xlu0 %9569  ;;  %v10849_v57 = vld [vmem:[%s17192_s0 + $0xc8] sm:$0xff]  ;;  %v9391_v54 = vld [vmem:[#allocation2 + $0x50] sm:$0xff]  ;;  %vm9506_vm14 = vcmp.eq.s32.totalorder %v17073_v50, 1 }
 0x755   :  { %v9679_v13 = vrot.slane %v10849_v57, 4  ;;  %v9631_v28 = vunpack.c.l.bf16 %v10849_v57  ;;  %v9519_v46 = vsel %vm9503_vm5, %v9391_v54, 0.0  ;;  %vm9597_vm9 = vcmp.eq.s32.totalorder %v9567_v9, 1 }
 0x756   :  { %9654 = vst [vmem:[#allocation10 + $0x8] sm:$0xff] %v9638_v14  ;;  %9734 = vst [vmem:[#allocation11 + $0x8] sm:$0xff] %v9718_v27  ;;  %v10850_v14 = vld [vmem:[%s17192_s0 + $0xa0] sm:$0xff]  ;;  %vm9598_vm7 = vcmp.eq.s32.totalorder %v9570_v3, 1  ;;  %v10855_v3 = vld [vmem:[%s17192_s0 + $0x12c] sm:$0xff] }
 0x757   :  { %v9677_v27 = vrot.slane %v10850_v14, 4  ;;  %v9711_v16 = vunpack.c.l.bf16 %v9679_v13  ;;  %v9684_v57 = vrot.slane %v10855_v3, 4 }
 0x758   :  { %v9573_v41 = vpop.permute.xlu1 %9572 }
 0x759   :  { %vm9599_vm0 = vcmp.eq.s32.totalorder %v9573_v41, 1  ;;  %v9709_v40 = vunpack.c.l.bf16 %v9677_v27  ;;  %v9716_v11 = vunpack.c.l.bf16 %v9684_v57 }
 0x75a   :  { %v10337_v47 = vpop.f32.mrf.mxu0 }
 0x75b   :  { %v9327_v39 = vadd.f32 %v10337_v47, %v17085_v34  ;;  %v9576_v47 = vpop.permute.xlu0 %9575 }
 0x75c   :  { %v9318_v7 = vpop.f32.mrf.mxu0  ;;  %vm9600_vm10 = vcmp.eq.s32.totalorder %v9576_v47, 1  ;;  %v9394_v47 = vld [vmem:[#allocation2 + $0x68] sm:$0xff] }
 0x75d   :  { %v9611_v12 = vsel %vm9595_vm13, %v9327_v39, %v9515_v36  ;;  %v9319_v48 = vadd.f32 %v17085_v34, %v9318_v7  ;;  %v9522_v5 = vsel %vm9506_vm14, %v9394_v47, 0.0 }
 0x75e   :  { %v9643_v10 = vadd.f32 %v9627_v1, %v9611_v12  ;;  %v9723_v21 = vsub.f32 %v9707_v25, %v9611_v12  ;;  %v10338_v18 = vpop.f32.mrf.mxu0  ;;  %v9629_v25 = vunpack.c.l.bf16 %v10850_v14 }
 0x75f   :  { %v9609_v42 = vsel %vm9593_vm1, %v9319_v48, %v9513_v38  ;;  %v9330_v4 = vadd.f32 %v10338_v18, %v17085_v34  ;;  %v9678_v38 = vrot.slane %v10852_v19, 4 }
 0x760   :  { %9659 = vst [vmem:[#allocation10 + $0x30] sm:$0xff] %v9643_v10  ;;  %9739 = vst [vmem:[#allocation11 + $0x30] sm:$0xff] %v9723_v21  ;;  %v9641_v37 = vadd.f32 %v9625_v44, %v9609_v42  ;;  %v9721_v26 = vsub.f32 %v9705_v8, %v9609_v42  ;;  %v9321_v0 = vpop.f32.mrf.mxu0  ;;  %v9632_v44 = vunpack.c.l.bf16 %v10851_v49  ;;  %v9712_v8 = vunpack.c.l.bf16 %v9680_v2 }
 0x761   :  { %v9612_v30 = vsel %vm9596_vm2, %v9330_v4, %v9516_v55  ;;  %v9322_v20 = vadd.f32 %v17085_v34, %v9321_v0  ;;  %v9518_v42 = vsel %vm9502_vm8, %v9390_v56, 0.0 }
 0x762   :  { %9657 = vst [vmem:[#allocation10 + $0x20] sm:$0xff] %v9641_v37  ;;  %9737 = vst [vmem:[#allocation11 + $0x20] sm:$0xff] %v9721_v26  ;;  %v9644_v58 = vadd.f32 %v9628_v31, %v9612_v30  ;;  %v9724_v35 = vsub.f32 %v9708_v53, %v9612_v30  ;;  %v9630_v31 = vunpack.c.l.bf16 %v10852_v19  ;;  %v9710_v53 = vunpack.c.l.bf16 %v9678_v38  ;;  %v9579_v37 = vpop.permute.xlu1 %9578 }
 0x763   :  { %v9610_v15 = vsel %vm9594_vm3, %v9322_v20, %v9514_v63  ;;  %v9683_v30 = vrot.slane %v10853_v43, 4  ;;  %v9393_v20 = vld [vmem:[#allocation2 + $0x60] sm:$0xff]  ;;  %v9395_v63 = vld [vmem:[#allocation2 + $0x70] sm:$0xff]  ;;  %vm9601_vm1 = vcmp.eq.s32.totalorder %v9579_v37, 1 }
 0x764   :  { %9660 = vst [vmem:[#allocation10 + $0x38] sm:$0xff] %v9644_v58  ;;  %9740 = vst [vmem:[#allocation11 + $0x38] sm:$0xff] %v9724_v35  ;;  %v9642_v51 = vadd.f32 %v9626_v62, %v9610_v15  ;;  %v9722_v17 = vsub.f32 %v9706_v61, %v9610_v15  ;;  %v17153_v61 = vpop.permute.xlu0 %9581  ;;  %v10854_v58 = vld [vmem:[%s17192_s0 + $0xf0] sm:$0xff]  ;;  %v9521_v13 = vsel %vm9505_vm11, %v9393_v20, 0.0  ;;  %v9523_v45 = vsel %vm9507_vm6, %v9395_v63, 0.0 }
 0x765   :  { %v9681_v35 = vrot.slane %v10854_v58, 4  ;;  %v9633_v27 = vunpack.c.l.bf16 %v10854_v58  ;;  %vm9602_vm3 = vcmp.eq.s32.totalorder %v17153_v61, 1 }
 0x766   :  { %9658 = vst [vmem:[#allocation10 + $0x28] sm:$0xff] %v9642_v51  ;;  %9738 = vst [vmem:[#allocation11 + $0x28] sm:$0xff] %v9722_v17  ;;  %v9585_v9 = vpop.permute.xlu1 %9584  ;;  %v9635_v51 = vunpack.c.l.bf16 %v10853_v43  ;;  %v9715_v17 = vunpack.c.l.bf16 %v9683_v30 }
 0x767   :  { %vm9603_vm13 = vcmp.eq.s32.totalorder %v9585_v9, 1  ;;  %v9713_v41 = vunpack.c.l.bf16 %v9681_v35 }
 0x768   :  { %v9588_v54 = vpop.permute.xlu0 %9587 }
 0x769   :  { %vm9604_vm2 = vcmp.eq.s32.totalorder %v9588_v54, 1 }
 0x76a   :  { %v10341_v60 = vpop.f32.mrf.mxu1 }
 0x76b   :  { %v9343_v32 = vadd.f32 %v10341_v60, %v17085_v34  ;;  %v10856_v60 = vld [vmem:[%s17192_s0 + $0x104] sm:$0xff]  ;;  %s10997_s0 = smov [#allocation10]  }
 0x76c   :  { %v9334_v1 = vpop.f32.mrf.mxu1  ;;  %s9754_s11 = sshll.u32 %s10997_s0, 4  ;;  %s9755_s11 = int_to_ptr.vmem [resolvable:$true] %s9754_s11 }
 0x76d   :  { %v9615_v36 = vsel %vm9599_vm0, %v9343_v32, %v9519_v46  ;;  %v9335_v39 = vadd.f32 %v17085_v34, %v9334_v1  ;;  %v9636_v32 = vunpack.c.l.bf16 %v10855_v3  ;;  %v9524_v1 = vsel %vm9508_vm12, %v9396_v22, 0.0  ;;  %s10937_s16 = scalar_lea.vmem %s9755_s11, 2048  ;;  %p10942_p7 = scmp.lt.s32.totalorder %s9755_s11, %s9755_s11 }
 0x76e   :  { %v9647_v52 = vadd.f32 %v9631_v28, %v9615_v36  ;;  %v9727_v6 = vsub.f32 %v9711_v16, %v9615_v36  ;;  %v10342_v7 = vpop.f32.mrf.mxu1  ;;  %v9682_v28 = vrot.slane %v10856_v60, 4  ;;  %p10938_p6 = scmp.ne.s32.totalorder %s9755_s11, %s10937_s16  ;;  %p10943_p8 = scmp.lt.s32.totalorder %s10937_s16, %s10937_s16 }
 0x76f   :  { %v9613_v12 = vsel %vm9597_vm9, %v9335_v39, %v9517_v59  ;;  %v9346_v48 = vadd.f32 %v10342_v7, %v17085_v34  ;;  %v9634_v39 = vunpack.c.l.bf16 %v10856_v60 }
 0x770   :  { %9663 = vst [vmem:[#allocation10 + $0x50] sm:$0xff] %v9647_v52  ;;  %9743 = vst [vmem:[#allocation11 + $0x50] sm:$0xff] %v9727_v6  ;;  %v9645_v10 = vadd.f32 %v9629_v25, %v9613_v12  ;;  %v9725_v21 = vsub.f32 %v9709_v40, %v9613_v12  ;;  %v9337_v18 = vpop.f32.mrf.mxu1  ;;  %v9714_v52 = vunpack.c.l.bf16 %v9682_v28  ;;  %p10944_p9 = por %p10943_p8, %p10942_p7 }
 0x771   :  { %v9616_v29 = vsel %vm9600_vm10, %v9346_v48, %v9520_v33  ;;  %v9338_v55 = vadd.f32 %v17085_v34, %v9337_v18 }
 0x772   :  { %9661 = vst [vmem:[#allocation10 + $0x40] sm:$0xff] %v9645_v10  ;;  %9741 = vst [vmem:[#allocation11 + $0x40] sm:$0xff] %v9725_v21  ;;  %v9648_v24 = vadd.f32 %v9632_v44, %v9616_v29  ;;  %v9728_v4 = vsub.f32 %v9712_v8, %v9616_v29  ;;  %p10945_p10 = pnand %p10944_p9, %p10938_p6 }
 0x773   :  { %v9614_v26 = vsel %vm9598_vm7, %v9338_v55, %v9518_v42 }
 0x774   :  { %9664 = vst [vmem:[#allocation10 + $0x58] sm:$0xff] %v9648_v24  ;;  %9744 = vst [vmem:[#allocation11 + $0x58] sm:$0xff] %v9728_v4  ;;  %v9646_v0 = vadd.f32 %v9630_v31, %v9614_v26  ;;  %v9726_v62 = vsub.f32 %v9710_v53, %v9614_v26 }
 0x776   :  { %9662 = vst [vmem:[#allocation10 + $0x48] sm:$0xff] %v9646_v0  ;;  %9742 = vst [vmem:[#allocation11 + $0x48] sm:$0xff] %v9726_v62 }
 0x77a   :  { %v10345_v15 = vpop.f32.mrf.mxu1 }
 0x77b   :  { %v9359_v23 = vadd.f32 %v10345_v15, %v17085_v34 }
 0x77c   :  { %v9350_v14 = vpop.f32.mrf.mxu1 }
 0x77d   :  { %v9619_v16 = vsel %vm9603_vm13, %v9359_v23, %v9523_v45  ;;  %v9351_v49 = vadd.f32 %v17085_v34, %v9350_v14 }
 0x77e   :  { %v9651_v2 = vadd.f32 %v9635_v51, %v9619_v16  ;;  %v9731_v59 = vsub.f32 %v9715_v17, %v9619_v16  ;;  %v10346_v46 = vpop.f32.mrf.mxu1 }
 0x77f   :  { %v9617_v25 = vsel %vm9601_vm1, %v9351_v49, %v9521_v13  ;;  %v9362_v40 = vadd.f32 %v10346_v46, %v17085_v34 }
 0x780   :  { %9667 = vst [vmem:[#allocation10 + $0x70] sm:$0xff] %v9651_v2  ;;  %9747 = vst [vmem:[#allocation11 + $0x70] sm:$0xff] %v9731_v59  ;;  %v9649_v19 = vadd.f32 %v9633_v27, %v9617_v25  ;;  %v9729_v38 = vsub.f32 %v9713_v41, %v9617_v25  ;;  %v9353_v36 = vpop.f32.mrf.mxu1 }
 0x781   :  { %v9620_v6 = vsel %vm9604_vm2, %v9362_v40, %v9524_v1  ;;  %v9354_v7 = vadd.f32 %v17085_v34, %v9353_v36 }
 0x782   :  { %9665 = vst [vmem:[#allocation10 + $0x60] sm:$0xff] %v9649_v19  ;;  %9745 = vst [vmem:[#allocation11 + $0x60] sm:$0xff] %v9729_v38  ;;  %v9652_v44 = vadd.f32 %v9636_v32, %v9620_v6  ;;  %v9732_v8 = vsub.f32 %v9716_v11, %v9620_v6 }
 0x783   :  { %v9618_v56 = vsel %vm9602_vm3, %v9354_v7, %v9522_v5 }
 0x784   :  { %9668 = vst [vmem:[#allocation10 + $0x78] sm:$0xff] %v9652_v44  ;;  %9748 = vst [vmem:[#allocation11 + $0x78] sm:$0xff] %v9732_v8  ;;  %v9650_v33 = vadd.f32 %v9634_v39, %v9618_v56  ;;  %v9730_v12 = vsub.f32 %v9714_v52, %v9618_v56 }
 0x786   :  { %9666 = vst [vmem:[#allocation10 + $0x68] sm:$0xff] %v9650_v33  ;;  %9746 = vst [vmem:[#allocation11 + $0x68] sm:$0xff] %v9730_v12 }
 0x787   :  { %10948 = shalt.err (!%p10945_p10)
}
 0x788   :  { %9760 = dma.vmem_to_hbm [thread:$0]  %s9755_s11, 2048, %s17204_s12, [#allocation4], %s10991_s18, %s10991_s18, %s10992_s19  }
 0x789   :  { %s10957_s20 = scalar_lea.vmem %s9767_s15, 2048  ;;  %p10962_p12 = scmp.lt.s32.totalorder %s9767_s15, %s9767_s15 }
 0x78a   :  { %p10958_p11 = scmp.ne.s32.totalorder %s9767_s15, %s10957_s20  ;;  %p10963_p13 = scmp.lt.s32.totalorder %s10957_s20, %s10957_s20 }
 0x78c   :  { %p10964_p0 = por %p10963_p13, %p10962_p12 }
 0x78e   :  { %p10965_p1 = pnand %p10964_p0, %p10958_p11 }
 0x790   :  { %10968 = shalt.err (!%p10965_p1)
}
 0x791   :  { %9772 = dma.vmem_to_hbm [thread:$0]  %s9767_s15, 2048, %s17205_s13, [#allocation12], %s10991_s18, %s10991_s18, %s10992_s19  }
 0x792   :  { %10983 = dma.done.wait [#allocation4], 2048  }
 0x793   :  { %10984 = vsyncadd [#allocation4], 4294965248 }
 0x794   :  { %10985 = dma.done.wait [#allocation12], 2048  }
 0x795   :  { %10986 = vsyncadd [#allocation12], 4294965248 }
 0x796   :  { %9779 = vsyncpa [#allocation3], 1 }
 0x797   :  { %9780 = vsyncpa [#allocation6], 1 }
 0x798   :  { %9781 = vsyncpa [#allocation9], 1 }
 0x799   :  { %9782 = vsyncpa [#allocation4], 1 }
 0x79a   :  { %9783 = vsyncpa [#allocation12], 1 }

</bundles_post_ra>
